<compile_context>
chip_gen: v5e
topology: v5e:2x2
jax: 0.10.0
libtpu: 0.0.40
codegen_flags: <defaults>
</compile_context>

<pallas_src>
import functools

import jax
import jax.numpy as jnp
from jax.experimental import pallas as pl
from jax.experimental.pallas import tpu as pltpu


def _round_up(a, b):
    return -(-a // b) * b


def _divisors(n):
    ds = set()
    i = 1
    while i * i <= n:
        if n % i == 0:
            ds.add(i)
            ds.add(n // i)
        i += 1
    return sorted(ds)


def _sublane_multiple(itemsize):
    # Rows per (sublane x 128-lane) vreg tile: 8 for 4-byte, 16 for 2-byte,
    # 32 for 1-byte dtypes.
    return max(8, 32 // max(1, itemsize))


def _pick_fold(total_rows, w, s):
    """Consecutive (N*C*H) rows folded into the lane dimension.

    Chosen as a divisor of total_rows so both the folded input (fold*W lanes)
    and folded output (fold*S*S*W lanes) views are free row-major re-views.
    Target: output block >= 512 lanes while keeping >= 8 rows and a sane
    per-row width / store-unroll factor.
    """
    out_per_row = s * s * w
    best = 1
    for f in _divisors(total_rows):
        if f > 1:
            if f > 64 or f * out_per_row > 4096:
                break
            if total_rows // f < 8 and best * out_per_row >= 128:
                break
        best = f
        if f * out_per_row >= 512:
            break
    return best


def _pick_row_block(m_rows, k_in, k_out, itemsize):
    """Rows per grid step for the (m_rows, k_in) -> (m_rows, k_out) stream."""
    sub = _sublane_multiple(itemsize)
    in_row = _round_up(k_in, 128) * itemsize     # lane-padded VMEM bytes / row
    out_row = _round_up(k_out, 128) * itemsize
    total_bytes = m_rows * (in_row + out_row)

    # Tiny problems: one grid step (the ~0.35us/step overhead dominates).
    if total_bytes <= (1 << 20) or m_rows <= sub:
        return m_rows

    # ~1 MiB of output per block; >=4 steps once the problem is a few MiB so
    # the software pipeline can overlap DMA-in / compute / DMA-out; an even
    # step count so both v7x TensorCores get work on the "parallel" axis.
    steps = max(2, -(-(m_rows * out_row) // (1 << 20)))
    if total_bytes > (4 << 20):
        steps = max(steps, 4)
    steps += steps % 2
    mb = _round_up(-(-m_rows // steps), sub)

    # Keep the double-buffered in+out block well under v7x's 32 MiB scoped VMEM.
    max_mb = max(sub, ((24 << 20) // (2 * (in_row + out_row))) // sub * sub)
    mb = min(mb, max_mb, m_rows)

    # Prefer the largest divisor of m_rows near the target (no ragged trailing
    # block); otherwise keep the target and let Pallas mask the tail.
    best_div = 0
    for d in _divisors(m_rows):
        if d <= mb and d % sub == 0:
            best_div = max(best_div, d)
    if best_div >= max(sub, mb // 2):
        mb = best_div
    return mb


def _nearest_up_kernel(x_ref, o_ref, *, scale, fold, w):
    """x_ref: (Mb, fold*w) -> o_ref: (Mb, fold*scale*scale*w).

    Folded-row mapping: input lane g*w + j (g-th original H-row, column j) maps
    to output lanes (g*scale + s)*wo + scale*j + t for s, t in [0, scale).
    """
    x = x_ref[...]
    if scale == 1:
        o_ref[...] = x
        return
    mb, k = x.shape
    wo = w * scale
    # W-interleave of the whole lane-dense block in one shot:
    #   y[:, g*wo + scale*j + t] = x[:, g*w + j]
    y = jnp.broadcast_to(x[:, :, None], (mb, k, scale)).reshape(mb, k * scale)
    # TODO(synk): for bf16/fp16 & scale==2 this interleave could use
    # pltpu.pack_elementwise / pltpu.bitcast (VPU-only), and for fp32 a 0/1
    # replication matmul on the idle MXU; only worth it if a bundle dump shows
    # the XLU relayout (not HBM) is the binding slot.
    # H-replication: store each original row's upsampled lanes `scale` times at
    # static lane offsets. The HBM-facing output block stays one dense
    # (Mb, fold*scale*wo) tile; only these in-VMEM stores are sub-128-lane.
    for g in range(fold):
        yg = y[:, g * wo:(g + 1) * wo]
        for s in range(scale):
            off = (g * scale + s) * wo
            o_ref[:, off:off + wo] = yg


def my_upsample(x, scale_factor=2):
    """Pallas equivalent of MyUpsample(scale_factor, mode='nearest') on NCHW x."""
    s = int(scale_factor)
    assert s == scale_factor and s >= 1, "only positive integer scale_factor supported"
    n, c, h, w = x.shape
    itemsize = jnp.dtype(x.dtype).itemsize

    total_rows = n * c * h
    fold = _pick_fold(total_rows, w, s)
    m = total_rows // fold
    k_in = fold * w
    k_out = fold * s * s * w

    x2 = x.reshape(m, k_in)                       # free row-major re-view
    mb = _pick_row_block(m, k_in, k_out, itemsize)
    grid = (pl.cdiv(m, mb),)

    sub = _sublane_multiple(itemsize)
    block_bytes = _round_up(mb, sub) * (
        _round_up(k_in, 128) + _round_up(k_out, 128)) * itemsize
    vmem_limit = int(min(32 << 20, max(8 << 20, 4 * block_bytes)))

    kernel = functools.partial(_nearest_up_kernel, scale=s, fold=fold, w=w)
    y2 = pl.pallas_call(
        kernel,
        out_shape=jax.ShapeDtypeStruct((m, k_out), x.dtype),
        grid=grid,
        in_specs=[pl.BlockSpec((mb, k_in), lambda i: (i, 0))],
        out_specs=pl.BlockSpec((mb, k_out), lambda i: (i, 0)),
        compiler_params=pltpu.CompilerParams(
            dimension_semantics=("parallel",),
            vmem_limit_bytes=vmem_limit,
        ),
        cost_estimate=pl.CostEstimate(
            flops=0,
            transcendentals=0,
            bytes_accessed=int((1 + s * s) * n * c * h * w * itemsize),
        ),
    )(x2)
    # (M, fold*S*S*W) is exactly the row-major layout of (N, C, H*S, W*S).
    return y2.reshape(n, c, h * s, w * s)


if __name__ == "__main__":
    key = jax.random.PRNGKey(0)
    # Small NCHW input consistent with the module's forward (conv feature map).
    x = jax.random.normal(key, (2, 4, 16, 16), dtype=jnp.float32)

    y = jax.block_until_ready(my_upsample(x, scale_factor=2))

    # Reference: plain-JAX nearest-neighbor upsample (matches F.interpolate nearest).
    ref = jnp.repeat(jnp.repeat(x, 2, axis=2), 2, axis=3)
    assert y.shape == (2, 4, 32, 32), y.shape
    assert bool(jnp.array_equal(y, ref)), "mismatch vs reference nearest upsample"

    print("KERNEL_OK")
</pallas_src>

<mosaic_0001>
module attributes {stable_mosaic.version = 11 : i64} {
  func.func @_nearest_up_kernel(%arg0: i32, %arg1: memref<16x128xf32, #tpu.memory_space<vmem>>, %arg2: memref<16x512xf32, #tpu.memory_space<vmem>>) attributes {dimension_semantics = [#tpu.dimension_semantics<parallel>], iteration_bounds = array<i64: 1>, scalar_prefetch = 0 : i64, scratch_operands = 0 : i64, tpu.core_type = #tpu.core_type<tc>, window_params = [{transform_indices = @transform_0, window_bounds = array<i64: 16, 128>}, {transform_indices = @transform_1, window_bounds = array<i64: 16, 512>}]} {
    %c0 = arith.constant 0 : index
    %c0_0 = arith.constant 0 : index
    %0 = vector.load %arg1[%c0, %c0_0] : memref<16x128xf32, #tpu.memory_space<vmem>>, vector<16x128xf32>
    %1 = vector.shape_cast %0 : vector<16x128xf32> to vector<16x128x1xf32>
    %2 = vector.shape_cast %1 : vector<16x128x1xf32> to vector<16x128x1xf32>
    %3 = vector.broadcast %2 : vector<16x128x1xf32> to vector<16x128x2xf32>
    %4 = vector.shape_cast %3 : vector<16x128x2xf32> to vector<16x256xf32>
    %5 = vector.extract_strided_slice %4 {offsets = [0, 0], sizes = [16, 32], strides = [1, 1]} : vector<16x256xf32> to vector<16x32xf32>
    %c0_1 = arith.constant 0 : index
    %c0_2 = arith.constant 0 : index
    %6 = vector.load %arg2[%c0_1, %c0_2] : memref<16x512xf32, #tpu.memory_space<vmem>>, vector<16x32xf32>
    tpu.vector_store %arg2[%c0_1, %c0_2], %5 {strides = array<i32>} : memref<16x512xf32, #tpu.memory_space<vmem>>, vector<16x32xf32>,
    %c0_3 = arith.constant 0 : index
    %c32 = arith.constant 32 : index
    %7 = vector.load %arg2[%c0_3, %c32] : memref<16x512xf32, #tpu.memory_space<vmem>>, vector<16x32xf32>
    tpu.vector_store %arg2[%c0_3, %c32], %5 {strides = array<i32>} : memref<16x512xf32, #tpu.memory_space<vmem>>, vector<16x32xf32>,
    %8 = vector.extract_strided_slice %4 {offsets = [0, 32], sizes = [16, 32], strides = [1, 1]} : vector<16x256xf32> to vector<16x32xf32>
    %c0_4 = arith.constant 0 : index
    %c64 = arith.constant 64 : index
    %9 = vector.load %arg2[%c0_4, %c64] : memref<16x512xf32, #tpu.memory_space<vmem>>, vector<16x32xf32>
    tpu.vector_store %arg2[%c0_4, %c64], %8 {strides = array<i32>} : memref<16x512xf32, #tpu.memory_space<vmem>>, vector<16x32xf32>,
    %c0_5 = arith.constant 0 : index
    %c96 = arith.constant 96 : index
    %10 = vector.load %arg2[%c0_5, %c96] : memref<16x512xf32, #tpu.memory_space<vmem>>, vector<16x32xf32>
    tpu.vector_store %arg2[%c0_5, %c96], %8 {strides = array<i32>} : memref<16x512xf32, #tpu.memory_space<vmem>>, vector<16x32xf32>,
    %11 = vector.extract_strided_slice %4 {offsets = [0, 64], sizes = [16, 32], strides = [1, 1]} : vector<16x256xf32> to vector<16x32xf32>
    %c0_6 = arith.constant 0 : index
    %c128 = arith.constant 128 : index
    %12 = vector.load %arg2[%c0_6, %c128] : memref<16x512xf32, #tpu.memory_space<vmem>>, vector<16x32xf32>
    tpu.vector_store %arg2[%c0_6, %c128], %11 {strides = array<i32>} : memref<16x512xf32, #tpu.memory_space<vmem>>, vector<16x32xf32>,
    %c0_7 = arith.constant 0 : index
    %c160 = arith.constant 160 : index
    %13 = vector.load %arg2[%c0_7, %c160] : memref<16x512xf32, #tpu.memory_space<vmem>>, vector<16x32xf32>
    tpu.vector_store %arg2[%c0_7, %c160], %11 {strides = array<i32>} : memref<16x512xf32, #tpu.memory_space<vmem>>, vector<16x32xf32>,
    %14 = vector.extract_strided_slice %4 {offsets = [0, 96], sizes = [16, 32], strides = [1, 1]} : vector<16x256xf32> to vector<16x32xf32>
    %c0_8 = arith.constant 0 : index
    %c192 = arith.constant 192 : index
    %15 = vector.load %arg2[%c0_8, %c192] : memref<16x512xf32, #tpu.memory_space<vmem>>, vector<16x32xf32>
    tpu.vector_store %arg2[%c0_8, %c192], %14 {strides = array<i32>} : memref<16x512xf32, #tpu.memory_space<vmem>>, vector<16x32xf32>,
    %c0_9 = arith.constant 0 : index
    %c224 = arith.constant 224 : index
    %16 = vector.load %arg2[%c0_9, %c224] : memref<16x512xf32, #tpu.memory_space<vmem>>, vector<16x32xf32>
    tpu.vector_store %arg2[%c0_9, %c224], %14 {strides = array<i32>} : memref<16x512xf32, #tpu.memory_space<vmem>>, vector<16x32xf32>,
    %17 = vector.extract_strided_slice %4 {offsets = [0, 128], sizes = [16, 32], strides = [1, 1]} : vector<16x256xf32> to vector<16x32xf32>
    %c0_10 = arith.constant 0 : index
    %c256 = arith.constant 256 : index
    %18 = vector.load %arg2[%c0_10, %c256] : memref<16x512xf32, #tpu.memory_space<vmem>>, vector<16x32xf32>
    tpu.vector_store %arg2[%c0_10, %c256], %17 {strides = array<i32>} : memref<16x512xf32, #tpu.memory_space<vmem>>, vector<16x32xf32>,
    %c0_11 = arith.constant 0 : index
    %c288 = arith.constant 288 : index
    %19 = vector.load %arg2[%c0_11, %c288] : memref<16x512xf32, #tpu.memory_space<vmem>>, vector<16x32xf32>
    tpu.vector_store %arg2[%c0_11, %c288], %17 {strides = array<i32>} : memref<16x512xf32, #tpu.memory_space<vmem>>, vector<16x32xf32>,
    %20 = vector.extract_strided_slice %4 {offsets = [0, 160], sizes = [16, 32], strides = [1, 1]} : vector<16x256xf32> to vector<16x32xf32>
    %c0_12 = arith.constant 0 : index
    %c320 = arith.constant 320 : index
    %21 = vector.load %arg2[%c0_12, %c320] : memref<16x512xf32, #tpu.memory_space<vmem>>, vector<16x32xf32>
    tpu.vector_store %arg2[%c0_12, %c320], %20 {strides = array<i32>} : memref<16x512xf32, #tpu.memory_space<vmem>>, vector<16x32xf32>,
    %c0_13 = arith.constant 0 : index
    %c352 = arith.constant 352 : index
    %22 = vector.load %arg2[%c0_13, %c352] : memref<16x512xf32, #tpu.memory_space<vmem>>, vector<16x32xf32>
    tpu.vector_store %arg2[%c0_13, %c352], %20 {strides = array<i32>} : memref<16x512xf32, #tpu.memory_space<vmem>>, vector<16x32xf32>,
    %23 = vector.extract_strided_slice %4 {offsets = [0, 192], sizes = [16, 32], strides = [1, 1]} : vector<16x256xf32> to vector<16x32xf32>
    %c0_14 = arith.constant 0 : index
    %c384 = arith.constant 384 : index
    %24 = vector.load %arg2[%c0_14, %c384] : memref<16x512xf32, #tpu.memory_space<vmem>>, vector<16x32xf32>
    tpu.vector_store %arg2[%c0_14, %c384], %23 {strides = array<i32>} : memref<16x512xf32, #tpu.memory_space<vmem>>, vector<16x32xf32>,
    %c0_15 = arith.constant 0 : index
    %c416 = arith.constant 416 : index
    %25 = vector.load %arg2[%c0_15, %c416] : memref<16x512xf32, #tpu.memory_space<vmem>>, vector<16x32xf32>
    tpu.vector_store %arg2[%c0_15, %c416], %23 {strides = array<i32>} : memref<16x512xf32, #tpu.memory_space<vmem>>, vector<16x32xf32>,
    %26 = vector.extract_strided_slice %4 {offsets = [0, 224], sizes = [16, 32], strides = [1, 1]} : vector<16x256xf32> to vector<16x32xf32>
    %c0_16 = arith.constant 0 : index
    %c448 = arith.constant 448 : index
    %27 = vector.load %arg2[%c0_16, %c448] : memref<16x512xf32, #tpu.memory_space<vmem>>, vector<16x32xf32>
    tpu.vector_store %arg2[%c0_16, %c448], %26 {strides = array<i32>} : memref<16x512xf32, #tpu.memory_space<vmem>>, vector<16x32xf32>,
    %c0_17 = arith.constant 0 : index
    %c480 = arith.constant 480 : index
    %28 = vector.load %arg2[%c0_17, %c480] : memref<16x512xf32, #tpu.memory_space<vmem>>, vector<16x32xf32>
    tpu.vector_store %arg2[%c0_17, %c480], %26 {strides = array<i32>} : memref<16x512xf32, #tpu.memory_space<vmem>>, vector<16x32xf32>,
    return
  }
  func.func @transform_0(%arg0: i32) -> (i32, i32) {
    %c0_i32 = arith.constant 0 : i32
    %c0_i32_0 = arith.constant 0 : i32
    return %arg0, %c0_i32 : i32, i32
  }
  func.func @transform_1(%arg0: i32) -> (i32, i32) {
    %c0_i32 = arith.constant 0 : i32
    %c0_i32_0 = arith.constant 0 : i32
    return %arg0, %c0_i32 : i32, i32
  }
}

</mosaic_0001>

<bundles_post_ra>
// kernel: tpu_custom_call.1
= control target key start
LH: loop header
LB: loop body
LE: loop exit
PB: predicated region body
PF: predicated region fallthrough
CT: control target
= control target key end

     0   :  { %6 = vsyncpa [#allocation3], 0  ;;  %s11987_s0 = inlined_call_operand.hbm [shape: f32[16,128], index: 0, kind: input, shape index: {}]   ;;  %s11988_s1 = inlined_call_operand.hbm [shape: f32[16,512], index: 1, kind: output, shape index: {}]  }
   0x1   :  { %7 = vsyncpa [#allocation4], 0  ;;  %s12_s8 = sshll.u32 %s11987_s0, 4  ;;  %s6923_s9 = smov [#allocation2]   ;;  %s13_s8 = int_to_ptr.hbm [resolvable:$true] %s12_s8 }
   0x2   :  { %s14_s10 = sshll.u32 %s6923_s9, 4  ;;  %s6924_s11 = smov 128   ;;  %s15_s10 = int_to_ptr.vmem [resolvable:$true] %s14_s10 }
   0x3   :  { %s6925_s12 = smov 8  }
   0x4   :  { %20 = dma.hbm_to_vmem [thread:$0]  %s13_s8, 256, %s15_s10, [#allocation3], %s6924_s11, %s6924_s11, %s6925_s12  }
   0x5   :  { %6919 = dma.done.wait [#allocation3], 256  }
   0x6   :  { %6920 = vsyncadd [#allocation3], 4294967040  ;;  %v28_v0 = vlaneseq  ;;  %v7017_v4 = vld [vmem:[#allocation2] sm:$0xff]  ;;  %v7040_v10 = vld [vmem:[#allocation2 + $0x8] sm:$0xff]  ;;  %vm1580_vm0 = vcmask 1047556   ;;  %s6928_s0 = smov 4  }
   0x7   :  { %v7020_v5 = vperm.slane %v7017_v4, 1  ;;  %v7023_v6 = vperm.slane %v7017_v4, 0  ;;  %v7029_v7 = vperm.slane %v7017_v4, 6  ;;  %v7043_v11 = vperm.slane %v7040_v10, 3  ;;  %s6929_s13 = smov 6   ;;  %s6930_s14 = smov 2  }
   0x8   :  { %v7006_v1 = vshrl.u32 %v28_v0, 7  ;;  %v7106_v21 = vperm.slane %v7017_v4, 2  ;;  %v7112_v22 = vperm.slane %v7017_v4, 7  ;;  %v7118_v23 = vperm.slane %v7040_v10, 4  ;;  %s6931_s15 = smov 10   ;;  %s6932_s16 = smov 12  }
   0x9   :  { %v7176_v34 = vperm.slane %v7017_v4, 3  ;;  %v7184_v36 = vperm.slane %v7040_v10, 0  ;;  %v7192_v38 = vperm.slane %v7040_v10, 5  ;;  %s6933_s17 = smov 16   ;;  %s6934_s18 = smov 14   ;;  %vm6172_vm1 = vcmask 15360  }
   0xa   :  { %v7009_v2 = vadd.s32 32, %v7006_v1  ;;  %v7012_v3 = vadd.s32 16, %v7006_v1  ;;  %v7032_v8 = vadd.s32 40, %v7006_v1  ;;  %v7035_v9 = vadd.s32 24, %v7006_v1  ;;  %s6935_s19 = smov 18   ;;  %s6936_s20 = smov 22  }
   0xb   :  { %v7049_v12 = vadd.s32 56, %v7006_v1  ;;  %v7052_v13 = vadd.s32 48, %v7006_v1  ;;  %v7061_v14 = vadd.s32 80, %v7006_v1  ;;  %v7064_v15 = vadd.s32 72, %v7006_v1  ;;  %s6937_s21 = smov 20   ;;  %s6938_s22 = smov 24  }
   0xc   :  { %6652 = vset.pattern.permute.xlu2 %v7009_v2  ;;  %6664 = vset.pattern.permute.xlu0 %v7012_v3  ;;  %v7073_v16 = vadd.s32 96, %v7006_v1  ;;  %v7076_v17 = vadd.s32 88, %v7006_v1  ;;  %v7085_v18 = vadd.s32 120, %v7006_v1  ;;  %v7088_v19 = vadd.s32 112, %v7006_v1  ;;  %s6939_s23 = smov 28   ;;  %s6940_s24 = smov 26  }
   0xd   :  { %6650 = vset.pattern.permute.xlu1 %v7012_v3  ;;  %v7097_v20 = vadd.s32 8, %v7006_v1  ;;  %v7129_v25 = vadd.s32 64, %v7006_v1  ;;  %v7150_v29 = vadd.s32 104, %v7006_v1  ;;  %s6941_s25 = smov 30   ;;  %s6942_s26 = smov 34   ;;  %vm6175_vm2 = vcmask 31744  }
   0xe   :  { %s6943_s27 = smov 32   ;;  %s6944_s28 = smov 36   ;;  %vm6178_vm3 = vcmask 48128   ;;  %vm6181_vm4 = vcmask 64512   ;;  %vm6184_vm5 = vcmask 80896   ;;  %vm6187_vm6 = vcmask 97280  }
   0xf   :  { %s6945_s29 = smov 40   ;;  %s6946_s30 = smov 38   ;;  %vm6190_vm7 = vcmask 113664   ;;  %vm6193_vm8 = vcmask 130048   ;;  %vm12316_vm9 = vcmask 146432   ;;  %vm12272_vm10 = vcmask 162816  }
  0x10   :  { %s6947_s2 = smov 42   ;;  %s6948_s3 = smov 46   ;;  %vm12266_vm11 = vcmask 179200   ;;  %vm12265_vm12 = vcmask 195584   ;;  %vm12269_vm13 = vcmask 211968   ;;  %vm12267_vm14 = vcmask 228352  }
  0x11   :  { %s6949_s4 = smov 44   ;;  %s6950_s5 = smov 48   ;;  %vm12268_vm15 = vcmask 244736  }
  0x12   :  { %s6951_s6 = smov 52   ;;  %s6952_s7 = smov 50  }
  0x13   :  { %s6953_s8 = smov 54   ;;  %s6954_s9 = smov 58  }
  0x14   :  { %141 = vperm.xlu0 %6664, %v7020_v5   ;;  %56 = vperm.xlu2 %6652, %v7023_v6   ;;  %s12192_s10 = smov 56   ;;  %s12190_s11 = smov 60  }
  0x15   :  { %44 = vperm.xlu1 %6650, %v7023_v6  }
  0x1c   :  { %626 = vperm.xlu0 %6664, %v7029_v7   ;;  %6653 = vset.pattern.permute.xlu2 %v7032_v8 }
  0x1d   :  { %6651 = vset.pattern.permute.xlu1 %v7035_v9 }
  0x24   :  { %1111 = vperm.xlu0 %6664, %v7043_v11   ;;  %62 = vperm.xlu2 %6653, %v7023_v6  }
  0x25   :  { %50 = vperm.xlu1 %6651, %v7023_v6  }
  0x2c   :  { %6793 = vset.pattern.permute.xlu0 %v7049_v12  ;;  %6655 = vset.pattern.permute.xlu2 %v7049_v12 }
  0x2d   :  { %6654 = vset.pattern.permute.xlu1 %v7052_v13 }
  0x34   :  { %171 = vperm.xlu0 %6793, %v7020_v5   ;;  %74 = vperm.xlu2 %6655, %v7023_v6  }
  0x35   :  { %68 = vperm.xlu1 %6654, %v7023_v6  }
  0x3c   :  { %656 = vperm.xlu0 %6793, %v7029_v7   ;;  %6657 = vset.pattern.permute.xlu2 %v7061_v14 }
  0x3d   :  { %6656 = vset.pattern.permute.xlu1 %v7064_v15 }
  0x44   :  { %1141 = vperm.xlu0 %6793, %v7043_v11   ;;  %92 = vperm.xlu2 %6657, %v7023_v6  }
  0x45   :  { %86 = vperm.xlu1 %6656, %v7023_v6  }
  0x4c   :  { %6798 = vset.pattern.permute.xlu0 %v7073_v16  ;;  %6659 = vset.pattern.permute.xlu2 %v7073_v16 }
  0x4d   :  { %6658 = vset.pattern.permute.xlu1 %v7076_v17 }
  0x54   :  { %201 = vperm.xlu0 %6798, %v7020_v5   ;;  %104 = vperm.xlu2 %6659, %v7023_v6  }
  0x55   :  { %98 = vperm.xlu1 %6658, %v7023_v6  }
  0x5c   :  { %686 = vperm.xlu0 %6798, %v7029_v7   ;;  %6661 = vset.pattern.permute.xlu2 %v7085_v18 }
  0x5d   :  { %6660 = vset.pattern.permute.xlu1 %v7088_v19 }
  0x64   :  { %1171 = vperm.xlu0 %6798, %v7043_v11   ;;  %122 = vperm.xlu2 %6661, %v7023_v6  }
  0x65   :  { %116 = vperm.xlu1 %6660, %v7023_v6  }
  0x6c   :  { %6803 = vset.pattern.permute.xlu0 %v7097_v20  ;;  %6663 = vset.pattern.permute.xlu2 %v7097_v20 }
  0x6d   :  { %6662 = vset.pattern.permute.xlu1 %v7006_v1 }
  0x6e   :  { %v7197_v39 = vpop.permute.xlu2 %56 }
  0x6f   :  { %12324 = vst [vmem:[#allocation15_spill] sm:$0xff] %v7197_v39 }
  0x74   :  { %38 = vperm.xlu0 %6803, %v7023_v6   ;;  %135 = vperm.xlu2 %6663, %v7020_v5  }
  0x75   :  { %129 = vperm.xlu1 %6662, %v7020_v5  }
  0x7c   :  { %232 = vperm.xlu0 %6803, %v7106_v21   ;;  %6666 = vset.pattern.permute.xlu2 %v7009_v2 }
  0x7d   :  { %6665 = vset.pattern.permute.xlu1 %v7035_v9 }
  0x7e   :  { %v7204_v41 = vpop.permute.xlu2 %62 }
  0x7f   :  { %12325 = vst [vmem:[#allocation16_spill] sm:$0xff] %v7204_v41 }
  0x84   :  { %717 = vperm.xlu0 %6803, %v7112_v22   ;;  %153 = vperm.xlu2 %6666, %v7020_v5  }
  0x85   :  { %147 = vperm.xlu1 %6665, %v7020_v5  }
  0x86   :  { %v7125_v24 = vpop.permute.xlu0 %141 }
  0x87   :  { %v7239_v51 = vpop.permute.xlu1 %44 }
  0x88   :  { %12332 = vst [vmem:[#allocation23_spill] sm:$0xff] %v7239_v51 }
  0x8c   :  { %1202 = vperm.xlu0 %6803, %v7118_v23   ;;  %6668 = vset.pattern.permute.xlu2 %v7052_v13 }
  0x8d   :  { %6667 = vset.pattern.permute.xlu1 %v7032_v8 }
  0x8e   :  { %v7134_v26 = vpop.permute.xlu0 %626  ;;  %v7211_v43 = vpop.permute.xlu2 %74 }
  0x8f   :  { %12326 = vst [vmem:[#allocation17_spill] sm:$0xff] %v7211_v43 }
  0x94   :  { %6808 = vset.pattern.permute.xlu0 %v7052_v13  ;;  %165 = vperm.xlu2 %6668, %v7020_v5  }
  0x95   :  { %159 = vperm.xlu1 %6667, %v7020_v5  }
  0x96   :  { %v7139_v27 = vpop.permute.xlu0 %1111 }
  0x97   :  { %12317 = vst [vmem:[#allocation8_spill] sm:$0xff] %v7139_v27  ;;  %v7248_v54 = vpop.permute.xlu1 %50 }
  0x98   :  { %12335 = vst [vmem:[#allocation26_spill] sm:$0xff] %v7248_v54  ;;  %v6927_v54 = vmov 1934713408  }
  0x9c   :  { %262 = vperm.xlu0 %6808, %v7106_v21   ;;  %6670 = vset.pattern.permute.xlu2 %v7064_v15 }
  0x9d   :  { %6669 = vset.pattern.permute.xlu1 %v7129_v25 }
  0x9e   :  { %v7218_v45 = vpop.permute.xlu2 %92 }
  0x9f   :  { %12327 = vst [vmem:[#allocation18_spill] sm:$0xff] %v7218_v45 }
  0xa4   :  { %747 = vperm.xlu0 %6808, %v7112_v22   ;;  %183 = vperm.xlu2 %6670, %v7020_v5  }
  0xa5   :  { %177 = vperm.xlu1 %6669, %v7020_v5  }
  0xa6   :  { %v7144_v28 = vpop.permute.xlu0 %171 }
  0xa7   :  { %12318 = vst [vmem:[#allocation9_spill] sm:$0xff] %v7144_v28  ;;  %v7257_v57 = vpop.permute.xlu1 %68 }
  0xa8   :  { %12338 = vst [vmem:[#allocation29_spill] sm:$0xff] %v7257_v57 }
  0xac   :  { %1232 = vperm.xlu0 %6808, %v7118_v23   ;;  %6672 = vset.pattern.permute.xlu2 %v7076_v17 }
  0xad   :  { %6671 = vset.pattern.permute.xlu1 %v7061_v14 }
  0xae   :  { %v7154_v30 = vpop.permute.xlu0 %656  ;;  %v7223_v46 = vpop.permute.xlu2 %104 }
  0xaf   :  { %12319 = vst [vmem:[#allocation10_spill] sm:$0xff] %v7154_v30 }
  0xb0   :  { %12328 = vst [vmem:[#allocation19_spill] sm:$0xff] %v7223_v46 }
  0xb4   :  { %6813 = vset.pattern.permute.xlu0 %v7076_v17  ;;  %195 = vperm.xlu2 %6672, %v7020_v5  }
  0xb5   :  { %189 = vperm.xlu1 %6671, %v7020_v5  }
  0xb6   :  { %v7160_v31 = vpop.permute.xlu0 %1141 }
  0xb7   :  { %12320 = vst [vmem:[#allocation11_spill] sm:$0xff] %v7160_v31  ;;  %v7266_v60 = vpop.permute.xlu1 %86 }
  0xb8   :  { %12341 = vst [vmem:[#allocation32_spill] sm:$0xff] %v7266_v60 }
  0xbc   :  { %292 = vperm.xlu0 %6813, %v7106_v21   ;;  %6674 = vset.pattern.permute.xlu2 %v7088_v19 }
  0xbd   :  { %6673 = vset.pattern.permute.xlu1 %v7150_v29 }
  0xbe   :  { %v7230_v48 = vpop.permute.xlu2 %122 }
  0xbf   :  { %12330 = vst [vmem:[#allocation21_spill] sm:$0xff] %v7230_v48  ;;  %v6926_v48 = vmov 1983009808  }
  0xc0   :  { %v1585_v46 = vunpack.c.l.s4 %v6926_v48 }
  0xc4   :  { %777 = vperm.xlu0 %6813, %v7112_v22   ;;  %213 = vperm.xlu2 %6674, %v7020_v5  }
  0xc5   :  { %207 = vperm.xlu1 %6673, %v7020_v5  }
  0xc6   :  { %v7165_v32 = vpop.permute.xlu0 %201 }
  0xc7   :  { %12321 = vst [vmem:[#allocation12_spill] sm:$0xff] %v7165_v32  ;;  %v7275_v63 = vpop.permute.xlu1 %98 }
  0xc8   :  { %12344 = vst [vmem:[#allocation35_spill] sm:$0xff] %v7275_v63 }
  0xcc   :  { %1262 = vperm.xlu0 %6813, %v7118_v23   ;;  %6676 = vset.pattern.permute.xlu2 %v7006_v1 }
  0xcd   :  { %6675 = vset.pattern.permute.xlu1 %v7085_v18 }
  0xce   :  { %v7170_v33 = vpop.permute.xlu0 %686  ;;  %v7237_v50 = vpop.permute.xlu2 %135 }
  0xcf   :  { %12322 = vst [vmem:[#allocation13_spill] sm:$0xff] %v7170_v33 }
  0xd4   :  { %6818 = vset.pattern.permute.xlu0 %v7006_v1  ;;  %226 = vperm.xlu2 %6676, %v7106_v21  }
  0xd5   :  { %219 = vperm.xlu1 %6675, %v7020_v5  }
  0xd6   :  { %v7180_v35 = vpop.permute.xlu0 %1171 }
  0xd7   :  { %12323 = vst [vmem:[#allocation14_spill] sm:$0xff] %v7180_v35 }
  0xdc   :  { %32 = vperm.xlu0 %6818, %v7023_v6   ;;  %6678 = vset.pattern.permute.xlu2 %v7035_v9 }
  0xdd   :  { %6677 = vset.pattern.permute.xlu1 %v7012_v3 }
  0xde   :  { %v7246_v53 = vpop.permute.xlu2 %153 }
  0xdf   :  { %12334 = vst [vmem:[#allocation25_spill] sm:$0xff] %v7246_v53 }
  0xe4   :  { %323 = vperm.xlu0 %6818, %v7176_v34   ;;  %244 = vperm.xlu2 %6678, %v7106_v21  }
  0xe5   :  { %238 = vperm.xlu1 %6677, %v7106_v21  }
  0xe6   :  { %v7189_v37 = vpop.permute.xlu0 %38 }
  0xec   :  { %808 = vperm.xlu0 %6818, %v7184_v36   ;;  %6680 = vset.pattern.permute.xlu2 %v7032_v8 }
  0xed   :  { %6679 = vset.pattern.permute.xlu1 %v7009_v2 }
  0xee   :  { %v7199_v40 = vpop.permute.xlu0 %232  ;;  %v7255_v56 = vpop.permute.xlu2 %165 }
  0xef   :  { %12337 = vst [vmem:[#allocation28_spill] sm:$0xff] %v7255_v56 }
  0xf4   :  { %1293 = vperm.xlu0 %6818, %v7192_v38   ;;  %256 = vperm.xlu2 %6680, %v7106_v21  }
  0xf5   :  { %250 = vperm.xlu1 %6679, %v7106_v21  }
  0xf6   :  { %v7206_v42 = vpop.permute.xlu0 %717 }
  0xfc   :  { %6823 = vset.pattern.permute.xlu0 %v7032_v8  ;;  %6682 = vset.pattern.permute.xlu2 %v7129_v25 }
  0xfd   :  { %6681 = vset.pattern.permute.xlu1 %v7049_v12 }
  0xfe   :  { %v7213_v44 = vpop.permute.xlu0 %1202  ;;  %v7264_v59 = vpop.permute.xlu2 %183 }
  0xff   :  { %12340 = vst [vmem:[#allocation31_spill] sm:$0xff] %v7264_v59 }
 0x104   :  { %353 = vperm.xlu0 %6823, %v7176_v34   ;;  %274 = vperm.xlu2 %6682, %v7106_v21  }
 0x105   :  { %268 = vperm.xlu1 %6681, %v7106_v21  }
 0x10c   :  { %838 = vperm.xlu0 %6823, %v7184_v36   ;;  %6684 = vset.pattern.permute.xlu2 %v7061_v14 }
 0x10d   :  { %6683 = vset.pattern.permute.xlu1 %v7064_v15 }
 0x10e   :  { %v7225_v47 = vpop.permute.xlu0 %262  ;;  %v7273_v62 = vpop.permute.xlu2 %195 }
 0x10f   :  { %12329 = vst [vmem:[#allocation20_spill] sm:$0xff] %v7225_v47 }
 0x110   :  { %12343 = vst [vmem:[#allocation34_spill] sm:$0xff] %v7273_v62 }
 0x114   :  { %1323 = vperm.xlu0 %6823, %v7192_v38   ;;  %286 = vperm.xlu2 %6684, %v7106_v21  }
 0x115   :  { %280 = vperm.xlu1 %6683, %v7106_v21  }
 0x116   :  { %v7232_v49 = vpop.permute.xlu0 %747 }
 0x117   :  { %12331 = vst [vmem:[#allocation22_spill] sm:$0xff] %v7232_v49 }
 0x11c   :  { %6828 = vset.pattern.permute.xlu0 %v7061_v14  ;;  %6686 = vset.pattern.permute.xlu2 %v7150_v29 }
 0x11d   :  { %6685 = vset.pattern.permute.xlu1 %v7073_v16 }
 0x11e   :  { %v7241_v52 = vpop.permute.xlu0 %1232  ;;  %v7280_v0 = vpop.permute.xlu2 %213 }
 0x11f   :  { %12333 = vst [vmem:[#allocation24_spill] sm:$0xff] %v7241_v52 }
 0x120   :  { %12345 = vst [vmem:[#allocation36_spill] sm:$0xff] %v7280_v0 }
 0x124   :  { %383 = vperm.xlu0 %6828, %v7176_v34   ;;  %304 = vperm.xlu2 %6686, %v7106_v21  }
 0x125   :  { %298 = vperm.xlu1 %6685, %v7106_v21  }
 0x12c   :  { %868 = vperm.xlu0 %6828, %v7184_v36   ;;  %6688 = vset.pattern.permute.xlu2 %v7085_v18 }
 0x12d   :  { %6687 = vset.pattern.permute.xlu1 %v7088_v19 }
 0x12e   :  { %v7250_v55 = vpop.permute.xlu0 %292  ;;  %v7289_v32 = vpop.permute.xlu2 %226 }
 0x12f   :  { %12336 = vst [vmem:[#allocation27_spill] sm:$0xff] %v7250_v55  ;;  %v1579_v33 = vrot.slane %v7289_v32, 4 }
 0x134   :  { %1353 = vperm.xlu0 %6828, %v7192_v38   ;;  %316 = vperm.xlu2 %6688, %v7106_v21  }
 0x135   :  { %310 = vperm.xlu1 %6687, %v7106_v21   ;;  %v7284_v21 = vpop.permute.xlu1 %116 }
 0x136   :  { %v7259_v58 = vpop.permute.xlu0 %777  ;;  %12346 = vst [vmem:[#allocation37_spill] sm:$0xff] %v7284_v21  ;;  %v7297_v21 = vunpack.c.0.s8 %v1585_v46  ;;  %v7318_v46 = vperm.slane %v7017_v4, 4 }
 0x137   :  { %12339 = vst [vmem:[#allocation30_spill] sm:$0xff] %v7259_v58 }
 0x13c   :  { %6833 = vset.pattern.permute.xlu0 %v7085_v18  ;;  %6690 = vset.pattern.permute.xlu2 %v7012_v3 }
 0x13d   :  { %6689 = vset.pattern.permute.xlu1 %v7097_v20  ;;  %v7295_v63 = vpop.permute.xlu1 %129 }
 0x13e   :  { %v7270_v61 = vpop.permute.xlu0 %1262 }
 0x13f   :  { %12342 = vst [vmem:[#allocation33_spill] sm:$0xff] %v7270_v61 }
 0x144   :  { %413 = vperm.xlu0 %6833, %v7176_v34   ;;  %335 = vperm.xlu2 %6690, %v7176_v34  }
 0x145   :  { %329 = vperm.xlu1 %6689, %v7176_v34  }
 0x14c   :  { %898 = vperm.xlu0 %6833, %v7184_v36   ;;  %6692 = vset.pattern.permute.xlu2 %v7009_v2 }
 0x14d   :  { %6691 = vset.pattern.permute.xlu1 %v7035_v9 }
 0x14e   :  { %v7282_v5 = vpop.permute.xlu0 %32 }
 0x14f   :  { %v1581_v48 = vsel %vm1580_vm0, %v1579_v33, %v7282_v5 }
 0x150   :  { %v7307_v62 = vperm.slane %v1581_v48, %v7297_v21  ;;  %v7375_v48 = vperm.slane %v7040_v10, 7 }
 0x154   :  { %1383 = vperm.xlu0 %6833, %v7192_v38   ;;  %347 = vperm.xlu2 %6692, %v7176_v34  }
 0x155   :  { %341 = vperm.xlu1 %6691, %v7176_v34  }
 0x156   :  { %v7291_v35 = vpop.permute.xlu0 %323 }
 0x157   :  { %v1592_v0 = vrot.slane %v7291_v35, 4 }
 0x159   :  { %v1593_v55 = vsel %vm1580_vm0, %v1592_v0, %v7295_v63  ;;  %v7369_v0 = vperm.slane %v7040_v10, 2 }
 0x15a   :  { %v7304_v61 = vperm.slane %v1593_v55, %v7297_v21  ;;  %v7324_v55 = vperm.slane %v7040_v10, 1 }
 0x15c   :  { %v1628_v58 = vrot.slane %v7304_v61, 4  ;;  %6838 = vset.pattern.permute.xlu0 %v7009_v2  ;;  %6694 = vset.pattern.permute.xlu2 %v7049_v12 }
 0x15d   :  { %6693 = vset.pattern.permute.xlu1 %v7052_v13 }
 0x15e   :  { %v7315_v33 = vsel %vm1580_vm0, %v1628_v58, %v7307_v62  ;;  %v7330_v58 = vperm.slane %v7040_v10, 6 }
 0x164   :  { %444 = vperm.xlu0 %6838, %v7318_v46   ;;  %365 = vperm.xlu2 %6694, %v7176_v34  }
 0x165   :  { %359 = vperm.xlu1 %6693, %v7176_v34  }
 0x16c   :  { %929 = vperm.xlu0 %6838, %v7324_v55   ;;  %6696 = vset.pattern.permute.xlu2 %v7064_v15 }
 0x16d   :  { %6695 = vset.pattern.permute.xlu1 %v7129_v25 }
 0x174   :  { %1414 = vperm.xlu0 %6838, %v7330_v58   ;;  %377 = vperm.xlu2 %6696, %v7176_v34  }
 0x175   :  { %371 = vperm.xlu1 %6695, %v7176_v34  }
 0x17c   :  { %6843 = vset.pattern.permute.xlu0 %v7064_v15  ;;  %6698 = vset.pattern.permute.xlu2 %v7073_v16 }
 0x17d   :  { %6697 = vset.pattern.permute.xlu1 %v7076_v17 }
 0x184   :  { %474 = vperm.xlu0 %6843, %v7318_v46   ;;  %395 = vperm.xlu2 %6698, %v7176_v34  }
 0x185   :  { %389 = vperm.xlu1 %6697, %v7176_v34  }
 0x18c   :  { %959 = vperm.xlu0 %6843, %v7324_v55   ;;  %6700 = vset.pattern.permute.xlu2 %v7088_v19 }
 0x18d   :  { %6699 = vset.pattern.permute.xlu1 %v7150_v29 }
 0x194   :  { %1444 = vperm.xlu0 %6843, %v7330_v58   ;;  %407 = vperm.xlu2 %6700, %v7176_v34  }
 0x195   :  { %401 = vperm.xlu1 %6699, %v7176_v34   ;;  %v7363_v34 = vperm.slane %v7017_v4, 5  ;;  %v7410_v4 = vpop.permute.xlu2 %244 }
 0x196   :  { %12347 = vst [vmem:[#allocation38_spill] sm:$0xff] %v7410_v4 }
 0x19c   :  { %6848 = vset.pattern.permute.xlu0 %v7088_v19  ;;  %6702 = vset.pattern.permute.xlu2 %v7097_v20 }
 0x19d   :  { %6701 = vset.pattern.permute.xlu1 %v7006_v1  ;;  %v7417_v10 = vpop.permute.xlu2 %256 }
 0x19e   :  { %12349 = vst [vmem:[#allocation40_spill] sm:$0xff] %v7417_v10 }
 0x1a4   :  { %504 = vperm.xlu0 %6848, %v7318_v46   ;;  %426 = vperm.xlu2 %6702, %v7318_v46  }
 0x1a5   :  { %420 = vperm.xlu1 %6701, %v7318_v46   ;;  %v7423_v59 = vpop.permute.xlu2 %274 }
 0x1a6   :  { %12351 = vst [vmem:[#allocation42_spill] sm:$0xff] %v7423_v59 }
 0x1ac   :  { %989 = vperm.xlu0 %6848, %v7324_v55   ;;  %6704 = vset.pattern.permute.xlu2 %v7035_v9 }
 0x1ad   :  { %6703 = vset.pattern.permute.xlu1 %v7012_v3  ;;  %v7431_v30 = vpop.permute.xlu2 %286 }
 0x1ae   :  { %12354 = vst [vmem:[#allocation45_spill] sm:$0xff] %v7431_v30 }
 0x1b4   :  { %1474 = vperm.xlu0 %6848, %v7330_v58   ;;  %438 = vperm.xlu2 %6704, %v7318_v46  }
 0x1b5   :  { %432 = vperm.xlu1 %6703, %v7318_v46   ;;  %v7437_v45 = vpop.permute.xlu2 %304 }
 0x1b6   :  { %12356 = vst [vmem:[#allocation47_spill] sm:$0xff] %v7437_v45 }
 0x1bc   :  { %6853 = vset.pattern.permute.xlu0 %v7035_v9  ;;  %6706 = vset.pattern.permute.xlu2 %v7052_v13 }
 0x1bd   :  { %6705 = vset.pattern.permute.xlu1 %v7032_v8 }
 0x1c4   :  { %535 = vperm.xlu0 %6853, %v7363_v34   ;;  %456 = vperm.xlu2 %6706, %v7318_v46  }
 0x1c5   :  { %450 = vperm.xlu1 %6705, %v7318_v46  }
 0x1cc   :  { %1020 = vperm.xlu0 %6853, %v7369_v0   ;;  %6708 = vset.pattern.permute.xlu2 %v7129_v25 }
 0x1cd   :  { %6707 = vset.pattern.permute.xlu1 %v7049_v12 }
 0x1d4   :  { %1505 = vperm.xlu0 %6853, %v7375_v48   ;;  %468 = vperm.xlu2 %6708, %v7318_v46  }
 0x1d5   :  { %462 = vperm.xlu1 %6707, %v7318_v46  }
 0x1dc   :  { %6858 = vset.pattern.permute.xlu0 %v7129_v25  ;;  %6710 = vset.pattern.permute.xlu2 %v7076_v17 }
 0x1dd   :  { %6709 = vset.pattern.permute.xlu1 %v7061_v14 }
 0x1e4   :  { %80 = vperm.xlu0 %6858, %v7023_v6   ;;  %486 = vperm.xlu2 %6710, %v7318_v46  }
 0x1e5   :  { %480 = vperm.xlu1 %6709, %v7318_v46  }
 0x1ec   :  { %565 = vperm.xlu0 %6858, %v7363_v34   ;;  %6712 = vset.pattern.permute.xlu2 %v7150_v29 }
 0x1ed   :  { %6711 = vset.pattern.permute.xlu1 %v7073_v16 }
 0x1f4   :  { %1050 = vperm.xlu0 %6858, %v7369_v0   ;;  %498 = vperm.xlu2 %6712, %v7318_v46  }
 0x1f5   :  { %492 = vperm.xlu1 %6711, %v7318_v46  }
 0x1fc   :  { %1535 = vperm.xlu0 %6858, %v7375_v48   ;;  %6714 = vset.pattern.permute.xlu2 %v7006_v1 }
 0x1fd   :  { %6713 = vset.pattern.permute.xlu1 %v7085_v18 }
 0x204   :  { %6863 = vset.pattern.permute.xlu0 %v7150_v29  ;;  %517 = vperm.xlu2 %6714, %v7363_v34  }
 0x205   :  { %510 = vperm.xlu1 %6713, %v7318_v46  }
 0x20c   :  { %110 = vperm.xlu0 %6863, %v7023_v6   ;;  %6716 = vset.pattern.permute.xlu2 %v7012_v3  ;;  %v7412_v6 = vpop.permute.xlu1 %147 }
 0x20d   :  { %6715 = vset.pattern.permute.xlu1 %v7097_v20  ;;  %12348 = vst [vmem:[#allocation39_spill] sm:$0xff] %v7412_v6 }
 0x214   :  { %529 = vperm.xlu2 %6716, %v7363_v34   ;;  %595 = vperm.xlu0 %6863, %v7363_v34   ;;  %v7419_v46 = vpop.permute.xlu1 %159 }
 0x215   :  { %523 = vperm.xlu1 %6715, %v7363_v34   ;;  %12350 = vst [vmem:[#allocation41_spill] sm:$0xff] %v7419_v46 }
 0x21c   :  { %6718 = vset.pattern.permute.xlu2 %v7032_v8  ;;  %1080 = vperm.xlu0 %6863, %v7369_v0   ;;  %v7425_v31 = vpop.permute.xlu1 %177 }
 0x21d   :  { %6717 = vset.pattern.permute.xlu1 %v7009_v2  ;;  %12352 = vst [vmem:[#allocation43_spill] sm:$0xff] %v7425_v31 }
 0x224   :  { %547 = vperm.xlu2 %6718, %v7363_v34   ;;  %1565 = vperm.xlu0 %6863, %v7375_v48   ;;  %v7429_v60 = vpop.permute.xlu1 %189 }
 0x225   :  { %541 = vperm.xlu1 %6717, %v7363_v34   ;;  %12353 = vst [vmem:[#allocation44_spill] sm:$0xff] %v7429_v60  ;;  %v7445_v60 = vpop.permute.xlu2 %316 }
 0x226   :  { %12358 = vst [vmem:[#allocation49_spill] sm:$0xff] %v7445_v60 }
 0x22c   :  { %6720 = vset.pattern.permute.xlu2 %v7049_v12  ;;  %6870 = vset.pattern.permute.xlu0 %v7085_v18  ;;  %v7435_v28 = vpop.permute.xlu1 %207 }
 0x22d   :  { %6719 = vset.pattern.permute.xlu1 %v7052_v13  ;;  %12355 = vst [vmem:[#allocation46_spill] sm:$0xff] %v7435_v28  ;;  %v7451_v28 = vpop.permute.xlu2 %335 }
 0x234   :  { %559 = vperm.xlu2 %6720, %v7363_v34   ;;  %v7441_v59 = vpop.permute.xlu1 %219 }
 0x235   :  { %553 = vperm.xlu1 %6719, %v7363_v34   ;;  %12357 = vst [vmem:[#allocation48_spill] sm:$0xff] %v7441_v59  ;;  %v7457_v59 = vpop.permute.xlu2 %347 }
 0x236   :  { %12360 = vst [vmem:[#allocation51_spill] sm:$0xff] %v7457_v59 }
 0x23c   :  { %6722 = vset.pattern.permute.xlu2 %v7061_v14  ;;  %v7447_v31 = vpop.permute.xlu1 %238 }
 0x23d   :  { %6721 = vset.pattern.permute.xlu1 %v7064_v15  ;;  %v7463_v60 = vpop.permute.xlu2 %365 }
 0x23e   :  { %12362 = vst [vmem:[#allocation53_spill] sm:$0xff] %v7463_v60 }
 0x244   :  { %577 = vperm.xlu2 %6722, %v7363_v34   ;;  %v7453_v45 = vpop.permute.xlu1 %250 }
 0x245   :  { %571 = vperm.xlu1 %6721, %v7363_v34   ;;  %12359 = vst [vmem:[#allocation50_spill] sm:$0xff] %v7453_v45  ;;  %v7469_v57 = vpop.permute.xlu2 %377 }
 0x246   :  { %12364 = vst [vmem:[#allocation55_spill] sm:$0xff] %v7469_v57 }
 0x24c   :  { %6724 = vset.pattern.permute.xlu2 %v7073_v16  ;;  %v7459_v30 = vpop.permute.xlu1 %268 }
 0x24d   :  { %6723 = vset.pattern.permute.xlu1 %v7076_v17  ;;  %12361 = vst [vmem:[#allocation52_spill] sm:$0xff] %v7459_v30 }
 0x254   :  { %589 = vperm.xlu2 %6724, %v7363_v34   ;;  %v7465_v43 = vpop.permute.xlu1 %280 }
 0x255   :  { %583 = vperm.xlu1 %6723, %v7363_v34   ;;  %12363 = vst [vmem:[#allocation54_spill] sm:$0xff] %v7465_v43 }
 0x25c   :  { %6726 = vset.pattern.permute.xlu2 %v7085_v18  ;;  %v7471_v47 = vpop.permute.xlu1 %298 }
 0x25d   :  { %6725 = vset.pattern.permute.xlu1 %v7088_v19  ;;  %12365 = vst [vmem:[#allocation56_spill] sm:$0xff] %v7471_v47 }
 0x264   :  { %607 = vperm.xlu2 %6726, %v7363_v34   ;;  %v7477_v30 = vpop.permute.xlu1 %310 }
 0x265   :  { %601 = vperm.xlu1 %6725, %v7363_v34   ;;  %v7475_v34 = vpop.permute.xlu2 %395  ;;  %12367 = vst [vmem:[#allocation58_spill] sm:$0xff] %v7477_v30 }
 0x266   :  { %12366 = vst [vmem:[#allocation57_spill] sm:$0xff] %v7475_v34 }
 0x26c   :  { %6728 = vset.pattern.permute.xlu2 %v7097_v20  ;;  %v7483_v43 = vpop.permute.xlu1 %329 }
 0x26d   :  { %6727 = vset.pattern.permute.xlu1 %v7006_v1  ;;  %v7481_v60 = vpop.permute.xlu2 %407 }
 0x26e   :  { %12368 = vst [vmem:[#allocation59_spill] sm:$0xff] %v7481_v60 }
 0x274   :  { %620 = vperm.xlu2 %6728, %v7029_v7   ;;  %v7489_v57 = vpop.permute.xlu1 %341 }
 0x275   :  { %614 = vperm.xlu1 %6727, %v7029_v7   ;;  %v7487_v47 = vpop.permute.xlu2 %426  ;;  %12369 = vst [vmem:[#allocation60_spill] sm:$0xff] %v7489_v57 }
 0x27c   :  { %6730 = vset.pattern.permute.xlu2 %v7009_v2  ;;  %v7495_v34 = vpop.permute.xlu1 %359 }
 0x27d   :  { %6729 = vset.pattern.permute.xlu1 %v7035_v9  ;;  %v7493_v30 = vpop.permute.xlu2 %438  ;;  %12371 = vst [vmem:[#allocation62_spill] sm:$0xff] %v7495_v34 }
 0x27e   :  { %12370 = vst [vmem:[#allocation61_spill] sm:$0xff] %v7493_v30  ;;  %v1630_v30 = vrot.slane %v7307_v62, 4 }
 0x284   :  { %638 = vperm.xlu2 %6730, %v7029_v7   ;;  %v7501_v52 = vpop.permute.xlu1 %371 }
 0x285   :  { %632 = vperm.xlu1 %6729, %v7029_v7   ;;  %v7499_v60 = vpop.permute.xlu2 %456  ;;  %12373 = vst [vmem:[#allocation64_spill] sm:$0xff] %v7501_v52 }
 0x286   :  { %12372 = vst [vmem:[#allocation63_spill] sm:$0xff] %v7499_v60 }
 0x28c   :  { %6732 = vset.pattern.permute.xlu2 %v7052_v13  ;;  %v7507_v49 = vpop.permute.xlu1 %389 }
 0x28d   :  { %6731 = vset.pattern.permute.xlu1 %v7032_v8  ;;  %v7505_v56 = vpop.permute.xlu2 %468  ;;  %12375 = vst [vmem:[#allocation66_spill] sm:$0xff] %v7507_v49 }
 0x28e   :  { %12374 = vst [vmem:[#allocation65_spill] sm:$0xff] %v7505_v56 }
 0x294   :  { %650 = vperm.xlu2 %6732, %v7029_v7   ;;  %v7513_v41 = vpop.permute.xlu1 %401 }
 0x295   :  { %644 = vperm.xlu1 %6731, %v7029_v7   ;;  %v7511_v34 = vpop.permute.xlu2 %486  ;;  %12377 = vst [vmem:[#allocation68_spill] sm:$0xff] %v7513_v41 }
 0x296   :  { %12376 = vst [vmem:[#allocation67_spill] sm:$0xff] %v7511_v34 }
 0x29c   :  { %6734 = vset.pattern.permute.xlu2 %v7064_v15  ;;  %v7519_v60 = vpop.permute.xlu1 %420 }
 0x29d   :  { %6733 = vset.pattern.permute.xlu1 %v7129_v25  ;;  %v7517_v52 = vpop.permute.xlu2 %498 }
 0x29e   :  { %12378 = vst [vmem:[#allocation69_spill] sm:$0xff] %v7517_v52 }
 0x2a4   :  { %668 = vperm.xlu2 %6734, %v7029_v7   ;;  %v7525_v56 = vpop.permute.xlu1 %432 }
 0x2a5   :  { %662 = vperm.xlu1 %6733, %v7029_v7   ;;  %v7523_v49 = vpop.permute.xlu2 %517  ;;  %12379 = vst [vmem:[#allocation70_spill] sm:$0xff] %v7525_v56 }
 0x2ac   :  { %6736 = vset.pattern.permute.xlu2 %v7076_v17  ;;  %v7531_v34 = vpop.permute.xlu1 %450 }
 0x2ad   :  { %6735 = vset.pattern.permute.xlu1 %v7061_v14  ;;  %v7529_v41 = vpop.permute.xlu2 %529  ;;  %12380 = vst [vmem:[#allocation71_spill] sm:$0xff] %v7531_v34 }
 0x2b4   :  { %680 = vperm.xlu2 %6736, %v7029_v7   ;;  %v7537_v10 = vpop.permute.xlu1 %462 }
 0x2b5   :  { %674 = vperm.xlu1 %6735, %v7029_v7   ;;  %v7535_v52 = vpop.permute.xlu2 %547  ;;  %12382 = vst [vmem:[#allocation73_spill] sm:$0xff] %v7537_v10 }
 0x2b6   :  { %12381 = vst [vmem:[#allocation72_spill] sm:$0xff] %v7535_v52 }
 0x2bc   :  { %6738 = vset.pattern.permute.xlu2 %v7088_v19  ;;  %v7543_v39 = vpop.permute.xlu1 %480 }
 0x2bd   :  { %6737 = vset.pattern.permute.xlu1 %v7150_v29  ;;  %v7541_v46 = vpop.permute.xlu2 %559  ;;  %12384 = vst [vmem:[#allocation75_spill] sm:$0xff] %v7543_v39 }
 0x2be   :  { %12383 = vst [vmem:[#allocation74_spill] sm:$0xff] %v7541_v46 }
 0x2c4   :  { %698 = vperm.xlu2 %6738, %v7029_v7   ;;  %v7549_v45 = vpop.permute.xlu1 %492 }
 0x2c5   :  { %692 = vperm.xlu1 %6737, %v7029_v7   ;;  %v7547_v34 = vpop.permute.xlu2 %577  ;;  %12386 = vst [vmem:[#allocation77_spill] sm:$0xff] %v7549_v45 }
 0x2c6   :  { %12385 = vst [vmem:[#allocation76_spill] sm:$0xff] %v7547_v34 }
 0x2cc   :  { %6740 = vset.pattern.permute.xlu2 %v7006_v1  ;;  %v7555_v52 = vpop.permute.xlu1 %510 }
 0x2cd   :  { %6739 = vset.pattern.permute.xlu1 %v7085_v18  ;;  %v7553_v10 = vpop.permute.xlu2 %589  ;;  %12388 = vst [vmem:[#allocation79_spill] sm:$0xff] %v7555_v52 }
 0x2ce   :  { %12387 = vst [vmem:[#allocation78_spill] sm:$0xff] %v7553_v10 }
 0x2d4   :  { %711 = vperm.xlu2 %6740, %v7112_v22   ;;  %v7561_v39 = vpop.permute.xlu1 %523 }
 0x2d5   :  { %704 = vperm.xlu1 %6739, %v7029_v7   ;;  %v7559_v7 = vpop.permute.xlu2 %607 }
 0x2d6   :  { %12389 = vst [vmem:[#allocation80_spill] sm:$0xff] %v7559_v7 }
 0x2dc   :  { %6742 = vset.pattern.permute.xlu2 %v7035_v9  ;;  %v7567_v34 = vpop.permute.xlu1 %541 }
 0x2dd   :  { %6741 = vset.pattern.permute.xlu1 %v7012_v3  ;;  %v7565_v45 = vpop.permute.xlu2 %620  ;;  %12390 = vst [vmem:[#allocation81_spill] sm:$0xff] %v7567_v34 }
 0x2e4   :  { %729 = vperm.xlu2 %6742, %v7112_v22   ;;  %v7573_v10 = vpop.permute.xlu1 %553 }
 0x2e5   :  { %723 = vperm.xlu1 %6741, %v7112_v22   ;;  %v7571_v52 = vpop.permute.xlu2 %638  ;;  %12392 = vst [vmem:[#allocation83_spill] sm:$0xff] %v7573_v10 }
 0x2e6   :  { %12391 = vst [vmem:[#allocation82_spill] sm:$0xff] %v7571_v52 }
 0x2ec   :  { %6744 = vset.pattern.permute.xlu2 %v7032_v8  ;;  %v7579_v46 = vpop.permute.xlu1 %571 }
 0x2ed   :  { %6743 = vset.pattern.permute.xlu1 %v7009_v2  ;;  %12394 = vst [vmem:[#allocation85_spill] sm:$0xff] %v7579_v46 }
 0x2ee   :  { %v7577_v7 = vpop.permute.xlu2 %650 }
 0x2ef   :  { %12393 = vst [vmem:[#allocation84_spill] sm:$0xff] %v7577_v7 }
 0x2f4   :  { %741 = vperm.xlu2 %6744, %v7112_v22   ;;  %v7585_v59 = vpop.permute.xlu1 %583 }
 0x2f5   :  { %735 = vperm.xlu1 %6743, %v7112_v22   ;;  %12396 = vst [vmem:[#allocation87_spill] sm:$0xff] %v7585_v59 }
 0x2fc   :  { %6746 = vset.pattern.permute.xlu2 %v7129_v25  ;;  %v7589_v10 = vpop.permute.xlu1 %601 }
 0x2fd   :  { %6745 = vset.pattern.permute.xlu1 %v7049_v12  ;;  %12397 = vst [vmem:[#allocation88_spill] sm:$0xff] %v7589_v10 }
 0x2fe   :  { %v7583_v53 = vpop.permute.xlu2 %668 }
 0x2ff   :  { %12395 = vst [vmem:[#allocation86_spill] sm:$0xff] %v7583_v53 }
 0x304   :  { %759 = vperm.xlu2 %6746, %v7112_v22   ;;  %v7595_v46 = vpop.permute.xlu1 %614 }
 0x305   :  { %753 = vperm.xlu1 %6745, %v7112_v22   ;;  %v1604_v59 = vrot.slane %v7595_v46, 4 }
 0x307   :  { %v1605_v53 = vsel %vm1580_vm0, %v1604_v59, %v7519_v60 }
 0x308   :  { %v7607_v10 = vperm.slane %v1605_v53, %v7297_v21  ;;  %v1631_v53 = vsel %vm1580_vm0, %v7304_v61, %v1630_v30 }
 0x30a   :  { %v1654_v59 = vrot.slane %v7607_v10, 4 }
 0x30c   :  { %6748 = vset.pattern.permute.xlu2 %v7061_v14 }
 0x30d   :  { %6747 = vset.pattern.permute.xlu1 %v7064_v15 }
 0x30e   :  { %v7591_v52 = vpop.permute.xlu2 %680 }
 0x30f   :  { %12398 = vst [vmem:[#allocation89_spill] sm:$0xff] %v7591_v52 }
 0x314   :  { %771 = vperm.xlu2 %6748, %v7112_v22  }
 0x315   :  { %765 = vperm.xlu1 %6747, %v7112_v22  }
 0x31c   :  { %6750 = vset.pattern.permute.xlu2 %v7150_v29 }
 0x31d   :  { %6749 = vset.pattern.permute.xlu1 %v7073_v16 }
 0x31e   :  { %v7598_v7 = vpop.permute.xlu2 %698 }
 0x31f   :  { %12399 = vst [vmem:[#allocation90_spill] sm:$0xff] %v7598_v7  ;;  %v1633_v7 = vunpack.c.l.s4 %v6927_v54 }
 0x321   :  { %v7619_v57 = vunpack.c.0.s8 %v1633_v7 }
 0x323   :  { %v7631_v62 = vperm.slane %v1631_v53, %v7619_v57 }
 0x324   :  { %789 = vperm.xlu2 %6750, %v7112_v22  }
 0x325   :  { %783 = vperm.xlu1 %6749, %v7112_v22  }
 0x32c   :  { %6752 = vset.pattern.permute.xlu2 %v7085_v18 }
 0x32d   :  { %6751 = vset.pattern.permute.xlu1 %v7088_v19 }
 0x32e   :  { %v7609_v52 = vpop.permute.xlu2 %711 }
 0x32f   :  { %v1616_v34 = vrot.slane %v7609_v52, 4 }
 0x331   :  { %v1617_v4 = vsel %vm1580_vm0, %v1616_v34, %v7523_v49 }
 0x332   :  { %v7617_v6 = vperm.slane %v1617_v4, %v7297_v21 }
 0x334   :  { %801 = vperm.xlu2 %6752, %v7112_v22   ;;  %v1655_v54 = vsel %vm1580_vm0, %v7617_v6, %v1654_v59 }
 0x335   :  { %795 = vperm.xlu1 %6751, %v7112_v22   ;;  %v7628_v34 = vperm.slane %v1655_v54, %v7619_v57  ;;  %v7735_v22 = vpop.permute.xlu1 %632 }
 0x336   :  { %12400 = vst [vmem:[#allocation91_spill] sm:$0xff] %v7735_v22 }
 0x337   :  { %v1680_v4 = vrot.slane %v7628_v34, 4 }
 0x339   :  { %v1681_v7 = vsel %vm1580_vm0, %v1680_v4, %v7631_v62 }
 0x33a   :  { %5174 = vrot.lane.b32.xlu0 %v1681_v7, %s6928_s0 }
 0x33c   :  { %6754 = vset.pattern.permute.xlu2 %v7012_v3 }
 0x33d   :  { %6753 = vset.pattern.permute.xlu1 %v7097_v20 }
 0x33e   :  { %v7737_v30 = vpop.permute.xlu2 %729 }
 0x33f   :  { %12401 = vst [vmem:[#allocation92_spill] sm:$0xff] %v7737_v30 }
 0x344   :  { %820 = vperm.xlu2 %6754, %v7184_v36  }
 0x345   :  { %814 = vperm.xlu1 %6753, %v7184_v36  }
 0x34c   :  { %6756 = vset.pattern.permute.xlu2 %v7009_v2 }
 0x34d   :  { %6755 = vset.pattern.permute.xlu1 %v7035_v9 }
 0x34e   :  { %v7743_v61 = vpop.permute.xlu2 %741 }
 0x34f   :  { %12403 = vst [vmem:[#allocation94_spill] sm:$0xff] %v7743_v61 }
 0x354   :  { %832 = vperm.xlu2 %6756, %v7184_v36  }
 0x355   :  { %826 = vperm.xlu1 %6755, %v7184_v36  }
 0x35c   :  { %6758 = vset.pattern.permute.xlu2 %v7049_v12 }
 0x35d   :  { %6757 = vset.pattern.permute.xlu1 %v7052_v13 }
 0x364   :  { %850 = vperm.xlu2 %6758, %v7184_v36  }
 0x365   :  { %844 = vperm.xlu1 %6757, %v7184_v36  }
 0x36c   :  { %6760 = vset.pattern.permute.xlu2 %v7064_v15 }
 0x36d   :  { %6759 = vset.pattern.permute.xlu1 %v7129_v25 }
 0x374   :  { %862 = vperm.xlu2 %6760, %v7184_v36  }
 0x375   :  { %856 = vperm.xlu1 %6759, %v7184_v36  }
 0x37c   :  { %6762 = vset.pattern.permute.xlu2 %v7073_v16 }
 0x37d   :  { %6761 = vset.pattern.permute.xlu1 %v7076_v17 }
 0x384   :  { %880 = vperm.xlu2 %6762, %v7184_v36  }
 0x385   :  { %874 = vperm.xlu1 %6761, %v7184_v36  }
 0x38c   :  { %6764 = vset.pattern.permute.xlu2 %v7088_v19 }
 0x38d   :  { %6763 = vset.pattern.permute.xlu1 %v7150_v29 }
 0x394   :  { %892 = vperm.xlu2 %6764, %v7184_v36  }
 0x395   :  { %886 = vperm.xlu1 %6763, %v7184_v36   ;;  %v7741_v36 = vpop.permute.xlu1 %644 }
 0x396   :  { %12402 = vst [vmem:[#allocation93_spill] sm:$0xff] %v7741_v36 }
 0x39c   :  { %6766 = vset.pattern.permute.xlu2 %v7097_v20 }
 0x39d   :  { %6765 = vset.pattern.permute.xlu1 %v7006_v1 }
 0x3a4   :  { %911 = vperm.xlu2 %6766, %v7324_v55  }
 0x3a5   :  { %905 = vperm.xlu1 %6765, %v7324_v55  }
 0x3ac   :  { %6768 = vset.pattern.permute.xlu2 %v7035_v9 }
 0x3ad   :  { %6767 = vset.pattern.permute.xlu1 %v7012_v3 }
 0x3b4   :  { %923 = vperm.xlu2 %6768, %v7324_v55  }
 0x3b5   :  { %917 = vperm.xlu1 %6767, %v7324_v55  }
 0x3bc   :  { %6770 = vset.pattern.permute.xlu2 %v7052_v13 }
 0x3bd   :  { %6769 = vset.pattern.permute.xlu1 %v7032_v8 }
 0x3c4   :  { %941 = vperm.xlu2 %6770, %v7324_v55  }
 0x3c5   :  { %935 = vperm.xlu1 %6769, %v7324_v55  }
 0x3cc   :  { %6772 = vset.pattern.permute.xlu2 %v7129_v25 }
 0x3cd   :  { %6771 = vset.pattern.permute.xlu1 %v7049_v12 }
 0x3d4   :  { %953 = vperm.xlu2 %6772, %v7324_v55  }
 0x3d5   :  { %947 = vperm.xlu1 %6771, %v7324_v55  }
 0x3dc   :  { %6774 = vset.pattern.permute.xlu2 %v7076_v17 }
 0x3dd   :  { %6773 = vset.pattern.permute.xlu1 %v7061_v14 }
 0x3e4   :  { %971 = vperm.xlu2 %6774, %v7324_v55  }
 0x3e5   :  { %965 = vperm.xlu1 %6773, %v7324_v55  }
 0x3ec   :  { %6776 = vset.pattern.permute.xlu2 %v7150_v29 }
 0x3ed   :  { %6775 = vset.pattern.permute.xlu1 %v7073_v16 }
 0x3f4   :  { %983 = vperm.xlu2 %6776, %v7324_v55  }
 0x3f5   :  { %977 = vperm.xlu1 %6775, %v7324_v55  }
 0x3fc   :  { %6778 = vset.pattern.permute.xlu2 %v7006_v1 }
 0x3fd   :  { %6777 = vset.pattern.permute.xlu1 %v7085_v18 }
 0x404   :  { %1002 = vperm.xlu2 %6778, %v7369_v0  }
 0x405   :  { %995 = vperm.xlu1 %6777, %v7324_v55   ;;  %v7747_v55 = vpop.permute.xlu1 %662 }
 0x406   :  { %12404 = vst [vmem:[#allocation95_spill] sm:$0xff] %v7747_v55 }
 0x40c   :  { %6780 = vset.pattern.permute.xlu2 %v7012_v3 }
 0x40d   :  { %6779 = vset.pattern.permute.xlu1 %v7097_v20  ;;  %v7753_v59 = vpop.permute.xlu1 %674 }
 0x40e   :  { %12406 = vst [vmem:[#allocation97_spill] sm:$0xff] %v7753_v59 }
 0x414   :  { %1014 = vperm.xlu2 %6780, %v7369_v0  }
 0x415   :  { %1008 = vperm.xlu1 %6779, %v7369_v0   ;;  %v7759_v54 = vpop.permute.xlu1 %692 }
 0x416   :  { %12408 = vst [vmem:[#allocation99_spill] sm:$0xff] %v7759_v54 }
 0x41c   :  { %6782 = vset.pattern.permute.xlu2 %v7032_v8 }
 0x41d   :  { %6781 = vset.pattern.permute.xlu1 %v7009_v2  ;;  %v7765_v7 = vpop.permute.xlu1 %704 }
 0x41e   :  { %12410 = vst [vmem:[#allocation101_spill] sm:$0xff] %v7765_v7 }
 0x424   :  { %1032 = vperm.xlu2 %6782, %v7369_v0  }
 0x425   :  { %1026 = vperm.xlu1 %6781, %v7369_v0  }
 0x42c   :  { %6784 = vset.pattern.permute.xlu2 %v7049_v12 }
 0x42d   :  { %6783 = vset.pattern.permute.xlu1 %v7052_v13 }
 0x434   :  { %1044 = vperm.xlu2 %6784, %v7369_v0  }
 0x435   :  { %1038 = vperm.xlu1 %6783, %v7369_v0  }
 0x43c   :  { %6786 = vset.pattern.permute.xlu2 %v7061_v14 }
 0x43d   :  { %6785 = vset.pattern.permute.xlu1 %v7064_v15 }
 0x444   :  { %1062 = vperm.xlu2 %6786, %v7369_v0  }
 0x445   :  { %1056 = vperm.xlu1 %6785, %v7369_v0  }
 0x44c   :  { %6788 = vset.pattern.permute.xlu2 %v7073_v16 }
 0x44d   :  { %6787 = vset.pattern.permute.xlu1 %v7076_v17 }
 0x454   :  { %1074 = vperm.xlu2 %6788, %v7369_v0  }
 0x455   :  { %1068 = vperm.xlu1 %6787, %v7369_v0  }
 0x45c   :  { %6790 = vset.pattern.permute.xlu2 %v7085_v18 }
 0x45d   :  { %6789 = vset.pattern.permute.xlu1 %v7088_v19 }
 0x464   :  { %1092 = vperm.xlu2 %6790, %v7369_v0  }
 0x465   :  { %1086 = vperm.xlu1 %6789, %v7369_v0   ;;  %v7749_v0 = vpop.permute.xlu2 %759 }
 0x466   :  { %12405 = vst [vmem:[#allocation96_spill] sm:$0xff] %v7749_v0 }
 0x46c   :  { %6792 = vset.pattern.permute.xlu2 %v7097_v20 }
 0x46d   :  { %6791 = vset.pattern.permute.xlu1 %v7006_v1  ;;  %v7755_v53 = vpop.permute.xlu2 %771 }
 0x46e   :  { %12407 = vst [vmem:[#allocation98_spill] sm:$0xff] %v7755_v53 }
 0x474   :  { %1105 = vperm.xlu2 %6792, %v7043_v11  }
 0x475   :  { %1099 = vperm.xlu1 %6791, %v7043_v11   ;;  %v7761_v4 = vpop.permute.xlu2 %789 }
 0x476   :  { %12409 = vst [vmem:[#allocation100_spill] sm:$0xff] %v7761_v4 }
 0x47c   :  { %6795 = vset.pattern.permute.xlu2 %v7009_v2 }
 0x47d   :  { %6794 = vset.pattern.permute.xlu1 %v7035_v9  ;;  %v7767_v0 = vpop.permute.xlu2 %801 }
 0x47e   :  { %12411 = vst [vmem:[#allocation102_spill] sm:$0xff] %v7767_v0 }
 0x484   :  { %1123 = vperm.xlu2 %6795, %v7043_v11  }
 0x485   :  { %1117 = vperm.xlu1 %6794, %v7043_v11   ;;  %v7773_v59 = vpop.permute.xlu2 %820 }
 0x486   :  { %12412 = vst [vmem:[#allocation103_spill] sm:$0xff] %v7773_v59 }
 0x48c   :  { %6797 = vset.pattern.permute.xlu2 %v7052_v13 }
 0x48d   :  { %6796 = vset.pattern.permute.xlu1 %v7032_v8  ;;  %v7779_v4 = vpop.permute.xlu2 %832 }
 0x48e   :  { %12414 = vst [vmem:[#allocation105_spill] sm:$0xff] %v7779_v4 }
 0x494   :  { %1135 = vperm.xlu2 %6797, %v7043_v11  }
 0x495   :  { %1129 = vperm.xlu1 %6796, %v7043_v11   ;;  %v7785_v0 = vpop.permute.xlu2 %850 }
 0x496   :  { %12416 = vst [vmem:[#allocation107_spill] sm:$0xff] %v7785_v0 }
 0x49c   :  { %6800 = vset.pattern.permute.xlu2 %v7064_v15 }
 0x49d   :  { %6799 = vset.pattern.permute.xlu1 %v7129_v25  ;;  %v7791_v55 = vpop.permute.xlu2 %862 }
 0x49e   :  { %12418 = vst [vmem:[#allocation109_spill] sm:$0xff] %v7791_v55 }
 0x4a4   :  { %1153 = vperm.xlu2 %6800, %v7043_v11  }
 0x4a5   :  { %1147 = vperm.xlu1 %6799, %v7043_v11   ;;  %v7797_v61 = vpop.permute.xlu2 %880 }
 0x4a6   :  { %12420 = vst [vmem:[#allocation111_spill] sm:$0xff] %v7797_v61 }
 0x4ac   :  { %6802 = vset.pattern.permute.xlu2 %v7076_v17 }
 0x4ad   :  { %6801 = vset.pattern.permute.xlu1 %v7061_v14 }
 0x4b4   :  { %1165 = vperm.xlu2 %6802, %v7043_v11  }
 0x4b5   :  { %1159 = vperm.xlu1 %6801, %v7043_v11  }
 0x4bc   :  { %6805 = vset.pattern.permute.xlu2 %v7088_v19 }
 0x4bd   :  { %6804 = vset.pattern.permute.xlu1 %v7150_v29 }
 0x4c4   :  { %1183 = vperm.xlu2 %6805, %v7043_v11  }
 0x4c5   :  { %1177 = vperm.xlu1 %6804, %v7043_v11  }
 0x4cc   :  { %6807 = vset.pattern.permute.xlu2 %v7006_v1 }
 0x4cd   :  { %6806 = vset.pattern.permute.xlu1 %v7085_v18 }
 0x4d4   :  { %1196 = vperm.xlu2 %6807, %v7118_v23  }
 0x4d5   :  { %1189 = vperm.xlu1 %6806, %v7043_v11   ;;  %v7771_v11 = vpop.permute.xlu1 %723 }
 0x4dc   :  { %6810 = vset.pattern.permute.xlu2 %v7035_v9 }
 0x4dd   :  { %6809 = vset.pattern.permute.xlu1 %v7012_v3  ;;  %v7777_v54 = vpop.permute.xlu1 %735 }
 0x4de   :  { %12413 = vst [vmem:[#allocation104_spill] sm:$0xff] %v7777_v54 }
 0x4e4   :  { %1214 = vperm.xlu2 %6810, %v7118_v23  }
 0x4e5   :  { %1208 = vperm.xlu1 %6809, %v7118_v23   ;;  %v7783_v7 = vpop.permute.xlu1 %753 }
 0x4e6   :  { %12415 = vst [vmem:[#allocation106_spill] sm:$0xff] %v7783_v7  ;;  %v7803_v7 = vpop.permute.xlu2 %892 }
 0x4e7   :  { %12422 = vst [vmem:[#allocation113_spill] sm:$0xff] %v7803_v7 }
 0x4ec   :  { %6812 = vset.pattern.permute.xlu2 %v7032_v8 }
 0x4ed   :  { %6811 = vset.pattern.permute.xlu1 %v7009_v2  ;;  %v7789_v53 = vpop.permute.xlu1 %765 }
 0x4ee   :  { %12417 = vst [vmem:[#allocation108_spill] sm:$0xff] %v7789_v53  ;;  %v7809_v53 = vpop.permute.xlu2 %911 }
 0x4f4   :  { %1226 = vperm.xlu2 %6812, %v7118_v23  }
 0x4f5   :  { %1220 = vperm.xlu1 %6811, %v7118_v23   ;;  %v7795_v36 = vpop.permute.xlu1 %783 }
 0x4f6   :  { %12419 = vst [vmem:[#allocation110_spill] sm:$0xff] %v7795_v36  ;;  %v7815_v36 = vpop.permute.xlu2 %923 }
 0x4f7   :  { %12424 = vst [vmem:[#allocation115_spill] sm:$0xff] %v7815_v36 }
 0x4fc   :  { %6815 = vset.pattern.permute.xlu2 %v7129_v25 }
 0x4fd   :  { %6814 = vset.pattern.permute.xlu1 %v7049_v12  ;;  %v7801_v0 = vpop.permute.xlu1 %795 }
 0x4fe   :  { %12421 = vst [vmem:[#allocation112_spill] sm:$0xff] %v7801_v0  ;;  %v7821_v0 = vpop.permute.xlu2 %941 }
 0x4ff   :  { %12426 = vst [vmem:[#allocation117_spill] sm:$0xff] %v7821_v0 }
 0x504   :  { %1244 = vperm.xlu2 %6815, %v7118_v23  }
 0x505   :  { %1238 = vperm.xlu1 %6814, %v7118_v23   ;;  %v7807_v55 = vpop.permute.xlu1 %814 }
 0x506   :  { %v7827_v54 = vpop.permute.xlu2 %953 }
 0x507   :  { %12428 = vst [vmem:[#allocation119_spill] sm:$0xff] %v7827_v54 }
 0x50c   :  { %6817 = vset.pattern.permute.xlu2 %v7061_v14 }
 0x50d   :  { %6816 = vset.pattern.permute.xlu1 %v7064_v15  ;;  %v7813_v61 = vpop.permute.xlu1 %826 }
 0x50e   :  { %12423 = vst [vmem:[#allocation114_spill] sm:$0xff] %v7813_v61  ;;  %v7833_v36 = vpop.permute.xlu2 %971 }
 0x50f   :  { %12430 = vst [vmem:[#allocation121_spill] sm:$0xff] %v7833_v36 }
 0x514   :  { %1256 = vperm.xlu2 %6817, %v7118_v23  }
 0x515   :  { %1250 = vperm.xlu1 %6816, %v7118_v23   ;;  %v7819_v7 = vpop.permute.xlu1 %844 }
 0x516   :  { %12425 = vst [vmem:[#allocation116_spill] sm:$0xff] %v7819_v7  ;;  %v7839_v0 = vpop.permute.xlu2 %983 }
 0x517   :  { %12432 = vst [vmem:[#allocation123_spill] sm:$0xff] %v7839_v0 }
 0x51c   :  { %6820 = vset.pattern.permute.xlu2 %v7150_v29 }
 0x51d   :  { %6819 = vset.pattern.permute.xlu1 %v7073_v16  ;;  %v7825_v4 = vpop.permute.xlu1 %856 }
 0x51e   :  { %12427 = vst [vmem:[#allocation118_spill] sm:$0xff] %v7825_v4  ;;  %v7845_v4 = vpop.permute.xlu2 %1002 }
 0x524   :  { %1274 = vperm.xlu2 %6820, %v7118_v23  }
 0x525   :  { %1268 = vperm.xlu1 %6819, %v7118_v23   ;;  %v7831_v61 = vpop.permute.xlu1 %874 }
 0x526   :  { %12429 = vst [vmem:[#allocation120_spill] sm:$0xff] %v7831_v61 }
 0x52c   :  { %6822 = vset.pattern.permute.xlu2 %v7085_v18 }
 0x52d   :  { %6821 = vset.pattern.permute.xlu1 %v7088_v19  ;;  %v7837_v7 = vpop.permute.xlu1 %886 }
 0x52e   :  { %12431 = vst [vmem:[#allocation122_spill] sm:$0xff] %v7837_v7  ;;  %v7853_v7 = vpop.permute.xlu2 %1014 }
 0x52f   :  { %12434 = vst [vmem:[#allocation125_spill] sm:$0xff] %v7853_v7 }
 0x534   :  { %1286 = vperm.xlu2 %6822, %v7118_v23  }
 0x535   :  { %1280 = vperm.xlu1 %6821, %v7118_v23   ;;  %v7843_v23 = vpop.permute.xlu1 %905 }
 0x536   :  { %v7859_v36 = vpop.permute.xlu2 %1032 }
 0x537   :  { %12436 = vst [vmem:[#allocation127_spill] sm:$0xff] %v7859_v36 }
 0x53c   :  { %6825 = vset.pattern.permute.xlu2 %v7012_v3 }
 0x53d   :  { %6824 = vset.pattern.permute.xlu1 %v7097_v20  ;;  %v7849_v61 = vpop.permute.xlu1 %917 }
 0x53e   :  { %12433 = vst [vmem:[#allocation124_spill] sm:$0xff] %v7849_v61  ;;  %v7867_v30 = vpop.permute.xlu2 %1044 }
 0x53f   :  { %12439 = vst [vmem:[#allocation130_spill] sm:$0xff] %v7867_v30 }
 0x544   :  { %1305 = vperm.xlu2 %6825, %v7192_v38  }
 0x545   :  { %1299 = vperm.xlu1 %6824, %v7192_v38   ;;  %v7855_v0 = vpop.permute.xlu1 %935 }
 0x546   :  { %12435 = vst [vmem:[#allocation126_spill] sm:$0xff] %v7855_v0  ;;  %v7873_v59 = vpop.permute.xlu2 %1062 }
 0x547   :  { %12441 = vst [vmem:[#allocation132_spill] sm:$0xff] %v7873_v59 }
 0x54c   :  { %6827 = vset.pattern.permute.xlu2 %v7009_v2 }
 0x54d   :  { %6826 = vset.pattern.permute.xlu1 %v7035_v9  ;;  %v7861_v54 = vpop.permute.xlu1 %947 }
 0x54e   :  { %12437 = vst [vmem:[#allocation128_spill] sm:$0xff] %v7861_v54  ;;  %v7879_v36 = vpop.permute.xlu2 %1074 }
 0x54f   :  { %12443 = vst [vmem:[#allocation134_spill] sm:$0xff] %v7879_v36 }
 0x554   :  { %1317 = vperm.xlu2 %6827, %v7192_v38  }
 0x555   :  { %1311 = vperm.xlu1 %6826, %v7192_v38   ;;  %v7865_v22 = vpop.permute.xlu1 %965 }
 0x556   :  { %12438 = vst [vmem:[#allocation129_spill] sm:$0xff] %v7865_v22  ;;  %v7885_v30 = vpop.permute.xlu2 %1092 }
 0x557   :  { %12444 = vst [vmem:[#allocation135_spill] sm:$0xff] %v7885_v30 }
 0x55c   :  { %6830 = vset.pattern.permute.xlu2 %v7049_v12 }
 0x55d   :  { %6829 = vset.pattern.permute.xlu1 %v7052_v13  ;;  %v7871_v0 = vpop.permute.xlu1 %977 }
 0x55e   :  { %12440 = vst [vmem:[#allocation131_spill] sm:$0xff] %v7871_v0  ;;  %v7891_v59 = vpop.permute.xlu2 %1105 }
 0x564   :  { %1335 = vperm.xlu2 %6830, %v7192_v38  }
 0x565   :  { %1329 = vperm.xlu1 %6829, %v7192_v38   ;;  %v7877_v54 = vpop.permute.xlu1 %995 }
 0x566   :  { %12442 = vst [vmem:[#allocation133_spill] sm:$0xff] %v7877_v54  ;;  %v7897_v36 = vpop.permute.xlu2 %1123 }
 0x567   :  { %12447 = vst [vmem:[#allocation138_spill] sm:$0xff] %v7897_v36 }
 0x56c   :  { %6832 = vset.pattern.permute.xlu2 %v7064_v15 }
 0x56d   :  { %6831 = vset.pattern.permute.xlu1 %v7129_v25  ;;  %v7883_v22 = vpop.permute.xlu1 %1008 }
 0x56e   :  { %v7903_v61 = vpop.permute.xlu2 %1135 }
 0x56f   :  { %12449 = vst [vmem:[#allocation140_spill] sm:$0xff] %v7903_v61 }
 0x574   :  { %1347 = vperm.xlu2 %6832, %v7192_v38  }
 0x575   :  { %1341 = vperm.xlu1 %6831, %v7192_v38   ;;  %v7889_v0 = vpop.permute.xlu1 %1026 }
 0x576   :  { %12445 = vst [vmem:[#allocation136_spill] sm:$0xff] %v7889_v0  ;;  %v7909_v7 = vpop.permute.xlu2 %1153 }
 0x577   :  { %12451 = vst [vmem:[#allocation142_spill] sm:$0xff] %v7909_v7 }
 0x57c   :  { %6835 = vset.pattern.permute.xlu2 %v7073_v16 }
 0x57d   :  { %6834 = vset.pattern.permute.xlu1 %v7076_v17  ;;  %v7895_v54 = vpop.permute.xlu1 %1038 }
 0x57e   :  { %12446 = vst [vmem:[#allocation137_spill] sm:$0xff] %v7895_v54  ;;  %v7917_v36 = vpop.permute.xlu2 %1165 }
 0x57f   :  { %12453 = vst [vmem:[#allocation144_spill] sm:$0xff] %v7917_v36 }
 0x584   :  { %1365 = vperm.xlu2 %6835, %v7192_v38  }
 0x585   :  { %1359 = vperm.xlu1 %6834, %v7192_v38   ;;  %v7901_v30 = vpop.permute.xlu1 %1056 }
 0x586   :  { %12448 = vst [vmem:[#allocation139_spill] sm:$0xff] %v7901_v30 }
 0x58c   :  { %6837 = vset.pattern.permute.xlu2 %v7088_v19 }
 0x58d   :  { %6836 = vset.pattern.permute.xlu1 %v7150_v29  ;;  %v7907_v0 = vpop.permute.xlu1 %1068 }
 0x58e   :  { %12450 = vst [vmem:[#allocation141_spill] sm:$0xff] %v7907_v0  ;;  %v7925_v0 = vpop.permute.xlu2 %1183 }
 0x58f   :  { %12454 = vst [vmem:[#allocation145_spill] sm:$0xff] %v7925_v0 }
 0x594   :  { %1377 = vperm.xlu2 %6837, %v7192_v38  }
 0x595   :  { %1371 = vperm.xlu1 %6836, %v7192_v38   ;;  %v7912_v38 = vpop.permute.xlu0 %808  ;;  %v7915_v54 = vpop.permute.xlu1 %1086 }
 0x596   :  { %12452 = vst [vmem:[#allocation143_spill] sm:$0xff] %v7915_v54  ;;  %v7933_v54 = vpop.permute.xlu2 %1196 }
 0x59c   :  { %6840 = vset.pattern.permute.xlu2 %v7097_v20 }
 0x59d   :  { %6839 = vset.pattern.permute.xlu1 %v7006_v1  ;;  %v7921_v30 = vpop.permute.xlu0 %1293  ;;  %v7923_v61 = vpop.permute.xlu1 %1099 }
 0x59e   :  { %v7941_v51 = vpop.permute.xlu2 %1214 }
 0x5a4   :  { %1396 = vperm.xlu2 %6840, %v7330_v58  }
 0x5a5   :  { %1390 = vperm.xlu1 %6839, %v7330_v58   ;;  %v7931_v7 = vpop.permute.xlu0 %353 }
 0x5a6   :  { %12456 = vst [vmem:[#allocation147_spill] sm:$0xff] %v7931_v7  ;;  %v7949_v7 = vpop.permute.xlu2 %1226 }
 0x5a7   :  { %12461 = vst [vmem:[#allocation152_spill] sm:$0xff] %v7949_v7 }
 0x5ac   :  { %6842 = vset.pattern.permute.xlu2 %v7035_v9  ;;  %v7929_v9 = vpop.permute.xlu1 %1117 }
 0x5ad   :  { %6841 = vset.pattern.permute.xlu1 %v7012_v3  ;;  %12455 = vst [vmem:[#allocation146_spill] sm:$0xff] %v7929_v9  ;;  %v7939_v56 = vpop.permute.xlu0 %838 }
 0x5ae   :  { %12458 = vst [vmem:[#allocation149_spill] sm:$0xff] %v7939_v56 }
 0x5b4   :  { %1408 = vperm.xlu2 %6842, %v7330_v58   ;;  %v7937_v36 = vpop.permute.xlu1 %1129 }
 0x5b5   :  { %1402 = vperm.xlu1 %6841, %v7330_v58   ;;  %12457 = vst [vmem:[#allocation148_spill] sm:$0xff] %v7937_v36  ;;  %v7947_v9 = vpop.permute.xlu0 %1323  ;;  %v7955_v36 = vpop.permute.xlu2 %1244 }
 0x5b6   :  { %12460 = vst [vmem:[#allocation151_spill] sm:$0xff] %v7947_v9 }
 0x5b7   :  { %12463 = vst [vmem:[#allocation154_spill] sm:$0xff] %v7955_v36 }
 0x5bc   :  { %6845 = vset.pattern.permute.xlu2 %v7052_v13  ;;  %v7945_v0 = vpop.permute.xlu1 %1147 }
 0x5bd   :  { %6844 = vset.pattern.permute.xlu1 %v7032_v8  ;;  %12459 = vst [vmem:[#allocation150_spill] sm:$0xff] %v7945_v0  ;;  %v7958_v56 = vpop.permute.xlu0 %383  ;;  %v7963_v0 = vpop.permute.xlu2 %1256 }
 0x5be   :  { %12464 = vst [vmem:[#allocation155_spill] sm:$0xff] %v7958_v56 }
 0x5bf   :  { %12466 = vst [vmem:[#allocation157_spill] sm:$0xff] %v7963_v0 }
 0x5c4   :  { %1426 = vperm.xlu2 %6845, %v7330_v58   ;;  %v7953_v27 = vpop.permute.xlu1 %1159 }
 0x5c5   :  { %1420 = vperm.xlu1 %6844, %v7330_v58   ;;  %12462 = vst [vmem:[#allocation153_spill] sm:$0xff] %v7953_v27  ;;  %v7966_v7 = vpop.permute.xlu0 %868  ;;  %v7971_v27 = vpop.permute.xlu2 %1274 }
 0x5c6   :  { %12467 = vst [vmem:[#allocation158_spill] sm:$0xff] %v7966_v7 }
 0x5c7   :  { %12469 = vst [vmem:[#allocation160_spill] sm:$0xff] %v7971_v27 }
 0x5cc   :  { %6847 = vset.pattern.permute.xlu2 %v7129_v25  ;;  %v7961_v25 = vpop.permute.xlu1 %1177 }
 0x5cd   :  { %6846 = vset.pattern.permute.xlu1 %v7049_v12  ;;  %12465 = vst [vmem:[#allocation156_spill] sm:$0xff] %v7961_v25  ;;  %v7975_v36 = vpop.permute.xlu0 %1353  ;;  %v7979_v25 = vpop.permute.xlu2 %1286 }
 0x5ce   :  { %12470 = vst [vmem:[#allocation161_spill] sm:$0xff] %v7975_v36 }
 0x5cf   :  { %12471 = vst [vmem:[#allocation162_spill] sm:$0xff] %v7979_v25 }
 0x5d4   :  { %1438 = vperm.xlu2 %6847, %v7330_v58   ;;  %v7969_v9 = vpop.permute.xlu1 %1189 }
 0x5d5   :  { %1432 = vperm.xlu1 %6846, %v7330_v58   ;;  %12468 = vst [vmem:[#allocation159_spill] sm:$0xff] %v7969_v9  ;;  %v7985_v0 = vpop.permute.xlu0 %413  ;;  %v7987_v9 = vpop.permute.xlu2 %1305 }
 0x5d6   :  { %12473 = vst [vmem:[#allocation164_spill] sm:$0xff] %v7985_v0 }
 0x5dc   :  { %6850 = vset.pattern.permute.xlu2 %v7076_v17  ;;  %v7977_v56 = vpop.permute.xlu1 %1208 }
 0x5dd   :  { %6849 = vset.pattern.permute.xlu1 %v7061_v14  ;;  %v7993_v27 = vpop.permute.xlu0 %898  ;;  %v7995_v36 = vpop.permute.xlu2 %1317 }
 0x5de   :  { %12475 = vst [vmem:[#allocation166_spill] sm:$0xff] %v7993_v27 }
 0x5df   :  { %12476 = vst [vmem:[#allocation167_spill] sm:$0xff] %v7995_v36 }
 0x5e4   :  { %1456 = vperm.xlu2 %6850, %v7330_v58   ;;  %v7983_v7 = vpop.permute.xlu1 %1220 }
 0x5e5   :  { %1450 = vperm.xlu1 %6849, %v7330_v58   ;;  %12472 = vst [vmem:[#allocation163_spill] sm:$0xff] %v7983_v7  ;;  %v8001_v7 = vpop.permute.xlu0 %1383  ;;  %v8003_v0 = vpop.permute.xlu2 %1335 }
 0x5e6   :  { %12478 = vst [vmem:[#allocation169_spill] sm:$0xff] %v8001_v7 }
 0x5e7   :  { %12479 = vst [vmem:[#allocation170_spill] sm:$0xff] %v8003_v0 }
 0x5ec   :  { %6852 = vset.pattern.permute.xlu2 %v7150_v29  ;;  %v7991_v29 = vpop.permute.xlu1 %1238 }
 0x5ed   :  { %6851 = vset.pattern.permute.xlu1 %v7073_v16  ;;  %12474 = vst [vmem:[#allocation165_spill] sm:$0xff] %v7991_v29  ;;  %v8009_v29 = vpop.permute.xlu2 %1347  ;;  %v8012_v27 = vpop.permute.xlu0 %444 }
 0x5ee   :  { %12481 = vst [vmem:[#allocation172_spill] sm:$0xff] %v8009_v29 }
 0x5ef   :  { %12482 = vst [vmem:[#allocation173_spill] sm:$0xff] %v8012_v27 }
 0x5f4   :  { %1468 = vperm.xlu2 %6852, %v7330_v58   ;;  %v7999_v25 = vpop.permute.xlu1 %1250 }
 0x5f5   :  { %1462 = vperm.xlu1 %6851, %v7330_v58   ;;  %12477 = vst [vmem:[#allocation168_spill] sm:$0xff] %v7999_v25  ;;  %v8017_v25 = vpop.permute.xlu2 %1365 }
 0x5f6   :  { %12484 = vst [vmem:[#allocation175_spill] sm:$0xff] %v8017_v25 }
 0x5fc   :  { %6855 = vset.pattern.permute.xlu2 %v7006_v1  ;;  %v8007_v1 = vpop.permute.xlu1 %1268 }
 0x5fd   :  { %6854 = vset.pattern.permute.xlu1 %v7085_v18  ;;  %12480 = vst [vmem:[#allocation171_spill] sm:$0xff] %v8007_v1  ;;  %v8025_v7 = vpop.permute.xlu2 %1377 }
 0x5fe   :  { %12486 = vst [vmem:[#allocation177_spill] sm:$0xff] %v8025_v7 }
 0x604   :  { %1487 = vperm.xlu2 %6855, %v7375_v48  }
 0x605   :  { %1480 = vperm.xlu1 %6854, %v7330_v58   ;;  %v8015_v58 = vpop.permute.xlu1 %1280 }
 0x606   :  { %12483 = vst [vmem:[#allocation174_spill] sm:$0xff] %v8015_v58 }
 0x60c   :  { %6857 = vset.pattern.permute.xlu2 %v7012_v3  ;;  %v8021_v3 = vpop.permute.xlu0 %929 }
 0x60d   :  { %6856 = vset.pattern.permute.xlu1 %v7097_v20  ;;  %12485 = vst [vmem:[#allocation176_spill] sm:$0xff] %v8021_v3  ;;  %v8023_v20 = vpop.permute.xlu1 %1299 }
 0x614   :  { %1499 = vperm.xlu2 %6857, %v7375_v48   ;;  %v8031_v29 = vpop.permute.xlu0 %1414 }
 0x615   :  { %1493 = vperm.xlu1 %6856, %v7375_v48   ;;  %v8029_v1 = vpop.permute.xlu1 %1311  ;;  %12487 = vst [vmem:[#allocation178_spill] sm:$0xff] %v8031_v29 }
 0x61c   :  { %6860 = vset.pattern.permute.xlu2 %v7032_v8  ;;  %v8035_v8 = vpop.permute.xlu2 %1396  ;;  %v8039_v58 = vpop.permute.xlu0 %474 }
 0x61d   :  { %6859 = vset.pattern.permute.xlu1 %v7009_v2  ;;  %v8037_v2 = vpop.permute.xlu1 %1329  ;;  %12489 = vst [vmem:[#allocation180_spill] sm:$0xff] %v8039_v58 }
 0x61e   :  { %12488 = vst [vmem:[#allocation179_spill] sm:$0xff] %v8037_v2 }
 0x624   :  { %1517 = vperm.xlu2 %6860, %v7375_v48   ;;  %v8043_v7 = vpop.permute.xlu2 %1408  ;;  %v8048_v0 = vpop.permute.xlu0 %959 }
 0x625   :  { %1511 = vperm.xlu1 %6859, %v7375_v48   ;;  %v8045_v25 = vpop.permute.xlu1 %1341  ;;  %12491 = vst [vmem:[#allocation182_spill] sm:$0xff] %v8048_v0 }
 0x626   :  { %12490 = vst [vmem:[#allocation181_spill] sm:$0xff] %v8045_v25  ;;  %v1704_v25 = vrot.slane %v7923_v61, 4 }
 0x62c   :  { %6862 = vset.pattern.permute.xlu2 %v7049_v12  ;;  %v8051_v12 = vpop.permute.xlu2 %1426  ;;  %v8059_v2 = vpop.permute.xlu0 %1444 }
 0x62d   :  { %6861 = vset.pattern.permute.xlu1 %v7052_v13  ;;  %12492 = vst [vmem:[#allocation183_spill] sm:$0xff] %v8051_v12  ;;  %v8053_v13 = vpop.permute.xlu1 %1359 }
 0x62e   :  { %12493 = vst [vmem:[#allocation184_spill] sm:$0xff] %v8053_v13  ;;  %v1692_v13 = vrot.slane %v7845_v4, 4 }
 0x62f   :  { %12495 = vst [vmem:[#allocation186_spill] sm:$0xff] %v8059_v2 }
 0x634   :  { %1529 = vperm.xlu2 %6862, %v7375_v48   ;;  %v8057_v58 = vpop.permute.xlu2 %1438  ;;  %v8067_v0 = vpop.permute.xlu0 %504 }
 0x635   :  { %1523 = vperm.xlu1 %6861, %v7375_v48   ;;  %12494 = vst [vmem:[#allocation185_spill] sm:$0xff] %v8057_v58  ;;  %v8061_v29 = vpop.permute.xlu1 %1371  ;;  %v1594_v58 = vrot.slane %v7295_v63, 4  ;;  %v1582_v63 = vrot.slane %v7282_v5, 4 }
 0x636   :  { %12496 = vst [vmem:[#allocation187_spill] sm:$0xff] %v8061_v29  ;;  %v1693_v29 = vsel %vm1580_vm0, %v1692_v13, %v7912_v38 }
 0x637   :  { %12498 = vst [vmem:[#allocation189_spill] sm:$0xff] %v8067_v0  ;;  %v1705_v0 = vsel %vm1580_vm0, %v1704_v25, %v7843_v23  ;;  %v1699_v12 = vperm.slane %v1693_v29, %v7297_v21  ;;  %v1583_v29 = vsel %vm1580_vm0, %v7289_v32, %v1582_v63 }
 0x638   :  { %v1711_v13 = vperm.slane %v1705_v0, %v7297_v21 }
 0x639   :  { %v1742_v25 = vrot.slane %v1699_v12, 4 }
 0x63c   :  { %6865 = vset.pattern.permute.xlu2 %v7061_v14  ;;  %v8090_v3 = vpop.permute.xlu0 %989 }
 0x63d   :  { %6864 = vset.pattern.permute.xlu1 %v7064_v15  ;;  %v1391_v15 = vpop.permute.xlu1 %1390  ;;  %12500 = vst [vmem:[#allocation191_spill] sm:$0xff] %v8090_v3  ;;  %v1743_v3 = vsel %vm1580_vm0, %v1711_v13, %v1742_v25 }
 0x63e   :  { %v8065_v14 = vpop.permute.xlu2 %1456 }
 0x63f   :  { %12497 = vst [vmem:[#allocation188_spill] sm:$0xff] %v8065_v14  ;;  %v1716_v14 = vrot.slane %v1391_v15, 4 }
 0x644   :  { %1547 = vperm.xlu2 %6865, %v7375_v48  }
 0x645   :  { %1541 = vperm.xlu1 %6864, %v7375_v48   ;;  %v8082_v2 = vpop.permute.xlu1 %1402 }
 0x64c   :  { %6867 = vset.pattern.permute.xlu2 %v7073_v16 }
 0x64d   :  { %6866 = vset.pattern.permute.xlu1 %v7076_v17  ;;  %v1595_v17 = vsel %vm1580_vm0, %v7291_v35, %v1594_v58  ;;  %v1717_v35 = vsel %vm1580_vm0, %v1716_v14, %v7933_v54  ;;  %v1740_v58 = vrot.slane %v1711_v13, 4  ;;  %v8104_v14 = vpop.permute.xlu1 %1420  ;;  %v8118_v13 = vperm.slane %v1743_v3, %v7619_v57 }
 0x64e   :  { %v8076_v16 = vpop.permute.xlu2 %1468  ;;  %v8087_v36 = vperm.slane %v1595_v17, %v7297_v21  ;;  %v1723_v17 = vperm.slane %v1717_v35, %v7297_v21  ;;  %12501 = vst [vmem:[#allocation192_spill] sm:$0xff] %v8104_v14 }
 0x64f   :  { %12499 = vst [vmem:[#allocation190_spill] sm:$0xff] %v8076_v16  ;;  %v1618_v16 = vrot.slane %v7523_v49, 4 }
 0x650   :  { %v1640_v0 = vrot.slane %v8087_v36, 4  ;;  %v1766_v35 = vrot.slane %v1723_v17, 4 }
 0x651   :  { %v1619_v5 = vsel %vm1580_vm0, %v7609_v52, %v1618_v16  ;;  %v1652_v52 = vrot.slane %v7617_v6, 4  ;;  %v1718_v16 = vrot.slane %v7933_v54, 4  ;;  %v1694_v6 = vrot.slane %v7912_v38, 4 }
 0x652   :  { %v8110_v32 = vperm.slane %v1619_v5, %v7297_v21 }
 0x654   :  { %1559 = vperm.xlu2 %6867, %v7375_v48   ;;  %v1664_v3 = vrot.slane %v8110_v32, 4 }
 0x655   :  { %1553 = vperm.xlu1 %6866, %v7375_v48  }
 0x65c   :  { %6869 = vset.pattern.permute.xlu2 %v7085_v18  ;;  %v8107_v18 = vperm.slane %v1583_v29, %v7297_v21  ;;  %v1741_v29 = vsel %vm1580_vm0, %v1740_v58, %v1699_v12  ;;  %v1653_v12 = vsel %vm1580_vm0, %v1652_v52, %v7607_v10  ;;  %v8149_v10 = vperm.slane %v7315_v33, %v7619_v57  ;;  %v8153_v52 = vpop.permute.xlu1 %1432 }
 0x65d   :  { %6868 = vset.pattern.permute.xlu1 %v7088_v19  ;;  %v1606_v19 = vrot.slane %v7519_v60, 4  ;;  %v1730_v60 = vrot.slane %v7921_v30, 4 }
 0x65e   :  { %v1488_v49 = vpop.permute.xlu2 %1487  ;;  %v1641_v5 = vsel %vm1580_vm0, %v1640_v0, %v8107_v18  ;;  %v8134_v0 = vpop.permute.xlu0 %1474 }
 0x65f   :  { %v1728_v27 = vrot.slane %v1488_v49, 4  ;;  %v1607_v54 = vsel %vm1580_vm0, %v7595_v46, %v1606_v19  ;;  %12502 = vst [vmem:[#allocation193_spill] sm:$0xff] %v8134_v0  ;;  %v1731_v38 = vsel %vm1580_vm0, %v1488_v49, %v1730_v60  ;;  %v8165_v33 = vperm.slane %v1641_v5, %v7619_v57 }
 0x660   :  { %v8144_v58 = vperm.slane %v1607_v54, %v7297_v21  ;;  %v1706_v60 = vrot.slane %v7843_v23, 4  ;;  %v1695_v54 = vsel %vm1580_vm0, %v7845_v4, %v1694_v6 }
 0x661   :  { %v1729_v63 = vsel %vm1580_vm0, %v1728_v27, %v7921_v30  ;;  %v1719_v27 = vsel %vm1580_vm0, %v1391_v15, %v1718_v16  ;;  %v1794_v30 = vrot.slane %v8118_v13, 4  ;;  %v8141_v15 = vperm.slane %v1741_v29, %v7619_v57 }
 0x662   :  { %v1735_v25 = vperm.slane %v1729_v63, %v7297_v21  ;;  %v1727_v19 = vperm.slane %v1719_v27, %v7297_v21  ;;  %v8162_v29 = vperm.slane %v1653_v12, %v7619_v57  ;;  %v1678_v12 = vrot.slane %v8149_v10, 4 }
 0x663   :  { %12503 = vst [vmem:[#allocation194_spill] sm:$0xff] %v8141_v15  ;;  %v1790_v27 = vrot.slane %v8141_v15, 4  ;;  %v1703_v4 = vperm.slane %v1695_v54, %v7297_v21 }
 0x664   :  { %v1764_v14 = vrot.slane %v1735_v25, 4  ;;  %1577 = vperm.xlu2 %6869, %v7375_v48   ;;  %v1767_v63 = vsel %vm1580_vm0, %v1735_v25, %v1766_v35  ;;  %v1739_v25 = vperm.slane %v1731_v38, %v7297_v21  ;;  %v1778_v38 = vrot.slane %v1727_v19, 4 }
 0x665   :  { %1571 = vperm.xlu1 %6868, %v7375_v48   ;;  %v1775_v46 = vperm.slane %v1767_v63, %v7619_v57  ;;  %v1840_v48 = vrot.slane %v7206_v42, 4  ;;  %v1816_v63 = vrot.slane %v7483_v43, 4 }
 0x666   :  { %v1765_v49 = vsel %vm1580_vm0, %v1764_v14, %v1723_v17  ;;  %v1665_v17 = vsel %vm1580_vm0, %v1664_v3, %v8144_v58  ;;  %v1828_v14 = vrot.slane %v7565_v45, 4  ;;  %v1707_v3 = vsel %vm1580_vm0, %v7923_v61, %v1706_v60  ;;  %v8198_v54 = vpop.permute.xlu0 %535 }
 0x667   :  { %v1795_v16 = vsel %vm1580_vm0, %v1775_v46, %v1794_v30  ;;  %v8157_v35 = vperm.slane %v1765_v49, %v7619_v57  ;;  %v1841_v5 = vsel %vm1580_vm0, %v1840_v48, %v7561_v39  ;;  %v1671_v23 = vperm.slane %v1665_v17, %v7619_v57 }
 0x668   :  { %5184 = vrot.lane.b32.xlu0 %v1795_v16, %s6929_s13  ;;  %v1776_v6 = vrot.slane %v1739_v25, 4  ;;  %v1779_v49 = vsel %vm1580_vm0, %v1739_v25, %v1778_v38  ;;  %v1679_v16 = vsel %vm1580_vm0, %v8162_v29, %v1678_v12  ;;  %v1829_v48 = vsel %vm1580_vm0, %v1828_v14, %v7487_v47 }
 0x669   :  { %v1791_v30 = vsel %vm1580_vm0, %v8157_v35, %v1790_v27  ;;  %v1686_v61 = vrot.slane %v8165_v33, 4  ;;  %v8193_v17 = vperm.slane %v1841_v5, %v7297_v21  ;;  %v1715_v60 = vperm.slane %v1707_v3, %v7297_v21  ;;  %v8200_v27 = vpop.permute.xlu1 %1450 }
 0x66a   :  { %v1817_v25 = vsel %vm1580_vm0, %v1816_v63, %v7237_v50  ;;  %12504 = vst [vmem:[#allocation195_spill] sm:$0xff] %v8200_v27  ;;  %v8204_v14 = vperm.slane %v1779_v49, %v7619_v57  ;;  %v8207_v12 = vperm.slane %v1829_v48, %v7297_v21  ;;  %v1792_v5 = vrot.slane %v1775_v46, 4 }
 0x66b   :  { %v1687_v38 = vsel %vm1580_vm0, %v1671_v23, %v1686_v61  ;;  %v1777_v3 = vsel %vm1580_vm0, %v1776_v6, %v1727_v19  ;;  %v1804_v63 = vrot.slane %v7199_v40, 4  ;;  %v8214_v0 = vperm.slane %v1817_v25, %v7297_v21 }
 0x66c   :  { %5168 = vrot.lane.b32.xlu2 %v1791_v30, %s6930_s14  ;;  %v1754_v30 = vrot.slane %v1703_v4, 4  ;;  %v1876_v49 = vrot.slane %v8193_v17, 4  ;;  %v1752_v61 = vrot.slane %v1715_v60, 4  ;;  %v1783_v46 = vperm.slane %v1777_v3, %v7619_v57 }
 0x66d   :  { %5166 = vrot.lane.b32.xlu1 %v1679_v16, %s6930_s14  ;;  %v1682_v16 = vrot.slane %v7631_v62, 4  ;;  %v1793_v19 = vsel %vm1580_vm0, %v1792_v5, %v8118_v13  ;;  %v1805_v6 = vsel %vm1580_vm0, %v1804_v63, %v7189_v37  ;;  %v1666_v25 = vrot.slane %v8144_v58, 4 }
 0x66e   :  { %v1755_v48 = vsel %vm1580_vm0, %v1715_v60, %v1754_v30  ;;  %v1877_v62 = vsel %vm1580_vm0, %v1876_v49, %v8207_v12  ;;  %v1753_v30 = vsel %vm1580_vm0, %v1752_v61, %v1703_v4  ;;  %v8241_v63 = vperm.slane %v1805_v6, %v7297_v21  ;;  %v8246_v49 = vpop.permute.xlu0 %1020 }
 0x66f   :  { %v1683_v27 = vsel %vm1580_vm0, %v7628_v34, %v1682_v16  ;;  %v1763_v60 = vperm.slane %v1755_v48, %v7619_v57  ;;  %v1852_v34 = vrot.slane %v8214_v0, 4  ;;  %v8238_v5 = vperm.slane %v1877_v62, %v7619_v57 }
 0x670   :  { %5198 = vrot.lane.b32.xlu0 %v1687_v38, %s6931_s15  ;;  %v1800_v38 = vrot.slane %v8204_v14, 4  ;;  %v1667_v16 = vsel %vm1580_vm0, %v8110_v32, %v1666_v25  ;;  %v1684_v58 = vrot.slane %v1671_v23, 4  ;;  %v1759_v4 = vperm.slane %v1753_v30, %v7619_v57 }
 0x671   :  { %v8234_v3 = vpop.permute.xlu1 %1462  ;;  %v1928_v61 = vrot.slane %v7891_v59, 4  ;;  %v1853_v48 = vsel %vm1580_vm0, %v1852_v34, %v8241_v63  ;;  %v1675_v62 = vperm.slane %v1667_v16, %v7619_v57  ;;  %v1642_v32 = vrot.slane %v8107_v18, 4 }
 0x672   :  { %12505 = vst [vmem:[#allocation196_spill] sm:$0xff] %v8234_v3  ;;  %v1801_v13 = vsel %vm1580_vm0, %v1800_v38, %v1763_v60  ;;  %v1685_v23 = vsel %vm1580_vm0, %v1684_v58, %v8165_v33  ;;  %v8261_v6 = vperm.slane %v1853_v48, %v7619_v57  ;;  %v1916_v33 = vrot.slane %v7883_v22, 4 }
 0x673   :  { %v1929_v34 = vsel %vm1580_vm0, %v1928_v61, %v7809_v53  ;;  %v1643_v25 = vsel %vm1580_vm0, %v8087_v36, %v1642_v32  ;;  %v1798_v58 = vrot.slane %v1759_v4, 4  ;;  %v1940_v36 = vrot.slane %v8035_v8, 4 }
 0x674   :  { %5182 = vrot.lane.b32.xlu2 %v1683_v27, %s6929_s13  ;;  %v1796_v27 = vrot.slane %v1783_v46, 4  ;;  %v1651_v16 = vperm.slane %v1643_v25, %v7619_v57 }
 0x675   :  { %5176 = vrot.lane.b32.xlu1 %v1793_v19, %s6928_s0  ;;  %v1900_v19 = vrot.slane %v8238_v5, 4 }
 0x676   :  { %v1797_v38 = vsel %vm1580_vm0, %v1796_v27, %v1759_v4  ;;  %v8274_v27 = vperm.slane %v1929_v34, %v7297_v21  ;;  %v8277_v61 = vpop.permute.xlu0 %1505  ;;  %v1941_v4 = vsel %vm1580_vm0, %v1940_v36, %v7213_v44 }
 0x677   :  { %v1901_v18 = vsel %vm1580_vm0, %v1900_v19, %v8261_v6  ;;  %v1799_v19 = vsel %vm1580_vm0, %v1783_v46, %v1798_v58  ;;  %v1842_v46 = vrot.slane %v7561_v39, 4  ;;  %v1954_v58 = vrot.slane %v8023_v20, 4 }
 0x678   :  { %5208 = vrot.lane.b32.xlu0 %v1801_v13, %s6932_s16  ;;  %v1688_v13 = vrot.slane %v1675_v62, 4  ;;  %v1964_v32 = vrot.slane %v8274_v27, 4 }
 0x679   :  { %v8267_v30 = vpop.permute.xlu1 %1480 }
 0x67a   :  { %12506 = vst [vmem:[#allocation197_spill] sm:$0xff] %v8267_v30  ;;  %v1689_v48 = vsel %vm1580_vm0, %v1688_v13, %v1651_v16  ;;  %v1802_v13 = vrot.slane %v1763_v60, 4  ;;  %v1818_v60 = vrot.slane %v7237_v50, 4 }
 0x67c   :  { %5192 = vrot.lane.b32.xlu2 %v1797_v38, %s6925_s12  ;;  %v1917_v38 = vsel %vm1580_vm0, %v1916_v33, %v7807_v55  ;;  %v1819_v50 = vsel %vm1580_vm0, %v7483_v43, %v1818_v60 }
 0x67d   :  { %5190 = vrot.lane.b32.xlu1 %v1685_v23, %s6925_s12  ;;  %v8288_v23 = vperm.slane %v1917_v38, %v7297_v21 }
 0x67e   :  { %v8308_v30 = vpop.permute.xlu0 %80 }
 0x67f   :  { %v1965_v33 = vsel %vm1580_vm0, %v1964_v32, %v8288_v23 }
 0x680   :  { %5222 = vrot.lane.b32.xlu0 %v1901_v18, %s6933_s17  ;;  %v1690_v18 = vrot.slane %v1651_v16, 4  ;;  %v1803_v16 = vsel %vm1580_vm0, %v8204_v14, %v1802_v13  ;;  %v1942_v14 = vrot.slane %v7213_v44, 4 }
 0x682   :  { %v1691_v39 = vsel %vm1580_vm0, %v1675_v62, %v1690_v18  ;;  %v1843_v62 = vsel %vm1580_vm0, %v7206_v42, %v1842_v46  ;;  %v1902_v46 = vrot.slane %v8261_v6, 4 }
 0x683   :  { %v1851_v42 = vperm.slane %v1843_v62, %v7297_v21 }
 0x684   :  { %5206 = vrot.lane.b32.xlu2 %v1689_v48, %s6932_s16  ;;  %v1947_v48 = vperm.slane %v1941_v4, %v7297_v21  ;;  %v1971_v4 = vperm.slane %v1965_v33, %v7619_v57  ;;  %v1930_v33 = vrot.slane %v7809_v53, 4  ;;  %v1943_v53 = vsel %vm1580_vm0, %v8035_v8, %v1942_v14 }
 0x685   :  { %5200 = vrot.lane.b32.xlu1 %v1799_v19, %s6931_s15  ;;  %v1854_v19 = vrot.slane %v8241_v63, 4  ;;  %v1918_v14 = vrot.slane %v7807_v55, 4 }
 0x687   :  { %v1494_v34 = vpop.permute.xlu1 %1493 }
 0x688   :  { %v1952_v25 = vrot.slane %v1494_v34, 4  ;;  %v1955_v32 = vsel %vm1580_vm0, %v1494_v34, %v1954_v58  ;;  %v1990_v34 = vrot.slane %v1947_v48, 4  ;;  %v2014_v58 = vrot.slane %v1971_v4, 4 }
 0x689   :  { %v8319_v18 = vperm.slane %v1955_v32, %v7297_v21  ;;  %v1806_v32 = vrot.slane %v7189_v37, 4 }
 0x68a   :  { %v1953_v38 = vsel %vm1580_vm0, %v1952_v25, %v8023_v20  ;;  %v1878_v20 = vrot.slane %v8207_v12, 4  ;;  %v1830_v25 = vrot.slane %v7487_v47, 4  ;;  %v1855_v12 = vsel %vm1580_vm0, %v8214_v0, %v1854_v19 }
 0x68b   :  { %v1959_v36 = vperm.slane %v1953_v38, %v7297_v21  ;;  %v1931_v0 = vsel %vm1580_vm0, %v7891_v59, %v1930_v33  ;;  %v1863_v6 = vperm.slane %v1855_v12, %v7619_v57 }
 0x68c   :  { %5216 = vrot.lane.b32.xlu2 %v1803_v16, %s6934_s18  ;;  %v1831_v47 = vsel %vm1580_vm0, %v7565_v45, %v1830_v25  ;;  %v1903_v45 = vsel %vm1580_vm0, %v8238_v5, %v1902_v46  ;;  %v1966_v16 = vrot.slane %v8288_v23, 4  ;;  %v8353_v5 = vperm.slane %v1931_v0, %v7297_v21 }
 0x68d   :  { %v1988_v63 = vrot.slane %v1959_v36, 4  ;;  %5214 = vrot.lane.b32.xlu1 %v1691_v39, %s6934_s18  ;;  %v1991_v43 = vsel %vm1580_vm0, %v1959_v36, %v1990_v34  ;;  %v2000_v36 = vrot.slane %v8319_v18, 4  ;;  %v1839_v59 = vperm.slane %v1831_v47, %v7297_v21  ;;  %v8350_v39 = vpop.permute.xlu0 %565 }
 0x68e   :  { %12507 = vst [vmem:[#allocation198_spill] sm:$0xff] %v8350_v39  ;;  %v1827_v23 = vperm.slane %v1819_v50, %v7297_v21  ;;  %v1967_v37 = vsel %vm1580_vm0, %v8274_v27, %v1966_v16  ;;  %v1906_v12 = vrot.slane %v1863_v6, 4  ;;  %v1807_v50 = vsel %vm1580_vm0, %v7199_v40, %v1806_v32 }
 0x68f   :  { %v1989_v13 = vsel %vm1580_vm0, %v1988_v63, %v1947_v48  ;;  %v1879_v48 = vsel %vm1580_vm0, %v8193_v17, %v1878_v20  ;;  %v1999_v17 = vperm.slane %v1991_v43, %v7619_v57  ;;  %v8356_v20 = vperm.slane %v1943_v53, %v7297_v21 }
 0x690   :  { %v1995_v44 = vperm.slane %v1989_v13, %v7619_v57  ;;  %v1887_v60 = vperm.slane %v1879_v48, %v7619_v57  ;;  %v1888_v63 = vrot.slane %v1851_v42, 4  ;;  %v1919_v13 = vsel %vm1580_vm0, %v7883_v22, %v1918_v14 }
 0x691   :  { %v2016_v62 = vrot.slane %v1999_v17, 4  ;;  %v2001_v34 = vsel %vm1580_vm0, %v2000_v36, %v8356_v20  ;;  %v1976_v55 = vrot.slane %v8353_v5, 4  ;;  %v1890_v47 = vrot.slane %v1839_v59, 4 }
 0x692   :  { %v2015_v38 = vsel %vm1580_vm0, %v1995_v44, %v2014_v58  ;;  %v2012_v19 = vrot.slane %v1995_v44, 4  ;;  %v1889_v25 = vsel %vm1580_vm0, %v1888_v63, %v1839_v59  ;;  %v1904_v33 = vrot.slane %v1887_v60, 4 }
 0x693   :  { %5232 = vrot.lane.b32.xlu0 %v2015_v38, %s6935_s19  ;;  %v1975_v44 = vperm.slane %v1967_v37, %v7619_v57  ;;  %v1864_v58 = vrot.slane %v1827_v23, 4  ;;  %v1907_v27 = vsel %vm1580_vm0, %v1887_v60, %v1906_v12  ;;  %v8376_v43 = vperm.slane %v2001_v34, %v7619_v57 }
 0x694   :  { %5230 = vrot.lane.b32.xlu2 %v1903_v45, %s6935_s19  ;;  %v2013_v8 = vsel %vm1580_vm0, %v2012_v19, %v1971_v4  ;;  %v8361_v4 = vpop.permute.xlu2 %1499  ;;  %v1927_v46 = vperm.slane %v1919_v13, %v7297_v21  ;;  %v1895_v40 = vperm.slane %v1889_v25, %v7619_v57  ;;  %v1815_v48 = vperm.slane %v1807_v50, %v7297_v21 }
 0x695   :  { %5224 = vrot.lane.b32.xlu1 %v2013_v8, %s6933_s17  ;;  %v2017_v22 = vsel %vm1580_vm0, %v2016_v62, %v1975_v44  ;;  %v1905_v0 = vsel %vm1580_vm0, %v1904_v33, %v1863_v6  ;;  %v2020_v19 = vrot.slane %v8376_v43, 4  ;;  %v8391_v45 = vpop.permute.xlu0 %1050  ;;  %v1891_v16 = vsel %vm1580_vm0, %v1851_v42, %v1890_v47 }
 0x696   :  { %v1977_v53 = vsel %vm1580_vm0, %v1976_v55, %v1927_v46  ;;  %v1865_v36 = vsel %vm1580_vm0, %v1864_v58, %v1815_v48  ;;  %12508 = vst [vmem:[#allocation199_spill] sm:$0xff] %v8391_v45  ;;  %v1908_v59 = vrot.slane %v1895_v40, 4  ;;  %v1866_v60 = vrot.slane %v1815_v48, 4  ;;  %v12509_v48 = vld [vmem:[#allocation8_spill] sm:$0xff] }
 0x697   :  { %v1983_v8 = vperm.slane %v1977_v53, %v7619_v57  ;;  %v2040_v6 = vrot.slane %v7451_v28, 4  ;;  %v2176_v32 = vrot.slane %v8361_v4, 4  ;;  %v1871_v63 = vperm.slane %v1865_v36, %v7619_v57 }
 0x698   :  { %v2064_v14 = vrot.slane %v7771_v11, 4  ;;  %v2018_v62 = vrot.slane %v1975_v44, 4  ;;  %v8401_v34 = vperm.slane %v1891_v16, %v7619_v57  ;;  %v1867_v33 = vsel %vm1580_vm0, %v1827_v23, %v1866_v60  ;;  %v12511_v60 = vld [vmem:[#allocation23_spill] sm:$0xff] }
 0x699   :  { %v2021_v37 = vsel %vm1580_vm0, %v2020_v19, %v1983_v8  ;;  %v1909_v42 = vsel %vm1580_vm0, %v1908_v59, %v1871_v63  ;;  %v2041_v13 = vsel %vm1580_vm0, %v2040_v6, %v7125_v24  ;;  %v2177_v12 = vsel %vm1580_vm0, %v2176_v32, %v7987_v9 }
 0x69a   :  { %v2019_v25 = vsel %vm1580_vm0, %v1999_v17, %v2018_v62  ;;  %v2028_v50 = vrot.slane %v7447_v31, 4  ;;  %v2065_v55 = vsel %vm1580_vm0, %v2064_v14, %v7529_v41  ;;  %v1912_v58 = vrot.slane %v8401_v34, 4 }
 0x69b   :  { %5246 = vrot.lane.b32.xlu0 %v1907_v27, %s6936_s20  ;;  %v2052_v17 = vrot.slane %v7134_v26, 4  ;;  %v1978_v27 = vrot.slane %v1927_v46, 4  ;;  %v2002_v47 = vrot.slane %v8356_v20, 4  ;;  %v8424_v23 = vperm.slane %v2041_v13, %v7297_v21 }
 0x69c   :  { %5240 = vrot.lane.b32.xlu2 %v2017_v22, %s6937_s21  ;;  %v8387_v38 = vpop.permute.xlu2 %1517  ;;  %v2164_v22 = vrot.slane %v8082_v2, 4  ;;  %v8427_v53 = vperm.slane %v2177_v12, %v7297_v21  ;;  %v1875_v19 = vperm.slane %v1867_v33, %v7619_v57  ;;  %v8433_v59 = vperm.slane %v2065_v55, %v7297_v21  ;;  %v12514_v55 = vld [vmem:[#allocation124_spill] sm:$0xff] }
 0x69d   :  { %5238 = vrot.lane.b32.xlu1 %v1905_v0, %s6937_s21  ;;  %v2152_v0 = vrot.slane %v12509_v48, 4  ;;  %v8430_v36 = vpop.permute.xlu0 %1535  ;;  %v1979_v20 = vsel %vm1580_vm0, %v8353_v5, %v1978_v27  ;;  %v2022_v46 = vrot.slane %v1983_v8, 4  ;;  %v2003_v16 = vsel %vm1580_vm0, %v8319_v18, %v2002_v47  ;;  %v12516_v47 = vld [vmem:[#allocation103_spill] sm:$0xff] }
 0x69e   :  { %12510 = vst [vmem:[#allocation8_spill] sm:$0xff] %v8430_v36  ;;  %v2029_v6 = vsel %vm1580_vm0, %v2028_v50, %v12511_v60  ;;  %v1913_v32 = vsel %vm1580_vm0, %v1912_v58, %v1875_v19  ;;  %v1910_v14 = vrot.slane %v1871_v63, 4  ;;  %v2165_v13 = vsel %vm1580_vm0, %v2164_v22, %v7977_v56 }
 0x69f   :  { %v2023_v18 = vsel %vm1580_vm0, %v8376_v43, %v2022_v46  ;;  %v2212_v5 = vrot.slane %v8427_v53, 4  ;;  %v1987_v63 = vperm.slane %v1979_v20, %v7619_v57  ;;  %v2011_v12 = vperm.slane %v2003_v16, %v7619_v57 }
 0x6a0   :  { %v1911_v8 = vsel %vm1580_vm0, %v1895_v40, %v1910_v14  ;;  %v2076_v33 = vrot.slane %v8424_v23, 4  ;;  %v2100_v50 = vrot.slane %v8433_v59, 4  ;;  %v2153_v58 = vsel %vm1580_vm0, %v2152_v0, %v12514_v55 }
 0x6a1   :  { %v2171_v43 = vperm.slane %v2165_v13, %v7297_v21  ;;  %v8464_v27 = vperm.slane %v2029_v6, %v7297_v21  ;;  %v2159_v20 = vperm.slane %v2153_v58, %v7297_v21  ;;  %v2026_v46 = vrot.slane %v1987_v63, 4 }
 0x6a2   :  { %v2024_v16 = vrot.slane %v2011_v12, 4  ;;  %v1914_v14 = vrot.slane %v1875_v19, 4 }
 0x6a3   :  { %5256 = vrot.lane.b32.xlu0 %v2021_v37, %s6938_s22  ;;  %v12512_v37 = vld [vmem:[#allocation70_spill] sm:$0xff]  ;;  %v2213_v0 = vsel %vm1580_vm0, %v2212_v5, %v2171_v43  ;;  %v2077_v13 = vsel %vm1580_vm0, %v2076_v33, %v8464_v27  ;;  %v2188_v5 = vrot.slane %v2159_v20, 4  ;;  %v2214_v58 = vrot.slane %v2171_v43, 4 }
 0x6a4   :  { %5254 = vrot.lane.b32.xlu2 %v1909_v42, %s6938_s22  ;;  %v8416_v44 = vpop.permute.xlu2 %1529  ;;  %v2053_v62 = vsel %vm1580_vm0, %v2052_v17, %v12512_v37  ;;  %v12513_v42 = vld [vmem:[#allocation125_spill] sm:$0xff]  ;;  %v8485_v19 = vperm.slane %v2213_v0, %v7619_v57  ;;  %v2025_v33 = vsel %vm1580_vm0, %v2024_v16, %v1987_v63  ;;  %v8500_v63 = vpop.permute.xlu1 %1511 }
 0x6a5   :  { %5248 = vrot.lane.b32.xlu1 %v2019_v25, %s6936_s20  ;;  %v2140_v25 = vrot.slane %v12513_v42, 4  ;;  %v2059_v40 = vperm.slane %v2053_v62, %v7297_v21  ;;  %v2027_v62 = vsel %vm1580_vm0, %v2011_v12, %v2026_v46  ;;  %v2083_v12 = vperm.slane %v2077_v13, %v7619_v57 }
 0x6a6   :  { %v2236_v16 = vrot.slane %v8485_v19, 4 }
 0x6a7   :  { %v2141_v22 = vsel %vm1580_vm0, %v2140_v25, %v12516_v47  ;;  %v2101_v6 = vsel %vm1580_vm0, %v2100_v50, %v2059_v40  ;;  %v2126_v43 = vrot.slane %v2083_v12, 4 }
 0x6a8   :  { %v2107_v50 = vperm.slane %v2101_v6, %v7619_v57 }
 0x6ab   :  { %5270 = vrot.lane.b32.xlu0 %v1913_v32, %s6939_s23  ;;  %v2066_v32 = vrot.slane %v7529_v41, 4  ;;  %v1915_v41 = vsel %vm1580_vm0, %v8401_v34, %v1914_v14  ;;  %v2102_v34 = vrot.slane %v2059_v40, 4  ;;  %v2124_v14 = vrot.slane %v2107_v50, 4 }
 0x6ac   :  { %5264 = vrot.lane.b32.xlu2 %v2023_v18, %s6940_s24  ;;  %v8461_v17 = vpop.permute.xlu2 %1547  ;;  %v2147_v18 = vperm.slane %v2141_v22, %v7297_v21  ;;  %v2042_v22 = vrot.slane %v7125_v24, 4 }
 0x6ad   :  { %5262 = vrot.lane.b32.xlu1 %v1911_v8, %s6940_s24  ;;  %12515 = vst [vmem:[#allocation23_spill] sm:$0xff] %v8461_v17  ;;  %v8477_v8 = vpop.permute.xlu0 %110  ;;  %v2067_v25 = vsel %vm1580_vm0, %v7771_v11, %v2066_v32  ;;  %v2054_v11 = vrot.slane %v12512_v37, 4  ;;  %v2215_v37 = vsel %vm1580_vm0, %v8427_v53, %v2214_v58  ;;  %v2103_v24 = vsel %vm1580_vm0, %v8433_v59, %v2102_v34 }
 0x6ae   :  { %12517 = vst [vmem:[#allocation70_spill] sm:$0xff] %v8477_v8  ;;  %v8495_v46 = vperm.slane %v2067_v25, %v7297_v21  ;;  %v2189_v32 = vsel %vm1580_vm0, %v2188_v5, %v2147_v18  ;;  %v2190_v13 = vrot.slane %v2147_v18, 4  ;;  %v8515_v53 = vperm.slane %v2215_v37, %v7619_v57 }
 0x6af   :  { %v2055_v40 = vsel %vm1580_vm0, %v7134_v26, %v2054_v11  ;;  %v2195_v6 = vperm.slane %v2189_v32, %v7619_v57  ;;  %v2078_v5 = vrot.slane %v8464_v27, 4  ;;  %v8523_v59 = vperm.slane %v2103_v24, %v7619_v57 }
 0x6b0   :  { %v2112_v25 = vrot.slane %v8495_v46, 4  ;;  %v2154_v18 = vrot.slane %v12514_v55, 4  ;;  %v2125_v27 = vsel %vm1580_vm0, %v2124_v14, %v2083_v12  ;;  %v2030_v11 = vrot.slane %v12511_v60, 4  ;;  %v8545_v60 = vpop.permute.xlu1 %1523 }
 0x6b1   :  { %v2237_v26 = vsel %vm1580_vm0, %v2236_v16, %v2195_v6  ;;  %v2079_v55 = vsel %vm1580_vm0, %v8424_v23, %v2078_v5  ;;  %v2128_v16 = vrot.slane %v8523_v59, 4  ;;  %v2142_v37 = vrot.slane %v12516_v47, 4 }
 0x6b2   :  { %v2087_v24 = vperm.slane %v2079_v55, %v7619_v57 }
 0x6b3   :  { %5280 = vrot.lane.b32.xlu0 %v2027_v62, %s6941_s25  ;;  %v2043_v62 = vsel %vm1580_vm0, %v7451_v28, %v2042_v22  ;;  %v8526_v28 = vperm.slane %v2055_v40, %v7297_v21  ;;  %v2191_v22 = vsel %vm1580_vm0, %v2159_v20, %v2190_v13  ;;  %v2031_v20 = vsel %vm1580_vm0, %v7447_v31, %v2030_v11  ;;  %v12523_v11 = vld [vmem:[#allocation92_spill] sm:$0xff] }
 0x6b4   :  { %5278 = vrot.lane.b32.xlu2 %v1915_v41, %s6941_s25  ;;  %v8497_v0 = vpop.permute.xlu2 %1559  ;;  %v2127_v41 = vsel %vm1580_vm0, %v2107_v50, %v2126_v43  ;;  %v2178_v50 = vrot.slane %v7987_v9, 4  ;;  %v2051_v58 = vperm.slane %v2043_v62, %v7297_v21  ;;  %v2240_v9 = vrot.slane %v8515_v53, 4 }
 0x6b5   :  { %5272 = vrot.lane.b32.xlu1 %v2025_v33, %s6939_s23  ;;  %12518 = vst [vmem:[#allocation125_spill] sm:$0xff] %v8497_v0  ;;  %v8518_v33 = vpop.permute.xlu0 %595  ;;  %v2113_v12 = vsel %vm1580_vm0, %v2112_v25, %v8526_v28  ;;  %v2199_v43 = vperm.slane %v2191_v22, %v7619_v57  ;;  %v2143_v13 = vsel %vm1580_vm0, %v12513_v42, %v2142_v37  ;;  %v2166_v31 = vrot.slane %v7977_v56, 4 }
 0x6b6   :  { %12519 = vst [vmem:[#allocation124_spill] sm:$0xff] %v8518_v33  ;;  %v2179_v34 = vsel %vm1580_vm0, %v8361_v4, %v2178_v50  ;;  %v2155_v4 = vsel %vm1580_vm0, %v12509_v48, %v2154_v18  ;;  %v2088_v14 = vrot.slane %v2051_v58, 4  ;;  %v8557_v40 = vperm.slane %v2113_v12, %v7619_v57  ;;  %v12538_v33 = vld [vmem:[#allocation26_spill] sm:$0xff] }
 0x6b7   :  { %v2187_v23 = vperm.slane %v2179_v34, %v7297_v21  ;;  %v2241_v47 = vsel %vm1580_vm0, %v2240_v9, %v2199_v43  ;;  %v2238_v62 = vrot.slane %v2195_v6, 4  ;;  %v2039_v48 = vperm.slane %v2031_v20, %v7297_v21 }
 0x6b8   :  { %v2129_v5 = vsel %vm1580_vm0, %v2128_v16, %v2087_v24  ;;  %v2167_v42 = vsel %vm1580_vm0, %v8082_v2, %v2166_v31  ;;  %v8577_v6 = vperm.slane %v2143_v13, %v7297_v21  ;;  %v2288_v22 = vrot.slane %v12523_v11, 4  ;;  %v8587_v9 = vpop.permute.xlu1 %1541 }
 0x6b9   :  { %v2239_v56 = vsel %vm1580_vm0, %v8485_v19, %v2238_v62  ;;  %v2089_v18 = vsel %vm1580_vm0, %v2088_v14, %v2039_v48  ;;  %v2175_v34 = vperm.slane %v2167_v42, %v7297_v21  ;;  %12524 = vst [vmem:[#allocation92_spill] sm:$0xff] %v8587_v9  ;;  %v2242_v12 = vrot.slane %v2199_v43, 4  ;;  %v12526_v42 = vld [vmem:[#allocation60_spill] sm:$0xff] }
 0x6ba   :  { %v2095_v19 = vperm.slane %v2089_v18, %v7619_v57  ;;  %v2400_v20 = vrot.slane %v8277_v61, 4  ;;  %v2090_v14 = vrot.slane %v2039_v48, 4  ;;  %v2289_v13 = vsel %vm1580_vm0, %v2288_v22, %v8198_v54 }
 0x6bb   :  { %5294 = vrot.lane.b32.xlu0 %v2127_v41, %s6942_s26  ;;  %v8567_v41 = vperm.slane %v2155_v4, %v7297_v21  ;;  %v2130_v4 = vrot.slane %v2087_v24, 4  ;;  %v2243_v31 = vsel %vm1580_vm0, %v8515_v53, %v2242_v12  ;;  %v2264_v53 = vrot.slane %v12526_v42, 4 }
 0x6bc   :  { %5288 = vrot.lane.b32.xlu2 %v2237_v26, %s6943_s27  ;;  %v2224_v26 = vrot.slane %v2187_v23, 4  ;;  %v2091_v48 = vsel %vm1580_vm0, %v2051_v58, %v2090_v14  ;;  %v2401_v18 = vsel %vm1580_vm0, %v2400_v20, %v8029_v1  ;;  %v8619_v58 = vperm.slane %v2289_v13, %v7297_v21  ;;  %v12531_v13 = vld [vmem:[#allocation39_spill] sm:$0xff] }
 0x6bd   :  { %5286 = vrot.lane.b32.xlu1 %v2125_v27, %s6943_s27  ;;  %v8564_v25 = vpop.permute.xlu0 %1080  ;;  %v2132_v27 = vrot.slane %v8557_v40, 4  ;;  %v2200_v2 = vrot.slane %v8567_v41, 4  ;;  %v2131_v43 = vsel %vm1580_vm0, %v8523_v59, %v2130_v4  ;;  %v2114_v59 = vrot.slane %v8526_v28, 4 }
 0x6be   :  { %v8538_v32 = vpop.permute.xlu2 %1577  ;;  %12521 = vst [vmem:[#allocation200_spill] sm:$0xff] %v8564_v25  ;;  %v2225_v16 = vsel %vm1580_vm0, %v2224_v26, %v2175_v34  ;;  %v2134_v20 = vrot.slane %v2095_v19, 4  ;;  %v2099_v28 = vperm.slane %v2091_v48, %v7619_v57  ;;  %v12532_v25 = vld [vmem:[#allocation115_spill] sm:$0xff]  ;;  %v2402_v9 = vrot.slane %v8029_v1, 4 }
 0x6bf   :  { %12520 = vst [vmem:[#allocation103_spill] sm:$0xff] %v8538_v32  ;;  %v2201_v55 = vsel %vm1580_vm0, %v2200_v2, %v8577_v6  ;;  %v2133_v37 = vsel %vm1580_vm0, %v2132_v27, %v2095_v19  ;;  %v2231_v62 = vperm.slane %v2225_v16, %v7619_v57  ;;  %v2226_v27 = vrot.slane %v2175_v34, 4  ;;  %v12529_v2 = vld [vmem:[#allocation91_spill] sm:$0xff] }
 0x6c0   :  { %v2207_v24 = vperm.slane %v2201_v55, %v7619_v57  ;;  %v2276_v55 = vrot.slane %v12529_v2, 4  ;;  %v8627_v34 = vperm.slane %v2401_v18, %v7297_v21  ;;  %v2202_v32 = vrot.slane %v8577_v6, 4 }
 0x6c1   :  { %v2244_v14 = vrot.slane %v2231_v62, 4  ;;  %v2364_v6 = vrot.slane %v8246_v49, 4  ;;  %v2138_v8 = vrot.slane %v2099_v28, 4 }
 0x6c2   :  { %v2246_v4 = vrot.slane %v2207_v24, 4 }
 0x6c3   :  { %5304 = vrot.lane.b32.xlu0 %v2241_v47, %s6944_s28  ;;  %v2388_v47 = vrot.slane %v8043_v7, 4 }
 0x6c4   :  { %5302 = vrot.lane.b32.xlu2 %v2129_v5, %s6944_s28 }
 0x6c5   :  { %5296 = vrot.lane.b32.xlu1 %v2239_v56, %s6942_s26  ;;  %v8607_v5 = vpop.permute.xlu0 %1565  ;;  %v12527_v56 = vld [vmem:[#allocation146_spill] sm:$0xff]  ;;  %v2389_v16 = vsel %vm1580_vm0, %v2388_v47, %v7941_v51 }
 0x6c6   :  { %v8581_v50 = vpop.permute.xlu2 %5168  ;;  %12525 = vst [vmem:[#allocation202_spill] sm:$0xff] %v8607_v5  ;;  %v2376_v26 = vrot.slane %v12527_v56, 4  ;;  %v8641_v19 = vperm.slane %v2389_v16, %v7297_v21 }
 0x6c7   :  { %12522 = vst [vmem:[#allocation201_spill] sm:$0xff] %v8581_v50  ;;  %v8621_v12 = vpop.permute.xlu1 %1553 }
 0x6c8   :  { %12530 = vst [vmem:[#allocation146_spill] sm:$0xff] %v8621_v12  ;;  %v2377_v47 = vsel %vm1580_vm0, %v2376_v26, %v12532_v25 }
 0x6c9   :  { %v8654_v16 = vperm.slane %v2377_v47, %v7297_v21 }
 0x6cb   :  { %5318 = vrot.lane.b32.xlu0 %v2133_v37, %s6945_s29  ;;  %v2227_v37 = vsel %vm1580_vm0, %v2187_v23, %v2226_v27  ;;  %v2247_v23 = vsel %vm1580_vm0, %v2231_v62, %v2246_v4  ;;  %v12533_v27 = vld [vmem:[#allocation61_spill] sm:$0xff]  ;;  %v2245_v62 = vsel %vm1580_vm0, %v2244_v14, %v2207_v24  ;;  %v2436_v4 = vrot.slane %v8627_v34, 4 }
 0x6cc   :  { %5312 = vrot.lane.b32.xlu2 %v2243_v31, %s6946_s30  ;;  %v2115_v31 = vsel %vm1580_vm0, %v8495_v46, %v2114_v59  ;;  %v2277_v18 = vsel %vm1580_vm0, %v2276_v55, %v12533_v27  ;;  %v2135_v46 = vsel %vm1580_vm0, %v8557_v40, %v2134_v20  ;;  %v2235_v48 = vperm.slane %v2227_v37, %v7619_v57  ;;  %v12534_v59 = vld [vmem:[#allocation38_spill] sm:$0xff] }
 0x6cd   :  { %5310 = vrot.lane.b32.xlu1 %v2131_v43, %s6946_s30  ;;  %v2265_v43 = vsel %vm1580_vm0, %v2264_v53, %v12531_v13  ;;  %v2324_v53 = vrot.slane %v8619_v58, 4  ;;  %v2123_v26 = vperm.slane %v2115_v31, %v7619_v57  ;;  %v2252_v55 = vrot.slane %v12534_v59, 4  ;;  %v8664_v14 = vpop.permute.xlu0 %5174 }
 0x6ce   :  { %v8614_v22 = vpop.permute.xlu2 %5182  ;;  %v2271_v40 = vperm.slane %v2265_v43, %v7297_v21  ;;  %v2283_v37 = vperm.slane %v2277_v18, %v7297_v21  ;;  %v2203_v24 = vsel %vm1580_vm0, %v8567_v41, %v2202_v32  ;;  %v2437_v47 = vsel %vm1580_vm0, %v2436_v4, %v8641_v19 }
 0x6cf   :  { %12528 = vst [vmem:[#allocation60_spill] sm:$0xff] %v8614_v22  ;;  %v2136_v43 = vrot.slane %v2123_v26, 4  ;;  %v2253_v5 = vsel %vm1580_vm0, %v2252_v55, %v12538_v33  ;;  %v2412_v32 = vrot.slane %v8654_v16, 4  ;;  %v2211_v41 = vperm.slane %v2203_v24, %v7619_v57  ;;  %v12642_v22 = vld [vmem:[#allocation52_spill] sm:$0xff] }
 0x6d0   :  { %v2325_v18 = vsel %vm1580_vm0, %v2324_v53, %v2283_v37  ;;  %v2300_v3 = vrot.slane %v2271_v40, 4  ;;  %v8679_v0 = vperm.slane %v2437_v47, %v7619_v57  ;;  %v2259_v55 = vperm.slane %v2253_v5, %v7297_v21 }
 0x6d1   :  { %v8685_v53 = vperm.slane %v2325_v18, %v7619_v57  ;;  %v3148_v15 = vrot.slane %v12642_v22, 4 }
 0x6d2   :  { %v2302_v17 = vrot.slane %v2259_v55, 4 }
 0x6d3   :  { %5328 = vrot.lane.b32.xlu0 %v2247_v23, %s6947_s2  ;;  %v2248_v23 = vrot.slane %v2235_v48, 4  ;;  %v2348_v5 = vrot.slane %v8685_v53, 4 }
 0x6d4   :  { %5326 = vrot.lane.b32.xlu2 %v2135_v46, %s6947_s2  ;;  %v12537_v46 = vld [vmem:[#allocation114_spill] sm:$0xff]  ;;  %v2303_v1 = vsel %vm1580_vm0, %v2271_v40, %v2302_v17 }
 0x6d5   :  { %5320 = vrot.lane.b32.xlu1 %v2245_v62, %s6945_s29  ;;  %v2365_v62 = vsel %vm1580_vm0, %v2364_v6, %v12537_v46  ;;  %v2249_v6 = vsel %vm1580_vm0, %v2248_v23, %v2211_v41  ;;  %v2301_v23 = vsel %vm1580_vm0, %v2300_v3, %v2259_v55  ;;  %v2250_v3 = vrot.slane %v2211_v41, 4 }
 0x6d6   :  { %v8660_v20 = vpop.permute.xlu2 %5192  ;;  %v2371_v4 = vperm.slane %v2365_v62, %v7297_v21  ;;  %v2254_v55 = vrot.slane %v12538_v33, 4  ;;  %v2378_v33 = vrot.slane %v12532_v25, 4  ;;  %v2311_v40 = vperm.slane %v2303_v1, %v7619_v57  ;;  %v12546_v1 = vld [vmem:[#allocation104_spill] sm:$0xff] }
 0x6d7   :  { %12535 = vst [vmem:[#allocation91_spill] sm:$0xff] %v8660_v20  ;;  %v8666_v31 = vpop.permute.xlu1 %1571 }
 0x6d8   :  { %12536 = vst [vmem:[#allocation39_spill] sm:$0xff] %v8666_v31  ;;  %v2139_v31 = vsel %vm1580_vm0, %v2123_v26, %v2138_v8  ;;  %v2137_v8 = vsel %vm1580_vm0, %v2136_v43, %v2099_v28  ;;  %v2326_v26 = vrot.slane %v2283_v37, 4  ;;  %v2413_v24 = vsel %vm1580_vm0, %v2412_v32, %v2371_v4 }
 0x6d9   :  { %v2419_v37 = vperm.slane %v2413_v24, %v7619_v57  ;;  %v2290_v43 = vrot.slane %v8198_v54, 4  ;;  %v2307_v32 = vperm.slane %v2301_v23, %v7619_v57  ;;  %v2414_v23 = vrot.slane %v2371_v4, 4 }
 0x6da   :  { %v8696_v62 = vpop.permute.xlu0 %5184  ;;  %v2327_v28 = vsel %vm1580_vm0, %v8619_v58, %v2326_v26  ;;  %v2438_v26 = vrot.slane %v8641_v19, 4 }
 0x6db   :  { %5342 = vrot.lane.b32.xlu0 %v2139_v31, %s6948_s3  ;;  %v2460_v31 = vrot.slane %v8679_v0, 4  ;;  %12540 = vst [vmem:[#allocation61_spill] sm:$0xff] %v8696_v62  ;;  %v8709_v12 = vperm.slane %v2327_v28, %v7619_v57  ;;  %v2349_v58 = vsel %vm1580_vm0, %v2348_v5, %v2307_v32  ;;  %v2291_v41 = vsel %vm1580_vm0, %v12523_v11, %v2290_v43  ;;  %v12637_v62 = vld [vmem:[#allocation11_spill] sm:$0xff] }
 0x6dc   :  { %5336 = vrot.lane.b32.xlu2 %v2249_v6, %s6949_s4  ;;  %v2266_v6 = vrot.slane %v12531_v13, 4  ;;  %v2251_v13 = vsel %vm1580_vm0, %v2235_v48, %v2250_v3  ;;  %v2390_v48 = vrot.slane %v7941_v51, 4  ;;  %v2403_v11 = vsel %vm1580_vm0, %v8277_v61, %v2402_v9 }
 0x6dd   :  { %5334 = vrot.lane.b32.xlu1 %v2137_v8, %s6949_s4  ;;  %v2461_v8 = vsel %vm1580_vm0, %v2460_v31, %v2419_v37  ;;  %v2352_v31 = vrot.slane %v8709_v12, 4  ;;  %v2278_v5 = vrot.slane %v12533_v27, 4  ;;  %v8737_v17 = vperm.slane %v2291_v41, %v7297_v21 }
 0x6de   :  { %v8692_v47 = vpop.permute.xlu2 %5206  ;;  %v2267_v54 = vsel %vm1580_vm0, %v12526_v42, %v2266_v6  ;;  %v2391_v28 = vsel %vm1580_vm0, %v8043_v7, %v2390_v48  ;;  %v2462_v51 = vrot.slane %v2419_v37, 4  ;;  %v2415_v61 = vsel %vm1580_vm0, %v8654_v16, %v2414_v23 }
 0x6df   :  { %12539 = vst [vmem:[#allocation115_spill] sm:$0xff] %v8692_v47  ;;  %v8698_v18 = vpop.permute.xlu1 %5166  ;;  %v8728_v42 = vperm.slane %v2267_v54, %v7297_v21  ;;  %v2439_v9 = vsel %vm1580_vm0, %v8627_v34, %v2438_v26  ;;  %v2255_v27 = vsel %vm1580_vm0, %v12534_v59, %v2254_v55  ;;  %v2411_v43 = vperm.slane %v2403_v11, %v7297_v21 }
 0x6e0   :  { %v2353_v25 = vsel %vm1580_vm0, %v2352_v31, %v2311_v40  ;;  %v2350_v6 = vrot.slane %v2307_v32, 4  ;;  %v2279_v7 = vsel %vm1580_vm0, %v12529_v2, %v2278_v5  ;;  %v2379_v37 = vsel %vm1580_vm0, %v12527_v56, %v2378_v33 }
 0x6e1   :  { %v2463_v34 = vsel %vm1580_vm0, %v8679_v0, %v2462_v51  ;;  %v2399_v59 = vperm.slane %v2391_v28, %v7297_v21  ;;  %v2423_v32 = vperm.slane %v2415_v61, %v7619_v57  ;;  %v2447_v2 = vperm.slane %v2439_v9, %v7619_v57 }
 0x6e2   :  { %v8743_v4 = vpop.permute.xlu0 %5198  ;;  %v2351_v16 = vsel %vm1580_vm0, %v8685_v53, %v2350_v6  ;;  %v8768_v56 = vperm.slane %v2255_v27, %v7297_v21  ;;  %v2336_v3 = vrot.slane %v8737_v17, 4  ;;  %v8774_v0 = vperm.slane %v2379_v37, %v7297_v21  ;;  %v12549_v37 = vld [vmem:[#allocation51_spill] sm:$0xff] }
 0x6e3   :  { %5352 = vrot.lane.b32.xlu0 %v2461_v8, %s6950_s5  ;;  %12543 = vst [vmem:[#allocation26_spill] sm:$0xff] %v8743_v4  ;;  %v2312_v8 = vrot.slane %v8728_v42, 4  ;;  %v2448_v54 = vrot.slane %v2411_v43, 4  ;;  %v2287_v53 = vperm.slane %v2279_v7, %v7297_v21  ;;  %v2512_v55 = vrot.slane %v12546_v1, 4 }
 0x6e4   :  { %5350 = vrot.lane.b32.xlu2 %v2349_v58, %s6950_s5  ;;  %v2366_v58 = vrot.slane %v12537_v46, 4  ;;  %v2466_v46 = vrot.slane %v2423_v32, 4  ;;  %v2464_v23 = vrot.slane %v2447_v2, 4  ;;  %v2354_v11 = vrot.slane %v2311_v40, 4  ;;  %v12548_v40 = vld [vmem:[#allocation81_spill] sm:$0xff] }
 0x6e5   :  { %5344 = vrot.lane.b32.xlu1 %v2251_v13, %s6948_s3  ;;  %v2313_v26 = vsel %vm1580_vm0, %v2312_v8, %v8768_v56  ;;  %v2449_v31 = vsel %vm1580_vm0, %v2448_v54, %v2399_v59  ;;  %v2337_v5 = vsel %vm1580_vm0, %v2336_v3, %v2287_v53  ;;  %v2424_v33 = vrot.slane %v8774_v0, 4 }
 0x6e6   :  { %v8724_v24 = vpop.permute.xlu2 %5216  ;;  %v2367_v48 = vsel %vm1580_vm0, %v8246_v49, %v2366_v58  ;;  %v2467_v28 = vsel %vm1580_vm0, %v2447_v2, %v2466_v46  ;;  %v2450_v51 = vrot.slane %v2399_v59, 4  ;;  %v2355_v9 = vsel %vm1580_vm0, %v8709_v12, %v2354_v11  ;;  %v12550_v59 = vld [vmem:[#allocation82_spill] sm:$0xff] }
 0x6e7   :  { %12541 = vst [vmem:[#allocation38_spill] sm:$0xff] %v8724_v24  ;;  %v8733_v19 = vpop.permute.xlu1 %5176  ;;  %v2319_v27 = vperm.slane %v2313_v26, %v7619_v57  ;;  %v8797_v49 = vperm.slane %v2449_v31, %v7619_v57  ;;  %v2375_v6 = vperm.slane %v2367_v48, %v7297_v21  ;;  %v2465_v8 = vsel %vm1580_vm0, %v2464_v23, %v2423_v32  ;;  %v12553_v23 = vld [vmem:[#allocation25_spill] sm:$0xff] }
 0x6e8   :  { %12542 = vst [vmem:[#allocation114_spill] sm:$0xff] %v8733_v19  ;;  %v2343_v7 = vperm.slane %v2337_v5, %v7619_v57  ;;  %v2500_v12 = vrot.slane %v12550_v59, 4  ;;  %v2451_v26 = vsel %vm1580_vm0, %v2411_v43, %v2450_v51  ;;  %v12554_v48 = vld [vmem:[#allocation173_spill] sm:$0xff] }
 0x6e9   :  { %v2425_v3 = vsel %vm1580_vm0, %v2424_v33, %v2375_v6  ;;  %v2468_v32 = vrot.slane %v8797_v49, 4  ;;  %v2358_v31 = vrot.slane %v2319_v27, 4  ;;  %v12555_v33 = vld [vmem:[#allocation138_spill] sm:$0xff]  ;;  %v8829_v43 = vperm.slane %v2451_v26, %v7619_v57 }
 0x6ea   :  { %v8790_v61 = vpop.permute.xlu0 %5208  ;;  %v2356_v46 = vrot.slane %v2343_v7, 4  ;;  %v2501_v11 = vsel %vm1580_vm0, %v2500_v12, %v12554_v48  ;;  %v2431_v5 = vperm.slane %v2425_v3, %v7619_v57  ;;  %v2426_v51 = vrot.slane %v2375_v6, 4 }
 0x6eb   :  { %5366 = vrot.lane.b32.xlu0 %v2353_v25, %s6951_s6  ;;  %12547 = vst [vmem:[#allocation104_spill] sm:$0xff] %v8790_v61  ;;  %v2513_v25 = vsel %vm1580_vm0, %v2512_v55, %v12548_v40  ;;  %v2314_v12 = vrot.slane %v8768_v56, 4  ;;  %v8845_v6 = vperm.slane %v2501_v11, %v7297_v21 }
 0x6ec   :  { %5360 = vrot.lane.b32.xlu2 %v2463_v34, %s6952_s7  ;;  %v2488_v34 = vrot.slane %v12549_v37, 4  ;;  %v8812_v58 = vperm.slane %v2513_v25, %v7297_v21  ;;  %v2359_v25 = vsel %vm1580_vm0, %v2343_v7, %v2358_v31  ;;  %v2357_v7 = vsel %vm1580_vm0, %v2356_v46, %v2319_v27 }
 0x6ed   :  { %5358 = vrot.lane.b32.xlu1 %v2351_v16, %s6952_s7  ;;  %v2338_v16 = vrot.slane %v2287_v53, 4  ;;  %v2427_v56 = vsel %vm1580_vm0, %v8774_v0, %v2426_v51  ;;  %v2472_v46 = vrot.slane %v8829_v43, 4  ;;  %v12562_v51 = vld [vmem:[#allocation15_spill] sm:$0xff]  ;;  %v2470_v45 = vrot.slane %v2431_v5, 4 }
 0x6ee   :  { %v8776_v13 = vpop.permute.xlu2 %5230  ;;  %v2489_v53 = vsel %vm1580_vm0, %v2488_v34, %v12553_v23 }
 0x6ef   :  { %12544 = vst [vmem:[#allocation203_spill] sm:$0xff] %v8776_v13  ;;  %v8779_v41 = vpop.permute.xlu1 %5190  ;;  %v2339_v55 = vsel %vm1580_vm0, %v8737_v17, %v2338_v16  ;;  %v2548_v17 = vrot.slane %v8812_v58, 4  ;;  %v12556_v16 = vld [vmem:[#allocation50_spill] sm:$0xff]  ;;  %v8842_v26 = vperm.slane %v2489_v53, %v7297_v21  ;;  %v2315_v53 = vsel %vm1580_vm0, %v8728_v42, %v2314_v12 }
 0x6f0   :  { %12545 = vst [vmem:[#allocation204_spill] sm:$0xff] %v8779_v41  ;;  %v8835_v34 = vperm.slane %v2339_v55, %v7619_v57  ;;  %v2476_v3 = vrot.slane %v12556_v16, 4  ;;  %v2323_v36 = vperm.slane %v2315_v53, %v7619_v57  ;;  %v12641_v41 = vld [vmem:[#allocation43_spill] sm:$0xff] }
 0x6f1   :  { %v2549_v0 = vsel %vm1580_vm0, %v2548_v17, %v8845_v6  ;;  %v2524_v61 = vrot.slane %v8842_v26, 4 }
 0x6f2   :  { %v8847_v31 = vpop.permute.xlu0 %5222  ;;  %v2362_v20 = vrot.slane %v2323_v36, 4 }
 0x6f3   :  { %5376 = vrot.lane.b32.xlu0 %v2467_v28, %s6953_s8  ;;  %v2600_v28 = vrot.slane %v12555_v33, 4  ;;  %12557 = vst [vmem:[#allocation82_spill] sm:$0xff] %v8847_v31 }
 0x6f4   :  { %5374 = vrot.lane.b32.xlu2 %v2355_v9, %s6953_s8  ;;  %v2624_v9 = vrot.slane %v8500_v63, 4 }
 0x6f5   :  { %5368 = vrot.lane.b32.xlu1 %v2465_v8, %s6951_s6  ;;  %v2469_v8 = vsel %vm1580_vm0, %v2468_v32, %v2431_v5  ;;  %v12558_v32 = vld [vmem:[#allocation176_spill] sm:$0xff]  ;;  %v2471_v5 = vsel %vm1580_vm0, %v8797_v49, %v2470_v45 }
 0x6f6   :  { %v8808_v2 = vpop.permute.xlu2 %5240  ;;  %v2601_v55 = vsel %vm1580_vm0, %v2600_v28, %v12558_v32  ;;  %v2477_v28 = vsel %vm1580_vm0, %v2476_v3, %v12562_v51  ;;  %v8879_v3 = vperm.slane %v2549_v0, %v7619_v57 }
 0x6f7   :  { %12551 = vst [vmem:[#allocation81_spill] sm:$0xff] %v8808_v2  ;;  %v8814_v54 = vpop.permute.xlu1 %5200  ;;  %v12563_v2 = vld [vmem:[#allocation178_spill] sm:$0xff]  ;;  %v8873_v42 = vperm.slane %v2601_v55, %v7297_v21  ;;  %v2483_v31 = vperm.slane %v2477_v28, %v7297_v21 }
 0x6f8   :  { %12552 = vst [vmem:[#allocation51_spill] sm:$0xff] %v8814_v54  ;;  %v2612_v24 = vrot.slane %v12563_v2, 4  ;;  %v12565_v54 = vld [vmem:[#allocation105_spill] sm:$0xff] }
 0x6fb   :  { %5390 = vrot.lane.b32.xlu0 %v2359_v25, %s6954_s9  ;;  %v12559_v25 = vld [vmem:[#allocation167_spill] sm:$0xff] }
 0x6fc   :  { %5384 = vrot.lane.b32.xlu2 %v2469_v8, %s12192_s10  ;;  %v2625_v8 = vsel %vm1580_vm0, %v2624_v9, %v12559_v25  ;;  %v12564_v9 = vld [vmem:[#allocation136_spill] sm:$0xff] }
 0x6fd   :  { %5382 = vrot.lane.b32.xlu1 %v2357_v7, %s12192_s10  ;;  %v2360_v7 = vrot.slane %v8835_v34, 4  ;;  %v2588_v13 = vrot.slane %v12564_v9, 4  ;;  %v2631_v12 = vperm.slane %v2625_v8, %v7297_v21  ;;  %s12194_s10 = smov 62  }
 0x6fe   :  { %v8856_v27 = vpop.permute.xlu2 %5254 }
 0x6ff   :  { %12560 = vst [vmem:[#allocation25_spill] sm:$0xff] %v8856_v27  ;;  %v8861_v11 = vpop.permute.xlu1 %5214  ;;  %v2435_v27 = vperm.slane %v2427_v56, %v7619_v57  ;;  %v2361_v56 = vsel %vm1580_vm0, %v2360_v7, %v2323_v36  ;;  %v2589_v55 = vsel %vm1580_vm0, %v2588_v13, %v12565_v54  ;;  %v2660_v53 = vrot.slane %v2631_v12, 4 }
 0x700   :  { %12561 = vst [vmem:[#allocation173_spill] sm:$0xff] %v8861_v11  ;;  %v12566_v11 = vld [vmem:[#allocation163_spill] sm:$0xff]  ;;  %v2525_v7 = vsel %vm1580_vm0, %v2524_v61, %v2483_v31  ;;  %v2572_v13 = vrot.slane %v8879_v3, 4  ;;  %v2626_v61 = vrot.slane %v12559_v25, 4  ;;  %v2363_v25 = vsel %vm1580_vm0, %v8835_v34, %v2362_v20 }
 0x701   :  { %v2473_v17 = vsel %vm1580_vm0, %v2472_v46, %v2435_v27  ;;  %v2613_v8 = vsel %vm1580_vm0, %v2612_v24, %v12566_v11  ;;  %v2636_v46 = vrot.slane %v8873_v42, 4  ;;  %v8900_v24 = vperm.slane %v2589_v55, %v7297_v21 }
 0x702   :  { %v2531_v45 = vperm.slane %v2525_v7, %v7619_v57  ;;  %v2474_v49 = vrot.slane %v2435_v27, 4  ;;  %v2514_v55 = vrot.slane %v12548_v40, 4  ;;  %v2627_v27 = vsel %vm1580_vm0, %v8500_v63, %v2626_v61 }
 0x703   :  { %5400 = vrot.lane.b32.xlu0 %v2473_v17, %s12190_s11  ;;  %v2619_v17 = vperm.slane %v2613_v8, %v7297_v21  ;;  %v2526_v40 = vrot.slane %v2483_v31, 4  ;;  %v2490_v63 = vrot.slane %v12553_v23, 4  ;;  %v2502_v34 = vrot.slane %v12554_v48, 4 }
 0x704   :  { %5398 = vrot.lane.b32.xlu2 %v2361_v56, %s12190_s11  ;;  %s12198_s11 = smov 64   ;;  %v2475_v8 = vsel %vm1580_vm0, %v8829_v43, %v2474_v49  ;;  %v2602_v43 = vrot.slane %v12558_v32, 4  ;;  %v2550_v31 = vrot.slane %v8845_v6, 4 }
 0x705   :  { %v8892_v0 = vpop.permute.xlu0 %5232  ;;  %5392 = vrot.lane.b32.xlu1 %v2471_v5, %s6954_s9  ;;  %v2661_v5 = vsel %vm1580_vm0, %v2660_v53, %v2619_v17  ;;  %v2515_v53 = vsel %vm1580_vm0, %v12546_v1, %v2514_v55  ;;  %v2527_v49 = vsel %vm1580_vm0, %v8842_v26, %v2526_v40  ;;  %v2491_v48 = vsel %vm1580_vm0, %v12549_v37, %v2490_v63 }
 0x706   :  { %12567 = vst [vmem:[#allocation138_spill] sm:$0xff] %v8892_v0  ;;  %v8896_v28 = vpop.permute.xlu2 %5264  ;;  %v2637_v0 = vsel %vm1580_vm0, %v2636_v46, %v8900_v24  ;;  %v2667_v36 = vperm.slane %v2661_v5, %v7619_v57  ;;  %v8942_v23 = vperm.slane %v2515_v53, %v7297_v21  ;;  %v2574_v5 = vrot.slane %v2531_v45, 4 }
 0x707   :  { %12568 = vst [vmem:[#allocation50_spill] sm:$0xff] %v8896_v28  ;;  %v8903_v56 = vpop.permute.xlu1 %5224  ;;  %v2573_v28 = vsel %vm1580_vm0, %v2572_v13, %v2531_v45  ;;  %v2643_v46 = vperm.slane %v2637_v0, %v7619_v57  ;;  %v2662_v13 = vrot.slane %v2619_v17, 4  ;;  %v8935_v0 = vperm.slane %v2627_v27, %v7297_v21 }
 0x708   :  { %12569 = vst [vmem:[#allocation176_spill] sm:$0xff] %v8903_v56  ;;  %v2551_v6 = vsel %vm1580_vm0, %v8812_v58, %v2550_v31  ;;  %v2603_v61 = vsel %vm1580_vm0, %v12555_v33, %v2602_v43  ;;  %v2575_v37 = vsel %vm1580_vm0, %v8879_v3, %v2574_v5  ;;  %v2638_v33 = vrot.slane %v8900_v24, 4 }
 0x709   :  { %v2686_v32 = vrot.slane %v2643_v46, 4  ;;  %v2663_v17 = vsel %vm1580_vm0, %v2631_v12, %v2662_v13  ;;  %v2503_v12 = vsel %vm1580_vm0, %v12550_v59, %v2502_v34  ;;  %v2672_v27 = vrot.slane %v8935_v0, 4 }
 0x70a   :  { %v8962_v58 = vperm.slane %v2663_v17, %v7619_v57  ;;  %v2559_v59 = vperm.slane %v2551_v6, %v7619_v57  ;;  %v2499_v40 = vperm.slane %v2491_v48, %v7297_v21  ;;  %v2511_v24 = vperm.slane %v2503_v12, %v7297_v21 }
 0x70b   :  { %5414 = vrot.lane.b32.xlu0 %v2573_v28, %s12198_s11  ;;  %v2614_v28 = vrot.slane %v12566_v11, 4  ;;  %v2684_v11 = vrot.slane %v2667_v36, 4  ;;  %v2687_v55 = vsel %vm1580_vm0, %v2667_v36, %v2686_v32  ;;  %v2590_v53 = vrot.slane %v12565_v54, 4 }
 0x70c   :  { %5408 = vrot.lane.b32.xlu2 %v2475_v8, %s12194_s10  ;;  %v2535_v8 = vperm.slane %v2527_v49, %v7619_v57  ;;  %v2478_v43 = vrot.slane %v12562_v51, 4  ;;  %v2688_v13 = vrot.slane %v8962_v58, 4  ;;  %v2576_v32 = vrot.slane %v2559_v59, 4 }
 0x70d   :  { %v8924_v7 = vpop.permute.xlu0 %5246  ;;  %5406 = vrot.lane.b32.xlu1 %v2363_v25, %s12194_s10  ;;  %v2615_v26 = vsel %vm1580_vm0, %v12563_v2, %v2614_v28  ;;  %s12196_s10 = smov 66   ;;  %v2560_v2 = vrot.slane %v8942_v23, 4  ;;  %v2685_v45 = vsel %vm1580_vm0, %v2684_v11, %v2643_v46  ;;  %v8970_v25 = vperm.slane %v2603_v61, %v7297_v21 }
 0x70e   :  { %12570 = vst [vmem:[#allocation167_spill] sm:$0xff] %v8924_v7  ;;  %v8930_v20 = vpop.permute.xlu2 %5278  ;;  %v8973_v36 = vperm.slane %v2615_v26, %v7297_v21  ;;  %v2639_v46 = vsel %vm1580_vm0, %v8873_v42, %v2638_v33  ;;  %v2591_v31 = vsel %vm1580_vm0, %v12564_v9, %v2590_v53  ;;  %v2578_v49 = vrot.slane %v2535_v8, 4 }
 0x70f   :  { %12571 = vst [vmem:[#allocation15_spill] sm:$0xff] %v8930_v20  ;;  %v8937_v1 = vpop.permute.xlu1 %5238  ;;  %v2561_v54 = vsel %vm1580_vm0, %v2560_v2, %v2511_v24  ;;  %v2479_v11 = vsel %vm1580_vm0, %v12556_v16, %v2478_v43  ;;  %v2648_v42 = vrot.slane %v8970_v25, 4  ;;  %v2647_v51 = vperm.slane %v2639_v46, %v7619_v57 }
 0x710   :  { %12572 = vst [vmem:[#allocation178_spill] sm:$0xff] %v8937_v1  ;;  %v2673_v34 = vsel %vm1580_vm0, %v2672_v27, %v8973_v36  ;;  %v2536_v17 = vrot.slane %v2499_v40, 4  ;;  %v2579_v48 = vsel %vm1580_vm0, %v2559_v59, %v2578_v49  ;;  %v2599_v6 = vperm.slane %v2591_v31, %v7297_v21 }
 0x711   :  { %v9000_v5 = vperm.slane %v2673_v34, %v7619_v57  ;;  %v2689_v9 = vsel %vm1580_vm0, %v2688_v13, %v2647_v51  ;;  %v9006_v61 = vperm.slane %v2561_v54, %v7619_v57  ;;  %v2487_v16 = vperm.slane %v2479_v11, %v7297_v21  ;;  %v12580_v34 = vld [vmem:[#allocation94_spill] sm:$0xff] }
 0x712   :  { %v2577_v26 = vsel %vm1580_vm0, %v2576_v32, %v2535_v8  ;;  %v2649_v27 = vsel %vm1580_vm0, %v2648_v42, %v2599_v6  ;;  %v2848_v43 = vrot.slane %v8387_v38, 4  ;;  %v2736_v31 = vrot.slane %v12580_v34, 4 }
 0x713   :  { %5424 = vrot.lane.b32.xlu0 %v2687_v55, %s12196_s10  ;;  %v2562_v55 = vrot.slane %v2511_v24, 4  ;;  %v2692_v2 = vrot.slane %v9000_v5, 4  ;;  %v2537_v33 = vsel %vm1580_vm0, %v2536_v17, %v2487_v16  ;;  %v2580_v8 = vrot.slane %v9006_v61, 4 }
 0x714   :  { %5422 = vrot.lane.b32.xlu2 %v2575_v37, %s12196_s10  ;;  %s12204_s10 = smov 70   ;;  %v2655_v24 = vperm.slane %v2649_v27, %v7619_v57  ;;  %v2543_v13 = vperm.slane %v2537_v33, %v7619_v57  ;;  %v2690_v32 = vrot.slane %v2647_v51, 4  ;;  %v2538_v11 = vrot.slane %v2487_v16, 4  ;;  %v12583_v51 = vld [vmem:[#allocation151_spill] sm:$0xff]  ;;  %v12585_v33 = vld [vmem:[#allocation93_spill] sm:$0xff] }
 0x715   :  { %v8975_v3 = vpop.permute.xlu0 %5256  ;;  %5416 = vrot.lane.b32.xlu1 %v2685_v45, %s12198_s11  ;;  %s12200_s11 = smov 68   ;;  %v12578_v45 = vld [vmem:[#allocation147_spill] sm:$0xff]  ;;  %v2563_v53 = vsel %vm1580_vm0, %v8942_v23, %v2562_v55  ;;  %v12581_v23 = vld [vmem:[#allocation41_spill] sm:$0xff]  ;;  %v2849_v55 = vsel %vm1580_vm0, %v2848_v43, %v12583_v51  ;;  %v12588_v43 = vld [vmem:[#allocation148_spill] sm:$0xff] }
 0x716   :  { %12573 = vst [vmem:[#allocation136_spill] sm:$0xff] %v8975_v3  ;;  %v8981_v63 = vpop.permute.xlu2 %5288  ;;  %v2712_v59 = vrot.slane %v12578_v45, 4  ;;  %v2693_v49 = vsel %vm1580_vm0, %v2692_v2, %v2655_v24  ;;  %v9031_v54 = vperm.slane %v2563_v53, %v7619_v57  ;;  %v2581_v17 = vsel %vm1580_vm0, %v2580_v8, %v2543_v13  ;;  %v12586_v53 = vld [vmem:[#allocation72_spill] sm:$0xff] }
 0x717   :  { %12574 = vst [vmem:[#allocation105_spill] sm:$0xff] %v8981_v63  ;;  %v8986_v28 = vpop.permute.xlu1 %5248  ;;  %v2539_v16 = vsel %vm1580_vm0, %v2499_v40, %v2538_v11  ;;  %v2737_v8 = vsel %vm1580_vm0, %v2736_v31, %v12586_v53  ;;  %v2674_v63 = vrot.slane %v8973_v36, 4  ;;  %v9062_v11 = vperm.slane %v2849_v55, %v7297_v21  ;;  %v12591_v36 = vld [vmem:[#allocation16_spill] sm:$0xff] }
 0x718   :  { %12575 = vst [vmem:[#allocation163_spill] sm:$0xff] %v8986_v28  ;;  %v2713_v42 = vsel %vm1580_vm0, %v2712_v59, %v12581_v23  ;;  %v2724_v59 = vrot.slane %v12585_v33, 4  ;;  %v9066_v31 = vperm.slane %v2737_v8, %v7297_v21  ;;  %v2582_v3 = vrot.slane %v2543_v13, 4  ;;  %v12593_v8 = vld [vmem:[#allocation126_spill] sm:$0xff] }
 0x719   :  { %v9048_v2 = vperm.slane %v2713_v42, %v7297_v21  ;;  %v2547_v42 = vperm.slane %v2539_v16, %v7619_v57 }
 0x71b   :  { %5438 = vrot.lane.b32.xlu0 %v2579_v48, %s12204_s10  ;;  %v2691_v48 = vsel %vm1580_vm0, %v8962_v58, %v2690_v32  ;;  %v2650_v32 = vrot.slane %v2599_v6, 4  ;;  %v2694_v6 = vrot.slane %v2655_v24, 4  ;;  %v2583_v24 = vsel %vm1580_vm0, %v9006_v61, %v2582_v3 }
 0x71c   :  { %5432 = vrot.lane.b32.xlu2 %v2689_v9, %s12200_s11  ;;  %v12582_v9 = vld [vmem:[#allocation40_spill] sm:$0xff] }
 0x71d   :  { %v9011_v12 = vpop.permute.xlu0 %5270  ;;  %5430 = vrot.lane.b32.xlu1 %v2577_v26, %s12200_s11  ;;  %s12202_s11 = smov 72   ;;  %v2700_v26 = vrot.slane %v12582_v9, 4 }
 0x71e   :  { %12576 = vst [vmem:[#allocation205_spill] sm:$0xff] %v9011_v12  ;;  %v9015_v37 = vpop.permute.xlu2 %5302  ;;  %v12592_v12 = vld [vmem:[#allocation71_spill] sm:$0xff] }
 0x71f   :  { %12577 = vst [vmem:[#allocation206_spill] sm:$0xff] %v9015_v37  ;;  %v9022_v46 = vpop.permute.xlu1 %5262  ;;  %v2701_v20 = vsel %vm1580_vm0, %v2700_v26, %v12591_v36  ;;  %v2725_v16 = vsel %vm1580_vm0, %v2724_v59, %v12592_v12  ;;  %v12595_v59 = vld [vmem:[#allocation127_spill] sm:$0xff] }
 0x720   :  { %12579 = vst [vmem:[#allocation147_spill] sm:$0xff] %v9022_v46  ;;  %v12594_v46 = vld [vmem:[#allocation152_spill] sm:$0xff] }
 0x723   :  { %5448 = vrot.lane.b32.xlu0 %v2693_v49, %s12202_s11  ;;  %v2584_v49 = vrot.slane %v9031_v54, 4 }
 0x724   :  { %5446 = vrot.lane.b32.xlu2 %v2581_v17, %s12202_s11  ;;  %v2824_v17 = vrot.slane %v12588_v43, 4  ;;  %s12210_s11 = smov 76  }
 0x725   :  { %v9043_v27 = vpop.permute.xlu0 %5280  ;;  %5440 = vrot.lane.b32.xlu1 %v2691_v48, %s12204_s10  ;;  %v12589_v48 = vld [vmem:[#allocation192_spill] sm:$0xff]  ;;  %v2585_v55 = vsel %vm1580_vm0, %v2584_v49, %v2547_v42  ;;  %s12206_s10 = smov 74   ;;  %v2812_v49 = vrot.slane %v12595_v59, 4 }
 0x726   :  { %12584 = vst [vmem:[#allocation94_spill] sm:$0xff] %v9043_v27  ;;  %v9053_v58 = vpop.permute.xlu2 %5312  ;;  %v2836_v37 = vrot.slane %v12589_v48, 4  ;;  %v2675_v27 = vsel %vm1580_vm0, %v8935_v0, %v2674_v63  ;;  %v2825_v28 = vsel %vm1580_vm0, %v2824_v17, %v12593_v8  ;;  %v2695_v0 = vsel %vm1580_vm0, %v9000_v5, %v2694_v6 }
 0x727   :  { %12587 = vst [vmem:[#allocation41_spill] sm:$0xff] %v9053_v58  ;;  %v9059_v40 = vpop.permute.xlu1 %5272  ;;  %v2651_v58 = vsel %vm1580_vm0, %v8970_v25, %v2650_v32  ;;  %v2884_v63 = vrot.slane %v9062_v11, 4  ;;  %v2683_v26 = vperm.slane %v2675_v27, %v7619_v57  ;;  %v9097_v5 = vperm.slane %v2701_v20, %v7297_v21  ;;  %v12599_v20 = vld [vmem:[#allocation149_spill] sm:$0xff] }
 0x728   :  { %12590 = vst [vmem:[#allocation40_spill] sm:$0xff] %v9059_v40  ;;  %v2748_v40 = vrot.slane %v9048_v2, 4  ;;  %v2837_v25 = vsel %vm1580_vm0, %v2836_v37, %v12594_v46  ;;  %v2659_v13 = vperm.slane %v2651_v58, %v7619_v57  ;;  %v2772_v37 = vrot.slane %v9066_v31, 4 }
 0x729   :  { %v9100_v17 = vperm.slane %v2825_v28, %v7297_v21  ;;  %v2843_v3 = vperm.slane %v2837_v25, %v7297_v21  ;;  %v2731_v27 = vperm.slane %v2725_v16, %v7297_v21  ;;  %v2586_v28 = vrot.slane %v2547_v42, 4 }
 0x72a   :  { %v2698_v6 = vrot.slane %v2659_v13, 4  ;;  %v2738_v25 = vrot.slane %v12586_v53, 4 }
 0x72b   :  { %5462 = vrot.lane.b32.xlu0 %v2585_v55, %s12210_s11  ;;  %v2696_v55 = vrot.slane %v2683_v26, 4  ;;  %v2773_v7 = vsel %vm1580_vm0, %v2772_v37, %v2731_v27 }
 0x72c   :  { %5456 = vrot.lane.b32.xlu2 %v2695_v0, %s12206_s10  ;;  %v2749_v0 = vsel %vm1580_vm0, %v2748_v40, %v9097_v5  ;;  %v2699_v16 = vsel %vm1580_vm0, %v2683_v26, %v2698_v6  ;;  %v2587_v40 = vsel %vm1580_vm0, %v9031_v54, %v2586_v28  ;;  %v2739_v42 = vsel %vm1580_vm0, %v12580_v34, %v2738_v25 }
 0x72d   :  { %v9093_v32 = vpop.permute.xlu0 %5294  ;;  %5454 = vrot.lane.b32.xlu1 %v2583_v24, %s12206_s10  ;;  %v2885_v24 = vsel %vm1580_vm0, %v2884_v63, %v2843_v3  ;;  %s12208_s10 = smov 78   ;;  %v2755_v63 = vperm.slane %v2749_v0, %v7619_v57  ;;  %v2697_v26 = vsel %vm1580_vm0, %v2696_v55, %v2659_v13  ;;  %v2779_v37 = vperm.slane %v2773_v7, %v7619_v57 }
 0x72e   :  { %12596 = vst [vmem:[#allocation151_spill] sm:$0xff] %v9093_v32  ;;  %v9103_v61 = vpop.permute.xlu2 %5326  ;;  %v2813_v32 = vsel %vm1580_vm0, %v2812_v49, %v12599_v20  ;;  %v2886_v49 = vrot.slane %v2843_v3, 4  ;;  %v2774_v54 = vrot.slane %v2731_v27, 4  ;;  %v2714_v34 = vrot.slane %v12581_v23, 4 }
 0x72f   :  { %12597 = vst [vmem:[#allocation93_spill] sm:$0xff] %v9103_v61  ;;  %v9106_v58 = vpop.permute.xlu1 %5286  ;;  %v2860_v61 = vrot.slane %v9100_v17, 4  ;;  %v2819_v53 = vperm.slane %v2813_v32, %v7297_v21  ;;  %v9138_v32 = vperm.slane %v2739_v42, %v7297_v21  ;;  %v2726_v3 = vrot.slane %v12592_v12, 4 }
 0x730   :  { %12598 = vst [vmem:[#allocation72_spill] sm:$0xff] %v9106_v58  ;;  %v9122_v58 = vperm.slane %v2885_v24, %v7619_v57  ;;  %v2887_v7 = vsel %vm1580_vm0, %v9062_v11, %v2886_v49  ;;  %v2798_v55 = vrot.slane %v2755_v63, 4  ;;  %v2796_v27 = vrot.slane %v2779_v37, 4 }
 0x731   :  { %v2861_v24 = vsel %vm1580_vm0, %v2860_v61, %v2819_v53  ;;  %v2775_v25 = vsel %vm1580_vm0, %v9066_v31, %v2774_v54  ;;  %v2715_v23 = vsel %vm1580_vm0, %v12578_v45, %v2714_v34  ;;  %v9155_v42 = vperm.slane %v2887_v7, %v7619_v57 }
 0x732   :  { %v2908_v13 = vrot.slane %v9122_v58, 4  ;;  %v2867_v61 = vperm.slane %v2861_v24, %v7619_v57  ;;  %v2784_v12 = vrot.slane %v9138_v32, 4  ;;  %v2862_v11 = vrot.slane %v2819_v53, 4 }
 0x733   :  { %5472 = vrot.lane.b32.xlu0 %v2699_v16, %s12208_s10  ;;  %v2727_v16 = vsel %vm1580_vm0, %v12585_v33, %v2726_v3  ;;  %v2750_v45 = vrot.slane %v9097_v5, 4  ;;  %v2850_v33 = vrot.slane %v12583_v51, 4  ;;  %v2797_v49 = vsel %vm1580_vm0, %v2796_v27, %v2755_v63 }
 0x734   :  { %5470 = vrot.lane.b32.xlu2 %v2587_v40, %s12208_s10  ;;  %v2799_v40 = vsel %vm1580_vm0, %v2779_v37, %v2798_v55  ;;  %s12216_s10 = smov 82   ;;  %v2909_v31 = vsel %vm1580_vm0, %v2908_v13, %v2867_v61  ;;  %v2826_v37 = vrot.slane %v12593_v8, 4  ;;  %v2702_v53 = vrot.slane %v12591_v36, 4 }
 0x735   :  { %v9130_v6 = vpop.permute.xlu0 %5304  ;;  %5464 = vrot.lane.b32.xlu1 %v2697_v26, %s12210_s11  ;;  %v9161_v26 = vperm.slane %v2775_v25, %v7619_v57  ;;  %s12212_s11 = smov 80   ;;  %v9170_v54 = vperm.slane %v2715_v23, %v7297_v21  ;;  %v9173_v24 = vperm.slane %v2727_v16, %v7297_v21  ;;  %v2863_v51 = vsel %vm1580_vm0, %v9100_v17, %v2862_v11 }
 0x736   :  { %12600 = vst [vmem:[#allocation148_spill] sm:$0xff] %v9130_v6  ;;  %v9133_v0 = vpop.permute.xlu2 %5336  ;;  %v2827_v8 = vsel %vm1580_vm0, %v12588_v43, %v2826_v37  ;;  %v2851_v5 = vsel %vm1580_vm0, %v8387_v38, %v2850_v33  ;;  %v2912_v63 = vrot.slane %v9155_v42, 4  ;;  %v2751_v13 = vsel %vm1580_vm0, %v9048_v2, %v2750_v45 }
 0x737   :  { %12601 = vst [vmem:[#allocation192_spill] sm:$0xff] %v9133_v0  ;;  %v9140_v28 = vpop.permute.xlu1 %5296  ;;  %v2800_v3 = vrot.slane %v9161_v26, 4  ;;  %v2785_v17 = vsel %vm1580_vm0, %v2784_v12, %v9173_v24  ;;  %v2703_v43 = vsel %vm1580_vm0, %v12582_v9, %v2702_v53  ;;  %v2814_v55 = vrot.slane %v12599_v20, 4 }
 0x738   :  { %12602 = vst [vmem:[#allocation16_spill] sm:$0xff] %v9140_v28  ;;  %v2871_v38 = vperm.slane %v2863_v51, %v7619_v57  ;;  %v2760_v27 = vrot.slane %v9170_v54, 4  ;;  %v9200_v25 = vperm.slane %v2827_v8, %v7297_v21  ;;  %v2859_v2 = vperm.slane %v2851_v5, %v7297_v21  ;;  %v12630_v28 = vld [vmem:[#allocation17_spill] sm:$0xff] }
 0x739   :  { %v2759_v23 = vperm.slane %v2751_v13, %v7619_v57  ;;  %v2838_v16 = vrot.slane %v12594_v46, 4  ;;  %v2910_v12 = vrot.slane %v2867_v61, 4  ;;  %v9207_v9 = vperm.slane %v2785_v17, %v7619_v57 }
 0x73a   :  { %v2711_v20 = vperm.slane %v2703_v43, %v7297_v21  ;;  %v2872_v61 = vrot.slane %v9200_v25, 4  ;;  %v2896_v33 = vrot.slane %v2859_v2, 4 }
 0x73b   :  { %5486 = vrot.lane.b32.xlu0 %v2799_v40, %s12216_s10  ;;  %v2913_v40 = vsel %vm1580_vm0, %v2912_v63, %v2871_v38  ;;  %v2801_v11 = vsel %vm1580_vm0, %v2800_v3, %v2759_v23  ;;  %v2839_v45 = vsel %vm1580_vm0, %v12589_v48, %v2838_v16  ;;  %v2911_v46 = vsel %vm1580_vm0, %v9122_v58, %v2910_v12 }
 0x73c   :  { %5480 = vrot.lane.b32.xlu2 %v2909_v31, %s12212_s11  ;;  %v2815_v31 = vsel %vm1580_vm0, %v12595_v59, %v2814_v55  ;;  %v2804_v59 = vrot.slane %v9207_v9, 4  ;;  %v2847_v51 = vperm.slane %v2839_v45, %v7297_v21  ;;  %v3072_v58 = vrot.slane %v8545_v60, 4  ;;  %v12609_v55 = vld [vmem:[#allocation22_spill] sm:$0xff] }
 0x73d   :  { %v9175_v34 = vpop.permute.xlu0 %5318  ;;  %5478 = vrot.lane.b32.xlu1 %v2797_v49, %s12212_s11  ;;  %s12214_s11 = smov 84   ;;  %v2761_v49 = vsel %vm1580_vm0, %v2760_v27, %v2711_v20  ;;  %v9228_v48 = vperm.slane %v2815_v31, %v7297_v21  ;;  %v2914_v63 = vrot.slane %v2871_v38, 4  ;;  %v2802_v43 = vrot.slane %v2759_v23, 4  ;;  %v12611_v38 = vld [vmem:[#allocation179_spill] sm:$0xff] }
 0x73e   :  { %12603 = vst [vmem:[#allocation71_spill] sm:$0xff] %v9175_v34  ;;  %v9184_v36 = vpop.permute.xlu2 %5350  ;;  %v2767_v5 = vperm.slane %v2761_v49, %v7619_v57  ;;  %v2897_v3 = vsel %vm1580_vm0, %v2896_v33, %v2847_v51  ;;  %v2960_v27 = vrot.slane %v12609_v55, 4  ;;  %v2762_v16 = vrot.slane %v2711_v20, 4  ;;  %v12614_v49 = vld [vmem:[#allocation140_spill] sm:$0xff] }
 0x73f   :  { %12604 = vst [vmem:[#allocation126_spill] sm:$0xff] %v9184_v36  ;;  %v9189_v7 = vpop.permute.xlu1 %5310  ;;  %v2873_v13 = vsel %vm1580_vm0, %v2872_v61, %v9228_v48  ;;  %v3073_v31 = vsel %vm1580_vm0, %v3072_v58, %v12611_v38  ;;  %v2803_v23 = vsel %vm1580_vm0, %v9161_v26, %v2802_v43  ;;  %v2903_v20 = vperm.slane %v2897_v3, %v7619_v57  ;;  %v12615_v58 = vld [vmem:[#allocation183_spill] sm:$0xff] }
 0x740   :  { %12605 = vst [vmem:[#allocation152_spill] sm:$0xff] %v9189_v7  ;;  %v2805_v17 = vsel %vm1580_vm0, %v2804_v59, %v2767_v5  ;;  %v2879_v45 = vperm.slane %v2873_v13, %v7619_v57  ;;  %v3048_v59 = vrot.slane %v12614_v49, 4  ;;  %v12617_v26 = vld [vmem:[#allocation83_spill] sm:$0xff]  ;;  %v2786_v3 = vrot.slane %v9173_v24, 4 }
 0x741   :  { %v2961_v13 = vsel %vm1580_vm0, %v2960_v27, %v12617_v26  ;;  %v9265_v43 = vperm.slane %v3073_v31, %v7297_v21  ;;  %v2916_v36 = vrot.slane %v2903_v20, 4 }
 0x742   :  { %v2918_v0 = vrot.slane %v2879_v45, 4  ;;  %v2787_v24 = vsel %vm1580_vm0, %v9138_v32, %v2786_v3  ;;  %v9278_v31 = vperm.slane %v2961_v13, %v7297_v21  ;;  %v12624_v13 = vld [vmem:[#allocation20_spill] sm:$0xff] }
 0x743   :  { %5496 = vrot.lane.b32.xlu0 %v2913_v40, %s12214_s11  ;;  %v12610_v40 = vld [vmem:[#allocation84_spill] sm:$0xff]  ;;  %v2924_v3 = vrot.slane %v12624_v13, 4 }
 0x744   :  { %5494 = vrot.lane.b32.xlu2 %v2801_v11, %s12214_s11  ;;  %v2948_v12 = vrot.slane %v12610_v40, 4  ;;  %s12222_s11 = smov 88   ;;  %v2915_v11 = vsel %vm1580_vm0, %v9155_v42, %v2914_v63  ;;  %v2763_v42 = vsel %vm1580_vm0, %v9170_v54, %v2762_v16  ;;  %v3060_v63 = vrot.slane %v12615_v58, 4 }
 0x745   :  { %v9220_v37 = vpop.permute.xlu0 %5328  ;;  %5488 = vrot.lane.b32.xlu1 %v2911_v46, %s12216_s10  ;;  %s12218_s10 = smov 86   ;;  %v12612_v46 = vld [vmem:[#allocation62_spill] sm:$0xff]  ;;  %v2771_v27 = vperm.slane %v2763_v42, %v7619_v57  ;;  %v2874_v42 = vrot.slane %v9228_v48, 4 }
 0x746   :  { %12606 = vst [vmem:[#allocation127_spill] sm:$0xff] %v9220_v37  ;;  %v9224_v53 = vpop.permute.xlu2 %5360  ;;  %v2936_v61 = vrot.slane %v12612_v46, 4  ;;  %v2806_v37 = vrot.slane %v2767_v5, 4  ;;  %v3108_v5 = vrot.slane %v9265_v43, 4 }
 0x747   :  { %12607 = vst [vmem:[#allocation149_spill] sm:$0xff] %v9224_v53  ;;  %v9231_v8 = vpop.permute.xlu1 %5320 }
 0x748   :  { %12608 = vst [vmem:[#allocation207_spill] sm:$0xff] %v9231_v8  ;;  %v2807_v32 = vsel %vm1580_vm0, %v9207_v9, %v2806_v37 }
 0x74b   :  { %5510 = vrot.lane.b32.xlu0 %v2805_v17, %s12222_s11  ;;  %v2898_v17 = vrot.slane %v2847_v51, 4  ;;  %v12620_v51 = vld [vmem:[#allocation28_spill] sm:$0xff] }
 0x74c   :  { %5504 = vrot.lane.b32.xlu2 %v2915_v11, %s12218_s10 }
 0x74d   :  { %v9252_v33 = vpop.permute.xlu0 %5342  ;;  %5502 = vrot.lane.b32.xlu1 %v2803_v23, %s12218_s10  ;;  %v12619_v23 = vld [vmem:[#allocation63_spill] sm:$0xff]  ;;  %v2899_v16 = vsel %vm1580_vm0, %v2859_v2, %v2898_v17  ;;  %v2919_v17 = vsel %vm1580_vm0, %v2903_v20, %v2918_v0  ;;  %s12220_s10 = smov 90   ;;  %v2917_v0 = vsel %vm1580_vm0, %v2916_v36, %v2879_v45  ;;  %v2795_v20 = vperm.slane %v2787_v24, %v7619_v57  ;;  %v12627_v24 = vld [vmem:[#allocation29_spill] sm:$0xff] }
 0x74e   :  { %12613 = vst [vmem:[#allocation22_spill] sm:$0xff] %v9252_v33  ;;  %v9259_v11 = vpop.permute.xlu2 %5374  ;;  %v2949_v54 = vsel %vm1580_vm0, %v2948_v12, %v12619_v23  ;;  %v12621_v33 = vld [vmem:[#allocation117_spill] sm:$0xff]  ;;  %v12622_v12 = vld [vmem:[#allocation24_spill] sm:$0xff]  ;;  %v2875_v45 = vsel %vm1580_vm0, %v9200_v25, %v2874_v42  ;;  %v2925_v25 = vsel %vm1580_vm0, %v2924_v3, %v12627_v24 }
 0x74f   :  { %12616 = vst [vmem:[#allocation84_spill] sm:$0xff] %v9259_v11  ;;  %v9267_v53 = vpop.permute.xlu1 %5334  ;;  %v2937_v11 = vsel %vm1580_vm0, %v2936_v61, %v12620_v51  ;;  %v3049_v8 = vsel %vm1580_vm0, %v3048_v59, %v12621_v33  ;;  %v3061_v2 = vsel %vm1580_vm0, %v3060_v63, %v12622_v12  ;;  %v9293_v61 = vperm.slane %v2899_v16, %v7619_v57  ;;  %v12623_v59 = vld [vmem:[#allocation137_spill] sm:$0xff] }
 0x750   :  { %12618 = vst [vmem:[#allocation179_spill] sm:$0xff] %v9267_v53  ;;  %v9286_v53 = vperm.slane %v2949_v54, %v7297_v21  ;;  %v3036_v63 = vrot.slane %v12623_v59, 4  ;;  %v9302_v54 = vperm.slane %v3049_v8, %v7297_v21  ;;  %v9305_v9 = vperm.slane %v3061_v2, %v7297_v21 }
 0x751   :  { %v9311_v48 = vperm.slane %v2937_v11, %v7297_v21  ;;  %v2996_v16 = vrot.slane %v9278_v31, 4  ;;  %v2926_v8 = vrot.slane %v12627_v24, 4  ;;  %v2920_v2 = vrot.slane %v9293_v61, 4  ;;  %v12631_v24 = vld [vmem:[#allocation18_spill] sm:$0xff] }
 0x752   :  { %v2808_v6 = vrot.slane %v2795_v20, 4  ;;  %v2883_v34 = vperm.slane %v2875_v45, %v7619_v57 }
 0x753   :  { %5520 = vrot.lane.b32.xlu0 %v2919_v17, %s12220_s10  ;;  %v2927_v42 = vsel %vm1580_vm0, %v12624_v13, %v2926_v8  ;;  %v2972_v7 = vrot.slane %v9311_v48, 4  ;;  %v3822_v8 = vrot.slane %v12631_v24, 4 }
 0x754   :  { %5518 = vrot.lane.b32.xlu2 %v2807_v32, %s12220_s10  ;;  %v3109_v32 = vsel %vm1580_vm0, %v3108_v5, %v9305_v9  ;;  %s12230_s10 = smov 94   ;;  %v2921_v13 = vsel %vm1580_vm0, %v2920_v2, %v2883_v34  ;;  %v12634_v2 = vld [vmem:[#allocation45_spill] sm:$0xff]  ;;  %v2938_v5 = vrot.slane %v12620_v51, 4 }
 0x755   :  { %v9307_v37 = vpop.permute.xlu0 %5352  ;;  %5512 = vrot.lane.b32.xlu1 %v2917_v0, %s12222_s11  ;;  %v12629_v0 = vld [vmem:[#allocation116_spill] sm:$0xff]  ;;  %v9338_v56 = vperm.slane %v3109_v32, %v7619_v57  ;;  %s12226_s11 = smov 92   ;;  %v12632_v32 = vld [vmem:[#allocation9_spill] sm:$0xff]  ;;  %v3820_v1 = vrot.slane %v12634_v2, 4  ;;  %v3823_v39 = vsel %vm1580_vm0, %v12634_v2, %v3822_v8  ;;  %v3050_v2 = vrot.slane %v12621_v33, 4 }
 0x756   :  { %12625 = vst [vmem:[#allocation62_spill] sm:$0xff] %v9307_v37  ;;  %v9314_v36 = vpop.permute.xlu2 %5384  ;;  %v3037_v11 = vsel %vm1580_vm0, %v3036_v63, %v12629_v0  ;;  %v2810_v37 = vrot.slane %v2771_v27, 4  ;;  %v3296_v8 = vrot.slane %v8416_v44, 4 }
 0x757   :  { %12626 = vst [vmem:[#allocation140_spill] sm:$0xff] %v9314_v36  ;;  %v9319_v17 = vpop.permute.xlu1 %5344  ;;  %v2997_v36 = vsel %vm1580_vm0, %v2996_v16, %v9286_v53  ;;  %v2998_v16 = vrot.slane %v9286_v53, 4  ;;  %v9342_v3 = vperm.slane %v3037_v11, %v7297_v21  ;;  %v2809_v53 = vsel %vm1580_vm0, %v2808_v6, %v2771_v27  ;;  %v12639_v11 = vld [vmem:[#allocation31_spill] sm:$0xff] }
 0x758   :  { %12628 = vst [vmem:[#allocation183_spill] sm:$0xff] %v9319_v17  ;;  %v3084_v17 = vrot.slane %v9302_v54, 4  ;;  %v2811_v63 = vsel %vm1580_vm0, %v2795_v20, %v2810_v37  ;;  %v9347_v45 = vperm.slane %v2997_v36, %v7619_v57  ;;  %v2931_v20 = vperm.slane %v2925_v25, %v7297_v21 }
 0x759   :  { %v9352_v37 = vperm.slane %v2927_v42, %v7297_v21  ;;  %v12636_v42 = vld [vmem:[#allocation32_spill] sm:$0xff]  ;;  %v3132_v6 = vrot.slane %v9338_v56, 4  ;;  %v3821_v51 = vsel %vm1580_vm0, %v3820_v1, %v12631_v24  ;;  %v3074_v1 = vrot.slane %v12611_v38, 4 }
 0x75a   :  { %v3085_v25 = vsel %vm1580_vm0, %v3084_v17, %v9342_v3  ;;  %v3598_v47 = vrot.slane %v12636_v42, 4  ;;  %v2973_v27 = vsel %vm1580_vm0, %v2972_v7, %v2931_v20  ;;  %v2999_v17 = vsel %vm1580_vm0, %v9278_v31, %v2998_v16 }
 0x75b   :  { %5534 = vrot.lane.b32.xlu0 %v2811_v63, %s12230_s10  ;;  %v12633_v63 = vld [vmem:[#allocation10_spill] sm:$0xff]  ;;  %v2974_v19 = vrot.slane %v2931_v20, 4  ;;  %v3091_v50 = vperm.slane %v3085_v25, %v7619_v57  ;;  %v3062_v7 = vrot.slane %v12622_v12, 4  ;;  %v2922_v16 = vrot.slane %v2883_v34, 4 }
 0x75c   :  { %5528 = vrot.lane.b32.xlu2 %v2921_v13, %s12226_s11  ;;  %v9389_v20 = vperm.slane %v2999_v17, %v7619_v57  ;;  %v2939_v12 = vsel %vm1580_vm0, %v12612_v46, %v2938_v5  ;;  %v2962_v34 = vrot.slane %v12617_v26, 4  ;;  %v9404_v46 = vperm.slane %v3821_v51, %v7297_v21 }
 0x75d   :  { %v9359_v36 = vpop.permute.xlu0 %5366  ;;  %5526 = vrot.lane.b32.xlu1 %v2809_v53, %s12226_s11  ;;  %v3020_v53 = vrot.slane %v9347_v45, 4  ;;  %v3133_v31 = vsel %vm1580_vm0, %v3132_v6, %v3091_v50  ;;  %s12228_s11 = smov 96   ;;  %v2923_v17 = vsel %vm1580_vm0, %v9293_v61, %v2922_v16  ;;  %v9407_v38 = vperm.slane %v3823_v39, %v7297_v21 }
 0x75e   :  { %12635 = vst [vmem:[#allocation83_spill] sm:$0xff] %v9359_v36  ;;  %v9366_v13 = vpop.permute.xlu2 %5398  ;;  %v3075_v5 = vsel %vm1580_vm0, %v8545_v60, %v3074_v1  ;;  %v2975_v26 = vsel %vm1580_vm0, %v9311_v48, %v2974_v19  ;;  %v12648_v61 = vrot.slane %v12630_v28, 4  ;;  %v9423_v39 = vperm.slane %v2939_v12, %v7297_v21  ;;  %v12650_v1 = vld [vmem:[#allocation54_spill] sm:$0xff] }
 0x75f   :  { %12638 = vst [vmem:[#allocation63_spill] sm:$0xff] %v9366_v13  ;;  %v9372_v36 = vpop.permute.xlu1 %5358  ;;  %v12643_v13 = vld [vmem:[#allocation44_spill] sm:$0xff]  ;;  %v3024_v60 = vrot.slane %v9389_v20, 4  ;;  %v3599_v19 = vsel %vm1580_vm0, %v12650_v1, %v3598_v47  ;;  %v3086_v48 = vrot.slane %v9342_v3, 4  ;;  %v2963_v12 = vsel %vm1580_vm0, %v12609_v55, %v2962_v34 }
 0x760   :  { %12640 = vst [vmem:[#allocation28_spill] sm:$0xff] %v9372_v36  ;;  %v2979_v36 = vperm.slane %v2973_v27, %v7619_v57  ;;  %v3834_v25 = vrot.slane %v12643_v13, 4  ;;  %v12645_v27 = vld [vmem:[#allocation42_spill] sm:$0xff]  ;;  %v3151_v51 = vsel %vm1580_vm0, %v12642_v22, %v12648_v61  ;;  %v2950_v22 = vrot.slane %v12619_v23, 4 }
 0x761   :  { %12646 = vst [vmem:[#allocation117_spill] sm:$0xff] %v9404_v46  ;;  %v2983_v61 = vperm.slane %v2975_v26, %v7619_v57  ;;  %v3134_v6 = vrot.slane %v3091_v50, 4  ;;  %v3087_v47 = vsel %vm1580_vm0, %v9302_v54, %v3086_v48  ;;  %v2984_v3 = vrot.slane %v9423_v39, 4  ;;  %v12651_v26 = vld [vmem:[#allocation53_spill] sm:$0xff] }
 0x762   :  { %v3021_v24 = vsel %vm1580_vm0, %v3020_v53, %v2979_v36  ;;  %12647 = vst [vmem:[#allocation24_spill] sm:$0xff] %v9407_v38  ;;  %v2951_v23 = vsel %vm1580_vm0, %v12610_v40, %v2950_v22  ;;  %v3022_v34 = vrot.slane %v2979_v36, 4  ;;  %v3051_v50 = vsel %vm1580_vm0, %v12614_v49, %v3050_v2 }
 0x763   :  { %5544 = vrot.lane.b32.xlu0 %v3133_v31, %s12228_s11  ;;  %v3149_v31 = vsel %vm1580_vm0, %v3148_v15, %v12630_v28  ;;  %v3110_v15 = vrot.slane %v9305_v9, 4  ;;  %v3025_v55 = vsel %vm1580_vm0, %v3024_v60, %v2983_v61  ;;  %v3063_v33 = vsel %vm1580_vm0, %v12615_v58, %v3062_v7 }
 0x764   :  { %5542 = vrot.lane.b32.xlu2 %v3021_v24, %s12228_s11  ;;  %v3596_v24 = vrot.slane %v12650_v1, 4  ;;  %s12240_s11 = smov 100   ;;  %v3023_v54 = vsel %vm1580_vm0, %v9347_v45, %v3022_v34  ;;  %v3095_v36 = vperm.slane %v3087_v47, %v7619_v57  ;;  %v9469_v7 = vperm.slane %v3149_v31, %v7297_v21 }
 0x765   :  { %v9411_v53 = vpop.permute.xlu0 %5376  ;;  %5536 = vrot.lane.b32.xlu1 %v2923_v17, %s12230_s10  ;;  %v9439_v17 = vperm.slane %v3075_v5, %v7297_v21  ;;  %v3111_v9 = vsel %vm1580_vm0, %v9265_v43, %v3110_v15  ;;  %v9452_v5 = vperm.slane %v2963_v12, %v7297_v21  ;;  %v3135_v43 = vsel %vm1580_vm0, %v9338_v56, %v3134_v6  ;;  %s12232_s10 = smov 98  }
 0x766   :  { %v9425_v16 = vpop.permute.xlu2 %5408  ;;  %v3119_v49 = vperm.slane %v3111_v9, %v7619_v57  ;;  %v9472_v2 = vperm.slane %v3151_v51, %v7297_v21  ;;  %v2959_v56 = vperm.slane %v2951_v23, %v7297_v21  ;;  %v3597_v45 = vsel %vm1580_vm0, %v3596_v24, %v12636_v42  ;;  %v12653_v24 = vld [vmem:[#allocation106_spill] sm:$0xff] }
 0x767   :  { %12649 = vst [vmem:[#allocation137_spill] sm:$0xff] %v9425_v16  ;;  %v9433_v28 = vpop.permute.xlu1 %5368  ;;  %v3120_v40 = vrot.slane %v9439_v17, 4  ;;  %v3160_v60 = vrot.slane %v12651_v26, 4  ;;  %v9482_v1 = vperm.slane %v3051_v50, %v7297_v21  ;;  %v3071_v31 = vperm.slane %v3063_v33, %v7297_v21 }
 0x768   :  { %v9488_v51 = vperm.slane %v3599_v19, %v7297_v21  ;;  %v3008_v15 = vrot.slane %v9452_v5, 4  ;;  %v3038_v22 = vrot.slane %v12629_v0, 4  ;;  %v2985_v42 = vsel %vm1580_vm0, %v2984_v3, %v9352_v37 }
 0x769   :  { %v3184_v47 = vrot.slane %v12653_v24, 4  ;;  %v3138_v9 = vrot.slane %v3095_v36, 4  ;;  %v3136_v23 = vrot.slane %v3119_v49, 4  ;;  %v9499_v34 = vperm.slane %v3597_v45, %v7297_v21 }
 0x76a   :  { %12652 = vst [vmem:[#allocation20_spill] sm:$0xff] %v9488_v51  ;;  %v3039_v19 = vsel %vm1580_vm0, %v12623_v59, %v3038_v22  ;;  %v3026_v50 = vrot.slane %v2983_v61, 4  ;;  %v3009_v0 = vsel %vm1580_vm0, %v3008_v15, %v2959_v56  ;;  %v3161_v33 = vsel %vm1580_vm0, %v3160_v60, %v12632_v32  ;;  %v12667_v51 = vld [vmem:[#allocation107_spill] sm:$0xff] }
 0x76b   :  { %5558 = vrot.lane.b32.xlu0 %v3025_v55, %s12240_s11  ;;  %v3121_v55 = vsel %vm1580_vm0, %v3120_v40, %v3071_v31  ;;  %v12654_v3 = vrot.slane %v12632_v32, 4  ;;  %v3139_v40 = vsel %vm1580_vm0, %v3119_v49, %v3138_v9  ;;  %v3010_v45 = vrot.slane %v2959_v56, 4  ;;  %v12655_v32 = vld [vmem:[#allocation74_spill] sm:$0xff] }
 0x76c   :  { %5552 = vrot.lane.b32.xlu2 %v3135_v43, %s12232_s10  ;;  %v3027_v59 = vsel %vm1580_vm0, %v9389_v20, %v3026_v50  ;;  %v2991_v61 = vperm.slane %v2985_v42, %v7619_v57  ;;  %v9517_v60 = vperm.slane %v3121_v55, %v7619_v57  ;;  %v3185_v15 = vsel %vm1580_vm0, %v3184_v47, %v12655_v32 }
 0x76d   :  { %v9475_v6 = vpop.permute.xlu0 %5390  ;;  %5550 = vrot.lane.b32.xlu1 %v3023_v54, %s12232_s10  ;;  %v3163_v43 = vsel %vm1580_vm0, %v12651_v26, %v12654_v3  ;;  %v3096_v54 = vrot.slane %v9482_v1, 4  ;;  %s12238_s10 = smov 102   ;;  %v3047_v26 = vperm.slane %v3039_v19, %v7297_v21  ;;  %v3137_v22 = vsel %vm1580_vm0, %v3136_v23, %v3095_v36 }
 0x76e   :  { %v9485_v48 = vpop.permute.xlu2 %5422  ;;  %v3015_v49 = vperm.slane %v3009_v0, %v7619_v57  ;;  %v3167_v20 = vperm.slane %v3161_v33, %v7297_v21  ;;  %v3171_v42 = vperm.slane %v3163_v43, %v7297_v21  ;;  %v3122_v9 = vrot.slane %v3071_v31, 4 }
 0x76f   :  { %v9492_v12 = vpop.permute.xlu1 %5382  ;;  %v3198_v47 = vrot.slane %v9469_v7, 4  ;;  %v3210_v19 = vrot.slane %v9472_v2, 4  ;;  %v3097_v50 = vsel %vm1580_vm0, %v3096_v54, %v3047_v26  ;;  %v9539_v33 = vperm.slane %v3185_v15, %v7297_v21 }
 0x770   :  { %v3123_v31 = vsel %vm1580_vm0, %v9439_v17, %v3122_v9  ;;  %v3140_v43 = vrot.slane %v9517_v60, 4  ;;  %v3028_v58 = vrot.slane %v3015_v49, 4  ;;  %v3011_v36 = vsel %vm1580_vm0, %v9452_v5, %v3010_v45  ;;  %v12658_v9 = vld [vmem:[#allocation73_spill] sm:$0xff] }
 0x771   :  { %v3196_v15 = vrot.slane %v3167_v20, 4  ;;  %v3208_v56 = vrot.slane %v3171_v42, 4  ;;  %v3103_v17 = vperm.slane %v3097_v50, %v7619_v57  ;;  %v12659_v0 = vrot.slane %v12633_v63, 4 }
 0x772   :  { %v9561_v5 = vperm.slane %v3123_v31, %v7619_v57  ;;  %v3220_v45 = vrot.slane %v9539_v33, 4  ;;  %v3098_v46 = vrot.slane %v3047_v26, 4  ;;  %v9567_v50 = vperm.slane %v3011_v36, %v7619_v57 }
 0x773   :  { %5568 = vrot.lane.b32.xlu0 %v3139_v40, %s12238_s10  ;;  %v12657_v40 = vld [vmem:[#allocation155_spill] sm:$0xff]  ;;  %v3173_v4 = vsel %vm1580_vm0, %v12659_v0, %v12658_v9  ;;  %v3211_v26 = vsel %vm1580_vm0, %v3171_v42, %v3210_v19 }
 0x774   :  { %5566 = vrot.lane.b32.xlu2 %v3027_v59, %s12238_s10  ;;  %v3832_v59 = vrot.slane %v12657_v40, 4  ;;  %v3835_v54 = vsel %vm1580_vm0, %v12657_v40, %v3834_v25  ;;  %s12249_s10 = smov 106   ;;  %v3141_v25 = vsel %vm1580_vm0, %v3140_v43, %v3103_v17  ;;  %v3029_v40 = vsel %vm1580_vm0, %v3028_v58, %v2991_v61 }
 0x775   :  { %v9528_v55 = vpop.permute.xlu0 %5400  ;;  %5560 = vrot.lane.b32.xlu1 %v3137_v22, %s12240_s11  ;;  %v3030_v22 = vrot.slane %v2991_v61, 4  ;;  %s12244_s11 = smov 104   ;;  %v9576_v31 = vperm.slane %v3173_v4, %v7297_v21  ;;  %v3099_v36 = vsel %vm1580_vm0, %v9482_v1, %v3098_v46  ;;  %v3209_v58 = vsel %vm1580_vm0, %v3208_v56, %v9472_v2  ;;  %v12660_v61 = vld [vmem:[#allocation130_spill] sm:$0xff] }
 0x776   :  { %v9534_v23 = vpop.permute.xlu2 %5432  ;;  %v3833_v0 = vsel %vm1580_vm0, %v3832_v59, %v12643_v13  ;;  %v3197_v13 = vsel %vm1580_vm0, %v3196_v15, %v9469_v7  ;;  %v3144_v19 = vrot.slane %v9561_v5, 4  ;;  %v12663_v43 = vrot.slane %v9352_v37, 4  ;;  %v12664_v59 = vld [vmem:[#allocation128_spill] sm:$0xff] }
 0x777   :  { %12656 = vst [vmem:[#allocation29_spill] sm:$0xff] %v9534_v23  ;;  %v9543_v3 = vpop.permute.xlu1 %5392  ;;  %v3031_v38 = vsel %vm1580_vm0, %v3015_v49, %v3030_v22  ;;  %v3199_v49 = vsel %vm1580_vm0, %v3167_v20, %v3198_v47  ;;  %v3260_v20 = vrot.slane %v12660_v61, 4  ;;  %v12661_v47 = vld [vmem:[#allocation170_spill] sm:$0xff]  ;;  %v3032_v7 = vrot.slane %v9567_v50, 4 }
 0x778   :  { %v3297_v42 = vsel %vm1580_vm0, %v3296_v8, %v12661_v47  ;;  %v2987_v46 = vsel %vm1580_vm0, %v9423_v39, %v12663_v43  ;;  %v3221_v2 = vsel %vm1580_vm0, %v3220_v45, %v9576_v31  ;;  %v9603_v56 = vperm.slane %v3199_v49, %v7619_v57 }
 0x779   :  { %v9606_v8 = vperm.slane %v3211_v26, %v7619_v57  ;;  %v12665_v22 = vrot.slane %v12637_v62, 4  ;;  %v3284_v39 = vrot.slane %v8153_v52, 4  ;;  %v3107_v15 = vperm.slane %v3099_v36, %v7619_v57 }
 0x77a   :  { %v9619_v49 = vperm.slane %v3297_v42, %v7297_v21  ;;  %v2995_v26 = vperm.slane %v2987_v46, %v7619_v57  ;;  %v9623_v43 = vperm.slane %v3197_v13, %v7619_v57  ;;  %v9629_v36 = vperm.slane %v3221_v2, %v7619_v57 }
 0x77b   :  { %5582 = vrot.lane.b32.xlu0 %v3031_v38, %s12249_s10  ;;  %v3273_v37 = vsel %vm1580_vm0, %v12665_v22, %v12664_v59  ;;  %v3261_v22 = vsel %vm1580_vm0, %v3260_v20, %v12667_v51  ;;  %v3145_v23 = vsel %vm1580_vm0, %v3144_v19, %v3107_v15  ;;  %v9635_v42 = vperm.slane %v3835_v54, %v7297_v21  ;;  %v12669_v20 = vld [vmem:[#allocation55_spill] sm:$0xff] }
 0x77c   :  { %5576 = vrot.lane.b32.xlu2 %v3141_v25, %s12244_s11  ;;  %v9615_v25 = vperm.slane %v3209_v58, %v7619_v57  ;;  %v9632_v58 = vperm.slane %v3833_v0, %v7297_v21  ;;  %v9638_v46 = vperm.slane %v3273_v37, %v7297_v21  ;;  %v3033_v13 = vsel %vm1580_vm0, %v3032_v7, %v2995_v26 }
 0x77d   :  { %v9578_v38 = vpop.permute.xlu0 %5414  ;;  %5574 = vrot.lane.b32.xlu1 %v3029_v40, %s12244_s11  ;;  %v12666_v40 = vld [vmem:[#allocation64_spill] sm:$0xff]  ;;  %s12247_s11 = smov 108   ;;  %v3608_v19 = vrot.slane %v12669_v20, 4  ;;  %v12671_v37 = vrot.slane %v12641_v41, 4  ;;  %v3332_v7 = vrot.slane %v9619_v49, 4 }
 0x77e   :  { %v9590_v4 = vpop.permute.xlu2 %5446  ;;  %v3384_v45 = vrot.slane %v12666_v40, 4  ;;  %12668 = vst [vmem:[#allocation17_spill] sm:$0xff] %v9632_v58 }
 0x77f   :  { %12662 = vst [vmem:[#allocation116_spill] sm:$0xff] %v9590_v4  ;;  %v9597_v1 = vpop.permute.xlu1 %5406  ;;  %v3142_v4 = vrot.slane %v3103_v17, 4  ;;  %v12670_v17 = vld [vmem:[#allocation165_spill] sm:$0xff]  ;;  %v3387_v58 = vsel %vm1580_vm0, %v12666_v40, %v12671_v37  ;;  %v12674_v37 = vrot.slane %v12639_v11, 4 }
 0x780   :  { %v3285_v2 = vsel %vm1580_vm0, %v3284_v39, %v12670_v17  ;;  %v9682_v40 = vperm.slane %v3387_v58, %v7297_v21  ;;  %v3298_v58 = vrot.slane %v12661_v47, 4 }
 0x781   :  { %v3143_v0 = vsel %vm1580_vm0, %v9517_v60, %v3142_v4  ;;  %v3385_v4 = vsel %vm1580_vm0, %v3384_v45, %v12641_v41  ;;  %v9672_v54 = vsel %vm1580_vm0, %v12669_v20, %v12674_v37  ;;  %v3308_v60 = vrot.slane %v9638_v46, 4 }
 0x782   :  { %v3291_v41 = vperm.slane %v3285_v2, %v7297_v21  ;;  %v9686_v20 = vperm.slane %v3385_v4, %v7297_v21  ;;  %v3146_v37 = vrot.slane %v3107_v15, 4  ;;  %v3222_v15 = vrot.slane %v9576_v31, 4 }
 0x783   :  { %5592 = vrot.lane.b32.xlu0 %v3145_v23, %s12247_s11  ;;  %v9654_v23 = vperm.slane %v3261_v22, %v7297_v21  ;;  %v3186_v22 = vrot.slane %v12655_v32, 4  ;;  %v3299_v47 = vsel %vm1580_vm0, %v8416_v44, %v3298_v58  ;;  %v3432_v4 = vrot.slane %v9682_v40, 4 }
 0x784   :  { %5590 = vrot.lane.b32.xlu2 %v3033_v13, %s12247_s11  ;;  %v3244_v13 = vrot.slane %v9629_v36, 4  ;;  %v3333_v2 = vsel %vm1580_vm0, %v3332_v7, %v3291_v41  ;;  %s12255_s11 = smov 112   ;;  %v1676_v44 = vrot.slane %v8162_v29, 4 }
 0x785   :  { %v9657_v16 = vpop.permute.xlu0 %5424  ;;  %5584 = vrot.lane.b32.xlu1 %v3143_v0, %s12249_s10  ;;  %v3174_v0 = vrot.slane %v12658_v9, 4  ;;  %v3309_v9 = vsel %vm1580_vm0, %v3308_v60, %v9654_v23  ;;  %s12251_s10 = smov 110   ;;  %v3339_v31 = vperm.slane %v3333_v2, %v7619_v57  ;;  %v9740_v2 = vperm.slane %v3299_v47, %v7297_v21 }
 0x786   :  { %12672 = vst [vmem:[#allocation18_spill] sm:$0xff] %v9657_v16  ;;  %v9663_v39 = vpop.permute.xlu2 %5456  ;;  %v3034_v16 = vrot.slane %v2995_v26, 4  ;;  %v3245_v32 = vsel %vm1580_vm0, %v3244_v13, %v9623_v43 }
 0x787   :  { %12673 = vst [vmem:[#allocation9_spill] sm:$0xff] %v9663_v39  ;;  %v9677_v45 = vpop.permute.xlu1 %5416  ;;  %v3609_v39 = vsel %vm1580_vm0, %v3608_v19, %v12639_v11  ;;  %v3187_v11 = vsel %vm1580_vm0, %v12653_v24, %v3186_v22  ;;  %v3175_v26 = vsel %vm1580_vm0, %v12633_v63, %v3174_v0  ;;  %v12676_v19 = vrot.slane %v12645_v27, 4 }
 0x788   :  { %12675 = vst [vmem:[#allocation10_spill] sm:$0xff] %v9677_v45  ;;  %v3374_v45 = vrot.slane %v8308_v30, 4  ;;  %v3147_v24 = vsel %vm1580_vm0, %v9561_v5, %v3146_v37  ;;  %v3035_v60 = vsel %vm1580_vm0, %v9567_v50, %v3034_v16  ;;  %v3315_v63 = vperm.slane %v3309_v9, %v7619_v57 }
 0x789   :  { %v3373_v7 = vsel %vm1580_vm0, %v12676_v19, %v8308_v30  ;;  %v9715_v30 = vperm.slane %v3609_v39, %v7297_v21  ;;  %v9719_v5 = vperm.slane %v3187_v11, %v7297_v21  ;;  %v3274_v50 = vrot.slane %v12664_v59, 4 }
 0x78a   :  { %v3375_v16 = vsel %vm1580_vm0, %v12645_v27, %v3374_v45  ;;  %v3334_v22 = vrot.slane %v3291_v41, 4  ;;  %v3223_v39 = vsel %vm1580_vm0, %v9539_v33, %v3222_v15  ;;  %v3420_v37 = vrot.slane %v9686_v20, 4 }
 0x78b   :  { %5606 = vrot.lane.b32.xlu0 %v3245_v32, %s12255_s11  ;;  %v9734_v9 = vperm.slane %v3175_v26, %v7297_v21  ;;  %v9737_v29 = vperm.slane %v3373_v7, %v7297_v21  ;;  %v3286_v59 = vrot.slane %v12670_v17, 4  ;;  %v3358_v41 = vrot.slane %v3315_v63, 4 }
 0x78c   :  { %5600 = vrot.lane.b32.xlu2 %v3147_v24, %s12251_s10  ;;  %v3356_v45 = vrot.slane %v3339_v31, 4  ;;  %v3335_v33 = vsel %vm1580_vm0, %v9619_v49, %v3334_v22  ;;  %v9748_v11 = vperm.slane %v3375_v16, %v7297_v21  ;;  %v3232_v58 = vrot.slane %v9719_v5, 4 }
 0x78d   :  { %v9722_v13 = vpop.permute.xlu0 %5438  ;;  %5598 = vrot.lane.b32.xlu1 %v3035_v60, %s12251_s10  ;;  %v1677_v32 = vsel %vm1580_vm0, %v1676_v44, %v8149_v10  ;;  %v3231_v26 = vperm.slane %v3223_v39, %v7619_v57  ;;  %v3275_v15 = vsel %vm1580_vm0, %v12637_v62, %v3274_v50  ;;  %v3310_v17 = vrot.slane %v9654_v23, 4  ;;  %s12253_s10 = smov 114  }
 0x78e   :  { %v9728_v0 = vpop.permute.xlu2 %5470  ;;  %v3287_v19 = vsel %vm1580_vm0, %v8153_v52, %v3286_v59  ;;  %v3359_v49 = vsel %vm1580_vm0, %v3339_v31, %v3358_v41  ;;  %v3344_v7 = vrot.slane %v9740_v2, 4  ;;  %v12678_v10 = vrot.slane %v9623_v43, 4  ;;  %v12681_v59 = vld [vmem:[#allocation95_spill] sm:$0xff]  ;;  %v12682_v41 = vld [vmem:[#allocation96_spill] sm:$0xff] }
 0x78f   :  { %12677 = vst [vmem:[#allocation45_spill] sm:$0xff] %v9728_v0  ;;  %v9742_v27 = vpop.permute.xlu1 %5430  ;;  %v9767_v62 = vperm.slane %v3335_v33, %v7619_v57  ;;  %v3262_v23 = vrot.slane %v12667_v51, 4  ;;  %v6173_v52 = vsel %vm6172_vm1, %v1677_v32, %v8698_v18  ;;  %v3357_v47 = vsel %vm1580_vm0, %v3356_v45, %v3315_v63  ;;  %v12710_v0 = vld [vmem:[#allocation38_spill] sm:$0xff] }
 0x790   :  { %v3247_v24 = vsel %vm1580_vm0, %v9629_v36, %v12678_v10  ;;  %v3421_v60 = vsel %vm1580_vm0, %v3420_v37, %v9737_v29  ;;  %v9777_v43 = vperm.slane %v3275_v15, %v7297_v21  ;;  %v9780_v36 = vperm.slane %v3287_v19, %v7297_v21 }
 0x791   :  { %v3233_v18 = vsel %vm1580_vm0, %v3232_v58, %v9734_v9  ;;  %v3422_v51 = vrot.slane %v9737_v29, 4  ;;  %v3263_v63 = vsel %vm1580_vm0, %v12660_v61, %v3262_v23  ;;  %v1788_v44 = vrot.slane %v8157_v35, 4 }
 0x792   :  { %v3311_v50 = vsel %vm1580_vm0, %v9638_v46, %v3310_v17  ;;  %v6176_v22 = vsel %vm6175_vm2, %v6173_v52, %v8664_v14  ;;  %v3360_v37 = vrot.slane %v9767_v62, 4  ;;  %v3345_v29 = vsel %vm1580_vm0, %v3344_v7, %v9780_v36  ;;  %v12684_v17 = vld [vmem:[#allocation194_spill] sm:$0xff]  ;;  %v12687_v52 = vld [vmem:[#allocation204_spill] sm:$0xff] }
 0x793   :  { %5616 = vrot.lane.b32.xlu0 %v3359_v49, %s12253_s10  ;;  %v3396_v61 = vrot.slane %v12681_v59, 4  ;;  %v3408_v35 = vrot.slane %v12682_v41, 4  ;;  %v3248_v45 = vrot.slane %v3231_v26, 4  ;;  %v9805_v33 = vperm.slane %v3233_v18, %v7619_v57  ;;  %v12685_v49 = vld [vmem:[#allocation60_spill] sm:$0xff]  ;;  %v12688_v18 = vld [vmem:[#allocation65_spill] sm:$0xff] }
 0x794   :  { %5614 = vrot.lane.b32.xlu2 %v3247_v24, %s12253_s10  ;;  %v3320_v46 = vrot.slane %v9777_v43, 4  ;;  %v9809_v14 = vperm.slane %v3263_v63, %v7297_v21  ;;  %v12683_v58 = vrot.slane %v9603_v56, 4  ;;  %v3319_v15 = vperm.slane %v3311_v50, %v7619_v57  ;;  %v12686_v24 = vld [vmem:[#allocation201_spill] sm:$0xff]  ;;  %s12261_s10 = smov 118   ;;  %v12689_v50 = vld [vmem:[#allocation114_spill] sm:$0xff]  ;;  %v12699_v63 = vld [vmem:[#allocation51_spill] sm:$0xff] }
 0x795   :  { %v9782_v31 = vpop.permute.xlu0 %5448  ;;  %5608 = vrot.lane.b32.xlu1 %v3357_v47, %s12255_s11  ;;  %v1789_v19 = vsel %vm1580_vm0, %v1788_v44, %v12684_v17  ;;  %v6179_v7 = vsel %vm6178_vm3, %v6176_v22, %v12685_v49  ;;  %v9820_v10 = vperm.slane %v3345_v29, %v7619_v57  ;;  %v3234_v44 = vrot.slane %v9734_v9, 4  ;;  %s12257_s11 = smov 116   ;;  %v12690_v17 = vld [vmem:[#allocation198_spill] sm:$0xff] }
 0x796   :  { %12679 = vst [vmem:[#allocation32_spill] sm:$0xff] %v9782_v31  ;;  %v9791_v16 = vpop.permute.xlu2 %5480  ;;  %v3251_v32 = vsel %vm1580_vm0, %v3231_v26, %v12683_v58  ;;  %v6174_v23 = vsel %vm6172_vm1, %v1789_v19, %v12686_v24  ;;  %v6182_v47 = vsel %vm6181_vm4, %v6179_v7, %v12687_v52  ;;  %v3361_v26 = vsel %vm1580_vm0, %v3360_v37, %v3319_v15  ;;  %v12694_v24 = vld [vmem:[#allocation61_spill] sm:$0xff] }
 0x797   :  { %12680 = vst [vmem:[#allocation11_spill] sm:$0xff] %v9791_v16  ;;  %v9797_v39 = vpop.permute.xlu1 %5440  ;;  %v6177_v22 = vsel %vm6175_vm2, %v6174_v23, %v12689_v50  ;;  %v3249_v29 = vsel %vm1580_vm0, %v3248_v45, %v9603_v56  ;;  %v3397_v58 = vsel %vm1580_vm0, %v3396_v61, %v12688_v18  ;;  %v3321_v9 = vsel %vm1580_vm0, %v3320_v46, %v9809_v14  ;;  %v12692_v45 = vld [vmem:[#allocation26_spill] sm:$0xff]  ;;  %v12695_v50 = vld [vmem:[#allocation115_spill] sm:$0xff] }
 0x798   :  { %v9845_v19 = vperm.slane %v3421_v60, %v7619_v57  ;;  %v3235_v56 = vsel %vm1580_vm0, %v9719_v5, %v3234_v44  ;;  %v6185_v49 = vsel %vm6184_vm5, %v6182_v47, %v12692_v45  ;;  %v6180_v23 = vsel %vm6178_vm3, %v6177_v22, %v12694_v24 }
 0x799   :  { %v3252_v60 = vrot.slane %v9805_v33, 4  ;;  %v3423_v5 = vsel %vm1580_vm0, %v9686_v20, %v3422_v51  ;;  %v9863_v52 = vperm.slane %v3397_v58, %v7297_v21  ;;  %v3433_v44 = vsel %vm1580_vm0, %v3432_v4, %v9748_v11  ;;  %v12696_v51 = vld [vmem:[#allocation91_spill] sm:$0xff]  ;;  %v12698_v4 = vld [vmem:[#allocation150_spill] sm:$0xff] }
 0x79a   :  { %12691 = vst [vmem:[#allocation31_spill] sm:$0xff] %v9845_v19  ;;  %v6188_v22 = vsel %vm6187_vm6, %v6185_v49, %v12695_v50  ;;  %v9876_v20 = vperm.slane %v3235_v56, %v7619_v57  ;;  %v6183_v58 = vsel %vm6181_vm4, %v6180_v23, %v12696_v51  ;;  %v3322_v24 = vrot.slane %v9809_v14, 4 }
 0x79b   :  { %5630 = vrot.lane.b32.xlu0 %v3251_v32, %s12261_s10  ;;  %v3409_v32 = vsel %vm1580_vm0, %v3408_v35, %v12690_v17  ;;  %v3364_v35 = vrot.slane %v9820_v10, 4  ;;  %v3496_v7 = vrot.slane %v12698_v4, 4  ;;  %v6186_v49 = vsel %vm6184_vm5, %v6183_v58, %v12699_v63 }
 0x79c   :  { %5624 = vrot.lane.b32.xlu2 %v3361_v26, %s12257_s11  ;;  %v9866_v47 = vperm.slane %v3409_v32, %v7297_v21  ;;  %v3327_v26 = vperm.slane %v3321_v9, %v7619_v57  ;;  %v12697_v32 = vld [vmem:[#allocation173_spill] sm:$0xff]  ;;  %v9898_v23 = vperm.slane %v3433_v44, %v7619_v57  ;;  %v3410_v63 = vrot.slane %v12690_v17, 4 }
 0x79d   :  { %v9839_v37 = vpop.permute.xlu0 %5462  ;;  %5622 = vrot.lane.b32.xlu1 %v3249_v29, %s12257_s11  ;;  %v3362_v29 = vrot.slane %v3319_v15, 4  ;;  %v6191_v9 = vsel %vm6190_vm7, %v6188_v22, %v12697_v32  ;;  %s12259_s11 = smov 120   ;;  %v3253_v15 = vsel %vm1580_vm0, %v3252_v60, %v9615_v25  ;;  %v3446_v50 = vrot.slane %v9863_v52, 4  ;;  %v12700_v22 = vld [vmem:[#allocation82_spill] sm:$0xff]  ;;  %v12704_v32 = vld [vmem:[#allocation104_spill] sm:$0xff] }
 0x79e   :  { %v9851_v61 = vpop.permute.xlu2 %5494  ;;  %v3365_v45 = vsel %vm1580_vm0, %v3364_v35, %v3327_v26  ;;  %v9894_v35 = vperm.slane %v3423_v5, %v7619_v57  ;;  %v6194_v60 = vsel %vm6193_vm8, %v6191_v9, %v12700_v22  ;;  %v6189_v44 = vsel %vm6187_vm6, %v6186_v49, %v12704_v32  ;;  %v12709_v49 = vld [vmem:[#allocation203_spill] sm:$0xff] }
 0x79f   :  { %12693 = vst [vmem:[#allocation43_spill] sm:$0xff] %v9851_v61  ;;  %v9857_v46 = vpop.permute.xlu1 %5454  ;;  %v3363_v56 = vsel %vm1580_vm0, %v9767_v62, %v3362_v29  ;;  %v12702_v62 = vld [vmem:[#allocation199_spill] sm:$0xff]  ;;  %v12703_v29 = vld [vmem:[#allocation8_spill] sm:$0xff]  ;;  %v3256_v17 = vrot.slane %v9876_v20, 4  ;;  %v3346_v9 = vrot.slane %v9780_v36, 4  ;;  %v3447_v16 = vsel %vm1580_vm0, %v9866_v47, %v3446_v50  ;;  %v12708_v61 = vld [vmem:[#allocation185_spill] sm:$0xff] }
 0x7a0   :  { %v3484_v5 = vrot.slane %v12702_v62, 4  ;;  %v3520_v58 = vrot.slane %v12703_v29, 4  ;;  %v6197_v32 = vsel %vm12316_vm9, %v6194_v60, %v12709_v49  ;;  %v12711_v36 = vld [vmem:[#allocation178_spill] sm:$0xff]  ;;  %v12712_v50 = vld [vmem:[#allocation176_spill] sm:$0xff] }
 0x7a1   :  { %v3257_v60 = vsel %vm1580_vm0, %v3256_v17, %v9606_v8  ;;  %v12716_v17 = vld [vmem:[#allocation154_spill] sm:$0xff] }
 0x7a3   :  { %5640 = vrot.lane.b32.xlu0 %v3365_v45, %s12259_s11 }
 0x7a4   :  { %5638 = vrot.lane.b32.xlu2 %v3253_v15, %s12259_s11  ;;  %v12706_v15 = vld [vmem:[#allocation119_spill] sm:$0xff]  ;;  %s6987_s11 = smov 124  }
 0x7a5   :  { %v9904_v51 = vpop.permute.xlu0 %5472  ;;  %5632 = vrot.lane.b32.xlu1 %v3363_v56, %s12261_s10  ;;  %v3497_v14 = vsel %vm1580_vm0, %v3496_v7, %v12706_v15  ;;  %v3323_v56 = vsel %vm1580_vm0, %v9777_v43, %v3322_v24  ;;  %v6192_v7 = vsel %vm6190_vm7, %v6189_v44, %v12710_v0  ;;  %v3347_v43 = vsel %vm1580_vm0, %v9740_v2, %v3346_v9  ;;  %v12714_v44 = vld [vmem:[#allocation118_spill] sm:$0xff]  ;;  %s12263_s10 = smov 122  }
 0x7a6   :  { %12701 = vst [vmem:[#allocation52_spill] sm:$0xff] %v9904_v51  ;;  %v9911_v45 = vpop.permute.xlu2 %5504  ;;  %v3508_v51 = vrot.slane %v12708_v61, 4  ;;  %v9933_v24 = vperm.slane %v3497_v14, %v7297_v21  ;;  %v6195_v31 = vsel %vm6193_vm8, %v6192_v7, %v12712_v50  ;;  %v3485_v49 = vsel %vm1580_vm0, %v3484_v5, %v12714_v44  ;;  %v12717_v7 = vld [vmem:[#allocation167_spill] sm:$0xff] }
 0x7a7   :  { %12705 = vst [vmem:[#allocation44_spill] sm:$0xff] %v9911_v45  ;;  %v9917_v22 = vpop.permute.xlu1 %5464  ;;  %v3366_v45 = vrot.slane %v3327_v26, 4  ;;  %v12713_v26 = vrot.slane %v9615_v25, 4  ;;  %v3331_v9 = vperm.slane %v3323_v56, %v7619_v57  ;;  %v3355_v5 = vperm.slane %v3347_v43, %v7619_v57 }
 0x7a8   :  { %12707 = vst [vmem:[#allocation42_spill] sm:$0xff] %v9917_v22  ;;  %v6200_v22 = vsel %vm12272_vm10, %v6197_v32, %v12711_v36  ;;  %v12715_v32 = vld [vmem:[#allocation181_spill] sm:$0xff]  ;;  %v3509_v25 = vsel %vm1580_vm0, %v3508_v51, %v12716_v17  ;;  %v3491_v50 = vperm.slane %v3485_v49, %v7297_v21  ;;  %v3532_v43 = vrot.slane %v9933_v24, 4 }
 0x7a9   :  { %v3255_v0 = vsel %vm1580_vm0, %v9805_v33, %v12713_v26  ;;  %v3521_v2 = vsel %vm1580_vm0, %v3520_v58, %v12715_v32  ;;  %v3367_v14 = vsel %vm1580_vm0, %v9820_v10, %v3366_v45  ;;  %v6203_v33 = vsel %vm12266_vm11, %v6200_v22, %v12717_v7  ;;  %v12719_v45 = vld [vmem:[#allocation138_spill] sm:$0xff]  ;;  %v12724_v7 = vld [vmem:[#allocation147_spill] sm:$0xff] }
 0x7aa   :  { %v12718_v58 = vrot.slane %v12688_v18, 4  ;;  %v3411_v10 = vsel %vm1580_vm0, %v12682_v41, %v3410_v63  ;;  %v6198_v51 = vsel %vm12316_vm9, %v6195_v31, %v12719_v45  ;;  %v3527_v18 = vperm.slane %v3521_v2, %v7297_v21  ;;  %v12722_v31 = vld [vmem:[#allocation25_spill] sm:$0xff]  ;;  %v12725_v45 = vld [vmem:[#allocation86_spill] sm:$0xff] }
 0x7ab   :  { %5654 = vrot.lane.b32.xlu0 %v3257_v60, %s6987_s11  ;;  %v3515_v41 = vperm.slane %v3509_v25, %v7297_v21  ;;  %v6206_v63 = vsel %vm12265_vm12, %v6203_v33, %v12722_v31  ;;  %v3444_v25 = vrot.slane %v9866_v47, 4  ;;  %v12726_v33 = vld [vmem:[#allocation163_spill] sm:$0xff]  ;;  %v12728_v47 = vrot.slane %v9606_v8, 4 }
 0x7ac   :  { %5648 = vrot.lane.b32.xlu2 %v3367_v14, %s12263_s10  ;;  %v3399_v36 = vsel %vm1580_vm0, %v12681_v59, %v12718_v58  ;;  %v9975_v59 = vperm.slane %v3447_v16, %v7619_v57  ;;  %v12723_v14 = vld [vmem:[#allocation81_spill] sm:$0xff]  ;;  %v6209_v2 = vsel %vm12269_vm13, %v6206_v63, %v12724_v7  ;;  %v3368_v58 = vrot.slane %v3355_v5, 4 }
 0x7ad   :  { %v9965_v56 = vpop.permute.xlu0 %5486  ;;  %5646 = vrot.lane.b32.xlu1 %v3255_v0, %s12263_s10  ;;  %v3370_v0 = vrot.slane %v3331_v9, 4  ;;  %v6201_v49 = vsel %vm12272_vm10, %v6198_v51, %v12723_v14  ;;  %v9988_v22 = vperm.slane %v3399_v36, %v7297_v21  ;;  %v3533_v14 = vsel %vm1580_vm0, %v3532_v43, %v3491_v50  ;;  %v12727_v7 = vld [vmem:[#allocation205_spill] sm:$0xff]  ;;  %s6989_s10 = smov 126   ;;  %v12729_v36 = vld [vmem:[#allocation136_spill] sm:$0xff] }
 0x7ae   :  { %12720 = vst [vmem:[#allocation54_spill] sm:$0xff] %v9965_v56  ;;  %v9972_v60 = vpop.permute.xlu2 %5518  ;;  %v6204_v31 = vsel %vm12266_vm11, %v6201_v49, %v12726_v33  ;;  %v3556_v56 = vrot.slane %v3527_v18, 4  ;;  %v9997_v63 = vperm.slane %v3411_v10, %v7297_v21  ;;  %v6212_v16 = vsel %vm12267_vm14, %v6209_v2, %v12727_v7  ;;  %v12734_v7 = vld [vmem:[#allocation72_spill] sm:$0xff] }
 0x7af   :  { %12721 = vst [vmem:[#allocation53_spill] sm:$0xff] %v9972_v60  ;;  %v9980_v26 = vpop.permute.xlu1 %5478  ;;  %v3522_v60 = vrot.slane %v12715_v32, 4  ;;  %v3371_v51 = vsel %vm1580_vm0, %v3355_v5, %v3370_v0  ;;  %v3259_v32 = vsel %vm1580_vm0, %v9876_v20, %v12728_v47  ;;  %v6207_v5 = vsel %vm12265_vm12, %v6204_v31, %v12729_v36  ;;  %v12731_v31 = vld [vmem:[#allocation15_spill] sm:$0xff] }
 0x7b0   :  { %v3369_v43 = vsel %vm1580_vm0, %v3368_v58, %v3331_v9  ;;  %v3472_v10 = vrot.slane %v9975_v59, 4  ;;  %v3557_v0 = vsel %vm1580_vm0, %v3556_v56, %v3515_v41  ;;  %v3534_v49 = vrot.slane %v3491_v50, 4 }
 0x7b1   :  { %v3558_v2 = vrot.slane %v3515_v41, 4  ;;  %v3445_v8 = vsel %vm1580_vm0, %v3444_v25, %v9863_v52  ;;  %v10018_v20 = vperm.slane %v3533_v14, %v7619_v57  ;;  %v3510_v9 = vrot.slane %v12716_v17, 4  ;;  %v12733_v41 = vld [vmem:[#allocation50_spill] sm:$0xff] }
 0x7b2   :  { %v3523_v58 = vsel %vm1580_vm0, %v12703_v29, %v3522_v60  ;;  %v6215_v56 = vsel %vm12268_vm15, %v6212_v16, %v12731_v31  ;;  %vm6217_vm12 = vcmask 261120   ;;  %vm12275_vm11 = vcmask 277504   ;;  %v12736_v60 = vld [vmem:[#allocation40_spill] sm:$0xff] }
 0x7b3   :  { %5664 = vrot.lane.b32.xlu0 %v3371_v51, %s6989_s10  ;;  %12730 = vst [vmem:[#allocation106_spill] sm:$0xff] %v10018_v20  ;;  %v6210_v51 = vsel %vm12269_vm13, %v6207_v5, %v12733_v41  ;;  %v6218_v52 = vsel %vm6217_vm12, %v6215_v56, %v12734_v7  ;;  %v10034_v17 = vperm.slane %v3557_v0, %v7619_v57  ;;  %v3498_v29 = vrot.slane %v12706_v15, 4  ;;  %v12740_v56 = vld [vmem:[#allocation94_spill] sm:$0xff] }
 0x7b4   :  { %5662 = vrot.lane.b32.xlu2 %v3259_v32, %s6989_s10  ;;  %v6213_v16 = vsel %vm12267_vm14, %v6210_v51, %v12736_v60  ;;  %v3473_v14 = vsel %vm1580_vm0, %v3472_v10, %v9894_v35  ;;  %v10042_v47 = vperm.slane %v3445_v8, %v7619_v57  ;;  %v3511_v32 = vsel %vm1580_vm0, %v12708_v61, %v3510_v9  ;;  %v12738_v10 = vld [vmem:[#allocation151_spill] sm:$0xff]  ;;  %v12739_v61 = vld [vmem:[#allocation108_spill] sm:$0xff] }
 0x7b5   :  { %v10012_v33 = vpop.permute.xlu0 %5496  ;;  %5656 = vrot.lane.b32.xlu1 %v3369_v43, %s6987_s11  ;;  %12735 = vst [vmem:[#allocation155_spill] sm:$0xff] %v10034_v17  ;;  %v3582_v36 = vrot.slane %v10018_v20, 4  ;;  %v3535_v5 = vsel %vm1580_vm0, %v9933_v24, %v3534_v49  ;;  %v3559_v43 = vsel %vm1580_vm0, %v3527_v18, %v3558_v2  ;;  %v3499_v15 = vsel %vm1580_vm0, %v12698_v4, %v3498_v29 }
 0x7b6   :  { %v10025_v50 = vpop.permute.xlu2 %5528  ;;  %12737 = vst [vmem:[#allocation73_spill] sm:$0xff] %v10042_v47  ;;  %v10053_v0 = vperm.slane %v3523_v58, %v7297_v21  ;;  %v6221_v8 = vsel %vm12275_vm11, %v6218_v52, %v12738_v10  ;;  %vm12274_vm14 = vcmask 293888   ;;  %v3456_v31 = vrot.slane %v9997_v63, 4  ;;  %v12742_v52 = vld [vmem:[#allocation206_spill] sm:$0xff] }
 0x7b7   :  { %12732 = vst [vmem:[#allocation74_spill] sm:$0xff] %v10025_v50  ;;  %v10031_v25 = vpop.permute.xlu1 %5488  ;;  %v3632_v9 = vrot.slane %v12739_v61, 4  ;;  %v6216_v41 = vsel %vm12268_vm15, %v6213_v16, %v12740_v56  ;;  %v3583_v24 = vsel %vm1580_vm0, %v10034_v17, %v3582_v36  ;;  %v3519_v4 = vperm.slane %v3511_v32, %v7297_v21  ;;  %v12744_v36 = vld [vmem:[#allocation152_spill] sm:$0xff]  ;;  %v12748_v56 = vld [vmem:[#allocation85_spill] sm:$0xff] }
 0x7b8   :  { %v12741_v18 = vrot.slane %v9845_v19, 4  ;;  %v3543_v2 = vperm.slane %v3535_v5, %v7619_v57  ;;  %v3567_v58 = vperm.slane %v3559_v43, %v7619_v57  ;;  %v3486_v51 = vrot.slane %v12714_v44, 4  ;;  %v12746_v43 = vld [vmem:[#allocation180_spill] sm:$0xff] }
 0x7b9   :  { %v10074_v7 = vperm.slane %v3499_v15, %v7297_v21  ;;  %v6224_v29 = vsel %vm12274_vm14, %v6221_v8, %v12742_v52  ;;  %vm12278_vm15 = vcmask 310272   ;;  %v3568_v16 = vrot.slane %v10053_v0, 4 }
 0x7ba   :  { %v3471_v49 = vsel %vm1580_vm0, %v10042_v47, %v12741_v18  ;;  %vm12276_vm13 = vcmask 326656   ;;  %v6227_v44 = vsel %vm12278_vm15, %v6224_v29, %v12744_v36  ;;  %v12747_v15 = vrot.slane %v12725_v45, 4  ;;  %v12749_v18 = vld [vmem:[#allocation16_spill] sm:$0xff]  ;;  %v12750_v47 = vld [vmem:[#allocation71_spill] sm:$0xff] }
 0x7bb   :  { %5678 = vrot.lane.b32.xlu0 %v3473_v14, %s6928_s0  ;;  %v12743_v14 = vld [vmem:[#allocation105_spill] sm:$0xff]  ;;  %v3458_v8 = vrot.slane %v9988_v22, 4  ;;  %v3569_v52 = vsel %vm1580_vm0, %v3568_v16, %v3519_v4  ;;  %v3586_v29 = vrot.slane %v3543_v2, 4  ;;  %v3457_v36 = vsel %vm1580_vm0, %v3456_v31, %v9988_v22 }
 0x7bc   :  { %5672 = vrot.lane.b32.xlu2 %v3583_v24, %s6930_s14  ;;  %v6219_v32 = vsel %vm6217_vm12, %v6216_v41, %v12743_v14  ;;  %v3621_v10 = vsel %vm1580_vm0, %v12747_v15, %v12746_v43  ;;  %v3633_v24 = vsel %vm1580_vm0, %v3632_v9, %v12748_v56  ;;  %v3584_v14 = vrot.slane %v3567_v58, 4 }
 0x7bd   :  { %v10078_v60 = vpop.permute.xlu0 %5510  ;;  %5670 = vrot.lane.b32.xlu1 %v3471_v49, %s6930_s14  ;;  %v6222_v49 = vsel %vm12275_vm11, %v6219_v32, %v12749_v18  ;;  %v3459_v15 = vsel %vm1580_vm0, %v9997_v63, %v3458_v8  ;;  %v3487_v19 = vsel %vm1580_vm0, %v12702_v62, %v3486_v51  ;;  %v6230_v9 = vsel %vm12276_vm13, %v6227_v44, %v12750_v47  ;;  %v12751_v18 = vld [vmem:[#allocation148_spill] sm:$0xff]  ;;  %v12753_v8 = vld [vmem:[#allocation93_spill] sm:$0xff]  ;;  %s12871_s14 = smov 62  }
 0x7be   :  { %v10086_v5 = vpop.permute.xlu2 %5542  ;;  %vm12279_vm10 = vcmask 343040   ;;  %v10109_v32 = vperm.slane %v3633_v24, %v7297_v21  ;;  %v3544_v16 = vrot.slane %v10074_v7, 4  ;;  %v6225_v20 = vsel %vm12274_vm14, %v6222_v49, %v12751_v18 }
 0x7bf   :  { %12745 = vst [vmem:[#allocation130_spill] sm:$0xff] %v10086_v5  ;;  %v10097_v41 = vpop.permute.xlu1 %5502  ;;  %v3587_v22 = vsel %vm1580_vm0, %v3567_v58, %v3586_v29  ;;  %v3570_v31 = vrot.slane %v3519_v4, 4  ;;  %v12752_v63 = vrot.slane %v9894_v35, 4  ;;  %v3463_v47 = vperm.slane %v3457_v36, %v7619_v57  ;;  %v12754_v58 = vld [vmem:[#allocation41_spill] sm:$0xff]  ;;  %v12778_v5 = vld [vmem:[#allocation62_spill] sm:$0xff] }
 0x7c0   :  { %v10122_v51 = vperm.slane %v3569_v52, %v7619_v57  ;;  %v3495_v44 = vperm.slane %v3487_v19, %v7297_v21  ;;  %v6233_v24 = vsel %vm12279_vm10, %v6230_v9, %v12753_v8  ;;  %vm12281_vm14 = vcmask 359424  }
 0x7c1   :  { %v3475_v62 = vsel %vm1580_vm0, %v9975_v59, %v12752_v63  ;;  %v3585_v4 = vsel %vm1580_vm0, %v3584_v14, %v3543_v2  ;;  %v6228_v35 = vsel %vm12278_vm15, %v6225_v20, %v12754_v58  ;;  %vm12280_vm11 = vcmask 375808   ;;  %v12755_v59 = vld [vmem:[#allocation179_spill] sm:$0xff] }
 0x7c2   :  { %v6236_v49 = vsel %vm12281_vm14, %v6233_v24, %v12755_v59  ;;  %v10137_v19 = vperm.slane %v3459_v15, %v7619_v57  ;;  %v3644_v52 = vrot.slane %v9715_v30, 4  ;;  %v3668_v2 = vrot.slane %v10109_v32, 4  ;;  %v12757_v14 = vld [vmem:[#allocation207_spill] sm:$0xff] }
 0x7c3   :  { %5688 = vrot.lane.b32.xlu0 %v3587_v22, %s6929_s13  ;;  %v6231_v36 = vsel %vm12276_vm13, %v6228_v35, %v12757_v14  ;;  %v3545_v20 = vsel %vm1580_vm0, %v3544_v16, %v3495_v44  ;;  %v3478_v22 = vrot.slane %v9898_v23, 4  ;;  %v3588_v63 = vrot.slane %v10122_v51, 4  ;;  %v12762_v35 = vld [vmem:[#allocation142_spill] sm:$0xff]  ;;  %v12763_v14 = vld [vmem:[#allocation127_spill] sm:$0xff] }
 0x7c4   :  { %5686 = vrot.lane.b32.xlu2 %v3475_v62, %s6929_s13  ;;  %v3571_v15 = vsel %vm1580_vm0, %v10053_v0, %v3570_v31  ;;  %v12760_v62 = vrot.slane %v9748_v11, 4  ;;  %v10157_v24 = vperm.slane %v3621_v10, %v7297_v21  ;;  %vm12282_vm13 = vcmask 392192   ;;  %v12764_v31 = vld [vmem:[#allocation92_spill] sm:$0xff]  ;;  %s12870_s13 = smov 64  }
 0x7c5   :  { %v10133_v29 = vpop.permute.xlu0 %5520  ;;  %5680 = vrot.lane.b32.xlu1 %v3585_v4, %s6928_s0  ;;  %v12761_v4 = vld [vmem:[#allocation22_spill] sm:$0xff]  ;;  %v3476_v58 = vrot.slane %v3463_v47, 4  ;;  %v3720_v59 = vrot.slane %v12762_v35, 4  ;;  %v6234_v17 = vsel %vm12279_vm10, %v6231_v36, %v12763_v14  ;;  %v3551_v0 = vperm.slane %v3545_v20, %v7619_v57  ;;  %v12766_v20 = vld [vmem:[#allocation192_spill] sm:$0xff]  ;;  %s12866_s0 = smov 60  }
 0x7c6   :  { %12756 = vst [vmem:[#allocation170_spill] sm:$0xff] %v10133_v29  ;;  %v10143_v9 = vpop.permute.xlu2 %5552  ;;  %v3435_v8 = vsel %vm1580_vm0, %v9682_v40, %v12760_v62  ;;  %v6239_v16 = vsel %vm12280_vm11, %v6236_v49, %v12761_v4  ;;  %v3480_v11 = vrot.slane %v10137_v19, 4  ;;  %v3479_v40 = vsel %vm1580_vm0, %v3463_v47, %v3478_v22  ;;  %v12765_v4 = vld [vmem:[#allocation126_spill] sm:$0xff]  ;;  %v12767_v47 = vld [vmem:[#allocation28_spill] sm:$0xff] }
 0x7c7   :  { %12758 = vst [vmem:[#allocation128_spill] sm:$0xff] %v10143_v9  ;;  %v10146_v18 = vpop.permute.xlu1 %5512  ;;  %v3744_v9 = vrot.slane %v12764_v31, 4  ;;  %v10169_v10 = vperm.slane %v3571_v15, %v7619_v57  ;;  %v3669_v49 = vsel %vm1580_vm0, %v3668_v2, %v10157_v24  ;;  %v3546_v62 = vrot.slane %v3495_v44, 4  ;;  %v12768_v44 = vld [vmem:[#allocation182_spill] sm:$0xff] }
 0x7c8   :  { %12759 = vst [vmem:[#allocation64_spill] sm:$0xff] %v10146_v18  ;;  %v6242_v50 = vsel %vm12282_vm13, %v6239_v16, %v12765_v4  ;;  %vm12284_vm15 = vcmask 408576   ;;  %v3589_v36 = vsel %vm1580_vm0, %v3588_v63, %v3551_v0  ;;  %v6237_v14 = vsel %vm12281_vm14, %v6234_v17, %v12766_v20  ;;  %v12769_v16 = vld [vmem:[#allocation183_spill] sm:$0xff]  ;;  %v12771_v63 = vld [vmem:[#allocation172_spill] sm:$0xff] }
 0x7c9   :  { %vm12283_vm10 = vcmask 424960   ;;  %v6245_v22 = vsel %vm12284_vm15, %v6242_v50, %v12767_v47  ;;  %v3477_v15 = vsel %vm1580_vm0, %v3476_v58, %v9898_v23  ;;  %v3721_v2 = vsel %vm1580_vm0, %v3720_v59, %v12768_v44 }
 0x7ca   :  { %v3547_v17 = vsel %vm1580_vm0, %v10074_v7, %v3546_v62  ;;  %v10194_v50 = vperm.slane %v3669_v49, %v7619_v57  ;;  %v10198_v23 = vperm.slane %v9672_v54, %v7297_v21  ;;  %v3745_v58 = vsel %vm1580_vm0, %v3744_v9, %v12771_v63  ;;  %v12774_v7 = vld [vmem:[#allocation139_spill] sm:$0xff]  ;;  %v12777_v9 = vld [vmem:[#allocation186_spill] sm:$0xff] }
 0x7cb   :  { %5702 = vrot.lane.b32.xlu0 %v3479_v40, %s6931_s15  ;;  %v6240_v40 = vsel %vm12280_vm11, %v6237_v14, %v12769_v16  ;;  %v12773_v20 = vrot.slane %v9499_v34, 4  ;;  %v3708_v62 = vrot.slane %v12774_v7, 4  ;;  %v12775_v49 = vld [vmem:[#allocation83_spill] sm:$0xff]  ;;  %vm12285_vm11 = vcmask 441344  }
 0x7cc   :  { %5696 = vrot.lane.b32.xlu2 %v3589_v36, %s6925_s12  ;;  %v3592_v36 = vrot.slane %v10169_v10, 4  ;;  %v6248_v47 = vsel %vm12283_vm10, %v6245_v22, %v12775_v49  ;;  %v3732_v16 = vrot.slane %v12777_v9, 4  ;;  %v6243_v29 = vsel %vm12282_vm13, %v6240_v40, %v12778_v5  ;;  %v12780_v5 = vld [vmem:[#allocation109_spill] sm:$0xff] }
 0x7cd   :  { %v10188_v4 = vpop.permute.xlu0 %5534  ;;  %5694 = vrot.lane.b32.xlu1 %v3477_v15, %s6925_s12  ;;  %v3647_v14 = vsel %vm1580_vm0, %v9715_v30, %v12773_v20  ;;  %v3443_v15 = vperm.slane %v3435_v8, %v7619_v57  ;;  %v3555_v30 = vperm.slane %v3547_v17, %v7619_v57  ;;  %v10223_v20 = vperm.slane %v3745_v58, %v7297_v21  ;;  %v12781_v17 = vld [vmem:[#allocation149_spill] sm:$0xff]  ;;  %s12858_s12 = smov 56  }
 0x7ce   :  { %12770 = vst [vmem:[#allocation107_spill] sm:$0xff] %v10188_v4  ;;  %v10202_v59 = vpop.permute.xlu2 %5566  ;;  %v3645_v49 = vsel %vm1580_vm0, %v3644_v52, %v9499_v34  ;;  %v3692_v8 = vrot.slane %v10194_v50, 4  ;;  %v12779_v4 = vld [vmem:[#allocation84_spill] sm:$0xff]  ;;  %vm12288_vm14 = vcmask 457728   ;;  %v3709_v40 = vsel %vm1580_vm0, %v3708_v62, %v12780_v5 }
 0x7cf   :  { %12772 = vst [vmem:[#allocation55_spill] sm:$0xff] %v10202_v59  ;;  %v10212_v54 = vpop.permute.xlu1 %5526  ;;  %v10217_v59 = vperm.slane %v3721_v2, %v7297_v21  ;;  %v3481_v22 = vsel %vm1580_vm0, %v3480_v11, %v3443_v15  ;;  %v6251_v18 = vsel %vm12285_vm11, %v6248_v47, %v12779_v4  ;;  %v3593_v2 = vsel %vm1580_vm0, %v3592_v36, %v3555_v30  ;;  %v12782_v52 = vld [vmem:[#allocation168_spill] sm:$0xff] }
 0x7d0   :  { %12776 = vst [vmem:[#allocation165_spill] sm:$0xff] %v10212_v54  ;;  %v3590_v54 = vrot.slane %v3551_v0, 4  ;;  %v6246_v58 = vsel %vm12284_vm15, %v6243_v29, %v12781_v17  ;;  %vm12286_vm13 = vcmask 474112   ;;  %v6254_v11 = vsel %vm12288_vm14, %v6251_v18, %v9492_v12 }
 0x7d1   :  { %v3756_v34 = vrot.slane %v10217_v59, 4  ;;  %v3733_v4 = vsel %vm1580_vm0, %v3732_v16, %v12782_v52  ;;  %v6249_v0 = vsel %vm12283_vm10, %v6246_v58, %v9433_v28  ;;  %v3656_v62 = vrot.slane %v10198_v23, 4 }
 0x7d2   :  { %v3591_v36 = vsel %vm1580_vm0, %v10122_v51, %v3590_v54  ;;  %v3780_v12 = vrot.slane %v10223_v20, 4  ;;  %v10254_v47 = vperm.slane %v3645_v49, %v7619_v57  ;;  %v3634_v28 = vrot.slane %v12748_v56, 4 }
 0x7d3   :  { %5712 = vrot.lane.b32.xlu0 %v3593_v2, %s6932_s16  ;;  %v10258_v16 = vperm.slane %v3709_v40, %v7297_v21  ;;  %v6257_v51 = vsel %vm12286_vm13, %v6254_v11, %v9475_v6  ;;  %vm12287_vm10 = vcmask 490496   ;;  %v3739_v2 = vperm.slane %v3733_v4, %v7297_v21  ;;  %v12783_v11 = vld [vmem:[#allocation63_spill] sm:$0xff] }
 0x7d4   :  { %5710 = vrot.lane.b32.xlu2 %v3481_v22, %s6932_s16  ;;  %v3622_v22 = vrot.slane %v12746_v43, 4  ;;  %v6252_v17 = vsel %vm12285_vm11, %v6249_v0, %v9411_v53  ;;  %v10271_v56 = vperm.slane %v3647_v14, %v7619_v57  ;;  %v3635_v40 = vsel %vm1580_vm0, %v12739_v61, %v3634_v28  ;;  %s12879_s16 = smov 70  }
 0x7d5   :  { %5704 = vrot.lane.b32.xlu1 %v3591_v36, %s6931_s15  ;;  %v10251_v18 = vpop.permute.xlu0 %5544  ;;  %v3693_v6 = vsel %vm1580_vm0, %v3692_v8, %v10254_v47  ;;  %v3482_v58 = vrot.slane %v3443_v15, 4  ;;  %v3757_v43 = vsel %vm1580_vm0, %v3756_v34, %v10258_v16  ;;  %v6260_v4 = vsel %vm12287_vm10, %v6257_v51, %v12783_v11  ;;  %v12784_v36 = vld [vmem:[#allocation140_spill] sm:$0xff]  ;;  %s12875_s15 = smov 66  }
 0x7d6   :  { %v10262_v54 = vpop.permute.xlu2 %5576  ;;  %vm12291_vm15 = vcmask 506880   ;;  %v3594_v53 = vrot.slane %v3555_v30, 4  ;;  %v3781_v0 = vsel %vm1580_vm0, %v3780_v12, %v3739_v2  ;;  %v3746_v14 = vrot.slane %v12771_v63, 4 }
 0x7d7   :  { %v10268_v49 = vpop.permute.xlu1 %5536  ;;  %v6255_v29 = vsel %vm12288_vm14, %v6252_v17, %v12784_v36  ;;  %vm12289_vm11 = vcmask 523264   ;;  %v6263_v61 = vsel %vm12291_vm15, %v6260_v4, %v9597_v1  ;;  %v10288_v15 = vperm.slane %v3635_v40, %v7297_v21  ;;  %v12786_v4 = vld [vmem:[#allocation10_spill] sm:$0xff] }
 0x7d8   :  { %v6258_v8 = vsel %vm12286_vm13, %v6255_v29, %v9543_v3  ;;  %v3595_v30 = vsel %vm1580_vm0, %v10169_v10, %v3594_v53  ;;  %v3763_v63 = vperm.slane %v3757_v43, %v7619_v57  ;;  %v3670_v34 = vrot.slane %v10157_v24, 4 }
 0x7d9   :  { %v3747_v12 = vsel %vm1580_vm0, %v12764_v31, %v3746_v14  ;;  %v3483_v1 = vsel %vm1580_vm0, %v10137_v19, %v3482_v58  ;;  %v3787_v28 = vperm.slane %v3781_v0, %v7619_v57  ;;  %v3722_v3 = vrot.slane %v12768_v44, 4 }
 0x7da   :  { %v6266_v29 = vsel %vm12289_vm11, %v6263_v61, %v9578_v38  ;;  %vm12290_vm13 = vcmask 539648   ;;  %v3694_v24 = vrot.slane %v10254_v47, 4  ;;  %v3734_v31 = vrot.slane %v12782_v52, 4 }
 0x7db   :  { %5726 = vrot.lane.b32.xlu0 %v3693_v6, %s6933_s17  ;;  %v3782_v51 = vrot.slane %v3739_v2, 4  ;;  %v6261_v19 = vsel %vm12287_vm10, %v6258_v8, %v9528_v55  ;;  %v3671_v44 = vsel %vm1580_vm0, %v10109_v32, %v3670_v34  ;;  %v3623_v38 = vsel %vm1580_vm0, %v12725_v45, %v3622_v22  ;;  %v12785_v32 = vld [vmem:[#allocation137_spill] sm:$0xff] }
 0x7dc   :  { %5720 = vrot.lane.b32.xlu2 %v3595_v30, %s6934_s18  ;;  %v3680_v40 = vrot.slane %v10288_v15, 4  ;;  %v10321_v6 = vperm.slane %v3747_v12, %v7297_v21  ;;  %v3806_v52 = vrot.slane %v3763_v63, 4  ;;  %v6269_v2 = vsel %vm12290_vm13, %v6266_v29, %v9485_v48  ;;  %v12788_v29 = vld [vmem:[#allocation116_spill] sm:$0xff] }
 0x7dd   :  { %v10306_v10 = vpop.permute.xlu0 %5558  ;;  %5718 = vrot.lane.b32.xlu1 %v3483_v1, %s6934_s18  ;;  %vm12294_vm10 = vcmask 556032   ;;  %v3804_v55 = vrot.slane %v3787_v28, 4  ;;  %v3783_v58 = vsel %vm1580_vm0, %v10223_v20, %v3782_v51  ;;  %v6264_v43 = vsel %vm12291_vm15, %v6261_v19, %v12785_v32  ;;  %s12886_s18 = smov 72  }
 0x7de   :  { %v10313_v17 = vpop.permute.xlu2 %5590  ;;  %vm12292_vm14 = vcmask 572416   ;;  %v6272_v45 = vsel %vm12294_vm10, %v6269_v2, %v9742_v27  ;;  %v3679_v22 = vperm.slane %v3671_v44, %v7619_v57  ;;  %v3723_v11 = vsel %vm1580_vm0, %v12762_v35, %v3722_v3  ;;  %v12789_v44 = vld [vmem:[#allocation29_spill] sm:$0xff] }
 0x7df   :  { %v10323_v47 = vpop.permute.xlu1 %5550  ;;  %v3735_v48 = vsel %vm1580_vm0, %v12777_v9, %v3734_v31  ;;  %v6267_v53 = vsel %vm12289_vm11, %v6264_v43, %v12786_v4  ;;  %v3807_v20 = vsel %vm1580_vm0, %v3787_v28, %v3806_v52  ;;  %v3631_v0 = vperm.slane %v3623_v38, %v7297_v21  ;;  %v12791_v43 = vld [vmem:[#allocation20_spill] sm:$0xff] }
 0x7e0   :  { %v3792_v14 = vrot.slane %v10321_v6, 4  ;;  %v3695_v27 = vsel %vm1580_vm0, %v10194_v50, %v3694_v24  ;;  %v10347_v36 = vperm.slane %v3783_v58, %v7619_v57  ;;  %v3758_v35 = vrot.slane %v10258_v16, 4  ;;  %v12787_v50 = vld [vmem:[#allocation18_spill] sm:$0xff]  ;;  %v12792_v4 = vld [vmem:[#allocation32_spill] sm:$0xff] }
 0x7e1   :  { %v6275_v9 = vsel %vm12292_vm14, %v6272_v45, %v9722_v13  ;;  %vm12293_vm11 = vcmask 588800   ;;  %v3805_v61 = vsel %vm1580_vm0, %v3804_v55, %v3763_v63  ;;  %v10355_v8 = vperm.slane %v3723_v11, %v7297_v21 }
 0x7e2   :  { %v10358_v30 = vperm.slane %v3735_v48, %v7297_v21  ;;  %v6270_v34 = vsel %vm12290_vm13, %v6267_v53, %v12787_v50  ;;  %v3698_v13 = vrot.slane %v10271_v56, 4  ;;  %v3710_v16 = vrot.slane %v12780_v5, 4 }
 0x7e3   :  { %5736 = vrot.lane.b32.xlu0 %v3807_v20, %s6935_s19  ;;  %v3759_v63 = vsel %vm1580_vm0, %v10217_v59, %v3758_v35  ;;  %v3696_v28 = vrot.slane %v3679_v22, 4  ;;  %v3681_v3 = vsel %vm1580_vm0, %v3680_v40, %v3631_v0  ;;  %v6278_v24 = vsel %vm12293_vm11, %v6275_v9, %v12788_v29  ;;  %v12790_v40 = vld [vmem:[#allocation17_spill] sm:$0xff] }
 0x7e4   :  { %5734 = vrot.lane.b32.xlu2 %v3695_v27, %s6935_s19  ;;  %vm12297_vm13 = vcmask 605184   ;;  %v3808_v51 = vrot.slane %v10347_v36, 4  ;;  %v3793_v19 = vsel %vm1580_vm0, %v3792_v14, %v10358_v30  ;;  %v3711_v5 = vsel %vm1580_vm0, %v12774_v7, %v3710_v16  ;;  %v12793_v20 = vld [vmem:[#allocation117_spill] sm:$0xff]  ;;  %s12901_s19 = smov 76  }
 0x7e5   :  { %v10362_v12 = vpop.permute.xlu0 %5568  ;;  %5728 = vrot.lane.b32.xlu1 %v3805_v61, %s6933_s17  ;;  %v6273_v59 = vsel %vm12294_vm10, %v6270_v34, %v12789_v44  ;;  %vm12295_vm15 = vcmask 621568   ;;  %v6281_v38 = vsel %vm12297_vm13, %v6278_v24, %v9857_v46  ;;  %v3868_v52 = vrot.slane %v12790_v40, 4  ;;  %v12796_v34 = vld [vmem:[#allocation45_spill] sm:$0xff]  ;;  %s12880_s17 = smov 68  }
 0x7e6   :  { %v10367_v1 = vpop.permute.xlu2 %5600  ;;  %v3768_v2 = vrot.slane %v10355_v8, 4  ;;  %v6276_v55 = vsel %vm12292_vm14, %v6273_v59, %v9797_v39  ;;  %v3767_v58 = vperm.slane %v3759_v63, %v7619_v57  ;;  %v3699_v32 = vsel %vm1580_vm0, %v3679_v22, %v3698_v13 }
 0x7e7   :  { %v10374_v31 = vpop.permute.xlu1 %5560  ;;  %v10392_v7 = vperm.slane %v3793_v19, %v7619_v57  ;;  %v3657_v45 = vsel %vm1580_vm0, %v3656_v62, %v12791_v43  ;;  %v10399_v46 = vperm.slane %v3681_v3, %v7619_v57  ;;  %v10402_v11 = vperm.slane %v3711_v5, %v7297_v21 }
 0x7e8   :  { %v6284_v39 = vsel %vm12295_vm15, %v6281_v38, %v9839_v37  ;;  %vm12296_vm14 = vcmask 637952   ;;  %v3809_v22 = vsel %vm1580_vm0, %v3808_v51, %v3767_v58  ;;  %v3682_v48 = vrot.slane %v3631_v0, 4  ;;  %v12795_v37 = vld [vmem:[#allocation98_spill] sm:$0xff]  ;;  %v12800_v38 = vld [vmem:[#allocation24_spill] sm:$0xff] }
 0x7e9   :  { %v6279_v53 = vsel %vm12293_vm11, %v6276_v55, %v12792_v4  ;;  %v3697_v62 = vsel %vm1580_vm0, %v3696_v28, %v10271_v56  ;;  %v12794_v14 = vrot.slane %v12793_v20, 4  ;;  %v3856_v35 = vrot.slane %v12795_v37, 4  ;;  %v12797_v28 = vld [vmem:[#allocation9_spill] sm:$0xff]  ;;  %v12803_v55 = vld [vmem:[#allocation23_spill] sm:$0xff]  ;;  %v12805_v4 = vld [vmem:[#allocation52_spill] sm:$0xff] }
 0x7ea   :  { %v3769_v0 = vsel %vm1580_vm0, %v3768_v2, %v10402_v11  ;;  %v10426_v61 = vperm.slane %v3657_v45, %v7619_v57  ;;  %v3869_v56 = vsel %vm1580_vm0, %v3868_v52, %v12793_v20  ;;  %v3683_v50 = vsel %vm1580_vm0, %v10288_v15, %v3682_v48  ;;  %v12798_v15 = vld [vmem:[#allocation42_spill] sm:$0xff] }
 0x7eb   :  { %5750 = vrot.lane.b32.xlu0 %v3699_v32, %s6936_s20  ;;  %v10417_v27 = vsel %vm1580_vm0, %v12790_v40, %v12794_v14  ;;  %v6287_v13 = vsel %vm12296_vm14, %v6284_v39, %v12796_v34  ;;  %vm12298_vm11 = vcmask 654336   ;;  %v3812_v63 = vrot.slane %v10392_v7, 4  ;;  %v12807_v34 = vld [vmem:[#allocation161_spill] sm:$0xff] }
 0x7ec   :  { %5744 = vrot.lane.b32.xlu2 %v3809_v22, %s6937_s21  ;;  %v6282_v3 = vsel %vm12297_vm13, %v6279_v53, %v12797_v28  ;;  %vm12300_vm10 = vcmask 670720   ;;  %v6290_v29 = vsel %vm12298_vm11, %v6287_v13, %v9980_v26  ;;  %v3700_v51 = vrot.slane %v10399_v46, 4  ;;  %v12802_v26 = vld [vmem:[#allocation76_spill] sm:$0xff] }
 0x7ed   :  { %v10420_v9 = vpop.permute.xlu0 %5582  ;;  %5742 = vrot.lane.b32.xlu1 %v3697_v62, %s6937_s21  ;;  %v6285_v19 = vsel %vm12295_vm15, %v6282_v3, %v12798_v15  ;;  %v3775_v5 = vperm.slane %v3769_v0, %v7619_v57  ;;  %v12799_v44 = vrot.slane %v12791_v43, 4  ;;  %v12801_v40 = vrot.slane %v9635_v42, 4  ;;  %v12804_v43 = vld [vmem:[#allocation54_spill] sm:$0xff]  ;;  %v12806_v0 = vld [vmem:[#allocation97_spill] sm:$0xff]  ;;  %s12907_s21 = smov 78  }
 0x7ee   :  { %v10434_v16 = vpop.permute.xlu2 %5614  ;;  %v3857_v2 = vsel %vm1580_vm0, %v3856_v35, %v12802_v26  ;;  %v3968_v32 = vrot.slane %v12803_v55, 4  ;;  %v10461_v45 = vperm.slane %v3683_v50, %v7619_v57  ;;  %v10464_v39 = vperm.slane %v3869_v56, %v7619_v57 }
 0x7ef   :  { %v10441_v24 = vpop.permute.xlu1 %5574  ;;  %v3659_v59 = vsel %vm1580_vm0, %v10198_v23, %v12799_v44  ;;  %v10455_v52 = vsel %vm1580_vm0, %v12801_v40, %v12800_v38  ;;  %v6293_v23 = vsel %vm12300_vm10, %v6290_v29, %v12804_v43  ;;  %vm12299_vm15 = vcmask 687104   ;;  %v12810_v44 = vld [vmem:[#allocation153_spill] sm:$0xff] }
 0x7f0   :  { %v3813_v22 = vsel %vm1580_vm0, %v3812_v63, %v3775_v5  ;;  %v3810_v48 = vrot.slane %v3767_v58, 4  ;;  %v6288_v53 = vsel %vm12296_vm14, %v6285_v19, %v12805_v4  ;;  %v3701_v62 = vsel %vm1580_vm0, %v3700_v51, %v10426_v61  ;;  %v12808_v63 = vld [vmem:[#allocation43_spill] sm:$0xff] }
 0x7f1   :  { %v10475_v20 = vperm.slane %v3659_v59, %v7619_v57  ;;  %v3702_v14 = vrot.slane %v10426_v61, 4  ;;  %v3858_v35 = vrot.slane %v12802_v26, 4  ;;  %v3844_v56 = vrot.slane %v12806_v0, 4  ;;  %v12809_v51 = vld [vmem:[#allocation11_spill] sm:$0xff] }
 0x7f2   :  { %v10481_v50 = vperm.slane %v3857_v2, %v7297_v21  ;;  %v3811_v58 = vsel %vm1580_vm0, %v10347_v36, %v3810_v48  ;;  %v3969_v13 = vsel %vm1580_vm0, %v3968_v32, %v12807_v34  ;;  %v6296_v28 = vsel %vm12299_vm15, %v6293_v23, %v12808_v63  ;;  %v12811_v26 = vld [vmem:[#allocation195_spill] sm:$0xff] }
 0x7f3   :  { %5760 = vrot.lane.b32.xlu0 %v3813_v22, %s6938_s22  ;;  %vm12301_vm14 = vcmask 703488   ;;  %v3704_v3 = vrot.slane %v10461_v45, 4  ;;  %v3770_v29 = vrot.slane %v10402_v11, 4  ;;  %v6291_v15 = vsel %vm12298_vm11, %v6288_v53, %v12809_v51  ;;  %v12812_v11 = vld [vmem:[#allocation75_spill] sm:$0xff]  ;;  %v12813_v53 = vld [vmem:[#allocation132_spill] sm:$0xff] }
 0x7f4   :  { %5758 = vrot.lane.b32.xlu2 %v3701_v62, %s6938_s22  ;;  %vm12302_vm13 = vcmask 719872   ;;  %v6299_v36 = vsel %vm12301_vm14, %v6296_v28, %v10097_v41  ;;  %v3944_v59 = vrot.slane %v12810_v44, 4  ;;  %v3794_v40 = vrot.slane %v10358_v30, 4  ;;  %v12817_v51 = vld [vmem:[#allocation44_spill] sm:$0xff]  ;;  %s12911_s22 = smov 82  }
 0x7f5   :  { %v10490_v61 = vpop.permute.xlu0 %5592  ;;  %5752 = vrot.lane.b32.xlu1 %v3811_v58, %s6936_s20  ;;  %v3956_v2 = vrot.slane %v12811_v26, 4  ;;  %v6294_v32 = vsel %vm12300_vm10, %v6291_v15, %v10031_v25  ;;  %v3845_v23 = vsel %vm1580_vm0, %v3844_v56, %v12812_v11  ;;  %v3892_v22 = vrot.slane %v10481_v50, 4  ;;  %s12902_s20 = smov 74  }
 0x7f6   :  { %v10499_v19 = vpop.permute.xlu2 %5624  ;;  %v3771_v41 = vsel %vm1580_vm0, %v10355_v8, %v3770_v29  ;;  %v10514_v48 = vperm.slane %v3969_v13, %v7297_v21  ;;  %v6302_v30 = vsel %vm12302_vm13, %v6299_v36, %v10078_v60  ;;  %vm12303_vm11 = vcmask 736256   ;;  %v12814_v13 = vld [vmem:[#allocation129_spill] sm:$0xff] }
 0x7f7   :  { %v10506_v43 = vpop.permute.xlu1 %5584  ;;  %v3814_v4 = vrot.slane %v3775_v5, 4  ;;  %v3795_v25 = vsel %vm1580_vm0, %v10321_v6, %v3794_v40  ;;  %v3932_v62 = vrot.slane %v12813_v53, 4  ;;  %v6297_v56 = vsel %vm12299_vm15, %v6294_v32, %v10012_v33  ;;  %v12815_v60 = vld [vmem:[#allocation157_spill] sm:$0xff] }
 0x7f8   :  { %v3705_v58 = vsel %vm1580_vm0, %v3704_v3, %v10475_v20  ;;  %v3703_v8 = vsel %vm1580_vm0, %v10399_v46, %v3702_v14  ;;  %v3945_v63 = vsel %vm1580_vm0, %v3944_v59, %v12814_v13  ;;  %v3957_v5 = vsel %vm1580_vm0, %v3956_v2, %v12815_v60  ;;  %v12816_v29 = vld [vmem:[#allocation53_spill] sm:$0xff] }
 0x7f9   :  { %v3815_v6 = vsel %vm1580_vm0, %v10392_v7, %v3814_v4  ;;  %v3779_v28 = vperm.slane %v3771_v41, %v7619_v57  ;;  %v4004_v33 = vrot.slane %v10514_v48, 4  ;;  %v6305_v3 = vsel %vm12303_vm11, %v6302_v30, %v12816_v29  ;;  %v12818_v36 = vld [vmem:[#allocation165_spill] sm:$0xff]  ;;  %v12820_v4 = vld [vmem:[#allocation158_spill] sm:$0xff] }
 0x7fa   :  { %vm12304_vm15 = vcmask 752640   ;;  %v3803_v46 = vperm.slane %v3795_v25, %v7619_v57  ;;  %v3851_v14 = vperm.slane %v3845_v23, %v7297_v21  ;;  %v6300_v15 = vsel %vm12301_vm14, %v6297_v56, %v12817_v51  ;;  %v12819_v23 = vld [vmem:[#allocation64_spill] sm:$0xff] }
 0x7fb   :  { %5774 = vrot.lane.b32.xlu0 %v3705_v58, %s6939_s23  ;;  %vm12305_vm10 = vcmask 769024   ;;  %v6308_v7 = vsel %vm12304_vm15, %v6305_v3, %v12818_v36  ;;  %v3859_v40 = vsel %vm1580_vm0, %v12795_v37, %v3858_v35  ;;  %v10551_v2 = vperm.slane %v3945_v63, %v7297_v21  ;;  %v12821_v35 = vld [vmem:[#allocation107_spill] sm:$0xff] }
 0x7fc   :  { %5768 = vrot.lane.b32.xlu2 %v3815_v6, %s6940_s24  ;;  %v3963_v32 = vperm.slane %v3957_v5, %v7297_v21  ;;  %v6303_v41 = vsel %vm12302_vm13, %v6300_v15, %v12819_v23  ;;  %v3933_v25 = vsel %vm1580_vm0, %v3932_v62, %v12820_v4  ;;  %v3818_v58 = vrot.slane %v3779_v28, 4  ;;  %v12822_v62 = vld [vmem:[#allocation170_spill] sm:$0xff] }
 0x7fd   :  { %v10545_v59 = vpop.permute.xlu0 %5606  ;;  %5766 = vrot.lane.b32.xlu1 %v3703_v8, %s6940_s24  ;;  %v3706_v8 = vrot.slane %v10475_v20, 4  ;;  %v3893_v37 = vsel %vm1580_vm0, %v3892_v22, %v3851_v14  ;;  %v6311_v63 = vsel %vm12305_vm10, %v6308_v7, %v12821_v35  ;;  %vm12306_vm14 = vcmask 785408   ;;  %v12823_v23 = vld [vmem:[#allocation130_spill] sm:$0xff]  ;;  %s12916_s24 = smov 84  }
 0x7fe   :  { %v10556_v30 = vpop.permute.xlu2 %5638  ;;  %v3816_v5 = vrot.slane %v3803_v46, 4  ;;  %v4005_v6 = vsel %vm1580_vm0, %v4004_v33, %v3963_v32  ;;  %v3846_v29 = vrot.slane %v12812_v11, 4  ;;  %v3894_v3 = vrot.slane %v3851_v14, 4 }
 0x7ff   :  { %v10560_v56 = vpop.permute.xlu1 %5598  ;;  %v10569_v51 = vperm.slane %v3859_v40, %v7297_v21  ;;  %v6306_v15 = vsel %vm12303_vm11, %v6303_v41, %v12822_v62  ;;  %v3980_v20 = vrot.slane %v10551_v2, 4  ;;  %v3819_v22 = vsel %vm1580_vm0, %v3803_v46, %v3818_v58  ;;  %v12824_v40 = vld [vmem:[#allocation74_spill] sm:$0xff] }
 0x800   :  { %v3707_v36 = vsel %vm1580_vm0, %v10461_v45, %v3706_v8  ;;  %v3899_v7 = vperm.slane %v3893_v37, %v7619_v57  ;;  %v3939_v33 = vperm.slane %v3933_v25, %v7297_v21  ;;  %v6314_v11 = vsel %vm12306_vm14, %v6311_v63, %v12823_v23 }
 0x801   :  { %vm12309_vm13 = vcmask 801792   ;;  %v10583_v14 = vperm.slane %v4005_v6, %v7619_v57  ;;  %v6309_v41 = vsel %vm12304_vm15, %v6306_v15, %v12824_v40  ;;  %vm12307_vm11 = vcmask 818176  }
 0x802   :  { %v6317_v45 = vsel %vm12309_vm13, %v6314_v11, %v10323_v47  ;;  %v3817_v46 = vsel %vm1580_vm0, %v3816_v5, %v3779_v28  ;;  %v3934_v25 = vrot.slane %v12820_v4, 4  ;;  %v3847_v58 = vsel %vm1580_vm0, %v12806_v0, %v3846_v29  ;;  %v12826_v11 = vld [vmem:[#allocation128_spill] sm:$0xff] }
 0x803   :  { %5784 = vrot.lane.b32.xlu0 %v3819_v22, %s6941_s25  ;;  %v4006_v8 = vrot.slane %v3963_v32, 4  ;;  %v6312_v37 = vsel %vm12305_vm10, %v6309_v41, %v10268_v49  ;;  %v3970_v63 = vrot.slane %v12807_v34, 4  ;;  %v3918_v6 = vrot.slane %v10464_v39, 4 }
 0x804   :  { %5782 = vrot.lane.b32.xlu2 %v3707_v36, %s6941_s25  ;;  %v3981_v28 = vsel %vm1580_vm0, %v3980_v20, %v3939_v33  ;;  %v3895_v4 = vsel %vm1580_vm0, %v10481_v50, %v3894_v3  ;;  %v6320_v0 = vsel %vm12307_vm11, %v6317_v45, %v10306_v10  ;;  %vm12308_vm15 = vcmask 834560   ;;  %s12924_s25 = smov 88  }
 0x805   :  { %v10596_v35 = vpop.permute.xlu0 %5616  ;;  %5776 = vrot.lane.b32.xlu1 %v3817_v46, %s6939_s23  ;;  %v4028_v32 = vrot.slane %v10583_v14, 4  ;;  %v4007_v34 = vsel %vm1580_vm0, %v10514_v48, %v4006_v8  ;;  %v10614_v5 = vperm.slane %v3847_v58, %v7297_v21  ;;  %v3904_v29 = vrot.slane %v10569_v51, 4  ;;  %v12825_v48 = vld [vmem:[#allocation55_spill] sm:$0xff]  ;;  %s12912_s23 = smov 80  }
 0x806   :  { %v10600_v47 = vpop.permute.xlu2 %5648  ;;  %v6315_v62 = vsel %vm12306_vm14, %v6312_v37, %v10251_v18  ;;  %v3916_v50 = vrot.slane %v3899_v7, 4  ;;  %v3946_v3 = vrot.slane %v12814_v13, 4  ;;  %v3919_v10 = vsel %vm1580_vm0, %v3899_v7, %v3918_v6 }
 0x807   :  { %v10608_v49 = vpop.permute.xlu1 %5608  ;;  %v3987_v15 = vperm.slane %v3981_v28, %v7619_v57  ;;  %v10623_v20 = vperm.slane %v3895_v4, %v7619_v57  ;;  %v3982_v22 = vrot.slane %v3939_v33, 4  ;;  %v6323_v36 = vsel %vm12308_vm15, %v6320_v0, %v12825_v48 }
 0x808   :  { %vm12312_vm10 = vcmask 850944   ;;  %v10628_v23 = vperm.slane %v4007_v34, %v7619_v57  ;;  %v6318_v18 = vsel %vm12309_vm13, %v6315_v62, %v12826_v11  ;;  %vm12310_vm14 = vcmask 867328   ;;  %v12830_v11 = vld [vmem:[#allocation106_spill] sm:$0xff] }
 0x809   :  { %v6326_v13 = vsel %vm12312_vm10, %v6323_v36, %v10441_v24  ;;  %v4029_v7 = vsel %vm1580_vm0, %v4028_v32, %v3987_v15  ;;  %v3947_v33 = vsel %vm1580_vm0, %v12810_v44, %v3946_v3  ;;  %v6321_v40 = vsel %vm12307_vm11, %v6318_v18, %v10374_v31  ;;  %v12828_v32 = vld [vmem:[#allocation155_spill] sm:$0xff] }
 0x80a   :  { %v3917_v41 = vsel %vm1580_vm0, %v3916_v50, %v10464_v39  ;;  %v3905_v45 = vsel %vm1580_vm0, %v3904_v29, %v10614_v5  ;;  %v12827_v24 = vrot.slane %v12800_v38, 4  ;;  %v3983_v31 = vsel %vm1580_vm0, %v10551_v2, %v3982_v22 }
 0x80b   :  { %5798 = vrot.lane.b32.xlu0 %v3919_v10, %s6942_s26  ;;  %v10656_v44 = vperm.slane %v10417_v27, %v7619_v57  ;;  %v10660_v39 = vperm.slane %v10455_v52, %v7619_v57  ;;  %v3971_v38 = vsel %vm1580_vm0, %v12803_v55, %v3970_v63  ;;  %vm12311_vm11 = vcmask 883712  }
 0x80c   :  { %5792 = vrot.lane.b32.xlu2 %v4029_v7, %s6943_s27  ;;  %v3883_v46 = vsel %vm1580_vm0, %v9635_v42, %v12827_v24  ;;  %v6329_v42 = vsel %vm12310_vm14, %v6326_v13, %v10420_v9  ;;  %v4032_v37 = vrot.slane %v10628_v23, 4  ;;  %v10670_v2 = vperm.slane %v3947_v33, %v7297_v21  ;;  %v12831_v33 = vld [vmem:[#allocation89_spill] sm:$0xff] }
 0x80d   :  { %v10649_v58 = vpop.permute.xlu0 %5630  ;;  %5790 = vrot.lane.b32.xlu1 %v3917_v41, %s6943_s27  ;;  %v6324_v27 = vsel %vm12308_vm15, %v6321_v40, %v10362_v12  ;;  %v3920_v52 = vrot.slane %v10623_v20, 4  ;;  %v10676_v28 = vperm.slane %v3905_v45, %v7619_v57  ;;  %v3935_v9 = vsel %vm1580_vm0, %v12813_v53, %v3934_v25 }
 0x80e   :  { %v10666_v8 = vpop.permute.xlu2 %5662  ;;  %v3958_v55 = vrot.slane %v12815_v60, 4  ;;  %v3991_v63 = vperm.slane %v3983_v31, %v7619_v57  ;;  %v4030_v4 = vrot.slane %v3987_v15, 4  ;;  %v10683_v0 = vperm.slane %v3971_v38, %v7297_v21 }
 0x80f   :  { %v5623_v6 = vpop.permute.xlu1 %5622  ;;  %v6332_v12 = vsel %vm12311_vm11, %v6329_v42, %v10313_v17  ;;  %vm12314_vm15 = vcmask 900096   ;;  %v3580_v34 = vrot.slane %v12828_v32, 4  ;;  %v6327_v29 = vsel %vm12312_vm10, %v6324_v27, %v10262_v54  ;;  %v12833_v27 = vld [vmem:[#allocation34_spill] sm:$0xff] }
 0x810   :  { %vm12313_vm13 = vcmask 916480   ;;  %v6335_v53 = vsel %vm12314_vm15, %v6332_v12, %v10560_v56  ;;  %v4033_v60 = vsel %vm1580_vm0, %v4032_v37, %v3991_v63  ;;  %v3992_v25 = vrot.slane %v10670_v2, 4 }
 0x811   :  { %v6330_v62 = vsel %vm12310_vm14, %v6327_v29, %v10506_v43  ;;  %v3921_v17 = vsel %vm1580_vm0, %v3920_v52, %v10656_v44  ;;  %v10700_v50 = vperm.slane %v3883_v46, %v7619_v57  ;;  %v3959_v54 = vsel %vm1580_vm0, %v12811_v26, %v3958_v55  ;;  %v12829_v26 = vld [vmem:[#allocation66_spill] sm:$0xff] }
 0x812   :  { %v4031_v56 = vsel %vm1580_vm0, %v10583_v14, %v4030_v4  ;;  %v3922_v3 = vrot.slane %v10656_v44, 4  ;;  %v3926_v43 = vrot.slane %v10660_v39, 4  ;;  %v10710_v10 = vperm.slane %v3935_v9, %v7297_v21  ;;  %v12832_v46 = vld [vmem:[#allocation146_spill] sm:$0xff] }
 0x813   :  { %5808 = vrot.lane.b32.xlu0 %v4033_v60, %s6944_s28  ;;  %v4016_v15 = vrot.slane %v10683_v0, 4  ;;  %v6338_v22 = vsel %vm12313_vm13, %v6335_v53, %v10545_v59  ;;  %vm12315_vm14 = vcmask 932864   ;;  %v4056_v36 = vrot.slane %v12829_v26, 4  ;;  %v12835_v4 = vld [vmem:[#allocation30_spill] sm:$0xff] }
 0x814   :  { %5806 = vrot.lane.b32.xlu2 %v3921_v17, %s6944_s28  ;;  %v6333_v14 = vsel %vm12311_vm11, %v6330_v62, %v10490_v61  ;;  %v3581_v18 = vsel %vm1580_vm0, %v3580_v34, %v12830_v11  ;;  %v3924_v7 = vrot.slane %v10676_v28, 4  ;;  %v4068_v40 = vrot.slane %v12831_v33, 4  ;;  %v12837_v34 = vld [vmem:[#allocation184_spill] sm:$0xff]  ;;  %s12937_s28 = smov 90  }
 0x815   :  { %v10715_v48 = vpop.permute.xlu0 %5640  ;;  %5800 = vrot.lane.b32.xlu1 %v4031_v56, %s6942_s26  ;;  %v3967_v59 = vperm.slane %v3959_v54, %v7297_v21  ;;  %v3993_v24 = vsel %vm1580_vm0, %v3992_v25, %v10710_v10  ;;  %v4192_v31 = vrot.slane %v12832_v46, 4  ;;  %v6341_v61 = vsel %vm12315_vm14, %v6338_v22, %v10434_v16  ;;  %v12839_v62 = vld [vmem:[#allocation144_spill] sm:$0xff]  ;;  %s12926_s26 = smov 86  }
 0x816   :  { %v5673_v13 = vpop.permute.xlu2 %5672  ;;  %vm6343_vm11 = vcmask 949248   ;;  %v4034_v44 = vrot.slane %v3991_v63, 4  ;;  %v6336_v38 = vsel %vm12314_vm15, %v6333_v14, %v10367_v1  ;;  %vm6346_vm10 = vcmask 965632   ;;  %v12834_v63 = vld [vmem:[#allocation87_spill] sm:$0xff] }
 0x817   :  { %v10727_v41 = vsel %vm6172_vm1, %v3581_v18, %v5673_v13  ;;  %v5633_v45 = vpop.permute.xlu1 %5632  ;;  %v6344_v42 = vsel %vm6343_vm11, %v6341_v61, %v5623_v6  ;;  %v4017_v37 = vsel %vm1580_vm0, %v4016_v15, %v3967_v59  ;;  %v4057_v52 = vsel %vm1580_vm0, %v4056_v36, %v12833_v27 }
 0x818   :  { %v6339_v9 = vsel %vm12313_vm13, %v6336_v38, %v10608_v49  ;;  %v3925_v55 = vsel %vm1580_vm0, %v3924_v7, %v10660_v39  ;;  %v3999_v16 = vperm.slane %v3993_v24, %v7619_v57  ;;  %v12836_v12 = vrot.slane %v12835_v4, 4  ;;  %v12841_v24 = vld [vmem:[#allocation121_spill] sm:$0xff] }
 0x819   :  { %v3906_v6 = vrot.slane %v10614_v5, 4  ;;  %v4035_v32 = vsel %vm1580_vm0, %v10628_v23, %v4034_v44  ;;  %v3923_v49 = vsel %vm1580_vm0, %v10623_v20, %v3922_v3  ;;  %v4193_v29 = vsel %vm1580_vm0, %v4192_v31, %v12837_v34  ;;  %v12838_v5 = vld [vmem:[#allocation67_spill] sm:$0xff] }
 0x81a   :  { %v4081_v1 = vsel %vm1580_vm0, %v12836_v12, %v12834_v63  ;;  %v6347_v53 = vsel %vm6346_vm10, %v6344_v42, %v10649_v58  ;;  %vm6349_vm13 = vcmask 982016   ;;  %v4023_v60 = vperm.slane %v4017_v37, %v7619_v57  ;;  %v12840_v58 = vld [vmem:[#allocation188_spill] sm:$0xff] }
 0x81b   :  { %5822 = vrot.lane.b32.xlu0 %v3925_v55, %s6945_s29  ;;  %v4069_v25 = vsel %vm1580_vm0, %v4068_v40, %v12838_v5  ;;  %v4168_v17 = vrot.slane %v12839_v62, 4  ;;  %v6342_v23 = vsel %vm12315_vm14, %v6339_v9, %v10596_v35  ;;  %v3907_v54 = vsel %vm1580_vm0, %v10569_v51, %v3906_v6  ;;  %v12843_v9 = vld [vmem:[#allocation141_spill] sm:$0xff] }
 0x81c   :  { %5816 = vrot.lane.b32.xlu2 %v4035_v32, %s6946_s30  ;;  %v4180_v56 = vrot.slane %v12840_v58, 4  ;;  %v4018_v3 = vrot.slane %v3967_v59, 4  ;;  %vm6355_vm15 = vcmask 1014784   ;;  %v4038_v22 = vrot.slane %v3999_v16, 4 }
 0x81d   :  { %v5655_v20 = vpop.permute.xlu0 %5654  ;;  %5814 = vrot.lane.b32.xlu1 %v3923_v49, %s6946_s30  ;;  %v10773_v36 = vperm.slane %v4193_v29, %v7297_v21  ;;  %v6350_v14 = vsel %vm6349_vm13, %v6347_v53, %v10556_v30  ;;  %vm6352_vm14 = vcmask 998400   ;;  %vm6358_vm9 = vcmask 1031168   ;;  %s12946_s30 = smov 92  }
 0x81e   :  { %v10770_v15 = vpop.permute.xlu2 %5686  ;;  %v4019_v11 = vsel %vm1580_vm0, %v10683_v0, %v4018_v3  ;;  %v6345_v51 = vsel %vm6343_vm11, %v6342_v23, %v10499_v19  ;;  %v4036_v13 = vrot.slane %v4023_v60, 4  ;;  %v10783_v7 = vperm.slane %v4081_v1, %v7297_v21  ;;  %v12842_v0 = vld [vmem:[#allocation33_spill] sm:$0xff]  ;;  %v12845_v23 = vld [vmem:[#allocation120_spill] sm:$0xff] }
 0x81f   :  { %v5647_v35 = vpop.permute.xlu1 %5646  ;;  %v10786_v40 = vperm.slane %v4069_v25, %v7297_v21  ;;  %v6348_v30 = vsel %vm6346_vm10, %v6345_v51, %v5633_v45  ;;  %v4169_v31 = vsel %vm1580_vm0, %v4168_v17, %v12841_v24  ;;  %v4181_v61 = vsel %vm1580_vm0, %v4180_v56, %v12842_v0  ;;  %v12846_v56 = vld [vmem:[#allocation35_spill] sm:$0xff] }
 0x820   :  { %v6353_v18 = vsel %vm6352_vm14, %v6350_v14, %v5647_v35  ;;  %v4039_v19 = vsel %vm1580_vm0, %v4023_v60, %v4038_v22  ;;  %v4228_v38 = vrot.slane %v10773_v36, 4  ;;  %v3927_v45 = vsel %vm1580_vm0, %v10676_v28, %v3926_v43  ;;  %v12844_v28 = vld [vmem:[#allocation27_spill] sm:$0xff] }
 0x821   :  { %v6356_v59 = vsel %vm6355_vm15, %v6353_v18, %v5655_v20  ;;  %v3915_v42 = vperm.slane %v3907_v54, %v7619_v57  ;;  %v10807_v37 = vperm.slane %v4019_v11, %v7619_v57  ;;  %v4156_v55 = vrot.slane %v12843_v9, 4 }
 0x822   :  { %v10797_v44 = vsel %vm6358_vm9, %v6356_v59, %v10666_v8  ;;  %v3994_v8 = vrot.slane %v10710_v10, 4  ;;  %v6351_v12 = vsel %vm6349_vm13, %v6348_v30, %v10715_v48  ;;  %v4037_v39 = vsel %vm1580_vm0, %v4036_v13, %v3999_v16  ;;  %v12847_v59 = vld [vmem:[#allocation73_spill] sm:$0xff] }
 0x823   :  { %5832 = vrot.lane.b32.xlu0 %v4039_v19, %s6947_s2  ;;  %6487 = vst.msk [vmem:[#allocation5] sm:$0xff] %vm6217_vm12, %v10797_v44  ;;  %v4044_v43 = vrot.slane %v12844_v28, 4  ;;  %v10819_v1 = vperm.slane %v4169_v31, %v7297_v21  ;;  %v10822_v6 = vperm.slane %v4181_v61, %v7297_v21  ;;  %v4063_v10 = vperm.slane %v4057_v52, %v7297_v21 }
 0x824   :  { %5830 = vrot.lane.b32.xlu2 %v3927_v45, %s6947_s2  ;;  %v4116_v49 = vrot.slane %v10783_v7, 4  ;;  %v3995_v16 = vsel %vm1580_vm0, %v10670_v2, %v3994_v8  ;;  %v6354_v29 = vsel %vm6352_vm14, %v6351_v12, %v10600_v47  ;;  %v3930_v60 = vrot.slane %v10700_v50, 4  ;;  %s12950_s2 = smov 96  }
 0x825   :  { %v5665_v32 = vpop.permute.xlu0 %5664  ;;  %5824 = vrot.lane.b32.xlu1 %v4037_v39, %s6945_s29  ;;  %v4040_v25 = vrot.slane %v10807_v37, 4  ;;  %v4229_v17 = vsel %vm1580_vm0, %v4228_v38, %v10822_v6  ;;  %v4157_v52 = vsel %vm1580_vm0, %v4156_v55, %v12845_v23  ;;  %v3928_v54 = vrot.slane %v3915_v42, 4  ;;  %v12848_v39 = vld [vmem:[#allocation31_spill] sm:$0xff]  ;;  %s12945_s29 = smov 94  }
 0x826   :  { %v10827_v48 = vpop.permute.xlu2 %5696  ;;  %v4117_v2 = vsel %vm1580_vm0, %v4116_v49, %v10786_v40  ;;  %v4045_v47 = vsel %vm1580_vm0, %v4044_v43, %v12846_v56  ;;  %v4204_v3 = vrot.slane %v10819_v1, 4  ;;  %v4003_v14 = vperm.slane %v3995_v16, %v7619_v57 }
 0x827   :  { %v5657_v53 = vpop.permute.xlu1 %5656  ;;  %v4092_v35 = vrot.slane %v4063_v10, 4  ;;  %v4118_v11 = vrot.slane %v10786_v40, 4  ;;  %v3931_v51 = vsel %vm1580_vm0, %v3915_v42, %v3930_v60  ;;  %v10854_v18 = vperm.slane %v4229_v17, %v7619_v57 }
 0x828   :  { %v6357_v20 = vsel %vm6355_vm15, %v6354_v29, %v5657_v53  ;;  %v4163_v13 = vperm.slane %v4157_v52, %v7297_v21  ;;  %v4041_v30 = vsel %vm1580_vm0, %v4040_v25, %v4003_v14  ;;  %v3468_v31 = vrot.slane %v12847_v59, 4 }
 0x829   :  { %v10846_v22 = vsel %vm6358_vm9, %v6357_v20, %v5665_v32  ;;  %v10861_v61 = vperm.slane %v4117_v2, %v7619_v57  ;;  %v4058_v40 = vrot.slane %v12833_v27, 4  ;;  %v4051_v19 = vperm.slane %v4045_v47, %v7297_v21 }
 0x82a   :  { %6488 = vst.msk [vmem:[#allocation5 + $0x20] sm:$0xff] %vm6217_vm12, %v10846_v22  ;;  %v3929_v38 = vsel %vm1580_vm0, %v3928_v54, %v10700_v50  ;;  %v4205_v42 = vsel %vm1580_vm0, %v4204_v3, %v4163_v13  ;;  %v4252_v12 = vrot.slane %v10854_v18, 4  ;;  %v3469_v43 = vsel %vm1580_vm0, %v3468_v31, %v12848_v39 }
 0x82b   :  { %5846 = vrot.lane.b32.xlu0 %v3931_v51, %s6948_s3  ;;  %v4059_v8 = vsel %vm1580_vm0, %v12829_v26, %v4058_v40  ;;  %v4093_v27 = vsel %vm1580_vm0, %v4092_v35, %v4051_v19  ;;  %v4140_v50 = vrot.slane %v10861_v61, 4  ;;  %v4119_v49 = vsel %vm1580_vm0, %v10783_v7, %v4118_v11 }
 0x82c   :  { %5840 = vrot.lane.b32.xlu2 %v4041_v30, %s6949_s4  ;;  %v4211_v29 = vperm.slane %v4205_v42, %v7619_v57  ;;  %v4094_v26 = vrot.slane %v4051_v19, 4  ;;  %v10884_v53 = vperm.slane %v4059_v8, %v7297_v21  ;;  %v4099_v25 = vperm.slane %v4093_v27, %v7619_v57 }
 0x82d   :  { %v5679_v45 = vpop.permute.xlu0 %5678  ;;  %5838 = vrot.lane.b32.xlu1 %v3929_v38, %s6949_s4  ;;  %v4042_v52 = vrot.slane %v4003_v14, 4  ;;  %v10890_v20 = vperm.slane %v4119_v49, %v7619_v57  ;;  %v4194_v54 = vrot.slane %v12837_v34, 4  ;;  %v4046_v47 = vrot.slane %v12846_v56, 4  ;;  %s12955_s4 = smov 98  }
 0x82e   :  { %v10872_v55 = vpop.permute.xlu2 %5710  ;;  %v4253_v17 = vsel %vm1580_vm0, %v4252_v12, %v4211_v29  ;;  %v4141_v2 = vsel %vm1580_vm0, %v4140_v50, %v4099_v25  ;;  %v4082_v3 = vrot.slane %v12834_v63, 4  ;;  %v4095_v35 = vsel %vm1580_vm0, %v4063_v10, %v4094_v26  ;;  %v12849_v50 = vld [vmem:[#allocation110_spill] sm:$0xff] }
 0x82f   :  { %v5671_v32 = vpop.permute.xlu1 %5670  ;;  %v4043_v14 = vsel %vm1580_vm0, %v10807_v37, %v4042_v52  ;;  %v4047_v34 = vsel %vm1580_vm0, %v12844_v28, %v4046_v47  ;;  %v4182_v56 = vrot.slane %v12842_v0, 4  ;;  %v4104_v63 = vrot.slane %v10884_v53, 4 }
 0x830   :  { %v6361_v16 = vsel %vm6172_vm1, %v3469_v43, %v5671_v32  ;;  %v4144_v30 = vrot.slane %v10890_v20, 4  ;;  %v4070_v37 = vrot.slane %v12838_v5, 4  ;;  %v4206_v10 = vrot.slane %v4163_v13, 4 }
 0x831   :  { %v6363_v60 = vsel %vm6175_vm2, %v6361_v16, %v5679_v45  ;;  %v4230_v59 = vrot.slane %v10822_v6, 4  ;;  %v4103_v31 = vperm.slane %v4095_v35, %v7619_v57  ;;  %v4083_v40 = vsel %vm1580_vm0, %v12835_v4, %v4082_v3 }
 0x832   :  { %v6365_v7 = vsel %vm6178_vm3, %v6363_v60, %v10770_v15  ;;  %v4195_v15 = vsel %vm1580_vm0, %v12832_v46, %v4194_v54  ;;  %v4170_v28 = vrot.slane %v12841_v24, 4  ;;  %v4254_v5 = vrot.slane %v4211_v29, 4 }
 0x833   :  { %5856 = vrot.lane.b32.xlu0 %v4253_v17, %s6950_s5  ;;  %v10920_v0 = vperm.slane %v4195_v15, %v7297_v21  ;;  %v4207_v6 = vsel %vm1580_vm0, %v10819_v1, %v4206_v10  ;;  %v4231_v13 = vsel %vm1580_vm0, %v10773_v36, %v4230_v59  ;;  %v4071_v4 = vsel %vm1580_vm0, %v12831_v33, %v4070_v37  ;;  %v12852_v59 = vld [vmem:[#allocation13_spill] sm:$0xff] }
 0x834   :  { %5854 = vrot.lane.b32.xlu2 %v4141_v2, %s6950_s5  ;;  %v4145_v24 = vsel %vm1580_vm0, %v4144_v30, %v4103_v31  ;;  %v4142_v45 = vrot.slane %v4099_v25, 4  ;;  %v4171_v8 = vsel %vm1580_vm0, %v12839_v62, %v4170_v28  ;;  %v4183_v1 = vsel %vm1580_vm0, %v12840_v58, %v4182_v56  ;;  %s12961_s5 = smov 102  }
 0x835   :  { %v5689_v11 = vpop.permute.xlu0 %5688  ;;  %5848 = vrot.lane.b32.xlu1 %v4043_v14, %s6948_s3  ;;  %v4255_v36 = vsel %vm1580_vm0, %v10854_v18, %v4254_v5  ;;  %v4240_v33 = vrot.slane %v10920_v0, 4  ;;  %v4215_v12 = vperm.slane %v4207_v6, %v7619_v57  ;;  %v4239_v27 = vperm.slane %v4231_v13, %v7619_v57  ;;  %v12850_v14 = vld [vmem:[#allocation57_spill] sm:$0xff]  ;;  %v12854_v13 = vld [vmem:[#allocation56_spill] sm:$0xff]  ;;  %s12954_s3 = smov 100  }
 0x836   :  { %v10910_v51 = vpop.permute.xlu2 %5720  ;;  %v10949_v62 = vperm.slane %v4047_v34, %v7297_v21  ;;  %v4079_v58 = vperm.slane %v4071_v4, %v7297_v21  ;;  %v10954_v18 = vperm.slane %v4171_v8, %v7297_v21  ;;  %v4191_v43 = vperm.slane %v4183_v1, %v7297_v21 }
 0x837   :  { %v5681_v46 = vpop.permute.xlu1 %5680  ;;  %v4304_v49 = vrot.slane %v12849_v50, 4  ;;  %v4158_v16 = vrot.slane %v12845_v23, 4  ;;  %v4258_v25 = vrot.slane %v4215_v12, 4  ;;  %v4256_v17 = vrot.slane %v4239_v27, 4 }
 0x838   :  { %v6364_v19 = vsel %vm6175_vm2, %v10727_v41, %v5681_v46  ;;  %v4091_v41 = vperm.slane %v4083_v40, %v7297_v21  ;;  %v4105_v26 = vsel %vm1580_vm0, %v4104_v63, %v10949_v62  ;;  %v4241_v52 = vsel %vm1580_vm0, %v4240_v33, %v4191_v43 }
 0x839   :  { %v6366_v38 = vsel %vm6178_vm3, %v6364_v19, %v5689_v11  ;;  %v4159_v54 = vsel %vm1580_vm0, %v12843_v9, %v4158_v16  ;;  %v4146_v47 = vrot.slane %v4103_v31, 4  ;;  %v4280_v23 = vrot.slane %v12850_v14, 4  ;;  %v12851_v11 = vld [vmem:[#allocation78_spill] sm:$0xff] }
 0x83a   :  { %v6368_v42 = vsel %vm6181_vm4, %v6366_v38, %v10827_v48  ;;  %v4143_v48 = vsel %vm1580_vm0, %v10861_v61, %v4142_v45  ;;  %v4128_v61 = vrot.slane %v4091_v41, 4  ;;  %v4216_v35 = vrot.slane %v10954_v18, 4 }
 0x83b   :  { %5870 = vrot.lane.b32.xlu0 %v4145_v24, %s6951_s6  ;;  %v4259_v15 = vsel %vm1580_vm0, %v4239_v27, %v4258_v25  ;;  %v4305_v34 = vsel %vm1580_vm0, %v4304_v49, %v12851_v11  ;;  %v4147_v9 = vsel %vm1580_vm0, %v10890_v20, %v4146_v47  ;;  %v4111_v56 = vperm.slane %v4105_v26, %v7619_v57  ;;  %v12853_v20 = vld [vmem:[#allocation14_spill] sm:$0xff]  ;;  %v12857_v49 = vld [vmem:[#allocation125_spill] sm:$0xff] }
 0x83c   :  { %5864 = vrot.lane.b32.xlu2 %v4255_v36, %s6952_s7  ;;  %v4129_v3 = vsel %vm1580_vm0, %v4128_v61, %v4079_v58  ;;  %v10981_v63 = vperm.slane %v4241_v52, %v7619_v57  ;;  %v4130_v30 = vrot.slane %v4079_v58, 4  ;;  %v4167_v37 = vperm.slane %v4159_v54, %v7297_v21  ;;  %v12855_v36 = vld [vmem:[#allocation12_spill] sm:$0xff]  ;;  %v12859_v54 = vld [vmem:[#allocation134_spill] sm:$0xff] }
 0x83d   :  { %v5703_v39 = vpop.permute.xlu0 %5702  ;;  %5862 = vrot.lane.b32.xlu1 %v4143_v48, %s6952_s7  ;;  %v4135_v10 = vperm.slane %v4129_v3, %v7619_v57  ;;  %v4292_v46 = vrot.slane %v12852_v59, 4  ;;  %v4242_v31 = vrot.slane %v4191_v43, 4  ;;  %v4392_v28 = vrot.slane %v12853_v20, 4  ;;  %s12973_s7 = smov 104  }
 0x83e   :  { %v10957_v32 = vpop.permute.xlu2 %5734  ;;  %v4106_v19 = vrot.slane %v10949_v62, 4  ;;  %v10992_v38 = vperm.slane %v4305_v34, %v7297_v21  ;;  %v4217_v6 = vsel %vm1580_vm0, %v4216_v35, %v4167_v37  ;;  %v4268_v4 = vrot.slane %v12854_v13, 4  ;;  %v12856_v62 = vld [vmem:[#allocation77_spill] sm:$0xff] }
 0x83f   :  { %v5695_v29 = vpop.permute.xlu1 %5694  ;;  %v4243_v24 = vsel %vm1580_vm0, %v10920_v0, %v4242_v31  ;;  %v4150_v8 = vrot.slane %v4111_v56, 4  ;;  %v4260_v1 = vrot.slane %v10981_v63, 4  ;;  %v4281_v33 = vsel %vm1580_vm0, %v4280_v23, %v12855_v36  ;;  %v12860_v23 = vld [vmem:[#allocation175_spill] sm:$0xff] }
 0x840   :  { %v6367_v60 = vsel %vm6181_vm4, %v6365_v7, %v5695_v29  ;;  %v4131_v27 = vsel %vm1580_vm0, %v4091_v41, %v4130_v30  ;;  %v4293_v58 = vsel %vm1580_vm0, %v4292_v46, %v12856_v62  ;;  %v4223_v0 = vperm.slane %v4217_v6, %v7619_v57  ;;  %v12863_v46 = vld [vmem:[#allocation196_spill] sm:$0xff] }
 0x841   :  { %v6369_v2 = vsel %vm6184_vm5, %v6367_v60, %v5703_v39  ;;  %v4151_v43 = vsel %vm1580_vm0, %v4135_v10, %v4150_v8  ;;  %v4340_v61 = vrot.slane %v10992_v38, 4  ;;  %v4416_v16 = vrot.slane %v12857_v49, 4 }
 0x842   :  { %v6371_v7 = vsel %vm6187_vm6, %v6369_v2, %v10872_v55  ;;  %v4257_v55 = vsel %vm1580_vm0, %v4256_v17, %v4215_v12  ;;  %v4148_v12 = vrot.slane %v4135_v10, 4  ;;  %v11013_v29 = vperm.slane %v4243_v24, %v7619_v57  ;;  %v12864_v24 = vld [vmem:[#allocation111_spill] sm:$0xff] }
 0x843   :  { %5880 = vrot.lane.b32.xlu0 %v4259_v15, %s6953_s8  ;;  %v11018_v41 = vperm.slane %v4281_v33, %v7297_v21  ;;  %v4218_v26 = vrot.slane %v4167_v37, 4  ;;  %v4261_v60 = vsel %vm1580_vm0, %v4260_v1, %v4223_v0  ;;  %v11023_v25 = vperm.slane %v4131_v27, %v7619_v57 }
 0x844   :  { %5878 = vrot.lane.b32.xlu2 %v4147_v9, %s6953_s8  ;;  %v11026_v17 = vperm.slane %v4293_v58, %v7297_v21  ;;  %v4149_v52 = vsel %vm1580_vm0, %v4148_v12, %v4111_v56  ;;  %v4107_v3 = vsel %vm1580_vm0, %v10884_v53, %v4106_v19  ;;  %v4417_v35 = vsel %vm1580_vm0, %v4416_v16, %v12860_v23  ;;  %v12861_v56 = vld [vmem:[#allocation19_spill] sm:$0xff]  ;;  %s12983_s8 = smov 108  }
 0x845   :  { %v5713_v40 = vpop.permute.xlu0 %5712  ;;  %5872 = vrot.lane.b32.xlu1 %v4257_v55, %s6951_s6  ;;  %v4219_v47 = vsel %vm1580_vm0, %v10954_v18, %v4218_v26  ;;  %v4264_v34 = vrot.slane %v11013_v29, 4  ;;  %v4269_v30 = vsel %vm1580_vm0, %v4268_v4, %v12861_v56  ;;  %v4316_v37 = vrot.slane %v11018_v41, 4  ;;  %v12862_v55 = vld [vmem:[#allocation131_spill] sm:$0xff]  ;;  %s12972_s6 = smov 106  }
 0x846   :  { %v10994_v5 = vpop.permute.xlu2 %5744  ;;  %v4341_v9 = vsel %vm1580_vm0, %v4340_v61, %v11026_v17  ;;  %v4393_v18 = vsel %vm1580_vm0, %v4392_v28, %v12862_v55  ;;  %v4152_v53 = vrot.slane %v11023_v25, 4  ;;  %v4404_v31 = vrot.slane %v12863_v46, 4 }
 0x847   :  { %v5705_v45 = vpop.permute.xlu1 %5704  ;;  %v4227_v19 = vperm.slane %v4219_v47, %v7619_v57  ;;  %v4115_v6 = vperm.slane %v4107_v3, %v7619_v57  ;;  %v4423_v4 = vperm.slane %v4417_v35, %v7297_v21  ;;  %v11058_v28 = vperm.slane %v4341_v9, %v7619_v57 }
 0x848   :  { %v6370_v48 = vsel %vm6184_vm5, %v6368_v42, %v5705_v45  ;;  %v11061_v1 = vperm.slane %v4393_v18, %v7297_v21  ;;  %vm12865_vm1 = vcmask 146432   ;;  %v4275_v12 = vperm.slane %v4269_v30, %v7297_v21 }
 0x849   :  { %v6372_v39 = vsel %vm6187_vm6, %v6370_v48, %v5713_v40  ;;  %v4265_v33 = vsel %vm1580_vm0, %v4264_v34, %v4227_v19  ;;  %v4153_v27 = vsel %vm1580_vm0, %v4152_v53, %v4115_v6  ;;  %v4452_v61 = vrot.slane %v4423_v4, 4  ;;  %vm12868_vm2 = vmmov %vm12865_vm1 }
 0x84a   :  { %v6374_v42 = vsel %vm6190_vm7, %v6372_v39, %v10910_v51  ;;  %v4380_v51 = vrot.slane %v12859_v54, 4  ;;  %v12867_v39 = vld [vmem:[#allocation171_spill] sm:$0xff]  ;;  %v4428_v26 = vrot.slane %v11061_v1, 4  ;;  %v4318_v3 = vrot.slane %v4275_v12, 4 }
 0x84b   :  { %5894 = vrot.lane.b32.xlu0 %v4151_v43, %s6954_s9  ;;  %v4405_v43 = vsel %vm1580_vm0, %v4404_v31, %v12867_v39  ;;  %v4266_v30 = vrot.slane %v4227_v19, 4  ;;  %vm12869_vm3 = vcmask 162816   ;;  %vm12873_vm5 = vcmask 179200  }
 0x84c   :  { %5888 = vrot.lane.b32.xlu2 %v4261_v60, %s12858_s12  ;;  %v4381_v45 = vsel %vm1580_vm0, %v4380_v51, %v12864_v24  ;;  %v4282_v51 = vrot.slane %v12855_v36, 4  ;;  %v4418_v36 = vrot.slane %v12860_v23, 4  ;;  %v4319_v19 = vsel %vm1580_vm0, %v11018_v41, %v4318_v3  ;;  %vm12872_vm4 = vmmov %vm12869_vm3 }
 0x84d   :  { %v5727_v2 = vpop.permute.xlu0 %5726  ;;  %5886 = vrot.lane.b32.xlu1 %v4149_v52, %s12858_s12  ;;  %v11070_v58 = vperm.slane %v4381_v45, %v7297_v21  ;;  %v4364_v52 = vrot.slane %v11058_v28, 4  ;;  %v4267_v31 = vsel %vm1580_vm0, %v11013_v29, %v4266_v30  ;;  %v4294_v29 = vrot.slane %v12856_v62, 4  ;;  %s12989_s12 = smov 110  }
 0x84e   :  { %v11038_v15 = vpop.permute.xlu2 %5758  ;;  %v4419_v23 = vsel %vm1580_vm0, %v12857_v49, %v4418_v36  ;;  %v4283_v41 = vsel %vm1580_vm0, %v12850_v14, %v4282_v51  ;;  %v4327_v49 = vperm.slane %v4319_v19, %v7619_v57  ;;  %vm12874_vm6 = vcmask 195584  }
 0x84f   :  { %v5719_v10 = vpop.permute.xlu1 %5718  ;;  %v4429_v34 = vsel %vm1580_vm0, %v4428_v26, %v11070_v58  ;;  %v11123_v62 = vperm.slane %v4419_v23, %v7297_v21  ;;  %v4430_v26 = vrot.slane %v11070_v58, 4  ;;  %v4382_v58 = vrot.slane %v12864_v24, 4 }
 0x850   :  { %v6373_v40 = vsel %vm6190_vm7, %v6371_v7, %v5719_v10  ;;  %v4262_v7 = vrot.slane %v4223_v0, 4  ;;  %v4306_v10 = vrot.slane %v12851_v11, 4  ;;  %vm12876_vm7 = vmmov %vm12873_vm5  ;;  %v4370_v36 = vrot.slane %v4327_v49, 4 }
 0x851   :  { %v6375_v8 = vsel %vm6193_vm8, %v6373_v40, %v5727_v2  ;;  %v4411_v2 = vperm.slane %v4405_v43, %v7297_v21  ;;  %v4435_v40 = vperm.slane %v4429_v34, %v7619_v57  ;;  %v4406_v43 = vrot.slane %v12867_v39, 4 }
 0x852   :  { %v6377_v48 = vsel %vm12865_vm1, %v6375_v8, %v10957_v32  ;;  %v4263_v0 = vsel %vm1580_vm0, %v10981_v63, %v4262_v7  ;;  %v4317_v32 = vsel %vm1580_vm0, %v4316_v37, %v4275_v12  ;;  %v4154_v37 = vrot.slane %v4115_v6, 4 }
 0x853   :  { %5904 = vrot.lane.b32.xlu0 %v4265_v33, %s12866_s0  ;;  %v4323_v35 = vperm.slane %v4317_v32, %v7619_v57  ;;  %v4453_v18 = vsel %vm1580_vm0, %v4452_v61, %v4411_v2  ;;  %v4307_v11 = vsel %vm1580_vm0, %v12849_v50, %v4306_v10  ;;  %v4342_v50 = vrot.slane %v11026_v17, 4 }
 0x854   :  { %5902 = vrot.lane.b32.xlu2 %v4153_v27, %s12866_s0  ;;  %v4459_v6 = vperm.slane %v4453_v18, %v7619_v57  ;;  %v4454_v8 = vrot.slane %v4411_v2, 4  ;;  %v11119_v7 = vperm.slane %v4307_v11, %v7297_v21  ;;  %v4478_v27 = vrot.slane %v4435_v40, 4  ;;  %s12993_s0 = smov 114  }
 0x855   :  { %v5737_v16 = vpop.permute.xlu0 %5736  ;;  %5896 = vrot.lane.b32.xlu1 %v4263_v0, %s6954_s9  ;;  %v4365_v53 = vsel %vm1580_vm0, %v4364_v52, %v4323_v35  ;;  %v4295_v61 = vsel %vm1580_vm0, %v12852_v59, %v4294_v29  ;;  %v4366_v32 = vrot.slane %v4323_v35, 4  ;;  %v4407_v52 = vsel %vm1580_vm0, %v12863_v46, %v4406_v43  ;;  %s12988_s9 = smov 112  }
 0x856   :  { %v11080_v60 = vpop.permute.xlu2 %5768  ;;  %v4476_v17 = vrot.slane %v4459_v6, 4  ;;  %v4455_v0 = vsel %vm1580_vm0, %v4423_v4, %v4454_v8  ;;  %v4479_v39 = vsel %vm1580_vm0, %v4459_v6, %v4478_v27  ;;  %v4352_v4 = vrot.slane %v11119_v7, 4 }
 0x857   :  { %v5729_v47 = vpop.permute.xlu1 %5728  ;;  %v4464_v59 = vrot.slane %v11123_v62, 4  ;;  %v4367_v51 = vsel %vm1580_vm0, %v11058_v28, %v4366_v32  ;;  %v4291_v28 = vperm.slane %v4283_v41, %v7297_v21  ;;  %v4383_v24 = vsel %vm1580_vm0, %v12859_v54, %v4382_v58  ;;  %v12887_v58 = vld [vmem:[#allocation68_spill] sm:$0xff] }
 0x858   :  { %v6376_v63 = vsel %vm6193_vm8, %v6374_v42, %v5729_v47  ;;  %v11154_v47 = vperm.slane %v4407_v52, %v7297_v21  ;;  %v4431_v35 = vsel %vm1580_vm0, %v11061_v1, %v4430_v26  ;;  %v4270_v34 = vrot.slane %v12861_v56, 4  ;;  %vm12877_vm8 = vmmov %vm12874_vm6 }
 0x859   :  { %v6378_v9 = vsel %vm12868_vm2, %v6376_v63, %v5737_v16  ;;  %v4303_v63 = vperm.slane %v4295_v61, %v7297_v21  ;;  %v4391_v56 = vperm.slane %v4383_v24, %v7297_v21  ;;  %v4328_v19 = vrot.slane %v4291_v28, 4  ;;  %v12882_v61 = vld [vmem:[#allocation100_spill] sm:$0xff] }
 0x85a   :  { %v6380_v42 = vsel %vm12869_vm3, %v6378_v9, %v10994_v5  ;;  %v4155_v5 = vsel %vm1580_vm0, %v11023_v25, %v4154_v37  ;;  %v4394_v25 = vrot.slane %v12862_v55, 4  ;;  %v4343_v55 = vsel %vm1580_vm0, %v10992_v38, %v4342_v50 }
 0x85b   :  { %5918 = vrot.lane.b32.xlu0 %v4365_v53, %s12870_s13  ;;  %v11145_v38 = vperm.slane %v4455_v0, %v7619_v57  ;;  %v4351_v2 = vperm.slane %v4343_v55, %v7619_v57  ;;  %v4465_v18 = vsel %vm1580_vm0, %v4464_v59, %v11154_v47  ;;  %v4353_v53 = vsel %vm1580_vm0, %v4352_v4, %v4303_v63  ;;  %v12885_v4 = vld [vmem:[#allocation202_spill] sm:$0xff] }
 0x85c   :  { %5912 = vrot.lane.b32.xlu2 %v4267_v31, %s12871_s14  ;;  %v4395_v46 = vsel %vm1580_vm0, %v12853_v20, %v4394_v25  ;;  %v4271_v1 = vsel %vm1580_vm0, %v12854_v13, %v4270_v34  ;;  %v11181_v23 = vperm.slane %v4465_v18, %v7619_v57  ;;  %vm12878_vm1 = vcmask 211968   ;;  %v12890_v34 = vld [vmem:[#allocation47_spill] sm:$0xff] }
 0x85d   :  { %v5751_v45 = vpop.permute.xlu0 %5750  ;;  %5910 = vrot.lane.b32.xlu1 %v4155_v5, %s12871_s14  ;;  %v11167_v9 = vperm.slane %v4395_v46, %v7297_v21  ;;  %v4480_v37 = vrot.slane %v11145_v38, 4  ;;  %v4368_v54 = vrot.slane %v4351_v2, 4  ;;  %v4371_v11 = vsel %vm1580_vm0, %v4351_v2, %v4370_v36  ;;  %vm12881_vm2 = vmmov %vm12878_vm1  ;;  %v12891_v36 = vld [vmem:[#allocation99_spill] sm:$0xff]  ;;  %s12997_s14 = smov 118  }
 0x85e   :  { %v11115_v33 = vpop.permute.xlu2 %5782  ;;  %v11189_v6 = vperm.slane %v4353_v53, %v7619_v57  ;;  %v4279_v29 = vperm.slane %v4271_v1, %v7297_v21  ;;  %v4354_v41 = vrot.slane %v4303_v63, 4  ;;  %v4484_v25 = vrot.slane %v11181_v23, 4  ;;  %v12893_v1 = vld [vmem:[#allocation187_spill] sm:$0xff] }
 0x85f   :  { %v5743_v12 = vpop.permute.xlu1 %5742  ;;  %v4440_v5 = vrot.slane %v11167_v9, 4  ;;  %vm12883_vm3 = vcmask 228352   ;;  %v4504_v46 = vrot.slane %v12887_v58, 4 }
 0x860   :  { %v6379_v14 = vsel %vm12872_vm4, %v6377_v48, %v5743_v12  ;;  %v4329_v12 = vsel %vm1580_vm0, %v4328_v19, %v4279_v29  ;;  %v4355_v27 = vsel %vm1580_vm0, %v11119_v7, %v4354_v41  ;;  %v4330_v0 = vrot.slane %v4279_v29, 4  ;;  %v12894_v19 = vld [vmem:[#allocation46_spill] sm:$0xff] }
 0x861   :  { %v6381_v16 = vsel %vm12873_vm5, %v6379_v14, %v5751_v45  ;;  %v4369_v45 = vsel %vm1580_vm0, %v4368_v54, %v4327_v49  ;;  %v4372_v14 = vrot.slane %v11189_v6, 4  ;;  %v4335_v55 = vperm.slane %v4329_v12, %v7619_v57  ;;  %vm12895_vm5 = vmmov %vm12883_vm3 }
 0x862   :  { %v6383_v48 = vsel %vm12874_vm6, %v6381_v16, %v11038_v15  ;;  %v4477_v15 = vsel %vm1580_vm0, %v4476_v17, %v4435_v40  ;;  %v4439_v40 = vperm.slane %v4431_v35, %v7619_v57  ;;  %v4528_v16 = vrot.slane %v12882_v61, 4 }
 0x863   :  { %5928 = vrot.lane.b32.xlu0 %v4479_v39, %s12875_s15  ;;  %v11210_v39 = vperm.slane %v4355_v27, %v7619_v57  ;;  %vm12884_vm4 = vcmask 244736   ;;  %v4373_v59 = vsel %vm1580_vm0, %v4372_v14, %v4335_v55  ;;  %v4516_v54 = vrot.slane %v12891_v36, 4  ;;  %v12899_v14 = vld [vmem:[#allocation69_spill] sm:$0xff] }
 0x864   :  { %5926 = vrot.lane.b32.xlu2 %v4367_v51, %s12875_s15  ;;  %v4481_v13 = vsel %vm1580_vm0, %v4480_v37, %v4439_v40  ;;  %v4482_v52 = vrot.slane %v4439_v40, 4  ;;  %v4331_v51 = vsel %vm1580_vm0, %v4291_v28, %v4330_v0  ;;  %vm12897_vm6 = vmmov %vm12884_vm4  ;;  %s12998_s15 = smov 116  }
 0x865   :  { %v5761_v3 = vpop.permute.xlu0 %5760  ;;  %5920 = vrot.lane.b32.xlu1 %v4477_v15, %s12870_s13  ;;  %v4442_v15 = vrot.slane %v4391_v56, 4  ;;  %v4339_v28 = vperm.slane %v4331_v51, %v7619_v57  ;;  %v4376_v18 = vrot.slane %v11210_v39, 4 }
 0x866   :  { %v11161_v20 = vpop.permute.xlu2 %5792  ;;  %v4483_v2 = vsel %vm1580_vm0, %v11145_v38, %v4482_v52  ;;  %v12892_v38 = vld [vmem:[#allocation156_spill] sm:$0xff] }
 0x867   :  { %v5753_v30 = vpop.permute.xlu1 %5752  ;;  %v4616_v53 = vrot.slane %v12892_v38, 4  ;;  %v4443_v29 = vsel %vm1580_vm0, %v11167_v9, %v4442_v15 }
 0x868   :  { %v6382_v10 = vsel %vm12876_vm7, %v6380_v42, %v5753_v30  ;;  %v4492_v30 = vrot.slane %v12890_v34, 4  ;;  %vm12905_vm7 = vcmask 277504  }
 0x869   :  { %v6384_v31 = vsel %vm12877_vm8, %v6382_v10, %v5761_v3  ;;  %v12888_v3 = vld [vmem:[#allocation124_spill] sm:$0xff]  ;;  %v4374_v10 = vrot.slane %v4335_v55, 4  ;;  %vm12906_vm8 = vcmask 293888  }
 0x86a   :  { %v6386_v42 = vsel %vm12878_vm1, %v6384_v31, %v11080_v60  ;;  %v4441_v60 = vsel %vm1580_vm0, %v4440_v5, %v4391_v56  ;;  %v4529_v63 = vsel %vm1580_vm0, %v4528_v16, %v12888_v3  ;;  %v4466_v31 = vrot.slane %v11154_v47, 4  ;;  %vm12908_vm1 = vmmov %vm12905_vm7 }
 0x86b   :  { %5942 = vrot.lane.b32.xlu0 %v4371_v11, %s12879_s16  ;;  %v4447_v17 = vperm.slane %v4441_v60, %v7619_v57  ;;  %v4505_v11 = vsel %vm1580_vm0, %v4504_v46, %v12894_v19  ;;  %v11239_v5 = vperm.slane %v4529_v63, %v7297_v21  ;;  %v4530_v63 = vrot.slane %v12888_v3, 4 }
 0x86c   :  { %5936 = vrot.lane.b32.xlu2 %v4481_v13, %s12880_s17  ;;  %v4467_v47 = vsel %vm1580_vm0, %v11123_v62, %v4466_v31  ;;  %v11256_v9 = vperm.slane %v4505_v11, %v7297_v21  ;;  %v4506_v3 = vrot.slane %v12894_v19, 4 }
 0x86d   :  { %v5775_v50 = vpop.permute.xlu0 %5774  ;;  %5934 = vrot.lane.b32.xlu1 %v4369_v45, %s12880_s17  ;;  %v4485_v26 = vsel %vm1580_vm0, %v4484_v25, %v4447_v17  ;;  %v12896_v45 = vld [vmem:[#allocation160_spill] sm:$0xff]  ;;  %v4486_v60 = vrot.slane %v4447_v17, 4  ;;  %v12898_v25 = vld [vmem:[#allocation70_spill] sm:$0xff]  ;;  %v12900_v17 = vld [vmem:[#allocation123_spill] sm:$0xff]  ;;  %v4475_v55 = vperm.slane %v4467_v47, %v7619_v57  ;;  %v4564_v52 = vrot.slane %v11239_v5, 4  ;;  %s13006_s17 = smov 122  }
 0x86e   :  { %v11196_v8 = vpop.permute.xlu2 %5806  ;;  %v4493_v12 = vsel %vm1580_vm0, %v4492_v30, %v12898_v25  ;;  %v4617_v0 = vsel %vm1580_vm0, %v4616_v53, %v12900_v17 }
 0x86f   :  { %v5767_v43 = vpop.permute.xlu1 %5766  ;;  %v4487_v62 = vsel %vm1580_vm0, %v11181_v23, %v4486_v60  ;;  %v11278_v23 = vperm.slane %v4617_v0, %v7297_v21 }
 0x870   :  { %v6385_v49 = vsel %vm12881_vm2, %v6383_v48, %v5767_v43  ;;  %v4640_v48 = vrot.slane %v12885_v4, 4  ;;  %v4377_v43 = vsel %vm1580_vm0, %v4376_v18, %v4339_v28  ;;  %vm12909_vm2 = vmmov %vm12906_vm8 }
 0x871   :  { %v6387_v32 = vsel %vm12883_vm3, %v6385_v49, %v5775_v50  ;;  %v4517_v49 = vsel %vm1580_vm0, %v4516_v54, %v12899_v14  ;;  %vm12910_vm3 = vcmask 310272  }
 0x872   :  { %v6389_v7 = vsel %vm12884_vm4, %v6387_v32, %v11115_v33  ;;  %v12889_v33 = vld [vmem:[#allocation190_spill] sm:$0xff]  ;;  %v4641_v56 = vsel %vm1580_vm0, %v4640_v48, %v12893_v1  ;;  %v4451_v32 = vperm.slane %v4443_v29, %v7619_v57  ;;  %v12903_v48 = vld [vmem:[#allocation200_spill] sm:$0xff]  ;;  %v4531_v29 = vsel %vm1580_vm0, %v12882_v61, %v4530_v63  ;;  %vm12913_vm4 = vmmov %vm12910_vm3 }
 0x873   :  { %5952 = vrot.lane.b32.xlu0 %v4485_v26, %s12886_s18  ;;  %v4628_v24 = vrot.slane %v12889_v33, 4  ;;  %v4647_v27 = vperm.slane %v4641_v56, %v7297_v21  ;;  %v11272_v26 = vperm.slane %v4493_v12, %v7297_v21  ;;  %v12904_v56 = vld [vmem:[#allocation122_spill] sm:$0xff] }
 0x874   :  { %5950 = vrot.lane.b32.xlu2 %v4373_v59, %s12886_s18  ;;  %v4604_v59 = vrot.slane %v12903_v48, 4  ;;  %v4490_v18 = vrot.slane %v4451_v32, 4  ;;  %s6990_s18 = smov [#allocation5]  }
 0x875   :  { %v5785_v35 = vpop.permute.xlu0 %5784  ;;  %5944 = vrot.lane.b32.xlu1 %v4483_v2, %s12879_s16  ;;  %v4629_v41 = vsel %vm1580_vm0, %v4628_v24, %v12896_v45  ;;  %v4676_v46 = vrot.slane %v4647_v27, 4  ;;  %v4523_v2 = vperm.slane %v4517_v49, %v7297_v21  ;;  %v11315_v49 = vperm.slane %v4531_v29, %v7297_v21  ;;  %s13002_s16 = smov 120  }
 0x876   :  { %v11227_v37 = vpop.permute.xlu2 %5816  ;;  %v4635_v16 = vperm.slane %v4629_v41, %v7297_v21  ;;  %v4605_v31 = vsel %vm1580_vm0, %v4604_v59, %v12904_v56 }
 0x877   :  { %v5777_v40 = vpop.permute.xlu1 %5776  ;;  %v4565_v11 = vsel %vm1580_vm0, %v4564_v52, %v4523_v2  ;;  %v4611_v19 = vperm.slane %v4605_v31, %v7297_v21  ;;  %v4576_v63 = vrot.slane %v11315_v49, 4 }
 0x878   :  { %v6388_v13 = vsel %vm12895_vm5, %v6386_v42, %v5777_v40  ;;  %v4677_v54 = vsel %vm1580_vm0, %v4676_v46, %v4635_v16  ;;  %v4678_v41 = vrot.slane %v4635_v16, 4  ;;  %v4571_v12 = vperm.slane %v4565_v11, %v7619_v57 }
 0x879   :  { %v6390_v50 = vsel %vm12897_vm6, %v6388_v13, %v5785_v35  ;;  %v4378_v35 = vrot.slane %v4339_v28, 4  ;;  %v4652_v28 = vrot.slane %v11278_v23, 4  ;;  %v11304_v60 = vperm.slane %v4677_v54, %v7619_v57 }
 0x87a   :  { %v6392_v42 = vsel %vm6217_vm12, %v6390_v50, %v11161_v20  ;;  %v4375_v20 = vsel %vm1580_vm0, %v11189_v6, %v4374_v10  ;;  %v4540_v6 = vrot.slane %v11256_v9, 4  ;;  %v4488_v10 = vrot.slane %v4475_v55, 4 }
 0x87b   :  { %5966 = vrot.lane.b32.xlu0 %v4377_v43, %s12901_s19  ;;  %v4379_v50 = vsel %vm1580_vm0, %v11210_v39, %v4378_v35  ;;  %v4507_v43 = vsel %vm1580_vm0, %v12887_v58, %v4506_v3  ;;  %v4566_v39 = vrot.slane %v4523_v2, 4  ;;  %v4518_v16 = vrot.slane %v12899_v14, 4 }
 0x87c   :  { %5960 = vrot.lane.b32.xlu2 %v4487_v62, %s12902_s20  ;;  %v4541_v53 = vsel %vm1580_vm0, %v4540_v6, %v11272_v26  ;;  %v4489_v47 = vsel %vm1580_vm0, %v4488_v10, %v4451_v32  ;;  %v4653_v62 = vsel %vm1580_vm0, %v4652_v28, %v4611_v19  ;;  %v4679_v52 = vsel %vm1580_vm0, %v4647_v27, %v4678_v41 }
 0x87d   :  { %v5799_v51 = vpop.permute.xlu0 %5798  ;;  %5958 = vrot.lane.b32.xlu1 %v4375_v20, %s12902_s20  ;;  %v4494_v20 = vrot.slane %v12898_v25, 4  ;;  %v4567_v46 = vsel %vm1580_vm0, %v11239_v5, %v4566_v39  ;;  %v4542_v6 = vrot.slane %v11272_v26, 4  ;;  %v4519_v2 = vsel %vm1580_vm0, %v12891_v36, %v4518_v16  ;;  %s6991_s20 = smov 512  }
 0x87e   :  { %v11280_v15 = vpop.permute.xlu2 %5830  ;;  %v4659_v25 = vperm.slane %v4653_v62, %v7619_v57  ;;  %v4654_v26 = vrot.slane %v4611_v19, 4  ;;  %v11344_v35 = vperm.slane %v4567_v46, %v7619_v57  ;;  %v4642_v10 = vrot.slane %v12893_v1, 4 }
 0x87f   :  { %v5791_v24 = vpop.permute.xlu1 %5790  ;;  %v4495_v5 = vsel %vm1580_vm0, %v12890_v34, %v4494_v20  ;;  %v4543_v1 = vsel %vm1580_vm0, %v11256_v9, %v4542_v6  ;;  %v11366_v11 = vperm.slane %v4507_v43, %v7297_v21  ;;  %vm12914_vm5 = vcmask 326656  }
 0x880   :  { %v6391_v30 = vsel %vm6217_vm12, %v6389_v7, %v5791_v24  ;;  %v4491_v7 = vsel %vm1580_vm0, %v4475_v55, %v4490_v18  ;;  %v4700_v55 = vrot.slane %v11304_v60, 4  ;;  %v4618_v18 = vrot.slane %v12900_v17, 4 }
 0x881   :  { %v6393_v40 = vsel %vm12905_vm7, %v6391_v30, %v5799_v51  ;;  %v4588_v51 = vrot.slane %v4571_v12, 4  ;;  %v11347_v30 = vperm.slane %v4519_v2, %v7297_v21  ;;  %v4655_v54 = vsel %vm1580_vm0, %v11278_v23, %v4654_v26  ;;  %vm12919_vm7 = vmmov %vm12914_vm5 }
 0x882   :  { %v6395_v13 = vsel %vm12906_vm8, %v6393_v40, %v11196_v8  ;;  %v4547_v8 = vperm.slane %v4541_v53, %v7619_v57  ;;  %v4701_v36 = vsel %vm1580_vm0, %v4700_v55, %v4659_v25  ;;  %v4619_v53 = vsel %vm1580_vm0, %v12892_v38, %v4618_v18 }
 0x883   :  { %5976 = vrot.lane.b32.xlu0 %v4491_v7, %s12907_s21  ;;  %v4577_v17 = vsel %vm1580_vm0, %v4576_v63, %v11347_v30  ;;  %v11369_v3 = vperm.slane %v4495_v5, %v7297_v21  ;;  %v4606_v23 = vrot.slane %v12904_v56, 4  ;;  %v4592_v38 = vrot.slane %v11344_v35, 4 }
 0x884   :  { %5974 = vrot.lane.b32.xlu2 %v4379_v50, %s12907_s21  ;;  %v4590_v58 = vrot.slane %v4547_v8, 4  ;;  %v4630_v7 = vrot.slane %v12896_v45, 4  ;;  %v4643_v29 = vsel %vm1580_vm0, %v12885_v4, %v4642_v10  ;;  %v4663_v41 = vperm.slane %v4655_v54, %v7619_v57  ;;  %v12922_v10 = vld [vmem:[#allocation59_spill] sm:$0xff] }
 0x885   :  { %v5809_v61 = vpop.permute.xlu0 %5808  ;;  %5968 = vrot.lane.b32.xlu1 %v4489_v47, %s12901_s19  ;;  %v11379_v50 = vperm.slane %v4619_v53, %v7297_v21  ;;  %v4551_v47 = vperm.slane %v4543_v1, %v7619_v57  ;;  %v11384_v56 = vperm.slane %v4577_v17, %v7619_v57  ;;  %v4702_v4 = vrot.slane %v4659_v25, 4  ;;  %v12925_v1 = vld [vmem:[#allocation177_spill] sm:$0xff]  ;;  %s6566_s19 = sshll.u32 %s6990_s18, 4  ;;  %s6567_s19 = int_to_ptr.vmem [resolvable:$true] %s6566_s19 }
 0x886   :  { %v11317_v0 = vpop.permute.xlu2 %5840  ;;  %v4591_v27 = vsel %vm1580_vm0, %v4571_v12, %v4590_v58  ;;  %v4631_v45 = vsel %vm1580_vm0, %v12889_v33, %v4630_v7  ;;  %vm12915_vm6 = vcmask 343040   ;;  %v4552_v12 = vrot.slane %v11366_v11, 4 }
 0x887   :  { %v5801_v32 = vpop.permute.xlu1 %5800  ;;  %v4593_v43 = vsel %vm1580_vm0, %v4592_v38, %v4551_v47  ;;  %v4607_v39 = vsel %vm1580_vm0, %v12903_v48, %v4606_v23  ;;  %v4703_v33 = vsel %vm1580_vm0, %v11304_v60, %v4702_v4  ;;  %v4664_v62 = vrot.slane %v11379_v50, 4  ;;  %v12917_v48 = vld [vmem:[#allocation112_spill] sm:$0xff]  ;;  %vm12920_vm8 = vmmov %vm12915_vm6  ;;  %v12927_v23 = vld [vmem:[#allocation90_spill] sm:$0xff] }
 0x888   :  { %v6394_v59 = vsel %vm12908_vm1, %v6392_v42, %v5801_v32  ;;  %v11335_v42 = vperm.slane %v4679_v52, %v7619_v57  ;;  %v4553_v20 = vsel %vm1580_vm0, %v4552_v12, %v11369_v3  ;;  %v4596_v55 = vrot.slane %v11384_v56, 4 }
 0x889   :  { %v6396_v14 = vsel %vm12909_vm2, %v6394_v59, %v5809_v61  ;;  %v4651_v61 = vperm.slane %v4643_v29, %v7297_v21  ;;  %v4752_v52 = vrot.slane %v12917_v48, 4  ;;  %v11410_v59 = vperm.slane %v4607_v39, %v7297_v21 }
 0x88a   :  { %v6398_v24 = vsel %vm12910_vm3, %v6396_v14, %v11227_v37  ;;  %v4589_v37 = vsel %vm1580_vm0, %v4588_v51, %v4547_v8  ;;  %v4704_v40 = vrot.slane %v11335_v42, 4  ;;  %v12918_v51 = vld [vmem:[#allocation39_spill] sm:$0xff]  ;;  %v4559_v2 = vperm.slane %v4553_v20, %v7619_v57 }
 0x88b   :  { %5990 = vrot.lane.b32.xlu0 %v4591_v27, %s12911_s22  ;;  %v4688_v60 = vrot.slane %v4651_v61, 4  ;;  %v4864_v46 = vrot.slane %v12918_v51, 4  ;;  %v4594_v14 = vrot.slane %v4551_v47, 4  ;;  %v4706_v63 = vrot.slane %v4663_v41, 4  ;;  %v12930_v47 = vld [vmem:[#allocation36_spill] sm:$0xff] }
 0x88c   :  { %5984 = vrot.lane.b32.xlu2 %v4701_v36, %s12912_s23  ;;  %v4705_v8 = vsel %vm1580_vm0, %v4704_v40, %v4663_v41  ;;  %v4665_v27 = vsel %vm1580_vm0, %v4664_v62, %v11410_v59  ;;  %v4554_v26 = vrot.slane %v11369_v3, 4  ;;  %v4597_v36 = vsel %vm1580_vm0, %v4596_v55, %v4559_v2 }
 0x88d   :  { %v5823_v34 = vpop.permute.xlu0 %5822  ;;  %5982 = vrot.lane.b32.xlu1 %v4589_v37, %s12912_s23  ;;  %vm12921_vm1 = vcmask 359424   ;;  %v12923_v37 = vld [vmem:[#allocation88_spill] sm:$0xff]  ;;  %v4707_v54 = vsel %vm1580_vm0, %v11335_v42, %v4706_v63  ;;  %v4595_v53 = vsel %vm1580_vm0, %v11344_v35, %v4594_v14  ;;  %v4865_v17 = vsel %vm1580_vm0, %v4864_v46, %v12925_v1  ;;  %v12928_v42 = vld [vmem:[#allocation193_spill] sm:$0xff] }
 0x88e   :  { %v11358_v31 = vpop.permute.xlu2 %5854  ;;  %v4578_v38 = vrot.slane %v11347_v30, 4  ;;  %v4852_v29 = vrot.slane %v12928_v42, 4  ;;  %v12929_v35 = vld [vmem:[#allocation145_spill] sm:$0xff]  ;;  %v11451_v30 = vperm.slane %v4865_v17, %v7297_v21  ;;  %vm12931_vm2 = vmmov %vm12921_vm1  ;;  %vm12933_vm3 = vcmask 375808  }
 0x88f   :  { %v5815_v28 = vpop.permute.xlu1 %5814  ;;  %v4598_v20 = vrot.slane %v4559_v2, 4  ;;  %v4666_v63 = vrot.slane %v11410_v59, 4 }
 0x890   :  { %v6397_v9 = vsel %vm12913_vm4, %v6395_v13, %v5815_v28  ;;  %v4740_v28 = vrot.slane %v12927_v23, 4  ;;  %v4579_v12 = vsel %vm1580_vm0, %v11315_v49, %v4578_v38  ;;  %vm12936_vm4 = vcmask 392192   ;;  %v12940_v38 = vld [vmem:[#allocation113_spill] sm:$0xff] }
 0x891   :  { %v6399_v19 = vsel %vm12914_vm5, %v6397_v9, %v5823_v34  ;;  %v4753_v34 = vsel %vm1580_vm0, %v4752_v52, %v12923_v37  ;;  %v4840_v9 = vrot.slane %v12929_v35, 4  ;;  %v12934_v52 = vld [vmem:[#allocation191_spill] sm:$0xff]  ;;  %v4587_v2 = vperm.slane %v4579_v12, %v7619_v57  ;;  %vm12941_vm5 = vmmov %vm12933_vm3 }
 0x892   :  { %v6401_v13 = vsel %vm12915_vm6, %v6399_v19, %v11280_v15  ;;  %v4639_v15 = vperm.slane %v4631_v45, %v7297_v21  ;;  %v4555_v19 = vsel %vm1580_vm0, %v11366_v11, %v4554_v26  ;;  %v12932_v11 = vld [vmem:[#allocation189_spill] sm:$0xff]  ;;  %v12939_v26 = vld [vmem:[#allocation58_spill] sm:$0xff]  ;;  %vm12943_vm6 = vmmov %vm12936_vm4 }
 0x893   :  { %6000 = vrot.lane.b32.xlu0 %v4705_v8, %s12916_s24  ;;  %v11448_v8 = vperm.slane %v4753_v34, %v7297_v21  ;;  %v4563_v55 = vperm.slane %v4555_v19, %v7619_v57 }
 0x894   :  { %5998 = vrot.lane.b32.xlu2 %v4593_v43, %s12916_s24  ;;  %v4689_v5 = vsel %vm1580_vm0, %v4688_v60, %v4639_v15  ;;  %v4690_v40 = vrot.slane %v4639_v15, 4  ;;  %v4741_v15 = vsel %vm1580_vm0, %v4740_v28, %v12932_v11  ;;  %v4841_v60 = vsel %vm1580_vm0, %v4840_v9, %v12934_v52 }
 0x895   :  { %v5833_v16 = vpop.permute.xlu0 %5832  ;;  %5992 = vrot.lane.b32.xlu1 %v4703_v33, %s12911_s22  ;;  %v4695_v3 = vperm.slane %v4689_v5, %v7619_v57  ;;  %v4747_v59 = vperm.slane %v4741_v15, %v7297_v21  ;;  %v4600_v9 = vrot.slane %v4587_v2, 4 }
 0x896   :  { %v11405_v32 = vpop.permute.xlu2 %5864  ;;  %v4691_v62 = vsel %vm1580_vm0, %v4651_v61, %v4690_v40  ;;  %v4900_v61 = vrot.slane %v11451_v30, 4  ;;  %v4667_v40 = vsel %vm1580_vm0, %v11379_v50, %v4666_v63 }
 0x897   :  { %v5825_v58 = vpop.permute.xlu1 %5824  ;;  %v4708_v33 = vrot.slane %v4695_v3, 4  ;;  %v11474_v14 = vperm.slane %v4691_v62, %v7619_v57 }
 0x898   :  { %v6400_v6 = vsel %vm12919_vm7, %v6398_v24, %v5825_v58  ;;  %v4728_v24 = vrot.slane %v12922_v10, 4  ;;  %v12935_v58 = vld [vmem:[#allocation174_spill] sm:$0xff]  ;;  %vm12944_vm7 = vcmask 408576  }
 0x899   :  { %v6402_v25 = vsel %vm12920_vm8, %v6400_v6, %v5833_v16  ;;  %v4853_v49 = vsel %vm1580_vm0, %v4852_v29, %v12935_v58  ;;  %v4599_v6 = vsel %vm1580_vm0, %v11384_v56, %v4598_v20  ;;  %vm12947_vm8 = vmmov %vm12944_vm7 }
 0x89a   :  { %v6404_v18 = vsel %vm12921_vm1, %v6402_v25, %v11317_v0  ;;  %v4671_v0 = vperm.slane %v4665_v27, %v7619_v57  ;;  %v4729_v45 = vsel %vm1580_vm0, %v4728_v24, %v12930_v47  ;;  %v4788_v25 = vrot.slane %v11448_v8, 4  ;;  %v12938_v27 = vld [vmem:[#allocation143_spill] sm:$0xff] }
 0x89b   :  { %6014 = vrot.lane.b32.xlu0 %v4597_v36, %s12924_s25  ;;  %v4828_v5 = vrot.slane %v12938_v27, 4  ;;  %v4716_v36 = vrot.slane %v12939_v26, 4  ;;  %v11483_v24 = vperm.slane %v4841_v60, %v7297_v21  ;;  %v11486_v56 = vperm.slane %v4853_v49, %v7297_v21 }
 0x89c   :  { %6008 = vrot.lane.b32.xlu2 %v4707_v54, %s12926_s26  ;;  %v4710_v39 = vrot.slane %v4671_v0, 4  ;;  %v4735_v54 = vperm.slane %v4729_v45, %v7297_v21  ;;  %v4789_v19 = vsel %vm1580_vm0, %v4788_v25, %v4747_v59  ;;  %v12942_v45 = vld [vmem:[#allocation37_spill] sm:$0xff]  ;;  %v4601_v49 = vsel %vm1580_vm0, %v4600_v9, %v4563_v55 }
 0x89d   :  { %v5847_v7 = vpop.permute.xlu0 %5846  ;;  %6006 = vrot.lane.b32.xlu1 %v4595_v53, %s12926_s26  ;;  %v4901_v28 = vsel %vm1580_vm0, %v4900_v61, %v11486_v56  ;;  %v4876_v50 = vrot.slane %v11483_v24, 4  ;;  %v11517_v20 = vperm.slane %v4789_v19, %v7619_v57  ;;  %vm12948_vm1 = vcmask 424960  }
 0x89e   :  { %v11441_v41 = vpop.permute.xlu2 %5878  ;;  %v11509_v62 = vperm.slane %v4901_v28, %v7619_v57  ;;  %v4718_v9 = vrot.slane %v12942_v45, 4 }
 0x89f   :  { %v5839_v4 = vpop.permute.xlu1 %5838 }
 0x8a0   :  { %v6403_v43 = vsel %vm12931_vm2, %v6401_v13, %v5839_v4  ;;  %v4711_v13 = vsel %vm1580_vm0, %v4695_v3, %v4710_v39  ;;  %v4712_v3 = vrot.slane %v11474_v14, 4  ;;  %v4717_v4 = vsel %vm1580_vm0, %v4716_v36, %v12942_v45 }
 0x8a1   :  { %v6405_v16 = vsel %vm12933_vm3, %v6403_v43, %v5847_v7  ;;  %v4829_v7 = vsel %vm1580_vm0, %v4828_v5, %v12940_v38  ;;  %v4675_v43 = vperm.slane %v4667_v40, %v7619_v57  ;;  %v4764_v39 = vrot.slane %v4735_v54, 4  ;;  %vm12951_vm3 = vmmov %vm12948_vm1 }
 0x8a2   :  { %v6407_v46 = vsel %vm12936_vm4, %v6405_v16, %v11358_v31  ;;  %v4709_v31 = vsel %vm1580_vm0, %v4708_v33, %v4671_v0  ;;  %v4602_v0 = vrot.slane %v4563_v55, 4  ;;  %v4835_v15 = vperm.slane %v4829_v7, %v7297_v21 }
 0x8a3   :  { %6024 = vrot.lane.b32.xlu0 %v4711_v13, %s12937_s28  ;;  %v4713_v16 = vsel %vm1580_vm0, %v4712_v3, %v4675_v43  ;;  %v4723_v60 = vperm.slane %v4717_v4, %v7297_v21  ;;  %v4790_v13 = vrot.slane %v4747_v59, 4  ;;  %v4812_v5 = vrot.slane %v11517_v20, 4 }
 0x8a4   :  { %6022 = vrot.lane.b32.xlu2 %v4599_v6, %s12937_s28  ;;  %v4603_v33 = vsel %vm1580_vm0, %v4587_v2, %v4602_v0  ;;  %v4924_v2 = vrot.slane %v11509_v62, 4  ;;  %v4714_v3 = vrot.slane %v4675_v43, 4  ;;  %vm12949_vm2 = vcmask 441344  }
 0x8a5   :  { %v5857_v34 = vpop.permute.xlu0 %5856  ;;  %6016 = vrot.lane.b32.xlu1 %v4709_v31, %s12924_s25  ;;  %v4765_v25 = vsel %vm1580_vm0, %v4764_v39, %v4723_v60  ;;  %v4791_v31 = vsel %vm1580_vm0, %v11448_v8, %v4790_v13  ;;  %v4766_v59 = vrot.slane %v4723_v60, 4  ;;  %v4754_v7 = vrot.slane %v12923_v37, 4  ;;  %vm12952_vm4 = vmmov %vm12949_vm2 }
 0x8a6   :  { %v11491_v53 = vpop.permute.xlu2 %5888  ;;  %v11538_v28 = vperm.slane %v4791_v31, %v7619_v57  ;;  %v4715_v19 = vsel %vm1580_vm0, %v11474_v14, %v4714_v3  ;;  %v4719_v4 = vsel %vm1580_vm0, %v12939_v26, %v4718_v9  ;;  %v4854_v43 = vrot.slane %v12935_v58, 4 }
 0x8a7   :  { %v5849_v17 = vpop.permute.xlu1 %5848  ;;  %v4902_v39 = vrot.slane %v11486_v56, 4 }
 0x8a8   :  { %v6406_v29 = vsel %vm12941_vm5, %v6404_v18, %v5849_v17  ;;  %v4771_v17 = vperm.slane %v4765_v25, %v7619_v57  ;;  %vm12953_vm5 = vcmask 457728  }
 0x8a9   :  { %v6408_v12 = vsel %vm12943_vm6, %v6406_v29, %v5857_v34  ;;  %v4730_v34 = vrot.slane %v12930_v47, 4  ;;  %v4866_v47 = vrot.slane %v12925_v1, 4  ;;  %v4767_v1 = vsel %vm1580_vm0, %v4735_v54, %v4766_v59  ;;  %vm12957_vm6 = vmmov %vm12953_vm5 }
 0x8aa   :  { %v6410_v18 = vsel %vm12944_vm7, %v6408_v12, %v11405_v32  ;;  %v4877_v32 = vsel %vm1580_vm0, %v4876_v50, %v4835_v15  ;;  %v4813_v29 = vsel %vm1580_vm0, %v4812_v5, %v4771_v17  ;;  %v4742_v50 = vrot.slane %v12932_v11, 4 }
 0x8ab   :  { %6038 = vrot.lane.b32.xlu0 %v4603_v33, %s12945_s29  ;;  %v4883_v36 = vperm.slane %v4877_v32, %v7619_v57  ;;  %v4842_v12 = vrot.slane %v12934_v52, 4  ;;  %v4903_v58 = vsel %vm1580_vm0, %v11451_v30, %v4902_v39  ;;  %v4814_v13 = vrot.slane %v4771_v17, 4 }
 0x8ac   :  { %6032 = vrot.lane.b32.xlu2 %v4713_v16, %s12946_s30  ;;  %v4775_v16 = vperm.slane %v4767_v1, %v7619_v57  ;;  %v4911_v25 = vperm.slane %v4903_v58, %v7619_v57  ;;  %vm12958_vm7 = vcmask 474112  }
 0x8ad   :  { %v5871_v61 = vpop.permute.xlu0 %5870  ;;  %6030 = vrot.lane.b32.xlu1 %v4601_v49, %s12946_s30  ;;  %v4925_v0 = vsel %vm1580_vm0, %v4924_v2, %v4883_v36  ;;  %v4926_v49 = vrot.slane %v4883_v36, 4  ;;  %v4843_v32 = vsel %vm1580_vm0, %v12929_v35, %v4842_v12  ;;  %v11603_v35 = vperm.slane %v4719_v4, %v7297_v21  ;;  %v12962_v4 = vld [vmem:[#allocation80_spill] sm:$0xff] }
 0x8ae   :  { %v11524_v6 = vpop.permute.xlu2 %5902  ;;  %v4928_v3 = vrot.slane %v4911_v25, 4 }
 0x8af   :  { %v5863_v63 = vpop.permute.xlu1 %5862  ;;  %v4927_v30 = vsel %vm1580_vm0, %v11509_v62, %v4926_v49  ;;  %v11608_v62 = vperm.slane %v4843_v32, %v7297_v21 }
 0x8b0   :  { %v6409_v55 = vsel %vm12947_vm8, %v6407_v46, %v5863_v63  ;;  %v4731_v46 = vsel %vm1580_vm0, %v12922_v10, %v4730_v34  ;;  %v4867_v10 = vsel %vm1580_vm0, %v12918_v51, %v4866_v47  ;;  %v4878_v51 = vrot.slane %v4835_v15, 4 }
 0x8b1   :  { %v6411_v40 = vsel %vm12948_vm1, %v6409_v55, %v5871_v61  ;;  %v11561_v45 = vperm.slane %v4731_v46, %v7297_v21  ;;  %v11574_v26 = vperm.slane %v4867_v10, %v7297_v21  ;;  %v12956_v55 = vld [vmem:[#allocation102_spill] sm:$0xff]  ;;  %v4830_v34 = vrot.slane %v12940_v38, 4  ;;  %vm12966_vm1 = vmmov %vm12958_vm7 }
 0x8b2   :  { %v6413_v8 = vsel %vm12949_vm2, %v6411_v40, %v11441_v41  ;;  %v4755_v41 = vsel %vm1580_vm0, %v12917_v48, %v4754_v7  ;;  %v4816_v48 = vrot.slane %v11538_v28, 4  ;;  %v4879_v52 = vsel %vm1580_vm0, %v11483_v24, %v4878_v51  ;;  %v12963_v51 = vld [vmem:[#allocation101_spill] sm:$0xff] }
 0x8b3   :  { %6048 = vrot.lane.b32.xlu0 %v4925_v0, %s12950_s2  ;;  %v11571_v33 = vperm.slane %v4755_v41, %v7297_v21  ;;  %v4776_v56 = vrot.slane %v11561_v45, 4  ;;  %v4855_v24 = vsel %vm1580_vm0, %v12928_v42, %v4854_v43  ;;  %v4912_v2 = vrot.slane %v11574_v26, 4 }
 0x8b4   :  { %6046 = vrot.lane.b32.xlu2 %v4813_v29, %s12950_s2  ;;  %v4817_v15 = vsel %vm1580_vm0, %v4816_v48, %v4775_v16  ;;  %v4863_v5 = vperm.slane %v4855_v24, %v7297_v21  ;;  %v4976_v36 = vrot.slane %v12956_v55, 4  ;;  %v4831_v7 = vsel %vm1580_vm0, %v12938_v27, %v4830_v34 }
 0x8b5   :  { %v5881_v37 = vpop.permute.xlu0 %5880  ;;  %6040 = vrot.lane.b32.xlu1 %v4715_v19, %s12945_s29  ;;  %v4800_v42 = vrot.slane %v11571_v33, 4  ;;  %v4777_v40 = vsel %vm1580_vm0, %v4776_v56, %v11603_v35  ;;  %v4818_v29 = vrot.slane %v4775_v16, 4  ;;  %v4888_v38 = vrot.slane %v11608_v62, 4 }
 0x8b6   :  { %v11564_v14 = vpop.permute.xlu2 %5912  ;;  %v4913_v46 = vsel %vm1580_vm0, %v4912_v2, %v4863_v5  ;;  %vm12959_vm8 = vcmask 490496   ;;  %v4783_v27 = vperm.slane %v4777_v40, %v7619_v57  ;;  %v4839_v48 = vperm.slane %v4831_v7, %v7297_v21  ;;  %v12974_v7 = vld [vmem:[#allocation133_spill] sm:$0xff] }
 0x8b7   :  { %v5873_v54 = vpop.permute.xlu1 %5872  ;;  %v11634_v1 = vperm.slane %v4913_v46, %v7619_v57  ;;  %v4964_v43 = vrot.slane %v12963_v51, 4  ;;  %v4914_v39 = vrot.slane %v4863_v5, 4  ;;  %vm12969_vm2 = vmmov %vm12959_vm8 }
 0x8b8   :  { %v6412_v11 = vsel %vm12951_vm3, %v6410_v18, %v5873_v54  ;;  %v4743_v18 = vsel %vm1580_vm0, %v12927_v23, %v4742_v50  ;;  %v4887_v23 = vperm.slane %v4879_v52, %v7619_v57  ;;  %v4977_v50 = vsel %vm1580_vm0, %v4976_v36, %v12962_v4  ;;  %v12964_v54 = vld [vmem:[#allocation49_spill] sm:$0xff]  ;;  %v12965_v52 = vld [vmem:[#allocation48_spill] sm:$0xff] }
 0x8b9   :  { %v6414_v60 = vsel %vm12952_vm4, %v6412_v11, %v5881_v37  ;;  %v4819_v37 = vsel %vm1580_vm0, %v11538_v28, %v4818_v29  ;;  %v4940_v11 = vrot.slane %v12964_v54, 4  ;;  %v4889_v49 = vsel %vm1580_vm0, %v4888_v38, %v4839_v48  ;;  %v12975_v38 = vld [vmem:[#allocation169_spill] sm:$0xff] }
 0x8ba   :  { %v6416_v61 = vsel %vm12953_vm5, %v6414_v60, %v11491_v53  ;;  %v4815_v53 = vsel %vm1580_vm0, %v11517_v20, %v4814_v13  ;;  %v4751_v20 = vperm.slane %v4743_v18, %v7297_v21  ;;  %v4930_v0 = vrot.slane %v4887_v23, 4 }
 0x8bb   :  { %6062 = vrot.lane.b32.xlu0 %v4817_v15, %s12954_s3  ;;  %v11651_v56 = vperm.slane %v4977_v50, %v7297_v21  ;;  %v4915_v15 = vsel %vm1580_vm0, %v11574_v26, %v4914_v39  ;;  %v4932_v18 = vrot.slane %v11634_v1, 4  ;;  %v4895_v5 = vperm.slane %v4889_v49, %v7619_v57  ;;  %v12970_v26 = vld [vmem:[#allocation103_spill] sm:$0xff] }
 0x8bc   :  { %6056 = vrot.lane.b32.xlu2 %v4927_v30, %s12955_s4  ;;  %v4801_v9 = vsel %vm1580_vm0, %v4800_v42, %v4751_v20  ;;  %v4931_v19 = vsel %vm1580_vm0, %v4911_v25, %v4930_v0  ;;  %v4802_v16 = vrot.slane %v4751_v20, 4  ;;  %v4822_v30 = vrot.slane %v4783_v27, 4  ;;  %v12968_v25 = vld [vmem:[#allocation159_spill] sm:$0xff] }
 0x8bd   :  { %v5895_v63 = vpop.permute.xlu0 %5894  ;;  %6054 = vrot.lane.b32.xlu1 %v4815_v53, %s12955_s4  ;;  %v4807_v12 = vperm.slane %v4801_v9, %v7619_v57  ;;  %v12967_v53 = vld [vmem:[#allocation79_spill] sm:$0xff]  ;;  %v5064_v42 = vrot.slane %v12968_v25, 4  ;;  %v5088_v20 = vrot.slane %v12970_v26, 4  ;;  %v11667_v34 = vperm.slane %v4915_v15, %v7619_v57 }
 0x8be   :  { %v11611_v31 = vpop.permute.xlu2 %5926  ;;  %v4803_v32 = vsel %vm1580_vm0, %v11571_v33, %v4802_v16  ;;  %vm12971_vm3 = vcmask 506880   ;;  %v4933_v40 = vsel %vm1580_vm0, %v4932_v18, %v4895_v5  ;;  %v4778_v0 = vrot.slane %v11603_v35, 4 }
 0x8bf   :  { %v5887_v59 = vpop.permute.xlu1 %5886  ;;  %v4820_v2 = vrot.slane %v4807_v12, 4  ;;  %v4823_v36 = vsel %vm1580_vm0, %v4807_v12, %v4822_v30  ;;  %v5089_v35 = vsel %vm1580_vm0, %v5088_v20, %v12975_v38  ;;  %vm12979_vm4 = vmmov %vm12971_vm3  ;;  %vm12980_vm5 = vcmask 523264   ;;  %v12984_v20 = vld [vmem:[#allocation162_spill] sm:$0xff] }
 0x8c0   :  { %v6415_v17 = vsel %vm12957_vm6, %v6413_v8, %v5887_v59  ;;  %v12960_v8 = vld [vmem:[#allocation164_spill] sm:$0xff]  ;;  %v4890_v59 = vrot.slane %v4839_v48, 4  ;;  %v12977_v48 = vld [vmem:[#allocation135_spill] sm:$0xff]  ;;  %vm12981_vm6 = vcmask 539648  }
 0x8c1   :  { %v6417_v47 = vsel %vm12958_vm7, %v6415_v17, %v5895_v63  ;;  %v4952_v10 = vrot.slane %v12960_v8, 4  ;;  %v11675_v17 = vperm.slane %v4803_v32, %v7619_v57  ;;  %v4934_v32 = vrot.slane %v4895_v5, 4  ;;  %vm12985_vm7 = vmmov %vm12980_vm5 }
 0x8c2   :  { %v6419_v41 = vsel %vm12959_vm8, %v6417_v47, %v11524_v6  ;;  %v4929_v6 = vsel %vm1580_vm0, %v4928_v3, %v4887_v23  ;;  %v4965_v23 = vsel %vm1580_vm0, %v4964_v43, %v12967_v53  ;;  %v4821_v3 = vsel %vm1580_vm0, %v4820_v2, %v4783_v27  ;;  %v12976_v27 = vld [vmem:[#allocation21_spill] sm:$0xff]  ;;  %v12982_v2 = vld [vmem:[#allocation166_spill] sm:$0xff]  ;;  %vm12986_vm8 = vmmov %vm12981_vm6 }
 0x8c3   :  { %6072 = vrot.lane.b32.xlu0 %v4931_v19, %s12961_s5  ;;  %v4953_v58 = vsel %vm1580_vm0, %v4952_v10, %v12965_v52  ;;  %v5065_v47 = vsel %vm1580_vm0, %v5064_v42, %v12974_v7  ;;  %v4891_v9 = vsel %vm1580_vm0, %v11608_v62, %v4890_v59  ;;  %v4936_v10 = vrot.slane %v11667_v34, 4 }
 0x8c4   :  { %6070 = vrot.lane.b32.xlu2 %v4819_v37, %s12961_s5  ;;  %v4959_v46 = vperm.slane %v4953_v58, %v7297_v21  ;;  %v4779_v37 = vsel %vm1580_vm0, %v11561_v45, %v4778_v0  ;;  %v4941_v50 = vsel %vm1580_vm0, %v4940_v11, %v12976_v27  ;;  %v4824_v43 = vrot.slane %v11675_v17, 4 }
 0x8c5   :  { %v5905_v28 = vpop.permute.xlu0 %5904  ;;  %6064 = vrot.lane.b32.xlu1 %v4929_v6, %s12954_s3  ;;  %v5052_v6 = vrot.slane %v12977_v48, 4  ;;  %v11703_v39 = vperm.slane %v5065_v47, %v7297_v21  ;;  %v4899_v45 = vperm.slane %v4891_v9, %v7619_v57  ;;  %v11709_v11 = vperm.slane %v5089_v35, %v7297_v21 }
 0x8c6   :  { %v11645_v60 = vpop.permute.xlu2 %5936  ;;  %v4988_v58 = vrot.slane %v4959_v46, 4 }
 0x8c7   :  { %v5897_v13 = vpop.permute.xlu1 %5896  ;;  %v4937_v18 = vsel %vm1580_vm0, %v4936_v10, %v4899_v45 }
 0x8c8   :  { %v6418_v24 = vsel %vm12966_vm1, %v6416_v61, %v5897_v13  ;;  %v5012_v61 = vrot.slane %v11651_v56, 4  ;;  %v4787_v13 = vperm.slane %v4779_v37, %v7619_v57  ;;  %v5090_v37 = vrot.slane %v12975_v38, 4 }
 0x8c9   :  { %v6420_v63 = vsel %vm12969_vm2, %v6418_v24, %v5905_v28  ;;  %v12978_v28 = vld [vmem:[#allocation197_spill] sm:$0xff]  ;;  %vm12987_vm1 = vcmask 556032  }
 0x8ca   :  { %v6422_v33 = vsel %vm12971_vm3, %v6420_v63, %v11564_v14  ;;  %v11682_v14 = vperm.slane %v4965_v23, %v7297_v21  ;;  %v5076_v16 = vrot.slane %v12978_v28, 4  ;;  %v5053_v23 = vsel %vm1580_vm0, %v5052_v6, %v12982_v2  ;;  %vm12990_vm2 = vmmov %vm12987_vm1 }
 0x8cb   :  { %6086 = vrot.lane.b32.xlu0 %v4823_v36, %s12972_s6  ;;  %v4825_v42 = vsel %vm1580_vm0, %v4824_v43, %v4787_v13  ;;  %v5100_v63 = vrot.slane %v11703_v39, 4  ;;  %v4935_v36 = vsel %vm1580_vm0, %v11634_v1, %v4934_v32  ;;  %v4938_v6 = vrot.slane %v4899_v45, 4 }
 0x8cc   :  { %6080 = vrot.lane.b32.xlu2 %v4933_v40, %s12973_s7  ;;  %v5013_v62 = vsel %vm1580_vm0, %v5012_v61, %v11682_v14  ;;  %v5077_v5 = vsel %vm1580_vm0, %v5076_v16, %v12984_v20  ;;  %v11734_v40 = vperm.slane %v5053_v23, %v7297_v21  ;;  %v4978_v43 = vrot.slane %v12962_v4, 4 }
 0x8cd   :  { %v5919_v29 = vpop.permute.xlu0 %5918  ;;  %6078 = vrot.lane.b32.xlu1 %v4821_v3, %s12973_s7  ;;  %v11715_v24 = vperm.slane %v5013_v62, %v7619_v57  ;;  %v5083_v47 = vperm.slane %v5077_v5, %v7297_v21  ;;  %v4826_v16 = vrot.slane %v4787_v13, 4  ;;  %v4939_v38 = vsel %vm1580_vm0, %v11667_v34, %v4938_v6 }
 0x8ce   :  { %v11691_v19 = vpop.permute.xlu2 %5950  ;;  %v5101_v10 = vsel %vm1580_vm0, %v5100_v63, %v11734_v40  ;;  %v4979_v4 = vsel %vm1580_vm0, %v12956_v55, %v4978_v43  ;;  %v5078_v63 = vrot.slane %v12984_v20, 4  ;;  %vm12991_vm3 = vcmask 572416  }
 0x8cf   :  { %v5911_v12 = vpop.permute.xlu1 %5910  ;;  %v5036_v3 = vrot.slane %v11715_v24, 4 }
 0x8d0   :  { %v6421_v49 = vsel %vm12979_vm4, %v6419_v41, %v5911_v12  ;;  %v4947_v41 = vperm.slane %v4941_v50, %v7297_v21  ;;  %v5079_v20 = vsel %vm1580_vm0, %v12978_v28, %v5078_v63  ;;  %vm12992_vm4 = vcmask 588800  }
 0x8d1   :  { %v6423_v15 = vsel %vm12980_vm5, %v6421_v49, %v5919_v29  ;;  %v4954_v49 = vrot.slane %v12965_v52, 4  ;;  %v5102_v28 = vrot.slane %v11734_v40, 4  ;;  %vm12994_vm5 = vmmov %vm12991_vm3 }
 0x8d2   :  { %v6425_v30 = vsel %vm12981_vm6, %v6423_v15, %v11611_v31  ;;  %v5124_v31 = vrot.slane %v11709_v11, 4  ;;  %v4989_v59 = vsel %vm1580_vm0, %v4988_v58, %v4947_v41  ;;  %v4990_v9 = vrot.slane %v4947_v41, 4  ;;  %vm12995_vm6 = vmmov %vm12992_vm4 }
 0x8d3   :  { %6096 = vrot.lane.b32.xlu0 %v4937_v18, %s12983_s8  ;;  %v4995_v35 = vperm.slane %v4989_v59, %v7619_v57  ;;  %v5107_v58 = vperm.slane %v5101_v10, %v7619_v57  ;;  %v5091_v15 = vsel %vm1580_vm0, %v12970_v26, %v5090_v37  ;;  %v4955_v34 = vsel %vm1580_vm0, %v12960_v8, %v4954_v49 }
 0x8d4   :  { %6094 = vrot.lane.b32.xlu2 %v4825_v42, %s12983_s8  ;;  %v5125_v12 = vsel %vm1580_vm0, %v5124_v31, %v5083_v47  ;;  %v4991_v45 = vsel %vm1580_vm0, %v4959_v46, %v4990_v9  ;;  %v5014_v46 = vrot.slane %v11682_v14, 4  ;;  %v5126_v18 = vrot.slane %v5083_v47, 4 }
 0x8d5   :  { %v5929_v61 = vpop.permute.xlu0 %5928  ;;  %6088 = vrot.lane.b32.xlu1 %v4935_v36, %s12972_s6  ;;  %v5037_v62 = vsel %vm1580_vm0, %v5036_v3, %v4995_v35  ;;  %v5131_v52 = vperm.slane %v5125_v12, %v7619_v57  ;;  %v5038_v32 = vrot.slane %v4995_v35, 4  ;;  %v4999_v26 = vperm.slane %v4991_v45, %v7619_v57 }
 0x8d6   :  { %v11736_v0 = vpop.permute.xlu2 %5960  ;;  %v11773_v41 = vperm.slane %v4979_v4, %v7297_v21  ;;  %v11777_v23 = vperm.slane %v5091_v15, %v7297_v21  ;;  %v5150_v42 = vrot.slane %v5107_v58, 4  ;;  %v5127_v36 = vsel %vm1580_vm0, %v11709_v11, %v5126_v18 }
 0x8d7   :  { %v5921_v29 = vpop.permute.xlu1 %5920  ;;  %v5148_v5 = vrot.slane %v5131_v52, 4  ;;  %v5054_v31 = vrot.slane %v12982_v2, 4  ;;  %v11811_v9 = vperm.slane %v5079_v20, %v7297_v21  ;;  %v5103_v10 = vsel %vm1580_vm0, %v11703_v39, %v5102_v28 }
 0x8d8   :  { %v6424_v1 = vsel %vm12985_vm7, %v6422_v33, %v5921_v29  ;;  %v5024_v47 = vrot.slane %v11773_v41, 4  ;;  %v4942_v37 = vrot.slane %v12976_v27, 4  ;;  %v5042_v6 = vrot.slane %v4999_v26, 4 }
 0x8d9   :  { %v6426_v50 = vsel %vm12986_vm8, %v6424_v1, %v5929_v61  ;;  %v4966_v61 = vrot.slane %v12967_v53, 4  ;;  %v5136_v53 = vrot.slane %v11777_v23, 4  ;;  %v5111_v45 = vperm.slane %v5103_v10, %v7619_v57 }
 0x8da   :  { %v6428_v33 = vsel %vm12987_vm1, %v6426_v50, %v11645_v60  ;;  %v4827_v60 = vsel %vm1580_vm0, %v11675_v17, %v4826_v16  ;;  %v5066_v17 = vrot.slane %v12974_v7, 4  ;;  %v5015_v7 = vsel %vm1580_vm0, %v11651_v56, %v5014_v46 }
 0x8db   :  { %6110 = vrot.lane.b32.xlu0 %v5037_v62, %s12988_s9  ;;  %v4967_v2 = vsel %vm1580_vm0, %v12963_v51, %v4966_v61  ;;  %v5039_v56 = vsel %vm1580_vm0, %v11715_v24, %v5038_v32  ;;  %v5023_v29 = vperm.slane %v5015_v7, %v7619_v57  ;;  %v4963_v24 = vperm.slane %v4955_v34, %v7297_v21 }
 0x8dc   :  { %6104 = vrot.lane.b32.xlu2 %v4939_v38, %s12989_s12  ;;  %v5067_v3 = vsel %vm1580_vm0, %v12968_v25, %v5066_v17  ;;  %v5135_v25 = vperm.slane %v5127_v36, %v7619_v57  ;;  %v4975_v35 = vperm.slane %v4967_v2, %v7297_v21  ;;  %v5137_v43 = vsel %vm1580_vm0, %v5136_v53, %v11811_v9 }
 0x8dd   :  { %v5943_v13 = vpop.permute.xlu0 %5942  ;;  %6102 = vrot.lane.b32.xlu1 %v4827_v60, %s12989_s12  ;;  %v11808_v51 = vperm.slane %v5067_v3, %v7297_v21  ;;  %v5055_v62 = vsel %vm1580_vm0, %v12977_v48, %v5054_v31  ;;  %v5040_v49 = vrot.slane %v5023_v29, 4  ;;  %v5000_v4 = vrot.slane %v4963_v24, 4 }
 0x8de   :  { %v11769_v55 = vpop.permute.xlu2 %5974  ;;  %v5152_v12 = vrot.slane %v5135_v25, 4  ;;  %v5025_v38 = vsel %vm1580_vm0, %v5024_v47, %v4975_v35  ;;  %v5043_v15 = vsel %vm1580_vm0, %v5023_v29, %v5042_v6  ;;  %v5143_v60 = vperm.slane %v5137_v43, %v7619_v57 }
 0x8df   :  { %v5935_v8 = vpop.permute.xlu1 %5934  ;;  %v5112_v39 = vrot.slane %v11808_v51, 4  ;;  %vm12996_vm7 = vcmask 605184   ;;  %v5026_v46 = vrot.slane %v4975_v35, 4  ;;  %vm13000_vm1 = vcmask 621568  }
 0x8e0   :  { %v6427_v14 = vsel %vm12990_vm2, %v6425_v30, %v5935_v8  ;;  %v5151_v30 = vsel %vm1580_vm0, %v5131_v52, %v5150_v42  ;;  %v5031_v52 = vperm.slane %v5025_v38, %v7619_v57  ;;  %v5156_v17 = vrot.slane %v5143_v60, 4  ;;  %vm12999_vm8 = vmmov %vm12996_vm7 }
 0x8e1   :  { %v6429_v59 = vsel %vm12991_vm3, %v6427_v14, %v5943_v13  ;;  %v5041_v13 = vsel %vm1580_vm0, %v5040_v49, %v4999_v26  ;;  %v5027_v42 = vsel %vm1580_vm0, %v11773_v41, %v5026_v46  ;;  %v5154_v61 = vrot.slane %v5111_v45, 4  ;;  %vm13003_vm3 = vmmov %vm13000_vm1 }
 0x8e2   :  { %v6431_v11 = vsel %vm12992_vm4, %v6429_v59, %v11691_v19  ;;  %v5149_v19 = vsel %vm1580_vm0, %v5148_v5, %v5107_v58  ;;  %v4943_v58 = vsel %vm1580_vm0, %v12964_v54, %v4942_v37  ;;  %v5153_v54 = vsel %vm1580_vm0, %v5152_v12, %v5111_v45 }
 0x8e3   :  { %6120 = vrot.lane.b32.xlu0 %v5151_v30, %s12993_s0  ;;  %v4951_v34 = vperm.slane %v4943_v58, %v7297_v21  ;;  %v5044_v14 = vrot.slane %v5031_v52, 4  ;;  %v5035_v59 = vperm.slane %v5027_v42, %v7619_v57  ;;  %vm13001_vm2 = vcmask 637952  }
 0x8e4   :  { %6118 = vrot.lane.b32.xlu2 %v5039_v56, %s12993_s0  ;;  %v5155_v20 = vsel %vm1580_vm0, %v5135_v25, %v5154_v61  ;;  %v5138_v47 = vrot.slane %v11811_v9, 4  ;;  %vm13004_vm4 = vmmov %vm13001_vm2 }
 0x8e5   :  { %v5953_v1 = vpop.permute.xlu0 %5952  ;;  %6112 = vrot.lane.b32.xlu1 %v5149_v19, %s12988_s9  ;;  %v5001_v8 = vsel %vm1580_vm0, %v5000_v4, %v4951_v34  ;;  %v5002_v3 = vrot.slane %v4951_v34, 4  ;;  %v5048_v53 = vrot.slane %v5035_v59, 4 }
 0x8e6   :  { %v11816_v40 = vpop.permute.xlu2 %5984  ;;  %v5007_v36 = vperm.slane %v5001_v8, %v7619_v57  ;;  %v5139_v35 = vsel %vm1580_vm0, %v11777_v23, %v5138_v47 }
 0x8e7   :  { %v5945_v50 = vpop.permute.xlu1 %5944  ;;  %v5147_v6 = vperm.slane %v5139_v35, %v7619_v57 }
 0x8e8   :  { %v6430_v16 = vsel %vm12994_vm5, %v6428_v33, %v5945_v50  ;;  %v5063_v33 = vperm.slane %v5055_v62, %v7297_v21  ;;  %v5045_v41 = vsel %vm1580_vm0, %v5044_v14, %v5007_v36  ;;  %v5046_v10 = vrot.slane %v5007_v36, 4 }
 0x8e9   :  { %v6432_v27 = vsel %vm12995_vm6, %v6430_v16, %v5953_v1  ;;  %vm13005_vm5 = vcmask 654336   ;;  %v5160_v16 = vrot.slane %v5147_v6, 4 }
 0x8ea   :  { %v6434_v48 = vsel %vm12996_vm7, %v6432_v27, %v11736_v0  ;;  %v5113_v0 = vsel %vm1580_vm0, %v5112_v39, %v5063_v33  ;;  %v5114_v56 = vrot.slane %v5063_v33, 4  ;;  %vm13007_vm6 = vmmov %vm13005_vm5  ;;  %vm13008_vm7 = vcmask 670720  }
 0x8eb   :  { %6134 = vrot.lane.b32.xlu0 %v5043_v15, %s12997_s14  ;;  %v5119_v5 = vperm.slane %v5113_v0, %v7619_v57 }
 0x8ec   :  { %6128 = vrot.lane.b32.xlu2 %v5153_v54, %s12998_s15  ;;  %v5115_v29 = vsel %vm1580_vm0, %v11808_v51, %v5114_v56  ;;  %v5047_v51 = vsel %vm1580_vm0, %v5031_v52, %v5046_v10 }
 0x8ed   :  { %v5967_v18 = vpop.permute.xlu0 %5966  ;;  %6126 = vrot.lane.b32.xlu1 %v5041_v13, %s12998_s15  ;;  %v5157_v31 = vsel %vm1580_vm0, %v5156_v17, %v5119_v5  ;;  %v5158_v1 = vrot.slane %v5119_v5, 4  ;;  %v5123_v50 = vperm.slane %v5115_v29, %v7619_v57 }
 0x8ee   :  { %v5999_v32 = vpop.permute.xlu2 %5998 }
 0x8ef   :  { %v5959_v63 = vpop.permute.xlu1 %5958  ;;  %v5159_v37 = vsel %vm1580_vm0, %v5143_v60, %v5158_v1  ;;  %v5161_v27 = vsel %vm1580_vm0, %v5160_v16, %v5123_v50 }
 0x8f0   :  { %v6433_v21 = vsel %vm12999_vm8, %v6431_v11, %v5959_v63  ;;  %v5003_v11 = vsel %vm1580_vm0, %v4963_v24, %v5002_v3  ;;  %vm13009_vm8 = vcmask 687104  }
 0x8f1   :  { %v6435_v26 = vsel %vm13000_vm1, %v6433_v21, %v5967_v18  ;;  %v5011_v19 = vperm.slane %v5003_v11, %v7619_v57  ;;  %vm13010_vm1 = vmmov %vm13008_vm7 }
 0x8f2   :  { %v6437_v7 = vsel %vm13001_vm2, %v6435_v26, %v11769_v55  ;;  %vm13011_vm2 = vmmov %vm13009_vm8 }
 0x8f3   :  { %6144 = vrot.lane.b32.xlu0 %v5157_v31, %s13002_s16  ;;  %v5049_v24 = vsel %vm1580_vm0, %v5048_v53, %v5011_v19  ;;  %v5050_v38 = vrot.slane %v5011_v19, 4 }
 0x8f4   :  { %6142 = vrot.lane.b32.xlu2 %v5045_v41, %s13002_s16 }
 0x8f5   :  { %v5977_v30 = vpop.permute.xlu0 %5976  ;;  %6136 = vrot.lane.b32.xlu1 %v5155_v20, %s12997_s14  ;;  %v5051_v57 = vsel %vm1580_vm0, %v5035_v59, %v5050_v38 }
 0x8f6   :  { %v6009_v2 = vpop.permute.xlu2 %6008 }
 0x8f7   :  { %v5969_v55 = vpop.permute.xlu1 %5968 }
 0x8f8   :  { %v6436_v28 = vsel %vm13003_vm3, %v6434_v48, %v5969_v55  ;;  %vm13012_vm3 = vcmask 703488  }
 0x8f9   :  { %v6438_v25 = vsel %vm13004_vm4, %v6436_v28, %v5977_v30  ;;  %vm13014_vm4 = vcmask 719872  }
 0x8fa   :  { %v6440_v9 = vsel %vm13005_vm5, %v6438_v25, %v11816_v40  ;;  %v5162_v40 = vrot.slane %v5123_v50, 4  ;;  %vm13015_vm5 = vcmask 736256  }
 0x8fb   :  { %6158 = vrot.lane.b32.xlu0 %v5049_v24, %s6987_s11 }
 0x8fc   :  { %6152 = vrot.lane.b32.xlu2 %v5159_v37, %s13006_s17  ;;  %v5163_v58 = vsel %vm1580_vm0, %v5147_v6, %v5162_v40  ;;  %vm13013_vm0 = vmmov %vm13012_vm3 }
 0x8fd   :  { %v5991_v12 = vpop.permute.xlu0 %5990  ;;  %6150 = vrot.lane.b32.xlu1 %v5047_v51, %s13006_s17 }
 0x8fe   :  { %v6023_v23 = vpop.permute.xlu2 %6022 }
 0x8ff   :  { %v5983_v43 = vpop.permute.xlu1 %5982 }
 0x900   :  { %v6439_v62 = vsel %vm13007_vm6, %v6437_v7, %v5983_v43  ;;  %vm13016_vm6 = vmmov %vm13014_vm4 }
 0x901   :  { %v6441_v49 = vsel %vm13008_vm7, %v6439_v62, %v5991_v12  ;;  %vm13017_vm7 = vmmov %vm13015_vm5 }
 0x902   :  { %v6443_v39 = vsel %vm13009_vm8, %v6441_v49, %v5999_v32  ;;  %vm13018_vm8 = vcmask 752640  }
 0x903   :  { %6168 = vrot.lane.b32.xlu0 %v5163_v58, %s6989_s10 }
 0x904   :  { %6166 = vrot.lane.b32.xlu2 %v5051_v57, %s6989_s10 }
 0x905   :  { %v6001_v45 = vpop.permute.xlu0 %6000  ;;  %6160 = vrot.lane.b32.xlu1 %v5161_v27, %s6987_s11 }
 0x906   :  { %v6033_v4 = vpop.permute.xlu2 %6032 }
 0x907   :  { %v5993_v15 = vpop.permute.xlu1 %5992 }
 0x908   :  { %v6442_v60 = vsel %vm13010_vm1, %v6440_v9, %v5993_v15  ;;  %vm13019_vm1 = vmmov %vm13018_vm8 }
 0x909   :  { %v6444_v48 = vsel %vm13011_vm2, %v6442_v60, %v6001_v45  ;;  %vm13020_vm2 = vcmask 769024  }
 0x90a   :  { %v6446_v33 = vsel %vm13012_vm3, %v6444_v48, %v6009_v2  ;;  %vm13021_vm3 = vcmask 785408  }
 0x90c   :  { %6505 = vrot.lane.b32.xlu2 %v10846_v22, %s12870_s13 }
 0x90d   :  { %v6015_v54 = vpop.permute.xlu0 %6014  ;;  %6503 = vrot.lane.b32.xlu1 %v10797_v44, %s12870_s13 }
 0x90e   :  { %v6047_v52 = vpop.permute.xlu2 %6046 }
 0x90f   :  { %v6007_v34 = vpop.permute.xlu1 %6006 }
 0x910   :  { %v6445_v13 = vsel %vm13013_vm0, %v6443_v39, %v6007_v34  ;;  %vm13022_vm0 = vmmov %vm13020_vm2 }
 0x911   :  { %v6447_v46 = vsel %vm13014_vm4, %v6445_v13, %v6015_v54  ;;  %vm13023_vm4 = vmmov %vm13021_vm3 }
 0x912   :  { %v6449_v18 = vsel %vm13015_vm5, %v6447_v46, %v6023_v23  ;;  %vm13024_vm5 = vcmask 801792  }
 0x914   :  { %6491 = vrot.lane.b32.xlu2 %v10797_v44, %s6943_s27 }
 0x915   :  { %v6025_v0 = vpop.permute.xlu0 %6024 }
 0x916   :  { %v6057_v32 = vpop.permute.xlu2 %6056 }
 0x917   :  { %v6017_v17 = vpop.permute.xlu1 %6016 }
 0x918   :  { %v6448_v8 = vsel %vm13016_vm6, %v6446_v33, %v6017_v17  ;;  %vm13025_vm6 = vmmov %vm13024_vm5 }
 0x919   :  { %v6450_v42 = vsel %vm13017_vm7, %v6448_v8, %v6025_v0  ;;  %vm13026_vm7 = vcmask 818176  }
 0x91a   :  { %v6452_v63 = vsel %vm13018_vm8, %v6450_v42, %v6033_v4  ;;  %vm13027_vm8 = vcmask 834560  }
 0x91c   :  { %6516 = vrot.lane.b32.xlu2 %v10846_v22, %s12950_s2 }
 0x91d   :  { %v6039_v14 = vpop.permute.xlu0 %6038 }
 0x91e   :  { %v6071_v21 = vpop.permute.xlu2 %6070 }
 0x91f   :  { %v6031_v5 = vpop.permute.xlu1 %6030 }
 0x920   :  { %v6451_v26 = vsel %vm13019_vm1, %v6449_v18, %v6031_v5  ;;  %vm13028_vm1 = vmmov %vm13026_vm7 }
 0x921   :  { %v6453_v36 = vsel %vm13020_vm2, %v6451_v26, %v6039_v14  ;;  %vm13029_vm2 = vmmov %vm13027_vm8 }
 0x922   :  { %v6455_v31 = vsel %vm13021_vm3, %v6453_v36, %v6047_v52  ;;  %vm13030_vm3 = vcmask 850944  }
 0x925   :  { %v6049_v61 = vpop.permute.xlu0 %6048 }
 0x926   :  { %v6081_v59 = vpop.permute.xlu2 %6080 }
 0x927   :  { %v6041_v7 = vpop.permute.xlu1 %6040 }
 0x928   :  { %v6454_v3 = vsel %vm13022_vm0, %v6452_v63, %v6041_v7  ;;  %vm13031_vm0 = vmmov %vm13030_vm3 }
 0x929   :  { %v6456_v41 = vsel %vm13023_vm4, %v6454_v3, %v6049_v61  ;;  %vm13032_vm4 = vcmask 867328  }
 0x92a   :  { %v6458_v20 = vsel %vm13024_vm5, %v6456_v41, %v6057_v32  ;;  %vm13033_vm5 = vcmask 883712  }
 0x92d   :  { %v6063_v30 = vpop.permute.xlu0 %6062 }
 0x92e   :  { %v6095_v11 = vpop.permute.xlu2 %6094 }
 0x92f   :  { %v6055_v2 = vpop.permute.xlu1 %6054 }
 0x930   :  { %v6457_v53 = vsel %vm13025_vm6, %v6455_v31, %v6055_v2  ;;  %vm13034_vm6 = vcmask 900096  }
 0x931   :  { %v6459_v56 = vsel %vm13026_vm7, %v6457_v53, %v6063_v30  ;;  %vm13035_vm7 = vmmov %vm13032_vm4 }
 0x932   :  { %v6461_v47 = vsel %vm13027_vm8, %v6459_v56, %v6071_v21  ;;  %vm13036_vm8 = vcmask 916480  }
 0x935   :  { %v6073_v55 = vpop.permute.xlu0 %6072 }
 0x936   :  { %v6105_v28 = vpop.permute.xlu2 %6104 }
 0x937   :  { %v6065_v19 = vpop.permute.xlu1 %6064 }
 0x938   :  { %v6460_v29 = vsel %vm13028_vm1, %v6458_v20, %v6065_v19  ;;  %vm13037_vm1 = vmmov %vm13033_vm5 }
 0x939   :  { %v6462_v25 = vsel %vm13029_vm2, %v6460_v29, %v6073_v55  ;;  %vm13038_vm2 = vcmask 932864  }
 0x93a   :  { %v6464_v1 = vsel %vm13030_vm3, %v6462_v25, %v6081_v59  ;;  %vm13039_vm3 = vmmov %vm13034_vm6 }
 0x93d   :  { %v6087_v35 = vpop.permute.xlu0 %6086 }
 0x93e   :  { %v6119_v24 = vpop.permute.xlu2 %6118 }
 0x93f   :  { %v6079_v10 = vpop.permute.xlu1 %6078 }
 0x940   :  { %v6463_v40 = vsel %vm13031_vm0, %v6461_v47, %v6079_v10  ;;  %vm13040_vm0 = vmmov %vm13036_vm8 }
 0x941   :  { %v6465_v49 = vsel %vm13032_vm4, %v6463_v40, %v6087_v35  ;;  %vm6497_vm4 = vcmask 523520  }
 0x942   :  { %v6467_v39 = vsel %vm13033_vm5, %v6465_v49, %v6095_v11  ;;  %vm13041_vm5 = vmmov %vm13038_vm2 }
 0x945   :  { %v6097_v9 = vpop.permute.xlu0 %6096 }
 0x946   :  { %v6129_v37 = vpop.permute.xlu2 %6128 }
 0x947   :  { %v6089_v51 = vpop.permute.xlu1 %6088 }
 0x948   :  { %v6466_v27 = vsel %vm13035_vm7, %v6464_v1, %v6089_v51  ;;  %vm6509_vm7 = vcmask 1048320  }
 0x949   :  { %v6468_v15 = vsel %vm13037_vm1, %v6466_v27, %v6097_v9 }
 0x94a   :  { %v6470_v54 = vsel %vm13039_vm3, %v6468_v15, %v6105_v28 }
 0x94d   :  { %v6111_v50 = vpop.permute.xlu0 %6110 }
 0x94e   :  { %v6143_v6 = vpop.permute.xlu2 %6142 }
 0x94f   :  { %v6103_v12 = vpop.permute.xlu1 %6102 }
 0x950   :  { %v6469_v57 = vsel %vm13034_vm6, %v6467_v39, %v6103_v12  ;;  %vm6500_vm6 = vcmask 785920  }
 0x951   :  { %v6471_v45 = vsel %vm13036_vm8, %v6469_v57, %v6111_v50 }
 0x952   :  { %v6473_v33 = vsel %vm13038_vm2, %v6471_v45, %v6119_v24 }
 0x955   :  { %v6121_v23 = vpop.permute.xlu0 %6120 }
 0x956   :  { %v6153_v43 = vpop.permute.xlu2 %6152 }
 0x957   :  { %v6113_v62 = vpop.permute.xlu1 %6112 }
 0x958   :  { %v6472_v34 = vsel %vm13040_vm0, %v6470_v54, %v6113_v62 }
 0x959   :  { %v6474_v46 = vsel %vm13041_vm5, %v6472_v34, %v6121_v23 }
 0x95a   :  { %v6476_v8 = vsel %vm6343_vm11, %v6474_v46, %v6129_v37 }
 0x95d   :  { %v6135_v16 = vpop.permute.xlu0 %6134 }
 0x95e   :  { %v6167_v38 = vpop.permute.xlu2 %6166 }
 0x95f   :  { %v6127_v58 = vpop.permute.xlu1 %6126 }
 0x960   :  { %v6475_v52 = vsel %vm6343_vm11, %v6473_v33, %v6127_v58 }
 0x961   :  { %v6477_v13 = vsel %vm6346_vm10, %v6475_v52, %v6135_v16 }
 0x962   :  { %v6479_v32 = vsel %vm6349_vm13, %v6477_v13, %v6143_v6 }
 0x965   :  { %v6145_v4 = vpop.permute.xlu0 %6144 }
 0x966   :  { %v6506_v60 = vpop.permute.xlu2 %6505 }
 0x967   :  { %6513 = vst.msk [vmem:[#allocation5 + $0x28] sm:$0xff] %vm6217_vm12, %v6506_v60  ;;  %v6137_v48 = vpop.permute.xlu1 %6136 }
 0x968   :  { %v6478_v63 = vsel %vm6346_vm10, %v6476_v8, %v6137_v48 }
 0x969   :  { %v6480_v5 = vsel %vm6349_vm13, %v6478_v63, %v6145_v4 }
 0x96a   :  { %v6482_v36 = vsel %vm6352_vm14, %v6480_v5, %v6153_v43 }
 0x96d   :  { %v6159_v18 = vpop.permute.xlu0 %6158 }
 0x96e   :  { %v6492_v0 = vpop.permute.xlu2 %6491 }
 0x96f   :  { %6498 = vst.msk [vmem:[#allocation5] sm:$0xff] %vm6497_vm4, %v6492_v0  ;;  %v6151_v17 = vpop.permute.xlu1 %6150 }
 0x970   :  { %6501 = vst.msk [vmem:[#allocation5] sm:$0xff] %vm6500_vm6, %v6492_v0  ;;  %v6481_v42 = vsel %vm6352_vm14, %v6479_v32, %v6151_v17 }
 0x971   :  { %v6483_v14 = vsel %vm6355_vm15, %v6481_v42, %v6159_v18 }
 0x972   :  { %v6485_v21 = vsel %vm6358_vm9, %v6483_v14, %v6167_v38 }
 0x973   :  { %6550 = vrot.lane.b32.xlu2 %v6485_v21, %s12950_s2  ;;  %6526 = vst.msk [vmem:[#allocation5 + $0x10] sm:$0xff] %vm6217_vm12, %v6485_v21  ;;  %6540 = vrot.lane.b32.xlu0 %v6485_v21, %s12870_s13 }
 0x975   :  { %v6169_v61 = vpop.permute.xlu0 %6168 }
 0x976   :  { %v6517_v26 = vpop.permute.xlu2 %6516 }
 0x977   :  { %6521 = vst.msk [vmem:[#allocation5 + $0x28] sm:$0xff] %vm6497_vm4, %v6517_v26  ;;  %v6161_v31 = vpop.permute.xlu1 %6160 }
 0x978   :  { %6523 = vst.msk [vmem:[#allocation5 + $0x28] sm:$0xff] %vm6500_vm6, %v6517_v26  ;;  %v6484_v59 = vsel %vm6355_vm15, %v6482_v36, %v6161_v31 }
 0x979   :  { %6525 = vst.msk [vmem:[#allocation5 + $0x28] sm:$0xff] %vm6509_vm7, %v10846_v22  ;;  %v6486_v7 = vsel %vm6358_vm9, %v6484_v59, %v6169_v61 }
 0x97a   :  { %6527 = vst.msk [vmem:[#allocation5 + $0x30] sm:$0xff] %vm6217_vm12, %v6486_v7  ;;  %6542 = vrot.lane.b32.xlu1 %v6486_v7, %s12870_s13  ;;  %s6568_s13 = sshll.u32 %s11988_s1, 4  ;;  %s6569_s13 = int_to_ptr.hbm [resolvable:$true] %s6568_s13 }
 0x97b   :  { %6493 = vrot.lane.b32.xlu0 %v10846_v22, %s6943_s27 }
 0x97f   :  { %v6504_v3 = vpop.permute.xlu1 %6503 }
 0x980   :  { %6510 = vst.msk [vmem:[#allocation5] sm:$0xff] %vm6509_vm7, %v6504_v3 }
 0x981   :  { %6512 = vst.msk [vmem:[#allocation5 + $0x8] sm:$0xff] %vm6217_vm12, %v6504_v3 }
 0x982   :  { %6514 = vrot.lane.b32.xlu1 %v10797_v44, %s12950_s2 }
 0x983   :  { %6530 = vrot.lane.b32.xlu0 %v6485_v21, %s6943_s27 }
 0x98a   :  { %6532 = vrot.lane.b32.xlu1 %v6486_v7, %s6943_s27 }
 0x98b   :  { %6552 = vrot.lane.b32.xlu0 %v6486_v7, %s12950_s2 }
 0x9cd   :  { %v6551_v20 = vpop.permute.xlu2 %6550 }
 0x9e5   :  { %v6541_v41 = vpop.permute.xlu0 %6540 }
 0x9e6   :  { %6548 = vst.msk [vmem:[#allocation5 + $0x18] sm:$0xff] %vm6217_vm12, %v6541_v41 }
 0x9e7   :  { %6556 = vst.msk [vmem:[#allocation5 + $0x18] sm:$0xff] %vm6497_vm4, %v6551_v20 }
 0x9e8   :  { %6558 = vst.msk [vmem:[#allocation5 + $0x18] sm:$0xff] %vm6500_vm6, %v6551_v20 }
 0x9e9   :  { %6560 = vst.msk [vmem:[#allocation5 + $0x18] sm:$0xff] %vm6509_vm7, %v6485_v21 }
 0x9ec   :  { %v6543_v22 = vpop.permute.xlu1 %6542 }
 0x9ed   :  { %6549 = vst.msk [vmem:[#allocation5 + $0x38] sm:$0xff] %vm6217_vm12, %v6543_v22  ;;  %v6494_v30 = vpop.permute.xlu0 %6493 }
 0x9ee   :  { %6499 = vst.msk [vmem:[#allocation5 + $0x20] sm:$0xff] %vm6497_vm4, %v6494_v30 }
 0x9ef   :  { %6502 = vst.msk [vmem:[#allocation5 + $0x20] sm:$0xff] %vm6500_vm6, %v6494_v30 }
 0x9f0   :  { %6511 = vst.msk [vmem:[#allocation5 + $0x20] sm:$0xff] %vm6509_vm7, %v6506_v60 }
 0x9f4   :  { %v6515_v11 = vpop.permute.xlu1 %6514 }
 0x9f5   :  { %6520 = vst.msk [vmem:[#allocation5 + $0x8] sm:$0xff] %vm6497_vm4, %v6515_v11  ;;  %v6531_v2 = vpop.permute.xlu0 %6530 }
 0x9f6   :  { %6522 = vst.msk [vmem:[#allocation5 + $0x8] sm:$0xff] %vm6500_vm6, %v6515_v11 }
 0x9f7   :  { %6524 = vst.msk [vmem:[#allocation5 + $0x8] sm:$0xff] %vm6509_vm7, %v10797_v44 }
 0x9f8   :  { %6536 = vst.msk [vmem:[#allocation5 + $0x10] sm:$0xff] %vm6497_vm4, %v6531_v2 }
 0x9f9   :  { %6538 = vst.msk [vmem:[#allocation5 + $0x10] sm:$0xff] %vm6500_vm6, %v6531_v2 }
 0x9fa   :  { %6546 = vst.msk [vmem:[#allocation5 + $0x10] sm:$0xff] %vm6509_vm7, %v6541_v41 }
 0x9fc   :  { %v6533_v53 = vpop.permute.xlu1 %6532 }
 0x9fd   :  { %6537 = vst.msk [vmem:[#allocation5 + $0x30] sm:$0xff] %vm6497_vm4, %v6533_v53  ;;  %v6553_v56 = vpop.permute.xlu0 %6552 }
 0x9fe   :  { %6539 = vst.msk [vmem:[#allocation5 + $0x30] sm:$0xff] %vm6500_vm6, %v6533_v53 }
 0x9ff   :  { %6547 = vst.msk [vmem:[#allocation5 + $0x30] sm:$0xff] %vm6509_vm7, %v6543_v22 }
 0xa00   :  { %6557 = vst.msk [vmem:[#allocation5 + $0x38] sm:$0xff] %vm6497_vm4, %v6553_v56 }
 0xa01   :  { %6559 = vst.msk [vmem:[#allocation5 + $0x38] sm:$0xff] %vm6500_vm6, %v6553_v56 }
 0xa02   :  { %6561 = vst.msk [vmem:[#allocation5 + $0x38] sm:$0xff] %vm6509_vm7, %v6486_v7 }
 0xa03   :  { %6574 = dma.vmem_to_hbm [thread:$0]  %s6567_s19, 1024, %s6569_s13, [#allocation4], %s6991_s20, %s6991_s20, %s6943_s27  }
 0xa04   :  { %6921 = dma.done.wait [#allocation4], 1024  }
 0xa05   :  { %6922 = vsyncadd [#allocation4], 4294966272 }
 0xa06   :  { %6579 = vsyncpa [#allocation3], 1 }
 0xa07   :  { %6580 = vsyncpa [#allocation4], 1 }

</bundles_post_ra>
